<compile_context>
chip_gen: v6e
topology: v6e:2x2x1
jax: 0.10.0
libtpu: 0.0.40
codegen_flags: <defaults>
</compile_context>

<pallas_src>
import functools

import jax
import jax.numpy as jnp
from jax import lax
from jax.experimental import pallas as pl
from jax.experimental.pallas import tpu as pltpu

H = 392            # input height (forced by the MaxPool2d kernel sizes)
W = 392            # input width == conv kernel width (convs fully reduce W)
NUM_KERNELS = 4    # num_kernels (small deterministic synthetic config)
NUM_GROUPS = 12    # 1 + 4 + 7 conv kernel rows packed into one weight matrix
HOUT4 = H - 3      # conv4 output height (389)
HOUT7 = H - 6      # conv7 output height (386)


def component3_kernel(x_ref, w_ref, b1_ref, b4_ref, b7_ref,
                      wfc1_ref, bfc1_ref, wfc_ref, bfc_ref, o_ref):
    Bt = x_ref.shape[0]
    C = w_ref.shape[0]                 # 12K packed conv-kernel rows
    K = C // NUM_GROUPS

    # Cast the image block to bf16 in VMEM (HBM only ever sees the f32 input
    # once) and run ONE batched NT matmul: the result already has the
    # conv-output height h on the lane axis -> lane-dense epilogue.
    x_bf16 = x_ref[...].astype(jnp.bfloat16)                      # (Bt, H, W)
    w_b = jnp.broadcast_to(w_ref[...], (Bt, C, W))                # (Bt, 12K, W)
    yt = jnp.einsum("bcw,bhw->bch", w_b, x_bf16,
                    preferred_element_type=jnp.float32)           # (Bt, 12K, H)

    def grp(g):                                                   # (Bt, K, H)
        return yt[:, g * K:(g + 1) * K, :]

    # conv1 (kh=1): its single kernel row is already the conv output.
    acc1 = grp(0)

    # conv4 (kh=4) / conv7 (kh=7): shifted adds as static lane slices inside
    # each image (tree-balanced so the serial VALU chain stays short).
    acc4 = ((grp(1)[:, :, 0:HOUT4] + grp(2)[:, :, 1:1 + HOUT4])
            + (grp(3)[:, :, 2:2 + HOUT4] + grp(4)[:, :, 3:3 + HOUT4]))
    acc7 = (((grp(5)[:, :, 0:HOUT7] + grp(6)[:, :, 1:1 + HOUT7])
             + (grp(7)[:, :, 2:2 + HOUT7] + grp(8)[:, :, 3:3 + HOUT7]))
            + ((grp(9)[:, :, 4:4 + HOUT7] + grp(10)[:, :, 5:5 + HOUT7])
               + grp(11)[:, :, 6:6 + HOUT7]))

    # MaxPool spans the whole conv-output height and the bias is a per-channel
    # constant, so with tanh monotone: max_h tanh(a + b) == tanh(max_h a + b).
    f1 = jnp.tanh(jnp.max(acc1, axis=2) + b1_ref[...])            # (Bt, K)
    f4 = jnp.tanh(jnp.max(acc4, axis=2) + b4_ref[...])
    f7 = jnp.tanh(jnp.max(acc7, axis=2) + b7_ref[...])

    # FC head, batched over the image block.  Feature order [f1 | f4 | f7];
    # fc1 columns were permuted in the wrapper to match PyTorch's interleaved
    # flatten order (input index = 3*k + j).
    feats = jnp.concatenate([f1, f4, f7], axis=1)                 # (Bt, 3K)
    h1 = jnp.tanh(jnp.dot(feats, wfc1_ref[...],
                          preferred_element_type=jnp.float32) + bfc1_ref[...])
    # TODO(synk): training-mode NoiseLayer / Dropout / Dropout2d are identity
    # at inference and are not implemented here.
    # Final FC as an NT matmul so the logits come out as a lane-dense (1, Bt)
    # row that is stored directly.
    logit = lax.dot_general(wfc_ref[...], h1, (((1,), (1,)), ((), ())),
                            preferred_element_type=jnp.float32) + bfc_ref[...]
    out = 1.0 / (1.0 + jnp.exp(-logit))                           # sigmoid, (1, Bt)
    o_ref[...] = out.reshape(1, 1, Bt)


def _const_spec(shape):
    return pl.BlockSpec(shape, lambda b: tuple(0 for _ in shape))


@functools.partial(jax.jit, static_argnames=("block_b",))
def component3_cnn(x, w_rows, b1, b4, b7, wfc1t, bfc1, wfc, bfc, *, block_b=8):
    """x: (B, 1, H, W) float32 NCHW, like the PyTorch module.  Returns (B, 1).

    block_b tuning (per review): keep nsteps >= 2 so both v7x TensorCores get
    work (block_b <= B // 2 and scoped VMEM < 64 MiB); on v5e / v6e (128 MiB
    VMEM) block_b = 16..32 amortizes per-step overhead for large batches.
    """
    B = x.shape[0]
    xs = x.reshape(B, H, W)          # drop the channel dim; metadata-only, stays f32
    b_pad = ((B + block_b - 1) // block_b) * block_b
    if b_pad != B:
        # Rare ragged-batch path (one extra HBM pass); prefer block_b | B.
        xs = jnp.pad(xs, ((0, b_pad - B), (0, 0), (0, 0)))
    nsteps = b_pad // block_b

    out = pl.pallas_call(
        component3_kernel,
        out_shape=jax.ShapeDtypeStruct((nsteps, 1, block_b), jnp.float32),
        grid_spec=pltpu.PrefetchScalarGridSpec(
            num_scalar_prefetch=0,
            grid=(nsteps,),
            in_specs=[
                # f32 image block; the bf16 cast happens inside the kernel.
                # (pipeline_mode=pl.Buffered(3) is an option here if a profile
                #  ever shows exposed DMA at small block_b.)
                pl.BlockSpec((block_b, H, W), lambda b: (b, 0, 0)),
                _const_spec(w_rows.shape),
                _const_spec(b1.shape), _const_spec(b4.shape),
                _const_spec(b7.shape),
                _const_spec(wfc1t.shape), _const_spec(bfc1.shape),
                _const_spec(wfc.shape), _const_spec(bfc.shape),
            ],
            out_specs=pl.BlockSpec((1, 1, block_b), lambda b: (b, 0, 0)),
        ),
        compiler_params=pltpu.CompilerParams(
            # Batch axis is parallel so v7x's two TensorCores both get work.
            dimension_semantics=("parallel",),
            # ~16 MiB live at block_b=8; scale scoped VMEM with block_b
            # (48 MiB at block_b=8: above v5e's 16 MiB default scoped limit,
            #  below v7x's 64 MiB physical; ~96 MiB only on v5e/v6e).
            vmem_limit_bytes=min(100, 32 + 2 * block_b) * 1024 * 1024,
        ),
    )(xs, w_rows.astype(jnp.bfloat16), b1, b4, b7, wfc1t, bfc1, wfc, bfc)
    return out.reshape(b_pad, 1)[:B]


def make_params(key, num_kernels):
    """Deterministic synthetic parameters.  Returns (packed-kernel params,
    original PyTorch-shaped params) so the reference can be checked
    independently of the packing / permutation."""
    K = num_kernels
    ks = jax.random.split(key, 10)

    def init(k, shape, fan_in):
        return jax.random.normal(k, shape, jnp.float32) / jnp.sqrt(fan_in)

    torch_p = dict(
        conv1_w=init(ks[0], (K, 1, 1, W), 1 * W), conv1_b=init(ks[1], (K,), 1 * W),
        conv4_w=init(ks[2], (K, 1, 4, W), 4 * W), conv4_b=init(ks[3], (K,), 4 * W),
        conv7_w=init(ks[4], (K, 1, 7, W), 7 * W), conv7_b=init(ks[5], (K,), 7 * W),
        fc1_w=init(ks[6], (K, 3 * K), 3 * K),     fc1_b=init(ks[7], (K,), 3 * K),
        fc_w=init(ks[8], (1, K), K),              fc_b=init(ks[9], (1,), K),
    )

    # Pack all 12 conv kernel rows as ROWS of one (12K, W) matrix.
    # Group order: [conv1 row0 | conv4 rows0..3 | conv7 rows0..6], K channels
    # per group, row index = g*K + k.
    w_rows = jnp.concatenate(
        [torch_p["conv1_w"][:, 0, 0, :]]
        + [torch_p["conv4_w"][:, 0, dh, :] for dh in range(4)]
        + [torch_p["conv7_w"][:, 0, dh, :] for dh in range(7)], axis=0)   # (12K, W)

    b1 = torch_p["conv1_b"].reshape(1, K)
    b4 = torch_p["conv4_b"].reshape(1, K)
    b7 = torch_p["conv7_b"].reshape(1, K)

    # PyTorch flatten of cat(dim=2) gives input index i = 3*k + j (j: which
    # conv branch).  The kernel's feature order is i' = j*K + k -> permute fc1.
    perm = jnp.array([3 * k + j for j in range(3) for k in range(K)], jnp.int32)
    wfc1t = torch_p["fc1_w"][:, perm].T              # (3K, K)
    bfc1 = torch_p["fc1_b"].reshape(1, K)
    wfc = torch_p["fc_w"]                            # (1, K), used as NT lhs
    bfc = torch_p["fc_b"].reshape(1, 1)

    packed = (w_rows, b1, b4, b7, wfc1t, bfc1, wfc, bfc)
    return packed, torch_p


def reference_forward(x, p):
    """Pure-JAX f32 reference with the original PyTorch semantics & parameter
    layout (conv -> tanh -> full-height MaxPool, cat, flatten, fc1, tanh, fc,
    sigmoid) — independent of the kernel's packing / fc1 permutation."""
    xs = x[:, 0].astype(jnp.float32)                 # (B, H, W)
    B = xs.shape[0]

    def branch(w, b):                                # w: (K,1,kh,W), b: (K,)
        kh = w.shape[2]
        hout = H - kh + 1
        acc = jnp.zeros((B, w.shape[0], hout), jnp.float32)
        for dh in range(kh):
            acc = acc + jnp.einsum("bhw,kw->bkh", xs[:, dh:dh + hout, :],
                                   w[:, 0, dh, :],
                                   precision=jax.lax.Precision.HIGHEST)
        acc = acc + b[None, :, None]
        return jnp.max(jnp.tanh(acc), axis=2)        # (B, K)

    m1 = branch(p["conv1_w"], p["conv1_b"])
    m4 = branch(p["conv4_w"], p["conv4_b"])
    m7 = branch(p["conv7_w"], p["conv7_b"])
    # torch.cat(dim=2) of (B,K,1,1) then flatten(start_dim=1): index = 3*k + j.
    feats = jnp.stack([m1, m4, m7], axis=2).reshape(B, -1)        # (B, 3K)
    h = jnp.tanh(feats @ p["fc1_w"].T + p["fc1_b"])
    return jax.nn.sigmoid(h @ p["fc_w"].T + p["fc_b"])


if __name__ == "__main__":
    key = jax.random.PRNGKey(0)
    k_x, k_p = jax.random.split(key)

    # Spatial size 392x392 is forced by the module (conv kernel width 392 and
    # the MaxPool2d heights); keep the batch small.
    B = 16
    x = jax.random.normal(k_x, (B, 1, H, W), jnp.float32)   # NCHW, like PyTorch
    packed, torch_p = make_params(k_p, NUM_KERNELS)

    y = component3_cnn(x, *packed, block_b=8)
    y = jax.block_until_ready(y)

    y_ref = reference_forward(x, torch_p)
    assert y.shape == (B, 1)
    assert bool(jnp.all(jnp.isfinite(y)))
    assert bool(jnp.all((y > 0) & (y < 1)))
    max_err = float(jnp.max(jnp.abs(y - y_ref)))
    assert max_err < 2e-2, f"max abs err vs PyTorch-semantics f32 reference: {max_err}"
    print("KERNEL_OK")
</pallas_src>

<mosaic_0001>
module attributes {stable_mosaic.version = 11 : i64} {
  func.func @component3_kernel(%arg0: i32, %arg1: memref<8x392x392xf32, #tpu.memory_space<vmem>>, %arg2: memref<48x392xbf16, #tpu.memory_space<vmem>>, %arg3: memref<1x4xf32, #tpu.memory_space<vmem>>, %arg4: memref<1x4xf32, #tpu.memory_space<vmem>>, %arg5: memref<1x4xf32, #tpu.memory_space<vmem>>, %arg6: memref<12x4xf32, #tpu.memory_space<vmem>>, %arg7: memref<1x4xf32, #tpu.memory_space<vmem>>, %arg8: memref<1x4xf32, #tpu.memory_space<vmem>>, %arg9: memref<1x1xf32, #tpu.memory_space<vmem>>, %arg10: memref<1x1x8xf32, #tpu.memory_space<vmem>>) attributes {dimension_semantics = [#tpu.dimension_semantics<parallel>], iteration_bounds = array<i64: 2>, scalar_prefetch = 0 : i64, scratch_operands = 0 : i64, tpu.core_type = #tpu.core_type<tc>, window_params = [{transform_indices = @transform_0, window_bounds = array<i64: 8, 392, 392>}, {pipeline_mode = #tpu.pipeline_mode<synchronous>, transform_indices = @transform_1, window_bounds = array<i64: 48, 392>}, {pipeline_mode = #tpu.pipeline_mode<synchronous>, transform_indices = @transform_2, window_bounds = array<i64: 1, 4>}, {pipeline_mode = #tpu.pipeline_mode<synchronous>, transform_indices = @transform_3, window_bounds = array<i64: 1, 4>}, {pipeline_mode = #tpu.pipeline_mode<synchronous>, transform_indices = @transform_4, window_bounds = array<i64: 1, 4>}, {pipeline_mode = #tpu.pipeline_mode<synchronous>, transform_indices = @transform_5, window_bounds = array<i64: 12, 4>}, {pipeline_mode = #tpu.pipeline_mode<synchronous>, transform_indices = @transform_6, window_bounds = array<i64: 1, 4>}, {pipeline_mode = #tpu.pipeline_mode<synchronous>, transform_indices = @transform_7, window_bounds = array<i64: 1, 4>}, {pipeline_mode = #tpu.pipeline_mode<synchronous>, transform_indices = @transform_8, window_bounds = array<i64: 1, 1>}, {transform_indices = @transform_9, window_bounds = array<i64: 1, 1, 8>}]} {
    %c0 = arith.constant 0 : index
    %c0_0 = arith.constant 0 : index
    %c0_1 = arith.constant 0 : index
    %0 = vector.load %arg1[%c0, %c0_0, %c0_1] : memref<8x392x392xf32, #tpu.memory_space<vmem>>, vector<8x392x392xf32>
    %1 = arith.truncf %0 : vector<8x392x392xf32> to vector<8x392x392xbf16>
    %c0_2 = arith.constant 0 : index
    %c0_3 = arith.constant 0 : index
    %2 = vector.load %arg2[%c0_2, %c0_3] : memref<48x392xbf16, #tpu.memory_space<vmem>>, vector<48x392xbf16>
    %3 = vector.shape_cast %2 : vector<48x392xbf16> to vector<1x48x392xbf16>
    %4 = vector.broadcast %3 : vector<1x48x392xbf16> to vector<8x48x392xbf16>
    "tpu.trace_start"() <{level = 10 : i32, message = "bcw,bhw->bch"}> : () -> ()
    %cst = arith.constant dense<0.000000e+00> : vector<8x48x392xf32>
    %5 = tpu.matmul %4, %1, %cst {dimension_numbers = #tpu.dot_dimension_numbers<[2], [2], [1], [1], [0, 0, 0, 1, 1, 1], [0], [0]>} : vector<8x48x392xbf16>, vector<8x392x392xbf16>, vector<8x48x392xf32> -> vector<8x48x392xf32>
    "tpu.trace_stop"() : () -> ()
    %6 = vector.extract_strided_slice %5 {offsets = [0, 0, 0], sizes = [8, 4, 392], strides = [1, 1, 1]} : vector<8x48x392xf32> to vector<8x4x392xf32>
    %7 = vector.extract_strided_slice %5 {offsets = [0, 4, 0], sizes = [8, 4, 392], strides = [1, 1, 1]} : vector<8x48x392xf32> to vector<8x4x392xf32>
    %8 = vector.extract_strided_slice %7 {offsets = [0, 0, 0], sizes = [8, 4, 389], strides = [1, 1, 1]} : vector<8x4x392xf32> to vector<8x4x389xf32>
    %9 = vector.extract_strided_slice %5 {offsets = [0, 8, 0], sizes = [8, 4, 392], strides = [1, 1, 1]} : vector<8x48x392xf32> to vector<8x4x392xf32>
    %10 = vector.extract_strided_slice %9 {offsets = [0, 0, 1], sizes = [8, 4, 389], strides = [1, 1, 1]} : vector<8x4x392xf32> to vector<8x4x389xf32>
    %11 = arith.addf %8, %10 : vector<8x4x389xf32>
    %12 = vector.extract_strided_slice %5 {offsets = [0, 12, 0], sizes = [8, 4, 392], strides = [1, 1, 1]} : vector<8x48x392xf32> to vector<8x4x392xf32>
    %13 = vector.extract_strided_slice %12 {offsets = [0, 0, 2], sizes = [8, 4, 389], strides = [1, 1, 1]} : vector<8x4x392xf32> to vector<8x4x389xf32>
    %14 = vector.extract_strided_slice %5 {offsets = [0, 16, 0], sizes = [8, 4, 392], strides = [1, 1, 1]} : vector<8x48x392xf32> to vector<8x4x392xf32>
    %15 = vector.extract_strided_slice %14 {offsets = [0, 0, 3], sizes = [8, 4, 389], strides = [1, 1, 1]} : vector<8x4x392xf32> to vector<8x4x389xf32>
    %16 = arith.addf %13, %15 : vector<8x4x389xf32>
    %17 = arith.addf %11, %16 : vector<8x4x389xf32>
    %18 = vector.extract_strided_slice %5 {offsets = [0, 20, 0], sizes = [8, 4, 392], strides = [1, 1, 1]} : vector<8x48x392xf32> to vector<8x4x392xf32>
    %19 = vector.extract_strided_slice %18 {offsets = [0, 0, 0], sizes = [8, 4, 386], strides = [1, 1, 1]} : vector<8x4x392xf32> to vector<8x4x386xf32>
    %20 = vector.extract_strided_slice %5 {offsets = [0, 24, 0], sizes = [8, 4, 392], strides = [1, 1, 1]} : vector<8x48x392xf32> to vector<8x4x392xf32>
    %21 = vector.extract_strided_slice %20 {offsets = [0, 0, 1], sizes = [8, 4, 386], strides = [1, 1, 1]} : vector<8x4x392xf32> to vector<8x4x386xf32>
    %22 = arith.addf %19, %21 : vector<8x4x386xf32>
    %23 = vector.extract_strided_slice %5 {offsets = [0, 28, 0], sizes = [8, 4, 392], strides = [1, 1, 1]} : vector<8x48x392xf32> to vector<8x4x392xf32>
    %24 = vector.extract_strided_slice %23 {offsets = [0, 0, 2], sizes = [8, 4, 386], strides = [1, 1, 1]} : vector<8x4x392xf32> to vector<8x4x386xf32>
    %25 = vector.extract_strided_slice %5 {offsets = [0, 32, 0], sizes = [8, 4, 392], strides = [1, 1, 1]} : vector<8x48x392xf32> to vector<8x4x392xf32>
    %26 = vector.extract_strided_slice %25 {offsets = [0, 0, 3], sizes = [8, 4, 386], strides = [1, 1, 1]} : vector<8x4x392xf32> to vector<8x4x386xf32>
    %27 = arith.addf %24, %26 : vector<8x4x386xf32>
    %28 = arith.addf %22, %27 : vector<8x4x386xf32>
    %29 = vector.extract_strided_slice %5 {offsets = [0, 36, 0], sizes = [8, 4, 392], strides = [1, 1, 1]} : vector<8x48x392xf32> to vector<8x4x392xf32>
    %30 = vector.extract_strided_slice %29 {offsets = [0, 0, 4], sizes = [8, 4, 386], strides = [1, 1, 1]} : vector<8x4x392xf32> to vector<8x4x386xf32>
    %31 = vector.extract_strided_slice %5 {offsets = [0, 40, 0], sizes = [8, 4, 392], strides = [1, 1, 1]} : vector<8x48x392xf32> to vector<8x4x392xf32>
    %32 = vector.extract_strided_slice %31 {offsets = [0, 0, 5], sizes = [8, 4, 386], strides = [1, 1, 1]} : vector<8x4x392xf32> to vector<8x4x386xf32>
    %33 = arith.addf %30, %32 : vector<8x4x386xf32>
    %34 = vector.extract_strided_slice %5 {offsets = [0, 44, 0], sizes = [8, 4, 392], strides = [1, 1, 1]} : vector<8x48x392xf32> to vector<8x4x392xf32>
    %35 = vector.extract_strided_slice %34 {offsets = [0, 0, 6], sizes = [8, 4, 386], strides = [1, 1, 1]} : vector<8x4x392xf32> to vector<8x4x386xf32>
    %36 = arith.addf %33, %35 : vector<8x4x386xf32>
    %37 = arith.addf %28, %36 : vector<8x4x386xf32>
    %cst_4 = arith.constant dense<0xFF800000> : vector<8x4xf32>
    %38 = vector.multi_reduction <maximumf>, %6, %cst_4 [2] : vector<8x4x392xf32> to vector<8x4xf32>
    %c0_5 = arith.constant 0 : index
    %c0_6 = arith.constant 0 : index
    %39 = vector.load %arg3[%c0_5, %c0_6] : memref<1x4xf32, #tpu.memory_space<vmem>>, vector<1x4xf32>
    %40 = vector.broadcast %39 : vector<1x4xf32> to vector<8x4xf32>
    %41 = arith.addf %38, %40 : vector<8x4xf32>
    %42 = math.tanh %41 : vector<8x4xf32>
    %cst_7 = arith.constant dense<0xFF800000> : vector<8x4xf32>
    %43 = vector.multi_reduction <maximumf>, %17, %cst_7 [2] : vector<8x4x389xf32> to vector<8x4xf32>
    %c0_8 = arith.constant 0 : index
    %c0_9 = arith.constant 0 : index
    %44 = vector.load %arg4[%c0_8, %c0_9] : memref<1x4xf32, #tpu.memory_space<vmem>>, vector<1x4xf32>
    %45 = vector.broadcast %44 : vector<1x4xf32> to vector<8x4xf32>
    %46 = arith.addf %43, %45 : vector<8x4xf32>
    %47 = math.tanh %46 : vector<8x4xf32>
    %cst_10 = arith.constant dense<0xFF800000> : vector<8x4xf32>
    %48 = vector.multi_reduction <maximumf>, %37, %cst_10 [2] : vector<8x4x386xf32> to vector<8x4xf32>
    %c0_11 = arith.constant 0 : index
    %c0_12 = arith.constant 0 : index
    %49 = vector.load %arg5[%c0_11, %c0_12] : memref<1x4xf32, #tpu.memory_space<vmem>>, vector<1x4xf32>
    %50 = vector.broadcast %49 : vector<1x4xf32> to vector<8x4xf32>
    %51 = arith.addf %48, %50 : vector<8x4xf32>
    %52 = math.tanh %51 : vector<8x4xf32>
    %53 = tpu.concatenate %42, %47, %52 in 1 : vector<8x4xf32>, vector<8x4xf32>, vector<8x4xf32> -> vector<8x12xf32>
    %c0_13 = arith.constant 0 : index
    %c0_14 = arith.constant 0 : index
    %54 = vector.load %arg6[%c0_13, %c0_14] : memref<12x4xf32, #tpu.memory_space<vmem>>, vector<12x4xf32>
    %cst_15 = arith.constant dense<0.000000e+00> : vector<8x4xf32>
    %55 = tpu.matmul %53, %54, %cst_15 {dimension_numbers = #tpu.dot_dimension_numbers<[1], [0], [0], [1], [0, 0, 1, 1], [], []>} : vector<8x12xf32>, vector<12x4xf32>, vector<8x4xf32> -> vector<8x4xf32>
    %c0_16 = arith.constant 0 : index
    %c0_17 = arith.constant 0 : index
    %56 = vector.load %arg7[%c0_16, %c0_17] : memref<1x4xf32, #tpu.memory_space<vmem>>, vector<1x4xf32>
    %57 = vector.broadcast %56 : vector<1x4xf32> to vector<8x4xf32>
    %58 = arith.addf %55, %57 : vector<8x4xf32>
    %59 = math.tanh %58 : vector<8x4xf32>
    %c0_18 = arith.constant 0 : index
    %c0_19 = arith.constant 0 : index
    %60 = vector.load %arg8[%c0_18, %c0_19] : memref<1x4xf32, #tpu.memory_space<vmem>>, vector<1x4xf32>
    %cst_20 = arith.constant dense<0.000000e+00> : vector<1x8xf32>
    %61 = tpu.matmul %60, %59, %cst_20 {dimension_numbers = #tpu.dot_dimension_numbers<[1], [1], [0], [0], [0, 0, 1, 0], [], []>} : vector<1x4xf32>, vector<8x4xf32>, vector<1x8xf32> -> vector<1x8xf32>
    %c0_21 = arith.constant 0 : index
    %c0_22 = arith.constant 0 : index
    %62 = vector.load %arg9[%c0_21, %c0_22] : memref<1x1xf32, #tpu.memory_space<vmem>>, vector<1x1xf32>
    %63 = vector.broadcast %62 : vector<1x1xf32> to vector<1x8xf32>
    %64 = arith.addf %61, %63 : vector<1x8xf32>
    %cst_23 = arith.constant 0.000000e+00 : f32
    %65 = vector.broadcast %cst_23 : f32 to vector<1x8xf32>
    %66 = arith.subf %65, %64 : vector<1x8xf32>
    %67 = math.exp %66 : vector<1x8xf32>
    %cst_24 = arith.constant 1.000000e+00 : f32
    %68 = vector.broadcast %cst_24 : f32 to vector<1x8xf32>
    %69 = arith.addf %68, %67 : vector<1x8xf32>
    %cst_25 = arith.constant 1.000000e+00 : f32
    %70 = vector.broadcast %cst_25 : f32 to vector<1x8xf32>
    %71 = arith.divf %70, %69 : vector<1x8xf32>
    %72 = vector.shape_cast %71 : vector<1x8xf32> to vector<1x1x8xf32>
    %c0_26 = arith.constant 0 : index
    %c0_27 = arith.constant 0 : index
    %c0_28 = arith.constant 0 : index
    %73 = vector.load %arg10[%c0_26, %c0_27, %c0_28] : memref<1x1x8xf32, #tpu.memory_space<vmem>>, vector<1x1x8xf32>
    tpu.vector_store %arg10[%c0_26, %c0_27, %c0_28], %72 {strides = array<i32>} : memref<1x1x8xf32, #tpu.memory_space<vmem>>, vector<1x1x8xf32>,
    return
  }
  func.func @transform_0(%arg0: i32) -> (i32, i32, i32) {
    %c0_i32 = arith.constant 0 : i32
    %c0_i32_0 = arith.constant 0 : i32
    %c0_i32_1 = arith.constant 0 : i32
    return %arg0, %c0_i32, %c0_i32_0 : i32, i32, i32
  }
  func.func @transform_1(%arg0: i32) -> (i32, i32) {
    %c0_i32 = arith.constant 0 : i32
    %c0_i32_0 = arith.constant 0 : i32
    %c0_i32_1 = arith.constant 0 : i32
    return %c0_i32, %c0_i32_0 : i32, i32
  }
  func.func @transform_2(%arg0: i32) -> (i32, i32) {
    %c0_i32 = arith.constant 0 : i32
    %c0_i32_0 = arith.constant 0 : i32
    %c0_i32_1 = arith.constant 0 : i32
    return %c0_i32, %c0_i32_0 : i32, i32
  }
  func.func @transform_3(%arg0: i32) -> (i32, i32) {
    %c0_i32 = arith.constant 0 : i32
    %c0_i32_0 = arith.constant 0 : i32
    %c0_i32_1 = arith.constant 0 : i32
    return %c0_i32, %c0_i32_0 : i32, i32
  }
  func.func @transform_4(%arg0: i32) -> (i32, i32) {
    %c0_i32 = arith.constant 0 : i32
    %c0_i32_0 = arith.constant 0 : i32
    %c0_i32_1 = arith.constant 0 : i32
    return %c0_i32, %c0_i32_0 : i32, i32
  }
  func.func @transform_5(%arg0: i32) -> (i32, i32) {
    %c0_i32 = arith.constant 0 : i32
    %c0_i32_0 = arith.constant 0 : i32
    %c0_i32_1 = arith.constant 0 : i32
    return %c0_i32, %c0_i32_0 : i32, i32
  }
  func.func @transform_6(%arg0: i32) -> (i32, i32) {
    %c0_i32 = arith.constant 0 : i32
    %c0_i32_0 = arith.constant 0 : i32
    %c0_i32_1 = arith.constant 0 : i32
    return %c0_i32, %c0_i32_0 : i32, i32
  }
  func.func @transform_7(%arg0: i32) -> (i32, i32) {
    %c0_i32 = arith.constant 0 : i32
    %c0_i32_0 = arith.constant 0 : i32
    %c0_i32_1 = arith.constant 0 : i32
    return %c0_i32, %c0_i32_0 : i32, i32
  }
  func.func @transform_8(%arg0: i32) -> (i32, i32) {
    %c0_i32 = arith.constant 0 : i32
    %c0_i32_0 = arith.constant 0 : i32
    %c0_i32_1 = arith.constant 0 : i32
    return %c0_i32, %c0_i32_0 : i32, i32
  }
  func.func @transform_9(%arg0: i32) -> (i32, i32, i32) {
    %c0_i32 = arith.constant 0 : i32
    %c0_i32_0 = arith.constant 0 : i32
    %c0_i32_1 = arith.constant 0 : i32
    return %arg0, %c0_i32, %c0_i32_0 : i32, i32, i32
  }
}

</mosaic_0001>

<bundles_post_ra>
// kernel: component3_cnn.1
= control target key start
LH: loop header
LB: loop body
LE: loop exit
PB: predicated region body
PF: predicated region fallthrough
CT: control target
= control target key end

     0   :  { %s13935_s0 = inlined_call_operand.hbm [shape: f32[16,392,392], index: 0, kind: input, shape index: {}]   ;;  %s13936_s1 = inlined_call_operand.vmem [shape: bf16[48,392], index: 1, kind: input, shape index: {}]   ;;  %s13937_s2 = inlined_call_operand.hbm [shape: f32[1,4], index: 2, kind: input, shape index: {}]   ;;  %s13938_s3 = inlined_call_operand.hbm [shape: f32[1,4], index: 3, kind: input, shape index: {}]   ;;  %s13939_s4 = inlined_call_operand.hbm [shape: f32[1,4], index: 4, kind: input, shape index: {}]   ;;  %s13940_s5 = inlined_call_operand.vmem [shape: f32[12,4], index: 5, kind: input, shape index: {}]   ;;  %s13941_s6 = inlined_call_operand.hbm [shape: f32[1,4], index: 6, kind: input, shape index: {}]   ;;  %s13942_s7 = inlined_call_operand.hbm [shape: f32[1,4], index: 7, kind: input, shape index: {}]   ;;  %s13943_s8 = inlined_call_operand.<no memory space> [shape: f32[1,1], index: 8, kind: input, shape index: {}]   ;;  %s13944_s9 = inlined_call_operand.vmem [shape: f32[2,1,8], index: 9, kind: output, shape index: {}]  }
   0x1   :  { %v14_v0 = vstv %s13943_s8 }
   0x2   :  { %15 = vst [vmem:[#allocation2] sm:$0x1] %v14_v0 }
   0x3   :  { %16 = vsyncpa [#allocation4], 0 }
   0x4   :  { %18 = vsyncpa [#allocation4 + $0x1], 0 }
   0x5   :  { %19 = vsyncpa [#allocation6], 0 }
   0x6   :  { %20 = vsyncpa [#allocation9], 0 }
   0x7   :  { %21 = vsyncpa [#allocation12], 0  ;;  %s8922_s11 = smov 0   ;;  %s8924_s12 = smov 0  }
   0x8   :  { %s8926_s13 = smov 0   ;;  %s8928_s14 = smov 0  }
   0x9 LB: > { %s8855_s8 = smov [#allocation5]   ;;  %s8943_s16 = sadd.s32 4294967295, %s8853_s14   ;;  %s8853_s14 = sphi %s8928_s14, %s14203_s14   ;;  %s8849_s13 = sphi %s8926_s13, %s14202_s13   ;;  %s8845_s12 = sphi %s8924_s12, %s14201_s12   ;;  %s8841_s11 = sphi %s8922_s11, %s14200_s11  }
   0xa   : > { %s268_s15 = sshll.u32 %s8855_s8, 4  ;;  %p8087_p0 = scmp.ge.s32.totalorder %s8853_s14, 1  ;;  %s269_s15 = int_to_ptr.vmem [resolvable:$true] %s268_s15 }
   0xb   : > { %p13945_p1 = scmp.eq.s32.totalorder %s8943_s16, 0  ;;  %p252_p2 = scmp.lt.s32.totalorder %s8853_s14, 3 }
   0xc   : > { %s8856_s18 = smov [#allocation8]   ;;  %s8857_s20 = smov [#allocation7]  }
   0xd   : > { %p8948_p3 = pnand %p8087_p0, %p252_p2  ;;  %s290_s19 = sshll.u32 %s8856_s18, 4  ;;  %s8954_s19 = int_to_ptr.vmem [resolvable:$true] %s290_s19 }
   0xe   : > { %s279_s21 = sshll.u32 %s8857_s20, 4  ;;  %s8858_s23 = smov [#allocation10]   ;;  %s8962_s21 = int_to_ptr.vmem [resolvable:$true] %s279_s21 }
   0xf   : > { %s14012_s17 = scalar_select %p8948_p3, 1, 0 }
  0x10   : > { %p8415_p4 = pneg %p8948_p3  ;;  %s8964_s24 = sshll.u32 %s8858_s23, 4  ;;  %s305_s24 = int_to_ptr.vmem [resolvable:$true] %s8964_s24 }
  0x11   : > { %s8660_s26 = scalar_lea.vmem %s269_s15, 16  ;;  %s8667_s27 = scalar_lea.vmem %s269_s15, 32 }
  0x12   : > { %p8958_p5 = pnand %p8415_p4, %p13945_p1  ;;  %p8661_p7 = scmp.ne.s32.totalorder %s269_s15, %s8660_s26 }
  0x13   : > { %p8668_p10 = scmp.lt.s32.totalorder %s269_s15, %s269_s15  ;;  %p8669_p11 = scmp.lt.s32.totalorder %s8667_s27, %s8660_s26 }
  0x14   : > { %p8968_p6 = pneg %p8958_p5 }
  0x15   : > { %p8670_p12 = por %p8669_p11, %p8668_p10 }
  0x16   : > { %p8663_p8 = pnand %p8661_p7, %p8968_p6 }
  0x18   : > { %p8664_p9 = pneg %p8663_p8 }
  0x1a   : > { %p8671_p13 = pnand %p8670_p12, %p8664_p9 }
  0x1c   : > { %8674 = shalt.err (!%p8671_p13)
}
  0x1d   : > { %8418 = dma.hbm_to_vmem [thread:$0]  (!%p8958_p5), %s13937_s2, 16, %s269_s15, [#allocation6]  }
  0x1e   : > { %s8686_s30 = scalar_lea.vmem %s8954_s19, 16  ;;  %s8693_s10 = scalar_lea.vmem %s8954_s19, 32 }
  0x1f   : > { %p8687_p0 = scmp.ne.s32.totalorder %s8954_s19, %s8686_s30  ;;  %p8694_p7 = scmp.lt.s32.totalorder %s8954_s19, %s8954_s19 }
  0x20   : > { %p8695_p8 = scmp.lt.s32.totalorder %s8693_s10, %s8686_s30 }
  0x21   : > { %p8689_p2 = pnand %p8687_p0, %p8968_p6 }
  0x22   : > { %p8696_p9 = por %p8695_p8, %p8694_p7 }
  0x23   : > { %p8690_p4 = pneg %p8689_p2 }
  0x25   : > { %p8697_p10 = pnand %p8696_p9, %p8690_p4 }
  0x27   : > { %8700 = shalt.err (!%p8697_p10)
}
  0x28   : > { %8424 = dma.hbm_to_vmem [thread:$0]  (!%p8958_p5), %s13939_s4, 16, %s8954_s19, [#allocation9]  }
  0x29   : > { %s8712_s15 = scalar_lea.vmem %s8962_s21, 16  ;;  %s8719_s20 = scalar_lea.vmem %s8962_s21, 32 }
  0x2a   : > { %p8713_p11 = scmp.ne.s32.totalorder %s8962_s21, %s8712_s15  ;;  %p8720_p0 = scmp.lt.s32.totalorder %s8962_s21, %s8962_s21 }
  0x2b   : > { %p8721_p2 = scmp.lt.s32.totalorder %s8719_s20, %s8712_s15 }
  0x2c   : > { %p8715_p12 = pnand %p8713_p11, %p8968_p6 }
  0x2d   : > { %p8722_p4 = por %p8721_p2, %p8720_p0 }
  0x2e   : > { %p8716_p13 = pneg %p8715_p12 }
  0x30   : > { %p8723_p7 = pnand %p8722_p4, %p8716_p13 }
  0x32   : > { %8726 = shalt.err (!%p8723_p7)
}
  0x33   : > { %8421 = dma.hbm_to_vmem [thread:$0]  (!%p8958_p5), %s13938_s3, 16, %s8962_s21, [#allocation6]  }
  0x34   : > { %s8859_s19 = smov [#allocation11]   ;;  %s8738_s28 = scalar_lea.vmem %s305_s24, 16 }
  0x35   : > { %s315_s27 = sshll.u32 %s8859_s19, 4  ;;  %p8739_p8 = scmp.ne.s32.totalorder %s305_s24, %s8738_s28  ;;  %s316_s27 = int_to_ptr.vmem [resolvable:$true] %s315_s27 }
  0x36   : > { %s8745_s29 = scalar_lea.vmem %s305_s24, 32  ;;  %p8746_p11 = scmp.lt.s32.totalorder %s305_s24, %s305_s24 }
  0x37   : > { %p8741_p9 = pnand %p8739_p8, %p8968_p6  ;;  %p8747_p12 = scmp.lt.s32.totalorder %s8745_s29, %s8738_s28 }
  0x39   : > { %p8742_p10 = pneg %p8741_p9  ;;  %p8748_p13 = por %p8747_p12, %p8746_p11 }
  0x3b   : > { %p8749_p0 = pnand %p8748_p13, %p8742_p10 }
  0x3d   : > { %8752 = shalt.err (!%p8749_p0)
}
  0x3e   : > { %8427 = dma.hbm_to_vmem [thread:$0]  (!%p8958_p5), %s13941_s6, 16, %s305_s24, [#allocation9]  }
  0x3f   : > { %s8764_s21 = scalar_lea.vmem %s316_s27, 16  ;;  %s8771_s8 = scalar_lea.vmem %s316_s27, 32 }
  0x40   : > { %p8765_p2 = scmp.ne.s32.totalorder %s316_s27, %s8764_s21  ;;  %p8772_p8 = scmp.lt.s32.totalorder %s316_s27, %s316_s27 }
  0x41   : > { %p8773_p9 = scmp.lt.s32.totalorder %s8771_s8, %s8764_s21 }
  0x42   : > { %p8767_p4 = pnand %p8765_p2, %p8968_p6 }
  0x43   : > { %p8774_p1 = por %p8773_p9, %p8772_p8 }
  0x44   : > { %p8768_p7 = pneg %p8767_p4 }
  0x46   : > { %p8775_p11 = pnand %p8774_p1, %p8768_p7 }
  0x48   : > { %8778 = shalt.err (!%p8775_p11)
}
  0x49   : > { %8430 = dma.hbm_to_vmem [thread:$0]  (!%p8958_p5), %s13942_s7, 16, %s316_s27, [#allocation12]  }
  0x4a   : > { %s9021_s24 = sadd.s32 1, %s8853_s14   ;;  %s34_s25 = sadd.s32 1, %s8849_s13 }
  0x4b   : > { %s31_s22 = ssub.s32 %s8853_s14, %s9021_s24  ;;  %p41_p6 = scmp.ne.s32.totalorder %s8849_s13, %s8845_s12 }
  0x4c   : > { %p32_p1 = scmp.eq.s32.totalorder %s31_s22, 0  ;;  %p42_p10 = scmp.eq.s32.totalorder %s8853_s14, 0 }
  0x4d   : > { %p47_p12 = scmp.ne.s32.totalorder %s8845_s12, %s8841_s11  ;;  %p14015_p0 = scmp.eq.s32.totalorder %s8943_s16, 0 }
  0x4e   : > { %s9032_s20 = scalar_select %p32_p1, %s8849_s13, %s34_s25  }
  0x4f   : > { %p43_p13 = por %p42_p10, %p41_p6  ;;  %p9036_p2 = por %p14015_p0, %p47_p12 }
  0x50   : > { %p8440_p4 = scmp.lt.s32.totalorder %s8853_s14, 2  ;;  %s329_s26 = sand.u32 1, %s8849_s13  }
  0x51   : > { %s14016_s23 = scalar_select %p9036_p2, 1, 0 }
  0x52   : > { %s8390_s19 = smul.u32 12544, %s329_s26  ;;  %p9043_p5 = pnand %p8440_p4, %p43_p13 }
  0x53   : > { %s8391_s27 = smul.u32 200704, %s8853_s14  ;;  %s9054_s8 = scalar_lea.sflag [#allocation4], %s329_s26 }
  0x54   : > { %s333_s10 = scalar_lea.vmem [#allocation3], %s8390_s19  ;;  %p8781_p8 = pneg %p9043_p5 }
  0x55   : > { %s9050_s11 = scalar_lea.hbm %s13935_s0, %s8391_s27  ;;  %s341_s21 = sshll.u32 %s333_s10, 4  ;;  %s9052_s21 = int_to_ptr.vmem [resolvable:$true] %s341_s21 }
  0x56   : > { %s8779_s14 = scalar_lea.hbm %s9050_s11, 200704  ;;  %s8784_s22 = scalar_lea.hbm %s13935_s0, 401408 }
  0x57   : > { %p8780_p7 = scmp.ne.s32.totalorder %s9050_s11, %s8779_s14  ;;  %p8785_p1 = scmp.lt.s32.totalorder %s9050_s11, %s13935_s0 }
  0x58   : > { %p8786_p6 = scmp.lt.s32.totalorder %s8784_s22, %s8779_s14 }
  0x59   : > { %p8782_p9 = pnand %p8781_p8, %p8780_p7 }
  0x5a   : > { %p8787_p10 = por %p8786_p6, %p8785_p1 }
  0x5b   : > { %p8783_p11 = pneg %p8782_p9 }
  0x5d   : > { %p8788_p12 = pnand %p8787_p10, %p8783_p11 }
  0x5f   : > { %8791 = shalt.err (!%p8788_p12)
}
  0x60   : > { %s8792_s26 = scalar_lea.vmem %s9052_s21, 200704  ;;  %s8860_s19 = smov [#allocation3]  }
  0x61   : > { %p8793_p13 = scmp.ne.s32.totalorder %s9052_s21, %s8792_s26  ;;  %s8797_s29 = sshll.u32 %s8860_s19, 4  ;;  %s8798_s29 = int_to_ptr.vmem [resolvable:$false] %s8797_s29 }
  0x62   : > { %s8799_s30 = scalar_lea.vmem %s8798_s29, 401408  ;;  %p8800_p7 = scmp.lt.s32.totalorder %s9052_s21, %s8798_s29 }
  0x63   : > { %p8795_p0 = pnand %p8793_p13, %p8781_p8  ;;  %p8801_p9 = scmp.lt.s32.totalorder %s8799_s30, %s8792_s26 }
  0x65   : > { %p8796_p4 = pneg %p8795_p0  ;;  %p8802_p2 = por %p8801_p9, %p8800_p7 }
  0x67   : > { %p8803_p3 = pnand %p8802_p2, %p8796_p4 }
  0x69   : > { %8806 = shalt.err (!%p8803_p3)
}
  0x6a   : > { %s8861_s10 = smov 512   ;;  %s8862_s14 = smov 32  }
  0x6b   : > { %8434 = dma.hbm_to_vmem [thread:$0]  (!%p9043_p5), %s9050_s11, 200704, %s9052_s21, %s9054_s8, %s8861_s10, %s8861_s10, %s8862_s14  }
  0x6c   : > { %p14018_p8 = scmp.ne.s32.totalorder %s14012_s17, 0 }
  0x6e   : > { %353 = sbr.rel (%p14018_p8) target bundleno = 2976 (0xba0), region = 56 }
  0x73   : > { %s355_s18 = sand.u32 1, %s8845_s12   ;;  %p14019_p2 = scmp.ne.s32.totalorder %s14016_s23, 0 }
  0x74   : > { %s8392_s15 = smul.u32 12544, %s355_s18  ;;  %s356_s22 = scalar_lea.sflag [#allocation4], %s355_s18 }
  0x76   : > { %s9078_s25 = scalar_lea.vmem [#allocation3], %s8392_s15 }
  0x77   : > { %8824 = dma.done.wait (%p14019_p2), %s356_s22, 200704  }
  0x78   : > { %8826 = vsyncadd (%p14019_p2), %s356_s22, 4294766592  ;;  %p14020_p3 = scmp.eq.s32.totalorder %s8943_s16, 0 }
  0x7a   : > { %8828 = dma.done.wait (%p14020_p3), [#allocation6], 32   ;;  %p14021_p5 = pmov %p14020_p3 }
  0x7b   : > { %p14022_p11 = pmov %p14020_p3 }
  0x7c   : > { %8830 = vsyncadd (%p14021_p5), [#allocation6], 4294967264 }
  0x7d   : > { %8832 = dma.done.wait (%p14022_p11), [#allocation9], 32   ;;  %p14023_p1 = pmov %p14020_p3 }
  0x7f   : > { %8834 = vsyncadd (%p14023_p1), [#allocation9], 4294967264  ;;  %p14024_p6 = pmov %p14023_p1 }
  0x80   : > { %p14025_p10 = pmov %p14023_p1 }
  0x81   : > { %8836 = dma.done.wait (%p14024_p6), [#allocation12], 16  }
  0x82   : > { %8838 = vsyncadd (%p14025_p10), [#allocation12], 4294967280  ;;  %v474_v1 = vld [vmem:[%s9078_s25 + $0x1c8] sm:$0xff]  ;;  %v476_v3 = vld [vmem:[%s9078_s25 + $0x1d8] sm:$0xff]  ;;  %vm2854_vm0 = vcmask 64512   ;;  %s8863_s19 = smov 127  }
  0x83   : > { %v478_v2 = vld [vmem:[%s9078_s25 + $0x1e8] sm:$0xff]  ;;  %v480_v5 = vld [vmem:[%s9078_s25 + $0x1f8] sm:$0xff]  ;;  %v473_v6 = vld [vmem:[%s9078_s25 + $0x1c0] sm:$0xff]  ;;  %s8864_s29 = smov 126   ;;  %vm7267_vm1 = vcmask 1043456   ;;  %vm7273_vm2 = vcmask 60416  }
  0x84   : > { %v2014_v4 = vpack.c.bf16 %v478_v2, %v474_v1  ;;  %v477_v7 = vld [vmem:[%s9078_s25 + $0x1e0] sm:$0xff]  ;;  %v2016_v8 = vpack.c.bf16 %v480_v5, %v476_v3  ;;  %v475_v10 = vld [vmem:[%s9078_s25 + $0x1d0] sm:$0xff]  ;;  %v466_v12 = vld [vmem:[%s9078_s25 + $0x188] sm:$0xff]  ;;  %vm5608_vm3 = vcmask 1039360   ;;  %vm6009_vm4 = vcmask 1031168   ;;  %s8865_s21 = smov 124  }
  0x85   : > { %v2013_v9 = vpack.c.bf16 %v477_v7, %v473_v6  ;;  %v479_v11 = vld [vmem:[%s9078_s25 + $0x1f0] sm:$0xff]  ;;  %v470_v14 = vld [vmem:[%s9078_s25 + $0x1a8] sm:$0xff]  ;;  %v468_v15 = vld [vmem:[%s9078_s25 + $0x198] sm:$0xff]  ;;  %vm7367_vm5 = vcmask 1047556   ;;  %vm7373_vm6 = vcmask 39940   ;;  %vm7178_vm7 = vcmask 1014784  }
  0x86   : > { %2939 = vmatprep.subr.bf16.mxu0 %v2014_v4  ;;  %v2015_v13 = vpack.c.bf16 %v479_v11, %v475_v10  ;;  %v472_v16 = vld [vmem:[%s9078_s25 + $0x1b8] sm:$0xff]  ;;  %8115 = vmatprep.subr.msk.bf16.mxu1 %vm2854_vm0, %v2016_v8  ;;  %v2010_v17 = vpack.c.bf16 %v470_v14, %v466_v12  ;;  %v465_v19 = vld [vmem:[%s9078_s25 + $0x180] sm:$0xff]  ;;  %v467_v21 = vld [vmem:[%s9078_s25 + $0x190] sm:$0xff]  ;;  %vm7473_vm8 = vcmask 15364   ;;  %vm8868_vm9 = vmmov 0   ;;  %p413_p12 = scmp.lt.s32.totalorder %s8943_s16, 1 }
  0x87   : > { %2940 = vmatpush1.bf16.xpose.msra.mxu0 %v2013_v9  ;;  %v2012_v18 = vpack.c.bf16 %v472_v16, %v468_v15  ;;  %v469_v20 = vld [vmem:[%s9078_s25 + $0x1a0] sm:$0xff]  ;;  %v471_v22 = vld [vmem:[%s9078_s25 + $0x1b0] sm:$0xff]  ;;  %v458_v23 = vld [vmem:[%s9078_s25 + $0x148] sm:$0xff]  ;;  %vm7634_vm10 = vcmask 1041409   ;;  %vm7636_vm11 = vcmask 1042434   ;;  %vm7638_vm12 = vcmask 1043459  }
  0x88   : > { %3003 = vmatpush1.bf16.xpose.msra.mxu1 %v2015_v13  ;;  %2941 = vmatprep.subr.bf16.mxu0 %v2010_v17  ;;  %v462_v24 = vld [vmem:[%s9078_s25 + $0x168] sm:$0xff]  ;;  %v460_v25 = vld [vmem:[%s9078_s25 + $0x158] sm:$0xff]  ;;  %v2009_v27 = vpack.c.bf16 %v469_v20, %v465_v19  ;;  %v2011_v28 = vpack.c.bf16 %v471_v22, %v467_v21  ;;  %v457_v31 = vld [vmem:[%s9078_s25 + $0x140] sm:$0xff]  ;;  %vm7640_vm13 = vcmask 1044484   ;;  %vm7642_vm14 = vcmask 1045509   ;;  %s14205_s16 = smov (!%p413_p12, %s8943_s16), 1 }
  0x89   : > { %8116 = vmatprep.subr.msk.bf16.mxu1 %vm2854_vm0, %v2012_v18  ;;  %v464_v26 = vld [vmem:[%s9078_s25 + $0x178] sm:$0xff]  ;;  %v2006_v29 = vpack.c.bf16 %v462_v24, %v458_v23  ;;  %v461_v32 = vld [vmem:[%s9078_s25 + $0x160] sm:$0xff]  ;;  %v459_v33 = vld [vmem:[%s9078_s25 + $0x150] sm:$0xff]  ;;  %vm7644_vm15 = vcmask 1046534   ;;  %s415_s26 = scalar_lea.vmem %s13944_s9, %s14205_s16 }
  0x8a   : > { %v2008_v30 = vpack.c.bf16 %v464_v26, %v460_v25  ;;  %v463_v34 = vld [vmem:[%s9078_s25 + $0x170] sm:$0xff]  ;;  %v450_v35 = vld [vmem:[%s9078_s25 + $0x108] sm:$0xff]  ;;  %v452_v37 = vld [vmem:[%s9078_s25 + $0x118] sm:$0xff]  ;;  %v2005_v39 = vpack.c.bf16 %v461_v32, %v457_v31 }
  0x8b   : > { %v454_v36 = vld [vmem:[%s9078_s25 + $0x128] sm:$0xff]  ;;  %v456_v38 = vld [vmem:[%s9078_s25 + $0x138] sm:$0xff]  ;;  %v2007_v40 = vpack.c.bf16 %v463_v34, %v459_v33  ;;  %v449_v43 = vld [vmem:[%s9078_s25 + $0x100] sm:$0xff] }
  0x8c   : > { %v2002_v41 = vpack.c.bf16 %v454_v36, %v450_v35  ;;  %v2004_v42 = vpack.c.bf16 %v456_v38, %v452_v37  ;;  %v453_v44 = vld [vmem:[%s9078_s25 + $0x120] sm:$0xff]  ;;  %v451_v45 = vld [vmem:[%s9078_s25 + $0x110] sm:$0xff]  ;;  %v442_v47 = vld [vmem:[%s9078_s25 + $0xc8] sm:$0xff] }
  0x8d   : > { %v455_v46 = vld [vmem:[%s9078_s25 + $0x130] sm:$0xff]  ;;  %v446_v48 = vld [vmem:[%s9078_s25 + $0xe8] sm:$0xff]  ;;  %v444_v49 = vld [vmem:[%s9078_s25 + $0xd8] sm:$0xff]  ;;  %v2001_v51 = vpack.c.bf16 %v453_v44, %v449_v43 }
  0x8e   : > { %v448_v50 = vld [vmem:[%s9078_s25 + $0xf8] sm:$0xff]  ;;  %v2003_v52 = vpack.c.bf16 %v455_v46, %v451_v45  ;;  %v1998_v53 = vpack.c.bf16 %v446_v48, %v442_v47  ;;  %v441_v55 = vld [vmem:[%s9078_s25 + $0xc0] sm:$0xff]  ;;  %v443_v57 = vld [vmem:[%s9078_s25 + $0xd0] sm:$0xff] }
  0x8f   : > { %2942 = vmatpush1.bf16.xpose.msra.mxu0 %v2009_v27  ;;  %v2000_v54 = vpack.c.bf16 %v448_v50, %v444_v49  ;;  %v445_v56 = vld [vmem:[%s9078_s25 + $0xe0] sm:$0xff]  ;;  %v447_v58 = vld [vmem:[%s9078_s25 + $0xf0] sm:$0xff]  ;;  %v434_v59 = vld [vmem:[%s9078_s25 + $0x88] sm:$0xff] }
  0x90   : > { %3005 = vmatpush1.bf16.xpose.msra.mxu1 %v2011_v28  ;;  %2943 = vmatprep.subr.bf16.mxu0 %v2006_v29  ;;  %v438_v60 = vld [vmem:[%s9078_s25 + $0xa8] sm:$0xff]  ;;  %v436_v61 = vld [vmem:[%s9078_s25 + $0x98] sm:$0xff]  ;;  %v1997_v63 = vpack.c.bf16 %v445_v56, %v441_v55  ;;  %v1999_v0 = vpack.c.bf16 %v447_v58, %v443_v57  ;;  %v433_v3 = vld [vmem:[%s9078_s25 + $0x80] sm:$0xff] }
  0x91   : > { %8117 = vmatprep.subr.msk.bf16.mxu1 %vm2854_vm0, %v2008_v30  ;;  %v440_v62 = vld [vmem:[%s9078_s25 + $0xb8] sm:$0xff]  ;;  %v1994_v1 = vpack.c.bf16 %v438_v60, %v434_v59  ;;  %v437_v4 = vld [vmem:[%s9078_s25 + $0xa0] sm:$0xff]  ;;  %v435_v5 = vld [vmem:[%s9078_s25 + $0x90] sm:$0xff] }
  0x92   : > { %v1996_v2 = vpack.c.bf16 %v440_v62, %v436_v61  ;;  %v439_v6 = vld [vmem:[%s9078_s25 + $0xb0] sm:$0xff]  ;;  %v426_v7 = vld [vmem:[%s9078_s25 + $0x48] sm:$0xff]  ;;  %v428_v9 = vld [vmem:[%s9078_s25 + $0x58] sm:$0xff]  ;;  %v1993_v11 = vpack.c.bf16 %v437_v4, %v433_v3 }
  0x93   : > { %v430_v8 = vld [vmem:[%s9078_s25 + $0x68] sm:$0xff]  ;;  %v432_v10 = vld [vmem:[%s9078_s25 + $0x78] sm:$0xff]  ;;  %v1995_v12 = vpack.c.bf16 %v439_v6, %v435_v5  ;;  %v9157_v15 = vld [vmem:[%s13936_s1 + $0x4] ss:$16 sps:$4 sm:$0xff]  }
  0x94   : > { %v1990_v13 = vpack.c.bf16 %v430_v8, %v426_v7  ;;  %v1992_v14 = vpack.c.bf16 %v432_v10, %v428_v9  ;;  %v9162_v16 = vld [vmem:[%s13936_s1 + $0xc] ss:$16 sps:$4 sm:$0xff]   ;;  %v425_v17 = vld [vmem:[%s9078_s25 + $0x40] sm:$0xff]  ;;  %v427_v19 = vld [vmem:[%s9078_s25 + $0x50] sm:$0xff]  ;;  %2971 = vmatprep.mubr.bf16.mxu0 %v9157_v15 }
  0x95   : > { %v429_v18 = vld [vmem:[%s9078_s25 + $0x60] sm:$0xff]  ;;  %v431_v20 = vld [vmem:[%s9078_s25 + $0x70] sm:$0xff]  ;;  %v418_v21 = vld [vmem:[%s9078_s25 + $0x8] sm:$0xff]  ;;  %8131 = vmatprep.mubr.msk.bf16.mxu1 %vm2854_vm0, %v9162_v16 }
  0x96   : > { %v422_v22 = vld [vmem:[%s9078_s25 + $0x28] sm:$0xff]  ;;  %v420_v23 = vld [vmem:[%s9078_s25 + $0x18] sm:$0xff]  ;;  %v1989_v25 = vpack.c.bf16 %v429_v18, %v425_v17  ;;  %v1991_v26 = vpack.c.bf16 %v431_v20, %v427_v19  ;;  %v417_v29 = vld [vmem:[%s9078_s25] sm:$0xff] }
  0x97   : > { %2944 = vmatpush1.bf16.xpose.msra.mxu0 %v2005_v39  ;;  %v424_v24 = vld [vmem:[%s9078_s25 + $0x38] sm:$0xff]  ;;  %v1986_v27 = vpack.c.bf16 %v422_v22, %v418_v21  ;;  %v421_v30 = vld [vmem:[%s9078_s25 + $0x20] sm:$0xff]  ;;  %v419_v31 = vld [vmem:[%s9078_s25 + $0x10] sm:$0xff] }
  0x98   : > { %3007 = vmatpush1.bf16.xpose.msra.mxu1 %v2007_v40  ;;  %2945 = vmatprep.subr.bf16.mxu0 %v2002_v41  ;;  %v1988_v28 = vpack.c.bf16 %v424_v24, %v420_v23  ;;  %v423_v32 = vld [vmem:[%s9078_s25 + $0x30] sm:$0xff]  ;;  %v538_v33 = vld [vmem:[%s9078_s25 + $0x3c8] sm:$0xff]  ;;  %v540_v35 = vld [vmem:[%s9078_s25 + $0x3d8] sm:$0xff]  ;;  %v1985_v37 = vpack.c.bf16 %v421_v30, %v417_v29 }
  0x99   : > { %8118 = vmatprep.subr.msk.bf16.mxu1 %vm2854_vm0, %v2004_v42  ;;  %v542_v34 = vld [vmem:[%s9078_s25 + $0x3e8] sm:$0xff]  ;;  %v544_v36 = vld [vmem:[%s9078_s25 + $0x3f8] sm:$0xff]  ;;  %v1987_v38 = vpack.c.bf16 %v423_v32, %v419_v31  ;;  %v537_v41 = vld [vmem:[%s9078_s25 + $0x3c0] sm:$0xff] }
  0x9a   : > { %v2046_v39 = vpack.c.bf16 %v542_v34, %v538_v33  ;;  %v2048_v40 = vpack.c.bf16 %v544_v36, %v540_v35  ;;  %v541_v42 = vld [vmem:[%s9078_s25 + $0x3e0] sm:$0xff]  ;;  %v539_v43 = vld [vmem:[%s9078_s25 + $0x3d0] sm:$0xff]  ;;  %v530_v45 = vld [vmem:[%s9078_s25 + $0x388] sm:$0xff] }
  0x9b   : > { %v543_v44 = vld [vmem:[%s9078_s25 + $0x3f0] sm:$0xff]  ;;  %v534_v46 = vld [vmem:[%s9078_s25 + $0x3a8] sm:$0xff]  ;;  %v532_v47 = vld [vmem:[%s9078_s25 + $0x398] sm:$0xff]  ;;  %v2045_v49 = vpack.c.bf16 %v541_v42, %v537_v41 }
  0x9c   : > { %v536_v48 = vld [vmem:[%s9078_s25 + $0x3b8] sm:$0xff]  ;;  %v2047_v50 = vpack.c.bf16 %v543_v44, %v539_v43  ;;  %v531_v55 = vld [vmem:[%s9078_s25 + $0x390] sm:$0xff]  ;;  %v522_v57 = vld [vmem:[%s9078_s25 + $0x348] sm:$0xff] }
  0x9d   : > { %v535_v56 = vld [vmem:[%s9078_s25 + $0x3b0] sm:$0xff]  ;;  %v526_v58 = vld [vmem:[%s9078_s25 + $0x368] sm:$0xff]  ;;  %v524_v59 = vld [vmem:[%s9078_s25 + $0x358] sm:$0xff] }
  0x9e   : > { %v528_v60 = vld [vmem:[%s9078_s25 + $0x378] sm:$0xff]  ;;  %v2043_v62 = vpack.c.bf16 %v535_v56, %v531_v55  ;;  %v523_v3 = vld [vmem:[%s9078_s25 + $0x350] sm:$0xff]  ;;  %v514_v5 = vld [vmem:[%s9078_s25 + $0x308] sm:$0xff] }
  0x9f   : > { %2946 = vmatpush1.bf16.xpose.msra.mxu0 %v2001_v51  ;;  %v2042_v51 = vpack.c.bf16 %v534_v46, %v530_v45  ;;  %v527_v4 = vld [vmem:[%s9078_s25 + $0x370] sm:$0xff]  ;;  %v518_v6 = vld [vmem:[%s9078_s25 + $0x328] sm:$0xff]  ;;  %v516_v7 = vld [vmem:[%s9078_s25 + $0x318] sm:$0xff] }
  0xa0   : > { %3009 = vmatpush1.bf16.xpose.msra.mxu1 %v2003_v52  ;;  %2947 = vmatprep.subr.bf16.mxu0 %v1998_v53  ;;  %v2044_v52 = vpack.c.bf16 %v536_v48, %v532_v47  ;;  %v529_v53 = vld [vmem:[%s9078_s25 + $0x380] sm:$0xff]  ;;  %v520_v8 = vld [vmem:[%s9078_s25 + $0x338] sm:$0xff]  ;;  %v2039_v10 = vpack.c.bf16 %v527_v4, %v523_v3  ;;  %v515_v17 = vld [vmem:[%s9078_s25 + $0x310] sm:$0xff] }
  0xa1   : > { %8119 = vmatprep.subr.msk.bf16.mxu1 %vm2854_vm0, %v2000_v54  ;;  %v533_v54 = vld [vmem:[%s9078_s25 + $0x3a0] sm:$0xff]  ;;  %v519_v18 = vld [vmem:[%s9078_s25 + $0x330] sm:$0xff]  ;;  %v506_v19 = vld [vmem:[%s9078_s25 + $0x2c8] sm:$0xff] }
  0xa2   : > { %v2041_v61 = vpack.c.bf16 %v533_v54, %v529_v53  ;;  %v510_v20 = vld [vmem:[%s9078_s25 + $0x2e8] sm:$0xff]  ;;  %v508_v21 = vld [vmem:[%s9078_s25 + $0x2d8] sm:$0xff]  ;;  %v2035_v24 = vpack.c.bf16 %v519_v18, %v515_v17  ;;  %v507_v29 = vld [vmem:[%s9078_s25 + $0x2d0] sm:$0xff] }
  0xa3   : > { %v512_v22 = vld [vmem:[%s9078_s25 + $0x2f8] sm:$0xff]  ;;  %v511_v30 = vld [vmem:[%s9078_s25 + $0x2f0] sm:$0xff]  ;;  %v498_v31 = vld [vmem:[%s9078_s25 + $0x288] sm:$0xff] }
  0xa4   : > { %v502_v32 = vld [vmem:[%s9078_s25 + $0x2a8] sm:$0xff]  ;;  %v500_v33 = vld [vmem:[%s9078_s25 + $0x298] sm:$0xff]  ;;  %v2031_v36 = vpack.c.bf16 %v511_v30, %v507_v29  ;;  %v499_v41 = vld [vmem:[%s9078_s25 + $0x290] sm:$0xff] }
  0xa5   : > { %v504_v34 = vld [vmem:[%s9078_s25 + $0x2b8] sm:$0xff]  ;;  %v503_v42 = vld [vmem:[%s9078_s25 + $0x2b0] sm:$0xff]  ;;  %v490_v43 = vld [vmem:[%s9078_s25 + $0x248] sm:$0xff] }
  0xa6   : > { %v494_v44 = vld [vmem:[%s9078_s25 + $0x268] sm:$0xff]  ;;  %v492_v45 = vld [vmem:[%s9078_s25 + $0x258] sm:$0xff]  ;;  %v2027_v48 = vpack.c.bf16 %v503_v42, %v499_v41  ;;  %v491_v53 = vld [vmem:[%s9078_s25 + $0x250] sm:$0xff] }
  0xa7   : > { %2948 = vmatpush1.bf16.xpose.msra.mxu0 %v1997_v63  ;;  %v2038_v63 = vpack.c.bf16 %v526_v58, %v522_v57  ;;  %v496_v46 = vld [vmem:[%s9078_s25 + $0x278] sm:$0xff]  ;;  %v495_v54 = vld [vmem:[%s9078_s25 + $0x270] sm:$0xff]  ;;  %v482_v55 = vld [vmem:[%s9078_s25 + $0x208] sm:$0xff] }
  0xa8   : > { %3011 = vmatpush1.bf16.xpose.msra.mxu1 %v1999_v0  ;;  %2949 = vmatprep.subr.bf16.mxu0 %v1994_v1  ;;  %v2040_v0 = vpack.c.bf16 %v528_v60, %v524_v59  ;;  %v521_v1 = vld [vmem:[%s9078_s25 + $0x340] sm:$0xff]  ;;  %v486_v56 = vld [vmem:[%s9078_s25 + $0x228] sm:$0xff]  ;;  %v484_v57 = vld [vmem:[%s9078_s25 + $0x218] sm:$0xff]  ;;  %v2023_v60 = vpack.c.bf16 %v495_v54, %v491_v53 }
  0xa9   : > { %8120 = vmatprep.subr.msk.bf16.mxu1 %vm2854_vm0, %v1996_v2  ;;  %v525_v2 = vld [vmem:[%s9078_s25 + $0x360] sm:$0xff]  ;;  %v488_v58 = vld [vmem:[%s9078_s25 + $0x238] sm:$0xff]  ;;  %v602_v3 = vld [vmem:[%s9078_s25 + $0x5c8] sm:$0xff] }
  0xaa   : > { %v2037_v9 = vpack.c.bf16 %v525_v2, %v521_v1  ;;  %v483_v1 = vld [vmem:[%s9078_s25 + $0x210] sm:$0xff]  ;;  %v606_v4 = vld [vmem:[%s9078_s25 + $0x5e8] sm:$0xff]  ;;  %v593_v29 = vld [vmem:[%s9078_s25 + $0x580] sm:$0xff] }
  0xab   : > { %v487_v2 = vld [vmem:[%s9078_s25 + $0x230] sm:$0xff]  ;;  %v594_v17 = vld [vmem:[%s9078_s25 + $0x588] sm:$0xff]  ;;  %v597_v30 = vld [vmem:[%s9078_s25 + $0x5a0] sm:$0xff] }
  0xac   : > { %v598_v18 = vld [vmem:[%s9078_s25 + $0x5a8] sm:$0xff]  ;;  %v584_v53 = vld [vmem:[%s9078_s25 + $0x538] sm:$0xff] }
  0xaf   : > { %2950 = vmatpush1.bf16.xpose.msra.mxu0 %v1993_v11  ;;  %v2034_v11 = vpack.c.bf16 %v518_v6, %v514_v5  ;;  %v604_v5 = vld [vmem:[%s9078_s25 + $0x5d8] sm:$0xff] }
  0xb0   : > { %3013 = vmatpush1.bf16.xpose.msra.mxu1 %v1995_v12  ;;  %2951 = vmatprep.subr.bf16.mxu0 %v1990_v13  ;;  %v2036_v12 = vpack.c.bf16 %v520_v8, %v516_v7  ;;  %v513_v13 = vld [vmem:[%s9078_s25 + $0x300] sm:$0xff]  ;;  %v608_v6 = vld [vmem:[%s9078_s25 + $0x5f8] sm:$0xff]  ;;  %v2019_v8 = vpack.c.bf16 %v487_v2, %v483_v1 }
  0xb1   : > { %8121 = vmatprep.subr.msk.bf16.mxu1 %vm2854_vm0, %v1992_v14  ;;  %v517_v14 = vld [vmem:[%s9078_s25 + $0x320] sm:$0xff]  ;;  %v572_v1 = vld [vmem:[%s9078_s25 + $0x4d8] sm:$0xff] }
  0xb2   : > { %v2033_v23 = vpack.c.bf16 %v517_v14, %v513_v13  ;;  %v603_v13 = vld [vmem:[%s9078_s25 + $0x5d0] sm:$0xff]  ;;  %v576_v2 = vld [vmem:[%s9078_s25 + $0x4f8] sm:$0xff] }
  0xb3   : > { %v607_v14 = vld [vmem:[%s9078_s25 + $0x5f0] sm:$0xff] }
  0xb7   : > { %2952 = vmatpush1.bf16.xpose.msra.mxu0 %v1989_v25  ;;  %v2030_v25 = vpack.c.bf16 %v510_v20, %v506_v19  ;;  %v9267_v19 = vld [vmem:[%s13936_s1] ss:$16 sps:$4 sm:$0xff]  }
  0xb8   : > { %3015 = vmatpush1.bf16.xpose.msra.mxu1 %v1991_v26  ;;  %2953 = vmatprep.subr.bf16.mxu0 %v1986_v27  ;;  %v2032_v26 = vpack.c.bf16 %v512_v22, %v508_v21  ;;  %v505_v27 = vld [vmem:[%s9078_s25 + $0x2c0] sm:$0xff]  ;;  %v596_v20 = vld [vmem:[%s9078_s25 + $0x598] sm:$0xff] }
  0xb9   : > { %8122 = vmatprep.subr.msk.bf16.mxu1 %vm2854_vm0, %v1988_v28  ;;  %v509_v28 = vld [vmem:[%s9078_s25 + $0x2e0] sm:$0xff]  ;;  %v600_v21 = vld [vmem:[%s9078_s25 + $0x5b8] sm:$0xff] }
  0xba   : > { %v2029_v35 = vpack.c.bf16 %v509_v28, %v505_v27  ;;  %v9274_v22 = vld [vmem:[%s13936_s1 + $0x8] ss:$16 sps:$4 sm:$0xff]   ;;  %v9279_v27 = vld [vmem:[%s13936_s1 + $0x24] ss:$16 sps:$4 sm:$0xff]   ;;  %v9285_v28 = vld [vmem:[%s13936_s1 + $0x2c] ss:$16 sps:$4 sm:$0xff]  }
  0xbf   : > { %2954 = vmatpush1.bf16.xpose.msra.mxu0 %v1985_v37  ;;  %v2026_v37 = vpack.c.bf16 %v502_v32, %v498_v31  ;;  %v595_v31 = vld [vmem:[%s9078_s25 + $0x590] sm:$0xff] }
  0xc0   : > { %3017 = vmatpush1.bf16.xpose.msra.mxu1 %v1987_v38  ;;  %2955 = vmatprep.subr.bf16.mxu0 %v2046_v39  ;;  %v2028_v38 = vpack.c.bf16 %v504_v34, %v500_v33  ;;  %v497_v39 = vld [vmem:[%s9078_s25 + $0x280] sm:$0xff]  ;;  %v599_v32 = vld [vmem:[%s9078_s25 + $0x5b0] sm:$0xff]  ;;  %v586_v33 = vld [vmem:[%s9078_s25 + $0x548] sm:$0xff] }
  0xc1   : > { %8123 = vmatprep.subr.msk.bf16.mxu1 %vm2854_vm0, %v2048_v40  ;;  %v501_v40 = vld [vmem:[%s9078_s25 + $0x2a0] sm:$0xff]  ;;  %v590_v34 = vld [vmem:[%s9078_s25 + $0x568] sm:$0xff] }
  0xc2   : > { %v2025_v47 = vpack.c.bf16 %v501_v40, %v497_v39  ;;  %v9308_v39 = vld [vmem:[%s13936_s1 + $0x28] ss:$16 sps:$4 sm:$0xff]   ;;  %v2075_v40 = vpack.c.bf16 %v599_v32, %v595_v31  ;;  %v2070_v41 = vpack.c.bf16 %v590_v34, %v586_v33 }
  0xc3   : > { %v556_v31 = vld [vmem:[%s9078_s25 + $0x458] sm:$0xff] }
  0xc4   : > { %v560_v32 = vld [vmem:[%s9078_s25 + $0x478] sm:$0xff] }
  0xc7   : > { %2956 = vmatpush2.bf16.xpose.msra.mxu0 %v2045_v49  ;;  %v2022_v49 = vpack.c.bf16 %v494_v44, %v490_v43  ;;  %v9313_v43 = vld [vmem:[%s13936_s1 + $0x44] ss:$16 sps:$4 sm:$0xff]   ;;  %v9319_v44 = vld [vmem:[%s13936_s1 + $0x4c] ss:$16 sps:$4 sm:$0xff]  }
  0xc8   : > { %3019 = vmatpush2.bf16.xpose.msra.mxu1 %v2047_v50  ;;  %2957 = vmatprep.subr.bf16.mxu0 %v2042_v51  ;;  %v2024_v50 = vpack.c.bf16 %v496_v46, %v492_v45  ;;  %v489_v51 = vld [vmem:[%s9078_s25 + $0x240] sm:$0xff] }
  0xc9   : > { %8124 = vmatprep.subr.msk.bf16.mxu1 %vm2854_vm0, %v2044_v52  ;;  %v493_v52 = vld [vmem:[%s9078_s25 + $0x260] sm:$0xff] }
  0xca   : > { %v2021_v59 = vpack.c.bf16 %v493_v52, %v489_v51  ;;  %v585_v45 = vld [vmem:[%s9078_s25 + $0x540] sm:$0xff]  ;;  %v580_v52 = vld [vmem:[%s9078_s25 + $0x518] sm:$0xff] }
  0xcb   : > { %v589_v46 = vld [vmem:[%s9078_s25 + $0x560] sm:$0xff] }
  0xcc   : > { %v9335_v51 = vld [vmem:[%s13936_s1 + $0x40] ss:$16 sps:$4 sm:$0xff]   ;;  %v2069_v54 = vpack.c.bf16 %v589_v46, %v585_v45 }
  0xcd   : > { %v546_v45 = vld [vmem:[%s9078_s25 + $0x408] sm:$0xff] }
  0xce   : > { %v550_v46 = vld [vmem:[%s9078_s25 + $0x428] sm:$0xff] }
  0xcf   : > { %2958 = vmatpush2.bf16.xpose.msra.mxu0 %v2041_v61  ;;  %v2018_v61 = vpack.c.bf16 %v486_v56, %v482_v55  ;;  %v9342_v55 = vld [vmem:[%s13936_s1 + $0x48] ss:$16 sps:$4 sm:$0xff]  }
  0xd0   : > { %3021 = vmatpush2.bf16.xpose.msra.mxu1 %v2043_v62  ;;  %2959 = vmatprep.subr.bf16.mxu0 %v2038_v63  ;;  %v2020_v62 = vpack.c.bf16 %v488_v58, %v484_v57  ;;  %v481_v63 = vld [vmem:[%s9078_s25 + $0x200] sm:$0xff]  ;;  %v2068_v58 = vpack.c.bf16 %v584_v53, %v580_v52  ;;  %v2050_v52 = vpack.c.bf16 %v550_v46, %v546_v45 }
  0xd1   : > { %8125 = vmatprep.subr.msk.bf16.mxu1 %vm2854_vm0, %v2040_v0  ;;  %v485_v0 = vld [vmem:[%s9078_s25 + $0x220] sm:$0xff] }
  0xd2   : > { %v2017_v7 = vpack.c.bf16 %v485_v0, %v481_v63  ;;  %v570_v63 = vld [vmem:[%s9078_s25 + $0x4c8] sm:$0xff]  ;;  %v653_v45 = vld [vmem:[%s9078_s25 + $0x760] sm:$0xff] }
  0xd3   : > { %v574_v0 = vld [vmem:[%s9078_s25 + $0x4e8] sm:$0xff]  ;;  %v657_v46 = vld [vmem:[%s9078_s25 + $0x780] sm:$0xff] }
  0xd7   : > { %2960 = vmatpush2.bf16.xpose.msra.mxu0 %v2037_v9  ;;  %v2078_v9 = vpack.c.bf16 %v606_v4, %v602_v3 }
  0xd8   : > { %3023 = vmatpush2.bf16.xpose.msra.mxu1 %v2039_v10  ;;  %2961 = vmatprep.subr.bf16.mxu0 %v2034_v11  ;;  %v2080_v10 = vpack.c.bf16 %v608_v6, %v604_v5  ;;  %v601_v11 = vld [vmem:[%s9078_s25 + $0x5c0] sm:$0xff]  ;;  %v2062_v5 = vpack.c.bf16 %v574_v0, %v570_v63  ;;  %v2064_v6 = vpack.c.bf16 %v576_v2, %v572_v1  ;;  %v611_v2 = vld [vmem:[%s9078_s25 + $0x610] sm:$0xff] }
  0xd9   : > { %8126 = vmatprep.subr.msk.bf16.mxu1 %vm2854_vm0, %v2036_v12  ;;  %v605_v12 = vld [vmem:[%s9078_s25 + $0x5e0] sm:$0xff] }
  0xda   : > { %v609_v1 = vld [vmem:[%s9078_s25 + $0x600] sm:$0xff] }
  0xdf   : > { %2962 = vmatpush2.bf16.xpose.msra.mxu0 %v2033_v23  ;;  %v2077_v23 = vpack.c.bf16 %v605_v12, %v601_v11  ;;  %v562_v11 = vld [vmem:[%s9078_s25 + $0x488] sm:$0xff] }
  0xe0   : > { %3025 = vmatpush2.bf16.xpose.msra.mxu1 %v2035_v24  ;;  %2963 = vmatprep.subr.bf16.mxu0 %v2030_v25  ;;  %v2079_v24 = vpack.c.bf16 %v607_v14, %v603_v13  ;;  %v2074_v25 = vpack.c.bf16 %v598_v18, %v594_v17  ;;  %v566_v12 = vld [vmem:[%s9078_s25 + $0x4a8] sm:$0xff]  ;;  %v564_v13 = vld [vmem:[%s9078_s25 + $0x498] sm:$0xff] }
  0xe1   : > { %8127 = vmatprep.subr.msk.bf16.mxu1 %vm2854_vm0, %v2032_v26  ;;  %v2076_v26 = vpack.c.bf16 %v600_v21, %v596_v20  ;;  %v568_v14 = vld [vmem:[%s9078_s25 + $0x4b8] sm:$0xff]  ;;  %v2058_v20 = vpack.c.bf16 %v566_v12, %v562_v11  ;;  %v669_v11 = vld [vmem:[%s9078_s25 + $0x7e0] sm:$0xff] }
  0xe2   : > { %v2060_v21 = vpack.c.bf16 %v568_v14, %v564_v13  ;;  %v673_v12 = vld [vmem:[%s9078_s25 + $0x800] sm:$0xff]  ;;  %v671_v13 = vld [vmem:[%s9078_s25 + $0x7f0] sm:$0xff] }
  0xe3   : > { %v675_v14 = vld [vmem:[%s9078_s25 + $0x810] sm:$0xff] }
  0xe7   : > { %2964 = vmatpush2.bf16.xpose.msra.mxu0 %v2029_v35  ;;  %v9301_v35 = vld [vmem:[%s13936_s1 + $0x20] ss:$16 sps:$4 sm:$0xff]  }
  0xe8   : > { %3027 = vmatpush2.bf16.xpose.msra.mxu1 %v2031_v36  ;;  %2965 = vmatprep.subr.bf16.mxu0 %v2026_v37  ;;  %v588_v36 = vld [vmem:[%s9078_s25 + $0x558] sm:$0xff] }
  0xe9   : > { %8128 = vmatprep.subr.msk.bf16.mxu1 %vm2854_vm0, %v2028_v38  ;;  %v592_v37 = vld [vmem:[%s9078_s25 + $0x578] sm:$0xff]  ;;  %v2073_v38 = vpack.c.bf16 %v597_v30, %v593_v29  ;;  %v554_v29 = vld [vmem:[%s9078_s25 + $0x448] sm:$0xff] }
  0xea   : > { %v2072_v42 = vpack.c.bf16 %v592_v37, %v588_v36  ;;  %v558_v30 = vld [vmem:[%s9078_s25 + $0x468] sm:$0xff]  ;;  %v2056_v37 = vpack.c.bf16 %v560_v32, %v556_v31  ;;  %v663_v31 = vld [vmem:[%s9078_s25 + $0x7b0] sm:$0xff] }
  0xeb   : > { %v2054_v36 = vpack.c.bf16 %v558_v30, %v554_v29  ;;  %v661_v29 = vld [vmem:[%s9078_s25 + $0x7a0] sm:$0xff]  ;;  %v667_v32 = vld [vmem:[%s9078_s25 + $0x7d0] sm:$0xff] }
  0xec   : > { %v665_v30 = vld [vmem:[%s9078_s25 + $0x7c0] sm:$0xff] }
  0xef   : > { %2966 = vmatpush2.bf16.xpose.msra.mxu0 %v2025_v47  ;;  %v587_v47 = vld [vmem:[%s9078_s25 + $0x550] sm:$0xff] }
  0xf0   : > { %3029 = vmatpush2.bf16.xpose.msra.mxu1 %v2027_v48  ;;  %2967 = vmatprep.subr.bf16.mxu0 %v2022_v49  ;;  %v591_v48 = vld [vmem:[%s9078_s25 + $0x570] sm:$0xff]  ;;  %v578_v49 = vld [vmem:[%s9078_s25 + $0x508] sm:$0xff] }
  0xf1   : > { %8129 = vmatprep.subr.msk.bf16.mxu1 %vm2854_vm0, %v2024_v50  ;;  %v582_v50 = vld [vmem:[%s9078_s25 + $0x528] sm:$0xff]  ;;  %v2071_v56 = vpack.c.bf16 %v591_v48, %v587_v47  ;;  %v548_v47 = vld [vmem:[%s9078_s25 + $0x418] sm:$0xff] }
  0xf2   : > { %v2066_v57 = vpack.c.bf16 %v582_v50, %v578_v49  ;;  %v552_v48 = vld [vmem:[%s9078_s25 + $0x438] sm:$0xff] }
  0xf3   : > { %v2052_v53 = vpack.c.bf16 %v552_v48, %v548_v47  ;;  %v655_v47 = vld [vmem:[%s9078_s25 + $0x770] sm:$0xff] }
  0xf4   : > { %v659_v48 = vld [vmem:[%s9078_s25 + $0x790] sm:$0xff] }
  0xf7   : > { %2968 = vmatpush2.bf16.xpose.msra.mxu0 %v2021_v59  ;;  %v577_v59 = vld [vmem:[%s9078_s25 + $0x500] sm:$0xff] }
  0xf8   : > { %3031 = vmatpush2.bf16.xpose.msra.mxu1 %v2023_v60  ;;  %2969 = vmatprep.subr.bf16.mxu0 %v2018_v61  ;;  %v581_v60 = vld [vmem:[%s9078_s25 + $0x520] sm:$0xff]  ;;  %v579_v61 = vld [vmem:[%s9078_s25 + $0x510] sm:$0xff] }
  0xf9   : > { %8130 = vmatprep.subr.msk.bf16.mxu1 %vm2854_vm0, %v2020_v62  ;;  %v583_v62 = vld [vmem:[%s9078_s25 + $0x530] sm:$0xff]  ;;  %v2065_v3 = vpack.c.bf16 %v581_v60, %v577_v59  ;;  %v610_v59 = vld [vmem:[%s9078_s25 + $0x608] sm:$0xff]  ;;  %v612_v60 = vld [vmem:[%s9078_s25 + $0x618] sm:$0xff] }
  0xfa   : > { %v2067_v4 = vpack.c.bf16 %v583_v62, %v579_v61  ;;  %v2082_v63 = vpack.c.bf16 %v610_v59, %v610_v59  ;;  %v2084_v0 = vpack.c.bf16 %v612_v60, %v612_v60  ;;  %v645_v59 = vld [vmem:[%s9078_s25 + $0x720] sm:$0xff] }
  0xfb   : > { %v649_v60 = vld [vmem:[%s9078_s25 + $0x740] sm:$0xff] }
  0xff   : > { %2970 = vmatpush2.bf16.xpose.msra.mxu0 %v2017_v7  ;;  %v569_v7 = vld [vmem:[%s9078_s25 + $0x4c0] sm:$0xff] }
 0x100   : > { %3033 = vmatpush2.bf16.xpose.msra.mxu1 %v2019_v8  ;;  %3065 = vmatprep.subr.bf16.mxu0 %v2078_v9  ;;  %v573_v8 = vld [vmem:[%s9078_s25 + $0x4e0] sm:$0xff]  ;;  %v571_v9 = vld [vmem:[%s9078_s25 + $0x4d0] sm:$0xff] }
 0x101   : > { %8134 = vmatprep.subr.msk.bf16.mxu1 %vm2854_vm0, %v2080_v10  ;;  %v575_v10 = vld [vmem:[%s9078_s25 + $0x4f0] sm:$0xff]  ;;  %v2061_v17 = vpack.c.bf16 %v573_v8, %v569_v7  ;;  %v2081_v7 = vpack.c.bf16 %v609_v1, %v609_v1  ;;  %v2083_v8 = vpack.c.bf16 %v611_v2, %v611_v2  ;;  %v640_v1 = vld [vmem:[%s9078_s25 + $0x6f8] sm:$0xff] }
 0x102   : > { %v2063_v18 = vpack.c.bf16 %v575_v10, %v571_v9  ;;  %v644_v2 = vld [vmem:[%s9078_s25 + $0x718] sm:$0xff] }
 0x106   : > { %2972 = vmatmul.mubr.bf16.vlgmr.msra.gmra.mxu0 %v9267_v19 }
 0x107   : > { %3035 = vmatmul.mubr.bf16.vlgmr.msra.gmra.mxu1 %v9274_v22  ;;  %3066 = vmatpush1.bf16.xpose.msra.mxu0 %v2077_v23  ;;  %v561_v23 = vld [vmem:[%s9078_s25 + $0x480] sm:$0xff] }
 0x108   : > { %3129 = vmatpush1.bf16.xpose.msra.mxu1 %v2079_v24  ;;  %3067 = vmatprep.subr.bf16.mxu0 %v2074_v25  ;;  %v565_v24 = vld [vmem:[%s9078_s25 + $0x4a0] sm:$0xff]  ;;  %v563_v25 = vld [vmem:[%s9078_s25 + $0x490] sm:$0xff] }
 0x109   : > { %8135 = vmatprep.subr.msk.bf16.mxu1 %vm2854_vm0, %v2076_v26  ;;  %2981 = vmatprep.mubr.bf16.mxu0 %v9279_v27  ;;  %v567_v26 = vld [vmem:[%s9078_s25 + $0x4b0] sm:$0xff]  ;;  %v2057_v33 = vpack.c.bf16 %v565_v24, %v561_v23  ;;  %v2113_v23 = vpack.c.bf16 %v673_v12, %v669_v11  ;;  %v2115_v24 = vpack.c.bf16 %v675_v14, %v671_v13  ;;  %v632_v11 = vld [vmem:[%s9078_s25 + $0x6b8] sm:$0xff] }
 0x10a   : > { %8132 = vmatprep.mubr.msk.bf16.mxu1 %vm2854_vm0, %v9285_v28  ;;  %v2059_v34 = vpack.c.bf16 %v567_v26, %v563_v25  ;;  %v636_v12 = vld [vmem:[%s9078_s25 + $0x6d8] sm:$0xff] }
 0x10e   : > { %2982 = vmatmul.mubr.bf16.gmra.mxu0 %v9301_v35 }
 0x10f   : > { %3068 = vmatpush1.bf16.xpose.msra.mxu0 %v2073_v38  ;;  %3045 = vmatmul.mubr.bf16.gmra.mxu1 %v9308_v39  ;;  %v553_v38 = vld [vmem:[%s9078_s25 + $0x440] sm:$0xff] }
 0x110   : > { %3131 = vmatpush1.bf16.xpose.msra.mxu1 %v2075_v40  ;;  %3069 = vmatprep.subr.bf16.mxu0 %v2070_v41  ;;  %v557_v40 = vld [vmem:[%s9078_s25 + $0x460] sm:$0xff]  ;;  %v555_v41 = vld [vmem:[%s9078_s25 + $0x450] sm:$0xff] }
 0x111   : > { %8136 = vmatprep.subr.msk.bf16.mxu1 %vm2854_vm0, %v2072_v42  ;;  %2991 = vmatprep.mubr.bf16.mxu0 %v9313_v43  ;;  %v559_v42 = vld [vmem:[%s9078_s25 + $0x470] sm:$0xff]  ;;  %v2053_v49 = vpack.c.bf16 %v557_v40, %v553_v38  ;;  %v2109_v38 = vpack.c.bf16 %v665_v30, %v661_v29  ;;  %v2111_v40 = vpack.c.bf16 %v667_v32, %v663_v31  ;;  %v624_v29 = vld [vmem:[%s9078_s25 + $0x678] sm:$0xff] }
 0x112   : > { %8133 = vmatprep.mubr.msk.bf16.mxu1 %vm2854_vm0, %v9319_v44  ;;  %v2055_v50 = vpack.c.bf16 %v559_v42, %v555_v41  ;;  %v628_v30 = vld [vmem:[%s9078_s25 + $0x698] sm:$0xff] }
 0x116   : > { %2992 = vmatmul.mubr.bf16.gmra.mxu0 %v9335_v51 }
 0x117   : > { %3070 = vmatpush1.bf16.xpose.msra.mxu0 %v2069_v54  ;;  %3055 = vmatmul.mubr.bf16.gmra.mxu1 %v9342_v55  ;;  %v545_v54 = vld [vmem:[%s9078_s25 + $0x400] sm:$0xff] }
 0x118   : > { %3133 = vmatpush1.bf16.xpose.msra.mxu1 %v2071_v56  ;;  %3071 = vmatprep.subr.bf16.mxu0 %v2066_v57  ;;  %v549_v56 = vld [vmem:[%s9078_s25 + $0x420] sm:$0xff]  ;;  %v547_v57 = vld [vmem:[%s9078_s25 + $0x410] sm:$0xff] }
 0x119   : > { %8137 = vmatprep.subr.msk.bf16.mxu1 %vm2854_vm0, %v2068_v58  ;;  %3097 = vmatprep.mubr.bf16.mxu0 %v9157_v15  ;;  %v551_v58 = vld [vmem:[%s9078_s25 + $0x430] sm:$0xff]  ;;  %v2049_v61 = vpack.c.bf16 %v549_v56, %v545_v54  ;;  %v2105_v54 = vpack.c.bf16 %v657_v46, %v653_v45  ;;  %v2107_v56 = vpack.c.bf16 %v659_v48, %v655_v47  ;;  %v616_v45 = vld [vmem:[%s9078_s25 + $0x638] sm:$0xff] }
 0x11a   : > { %8143 = vmatprep.mubr.msk.bf16.mxu1 %vm2854_vm0, %v9162_v16  ;;  %v2051_v62 = vpack.c.bf16 %v551_v58, %v547_v57  ;;  %v620_v46 = vld [vmem:[%s9078_s25 + $0x658] sm:$0xff] }
 0x11f   : > { %3072 = vmatpush1.bf16.xpose.msra.mxu0 %v2065_v3  ;;  %v670_v3 = vld [vmem:[%s9078_s25 + $0x7e8] sm:$0xff] }
 0x120   : > { %3135 = vmatpush1.bf16.xpose.msra.mxu1 %v2067_v4  ;;  %3073 = vmatprep.subr.bf16.mxu0 %v2062_v5  ;;  %v674_v4 = vld [vmem:[%s9078_s25 + $0x808] sm:$0xff]  ;;  %v672_v5 = vld [vmem:[%s9078_s25 + $0x7f8] sm:$0xff] }
 0x121   : > { %8138 = vmatprep.subr.msk.bf16.mxu1 %vm2854_vm0, %v2064_v6  ;;  %v676_v6 = vld [vmem:[%s9078_s25 + $0x818] sm:$0xff]  ;;  %v2114_v9 = vpack.c.bf16 %v674_v4, %v670_v3  ;;  %v2101_v3 = vpack.c.bf16 %v649_v60, %v645_v59 }
 0x122   : > { %v2116_v10 = vpack.c.bf16 %v676_v6, %v672_v5  ;;  %v2100_v6 = vpack.c.bf16 %v644_v2, %v640_v1  ;;  %v736_v59 = vld [vmem:[%s9078_s25 + $0x9f8] sm:$0xff]  ;;  %v733_v1 = vld [vmem:[%s9078_s25 + $0x9e0] sm:$0xff] }
 0x123   : > { %v740_v60 = vld [vmem:[%s9078_s25 + $0xa18] sm:$0xff]  ;;  %v737_v2 = vld [vmem:[%s9078_s25 + $0xa00] sm:$0xff] }
 0x127   : > { %3074 = vmatpush1.bf16.xpose.msra.mxu0 %v2061_v17  ;;  %v662_v17 = vld [vmem:[%s9078_s25 + $0x7a8] sm:$0xff] }
 0x128   : > { %3137 = vmatpush1.bf16.xpose.msra.mxu1 %v2063_v18  ;;  %3075 = vmatprep.subr.bf16.mxu0 %v2058_v20  ;;  %v666_v18 = vld [vmem:[%s9078_s25 + $0x7c8] sm:$0xff]  ;;  %v664_v20 = vld [vmem:[%s9078_s25 + $0x7b8] sm:$0xff] }
 0x129   : > { %8139 = vmatprep.subr.msk.bf16.mxu1 %vm2854_vm0, %v2060_v21  ;;  %v668_v21 = vld [vmem:[%s9078_s25 + $0x7d8] sm:$0xff]  ;;  %v2110_v25 = vpack.c.bf16 %v666_v18, %v662_v17  ;;  %v2096_v18 = vpack.c.bf16 %v636_v12, %v632_v11  ;;  %v725_v11 = vld [vmem:[%s9078_s25 + $0x9a0] sm:$0xff] }
 0x12a   : > { %v2112_v26 = vpack.c.bf16 %v668_v21, %v664_v20  ;;  %v629_v20 = vld [vmem:[%s9078_s25 + $0x6a0] sm:$0xff] }
 0x12b   : > { %v633_v21 = vld [vmem:[%s9078_s25 + $0x6c0] sm:$0xff] }
 0x12c   : > { %v2093_v31 = vpack.c.bf16 %v633_v21, %v629_v20  ;;  %v729_v12 = vld [vmem:[%s9078_s25 + $0x9c0] sm:$0xff]  ;;  %v720_v20 = vld [vmem:[%s9078_s25 + $0x978] sm:$0xff] }
 0x12d   : > { %v724_v21 = vld [vmem:[%s9078_s25 + $0x998] sm:$0xff] }
 0x12f   : > { %3076 = vmatpush1.bf16.xpose.msra.mxu0 %v2057_v33  ;;  %v654_v33 = vld [vmem:[%s9078_s25 + $0x768] sm:$0xff] }
 0x130   : > { %3139 = vmatpush1.bf16.xpose.msra.mxu1 %v2059_v34  ;;  %3077 = vmatprep.subr.bf16.mxu0 %v2054_v36  ;;  %v658_v34 = vld [vmem:[%s9078_s25 + $0x788] sm:$0xff]  ;;  %v656_v36 = vld [vmem:[%s9078_s25 + $0x778] sm:$0xff] }
 0x131   : > { %8140 = vmatprep.subr.msk.bf16.mxu1 %vm2854_vm0, %v2056_v37  ;;  %v660_v37 = vld [vmem:[%s9078_s25 + $0x798] sm:$0xff]  ;;  %v2106_v41 = vpack.c.bf16 %v658_v34, %v654_v33  ;;  %v2092_v34 = vpack.c.bf16 %v628_v30, %v624_v29  ;;  %v717_v29 = vld [vmem:[%s9078_s25 + $0x960] sm:$0xff] }
 0x132   : > { %v2108_v42 = vpack.c.bf16 %v660_v37, %v656_v36  ;;  %v621_v36 = vld [vmem:[%s9078_s25 + $0x660] sm:$0xff] }
 0x133   : > { %v625_v37 = vld [vmem:[%s9078_s25 + $0x680] sm:$0xff] }
 0x134   : > { %v2089_v47 = vpack.c.bf16 %v625_v37, %v621_v36  ;;  %v721_v30 = vld [vmem:[%s9078_s25 + $0x980] sm:$0xff]  ;;  %v712_v36 = vld [vmem:[%s9078_s25 + $0x938] sm:$0xff] }
 0x135   : > { %v716_v37 = vld [vmem:[%s9078_s25 + $0x958] sm:$0xff] }
 0x137   : > { %3078 = vmatpush1.bf16.xpose.msra.mxu0 %v2053_v49  ;;  %v646_v49 = vld [vmem:[%s9078_s25 + $0x728] sm:$0xff] }
 0x138   : > { %3141 = vmatpush1.bf16.xpose.msra.mxu1 %v2055_v50  ;;  %3079 = vmatprep.subr.bf16.mxu0 %v2050_v52  ;;  %v650_v50 = vld [vmem:[%s9078_s25 + $0x748] sm:$0xff]  ;;  %v648_v52 = vld [vmem:[%s9078_s25 + $0x738] sm:$0xff] }
 0x139   : > { %8141 = vmatprep.subr.msk.bf16.mxu1 %vm2854_vm0, %v2052_v53  ;;  %v652_v53 = vld [vmem:[%s9078_s25 + $0x758] sm:$0xff]  ;;  %v2102_v57 = vpack.c.bf16 %v650_v50, %v646_v49  ;;  %v2088_v50 = vpack.c.bf16 %v620_v46, %v616_v45  ;;  %v709_v45 = vld [vmem:[%s9078_s25 + $0x920] sm:$0xff] }
 0x13a   : > { %v2104_v58 = vpack.c.bf16 %v652_v53, %v648_v52  ;;  %v613_v52 = vld [vmem:[%s9078_s25 + $0x620] sm:$0xff] }
 0x13b   : > { %v617_v53 = vld [vmem:[%s9078_s25 + $0x640] sm:$0xff] }
 0x13c   : > { %v713_v46 = vld [vmem:[%s9078_s25 + $0x940] sm:$0xff] }
 0x13f   : > { %3080 = vmatpush1.bf16.xpose.msra.mxu0 %v2049_v61  ;;  %v647_v61 = vld [vmem:[%s9078_s25 + $0x730] sm:$0xff] }
 0x140   : > { %3143 = vmatpush1.bf16.xpose.msra.mxu1 %v2051_v62  ;;  %3095 = vmatprep.subr.bf16.mxu0 %v2082_v63  ;;  %v651_v62 = vld [vmem:[%s9078_s25 + $0x750] sm:$0xff]  ;;  %v638_v63 = vld [vmem:[%s9078_s25 + $0x6e8] sm:$0xff] }
 0x141   : > { %8142 = vmatprep.subr.msk.bf16.mxu1 %vm2854_vm0, %v2084_v0  ;;  %v642_v0 = vld [vmem:[%s9078_s25 + $0x708] sm:$0xff]  ;;  %v2103_v4 = vpack.c.bf16 %v651_v62, %v647_v61  ;;  %v2085_v61 = vpack.c.bf16 %v617_v53, %v613_v52  ;;  %v704_v52 = vld [vmem:[%s9078_s25 + $0x8f8] sm:$0xff] }
 0x142   : > { %v2098_v5 = vpack.c.bf16 %v642_v0, %v638_v63  ;;  %v2148_v0 = vpack.c.bf16 %v740_v60, %v736_v59  ;;  %v708_v53 = vld [vmem:[%s9078_s25 + $0x918] sm:$0xff]  ;;  %v701_v59 = vld [vmem:[%s9078_s25 + $0x8e0] sm:$0xff] }
 0x143   : > { %v705_v60 = vld [vmem:[%s9078_s25 + $0x900] sm:$0xff] }
 0x147   : > { %3096 = vmatpush2.bf16.xpose.msra.mxu0 %v2081_v7  ;;  %v637_v7 = vld [vmem:[%s9078_s25 + $0x6e0] sm:$0xff] }
 0x148   : > { %3159 = vmatpush2.bf16.xpose.msra.mxu1 %v2083_v8  ;;  %3266 = vmatprep.subr.bf16.mxu0 %v2114_v9  ;;  %v641_v8 = vld [vmem:[%s9078_s25 + $0x700] sm:$0xff]  ;;  %v643_v9 = vld [vmem:[%s9078_s25 + $0x710] sm:$0xff] }
 0x149   : > { %8146 = vmatprep.subr.msk.bf16.mxu1 %vm2854_vm0, %v2116_v10  ;;  %v630_v10 = vld [vmem:[%s9078_s25 + $0x6a8] sm:$0xff]  ;;  %v2097_v13 = vpack.c.bf16 %v641_v8, %v637_v7  ;;  %v728_v7 = vld [vmem:[%s9078_s25 + $0x9b8] sm:$0xff] }
 0x14a   : > { %v732_v8 = vld [vmem:[%s9078_s25 + $0x9d8] sm:$0xff] }
 0x14e   : > { %3098 = vmatmul.mubr.bf16.vlgmr.msra.gmra.mxu0 %v9267_v19 }
 0x14f   : > { %3161 = vmatmul.mubr.bf16.vlgmr.msra.gmra.mxu1 %v9274_v22  ;;  %3267 = vmatpush1.bf16.xpose.msra.mxu0 %v2113_v23  ;;  %v631_v23 = vld [vmem:[%s9078_s25 + $0x6b0] sm:$0xff] }
 0x150   : > { %3330 = vmatpush1.bf16.xpose.msra.mxu1 %v2115_v24  ;;  %3268 = vmatprep.subr.bf16.mxu0 %v2110_v25  ;;  %v635_v24 = vld [vmem:[%s9078_s25 + $0x6d0] sm:$0xff]  ;;  %v622_v25 = vld [vmem:[%s9078_s25 + $0x668] sm:$0xff] }
 0x151   : > { %8147 = vmatprep.subr.msk.bf16.mxu1 %vm2854_vm0, %v2112_v26  ;;  %3107 = vmatprep.mubr.bf16.mxu0 %v9279_v27  ;;  %v626_v26 = vld [vmem:[%s9078_s25 + $0x688] sm:$0xff]  ;;  %v2095_v32 = vpack.c.bf16 %v635_v24, %v631_v23  ;;  %v2141_v23 = vpack.c.bf16 %v729_v12, %v725_v11  ;;  %v688_v11 = vld [vmem:[%s9078_s25 + $0x878] sm:$0xff] }
 0x152   : > { %8144 = vmatprep.mubr.msk.bf16.mxu1 %vm2854_vm0, %v9285_v28  ;;  %v2090_v33 = vpack.c.bf16 %v626_v26, %v622_v25  ;;  %v2140_v26 = vpack.c.bf16 %v724_v21, %v720_v20  ;;  %v692_v12 = vld [vmem:[%s9078_s25 + $0x898] sm:$0xff]  ;;  %v685_v20 = vld [vmem:[%s9078_s25 + $0x860] sm:$0xff] }
 0x153   : > { %v689_v21 = vld [vmem:[%s9078_s25 + $0x880] sm:$0xff] }
 0x156   : > { %3108 = vmatmul.mubr.bf16.gmra.mxu0 %v9301_v35 }
 0x157   : > { %3269 = vmatpush1.bf16.xpose.msra.mxu0 %v2109_v38  ;;  %3171 = vmatmul.mubr.bf16.gmra.mxu1 %v9308_v39  ;;  %v623_v38 = vld [vmem:[%s9078_s25 + $0x670] sm:$0xff] }
 0x158   : > { %3332 = vmatpush1.bf16.xpose.msra.mxu1 %v2111_v40  ;;  %3270 = vmatprep.subr.bf16.mxu0 %v2106_v41  ;;  %v627_v40 = vld [vmem:[%s9078_s25 + $0x690] sm:$0xff]  ;;  %v614_v41 = vld [vmem:[%s9078_s25 + $0x628] sm:$0xff] }
 0x159   : > { %8148 = vmatprep.subr.msk.bf16.mxu1 %vm2854_vm0, %v2108_v42  ;;  %3117 = vmatprep.mubr.bf16.mxu0 %v9313_v43  ;;  %v618_v42 = vld [vmem:[%s9078_s25 + $0x648] sm:$0xff]  ;;  %v2091_v48 = vpack.c.bf16 %v627_v40, %v623_v38  ;;  %v2137_v38 = vpack.c.bf16 %v721_v30, %v717_v29  ;;  %v680_v29 = vld [vmem:[%s9078_s25 + $0x838] sm:$0xff] }
 0x15a   : > { %8145 = vmatprep.mubr.msk.bf16.mxu1 %vm2854_vm0, %v9319_v44  ;;  %v2086_v49 = vpack.c.bf16 %v618_v42, %v614_v41  ;;  %v2136_v42 = vpack.c.bf16 %v716_v37, %v712_v36  ;;  %v684_v30 = vld [vmem:[%s9078_s25 + $0x858] sm:$0xff]  ;;  %v677_v36 = vld [vmem:[%s9078_s25 + $0x820] sm:$0xff] }
 0x15b   : > { %v681_v37 = vld [vmem:[%s9078_s25 + $0x840] sm:$0xff] }
 0x15e   : > { %3118 = vmatmul.mubr.bf16.gmra.mxu0 %v9335_v51 }
 0x15f   : > { %3271 = vmatpush1.bf16.xpose.msra.mxu0 %v2105_v54  ;;  %3181 = vmatmul.mubr.bf16.gmra.mxu1 %v9342_v55  ;;  %v615_v54 = vld [vmem:[%s9078_s25 + $0x630] sm:$0xff] }
 0x160   : > { %3334 = vmatpush1.bf16.xpose.msra.mxu1 %v2107_v56  ;;  %3272 = vmatprep.subr.bf16.mxu0 %v2102_v57  ;;  %v619_v56 = vld [vmem:[%s9078_s25 + $0x650] sm:$0xff]  ;;  %v734_v57 = vld [vmem:[%s9078_s25 + $0x9e8] sm:$0xff] }
 0x161   : > { %8149 = vmatprep.subr.msk.bf16.mxu1 %vm2854_vm0, %v2104_v58  ;;  %3298 = vmatprep.mubr.bf16.mxu0 %v9157_v15  ;;  %v639_v15 = vld [vmem:[%s9078_s25 + $0x6f0] sm:$0xff]  ;;  %v738_v58 = vld [vmem:[%s9078_s25 + $0xa08] sm:$0xff]  ;;  %v2087_v62 = vpack.c.bf16 %v619_v56, %v615_v54  ;;  %v2133_v54 = vpack.c.bf16 %v713_v46, %v709_v45  ;;  %v800_v45 = vld [vmem:[%s9078_s25 + $0xbf8] sm:$0xff] }
 0x162   : > { %8162 = vmatprep.mubr.msk.bf16.mxu1 %vm2854_vm0, %v9162_v16  ;;  %v634_v16 = vld [vmem:[%s9078_s25 + $0x6c8] sm:$0xff]  ;;  %v2099_v14 = vpack.c.bf16 %v643_v9, %v639_v15  ;;  %v2146_v63 = vpack.c.bf16 %v738_v58, %v734_v57  ;;  %v2145_v15 = vpack.c.bf16 %v737_v2, %v733_v1  ;;  %v2132_v58 = vpack.c.bf16 %v708_v53, %v704_v52  ;;  %v696_v1 = vld [vmem:[%s9078_s25 + $0x8b8] sm:$0xff] }
 0x163   : > { %v2094_v17 = vpack.c.bf16 %v634_v16, %v630_v10  ;;  %v2144_v16 = vpack.c.bf16 %v732_v8, %v728_v7  ;;  %v700_v2 = vld [vmem:[%s9078_s25 + $0x8d8] sm:$0xff]  ;;  %v693_v7 = vld [vmem:[%s9078_s25 + $0x8a0] sm:$0xff] }
 0x164   : > { %v697_v8 = vld [vmem:[%s9078_s25 + $0x8c0] sm:$0xff]  ;;  %v804_v46 = vld [vmem:[%s9078_s25 + $0xc18] sm:$0xff] }
 0x167   : > { %3273 = vmatpush1.bf16.xpose.msra.mxu0 %v2101_v3  ;;  %v735_v3 = vld [vmem:[%s9078_s25 + $0x9f0] sm:$0xff] }
 0x168   : > { %3336 = vmatpush1.bf16.xpose.msra.mxu1 %v2103_v4  ;;  %3274 = vmatprep.subr.bf16.mxu0 %v2098_v5  ;;  %v739_v4 = vld [vmem:[%s9078_s25 + $0xa10] sm:$0xff]  ;;  %v726_v5 = vld [vmem:[%s9078_s25 + $0x9a8] sm:$0xff] }
 0x169   : > { %8150 = vmatprep.subr.msk.bf16.mxu1 %vm2854_vm0, %v2100_v6  ;;  %v730_v6 = vld [vmem:[%s9078_s25 + $0x9c8] sm:$0xff]  ;;  %v2147_v9 = vpack.c.bf16 %v739_v4, %v735_v3  ;;  %v2129_v3 = vpack.c.bf16 %v705_v60, %v701_v59  ;;  %v799_v60 = vld [vmem:[%s9078_s25 + $0xbf0] sm:$0xff] }
 0x16a   : > { %v2142_v10 = vpack.c.bf16 %v730_v6, %v726_v5  ;;  %v2128_v6 = vpack.c.bf16 %v700_v2, %v696_v1  ;;  %v794_v1 = vld [vmem:[%s9078_s25 + $0xbc8] sm:$0xff]  ;;  %v792_v2 = vld [vmem:[%s9078_s25 + $0xbb8] sm:$0xff] }
 0x16f   : > { %3275 = vmatpush1.bf16.xpose.msra.mxu0 %v2097_v13  ;;  %v727_v13 = vld [vmem:[%s9078_s25 + $0x9b0] sm:$0xff] }
 0x170   : > { %3338 = vmatpush1.bf16.xpose.msra.mxu1 %v2099_v14  ;;  %3276 = vmatprep.subr.bf16.mxu0 %v2094_v17  ;;  %v731_v14 = vld [vmem:[%s9078_s25 + $0x9d0] sm:$0xff]  ;;  %v718_v17 = vld [vmem:[%s9078_s25 + $0x968] sm:$0xff] }
 0x171   : > { %8151 = vmatprep.subr.msk.bf16.mxu1 %vm2854_vm0, %v2096_v18  ;;  %v722_v18 = vld [vmem:[%s9078_s25 + $0x988] sm:$0xff]  ;;  %v2143_v24 = vpack.c.bf16 %v731_v14, %v727_v13  ;;  %v2125_v13 = vpack.c.bf16 %v697_v8, %v693_v7 }
 0x172   : > { %v2138_v25 = vpack.c.bf16 %v722_v18, %v718_v17  ;;  %v2124_v18 = vpack.c.bf16 %v692_v12, %v688_v11 }
 0x177   : > { %3277 = vmatpush1.bf16.xpose.msra.mxu0 %v2093_v31  ;;  %v719_v31 = vld [vmem:[%s9078_s25 + $0x970] sm:$0xff] }
 0x178   : > { %3340 = vmatpush1.bf16.xpose.msra.mxu1 %v2095_v32  ;;  %3278 = vmatprep.subr.bf16.mxu0 %v2090_v33  ;;  %v723_v32 = vld [vmem:[%s9078_s25 + $0x990] sm:$0xff]  ;;  %v710_v33 = vld [vmem:[%s9078_s25 + $0x928] sm:$0xff] }
 0x179   : > { %8152 = vmatprep.subr.msk.bf16.mxu1 %vm2854_vm0, %v2092_v34  ;;  %v714_v34 = vld [vmem:[%s9078_s25 + $0x948] sm:$0xff]  ;;  %v2139_v40 = vpack.c.bf16 %v723_v32, %v719_v31  ;;  %v2121_v31 = vpack.c.bf16 %v689_v21, %v685_v20  ;;  %v791_v21 = vld [vmem:[%s9078_s25 + $0xbb0] sm:$0xff] }
 0x17a   : > { %v2134_v41 = vpack.c.bf16 %v714_v34, %v710_v33  ;;  %v2120_v34 = vpack.c.bf16 %v684_v30, %v680_v29  ;;  %v786_v29 = vld [vmem:[%s9078_s25 + $0xb88] sm:$0xff]  ;;  %v784_v30 = vld [vmem:[%s9078_s25 + $0xb78] sm:$0xff] }
 0x17f   : > { %3279 = vmatpush1.bf16.xpose.msra.mxu0 %v2089_v47  ;;  %v711_v47 = vld [vmem:[%s9078_s25 + $0x930] sm:$0xff] }
 0x180   : > { %3342 = vmatpush1.bf16.xpose.msra.mxu1 %v2091_v48  ;;  %3280 = vmatprep.subr.bf16.mxu0 %v2086_v49  ;;  %v715_v48 = vld [vmem:[%s9078_s25 + $0x950] sm:$0xff]  ;;  %v702_v49 = vld [vmem:[%s9078_s25 + $0x8e8] sm:$0xff] }
 0x181   : > { %8153 = vmatprep.subr.msk.bf16.mxu1 %vm2854_vm0, %v2088_v50  ;;  %v706_v50 = vld [vmem:[%s9078_s25 + $0x908] sm:$0xff]  ;;  %v2135_v56 = vpack.c.bf16 %v715_v48, %v711_v47  ;;  %v2117_v47 = vpack.c.bf16 %v681_v37, %v677_v36 }
 0x182   : > { %v2130_v57 = vpack.c.bf16 %v706_v50, %v702_v49  ;;  %v2180_v50 = vpack.c.bf16 %v804_v46, %v800_v45 }
 0x187   : > { %3281 = vmatpush1.bf16.xpose.msra.mxu0 %v2085_v61  ;;  %v703_v61 = vld [vmem:[%s9078_s25 + $0x8f0] sm:$0xff] }
 0x188   : > { %3344 = vmatpush1.bf16.xpose.msra.mxu1 %v2087_v62  ;;  %3282 = vmatprep.subr.bf16.mxu0 %v2146_v63  ;;  %v707_v62 = vld [vmem:[%s9078_s25 + $0x910] sm:$0xff]  ;;  %v694_v63 = vld [vmem:[%s9078_s25 + $0x8a8] sm:$0xff] }
 0x189   : > { %8154 = vmatprep.subr.msk.bf16.mxu1 %vm2854_vm0, %v2148_v0  ;;  %v698_v0 = vld [vmem:[%s9078_s25 + $0x8c8] sm:$0xff]  ;;  %v2131_v4 = vpack.c.bf16 %v707_v62, %v703_v61  ;;  %v803_v61 = vld [vmem:[%s9078_s25 + $0xc10] sm:$0xff] }
 0x18a   : > { %v2126_v5 = vpack.c.bf16 %v698_v0, %v694_v63  ;;  %v790_v62 = vld [vmem:[%s9078_s25 + $0xba8] sm:$0xff]  ;;  %v2179_v8 = vpack.c.bf16 %v803_v61, %v799_v60  ;;  %v776_v61 = vld [vmem:[%s9078_s25 + $0xb38] sm:$0xff] }
 0x18b   : > { %v778_v60 = vld [vmem:[%s9078_s25 + $0xb48] sm:$0xff] }
 0x18f   : > { %3283 = vmatpush2.bf16.xpose.msra.mxu0 %v2145_v15  ;;  %v695_v15 = vld [vmem:[%s9078_s25 + $0x8b0] sm:$0xff] }
 0x190   : > { %3346 = vmatpush2.bf16.xpose.msra.mxu1 %v2147_v9  ;;  %3284 = vmatprep.subr.bf16.mxu0 %v2142_v10  ;;  %v699_v9 = vld [vmem:[%s9078_s25 + $0x8d0] sm:$0xff]  ;;  %v686_v10 = vld [vmem:[%s9078_s25 + $0x868] sm:$0xff] }
 0x191   : > { %8155 = vmatprep.subr.msk.bf16.mxu1 %vm2854_vm0, %v2144_v16  ;;  %v690_v16 = vld [vmem:[%s9078_s25 + $0x888] sm:$0xff]  ;;  %v2127_v14 = vpack.c.bf16 %v699_v9, %v695_v15  ;;  %v2174_v9 = vpack.c.bf16 %v794_v1, %v790_v62  ;;  %v780_v62 = vld [vmem:[%s9078_s25 + $0xb58] sm:$0xff] }
 0x192   : > { %v2122_v17 = vpack.c.bf16 %v690_v16, %v686_v10 }
 0x197   : > { %3285 = vmatpush2.bf16.xpose.msra.mxu0 %v2141_v23  ;;  %v687_v23 = vld [vmem:[%s9078_s25 + $0x870] sm:$0xff] }
 0x198   : > { %3348 = vmatpush2.bf16.xpose.msra.mxu1 %v2143_v24  ;;  %3286 = vmatprep.subr.bf16.mxu0 %v2138_v25  ;;  %v691_v24 = vld [vmem:[%s9078_s25 + $0x890] sm:$0xff]  ;;  %v678_v25 = vld [vmem:[%s9078_s25 + $0x828] sm:$0xff] }
 0x199   : > { %8156 = vmatprep.subr.msk.bf16.mxu1 %vm2854_vm0, %v2140_v26  ;;  %v682_v26 = vld [vmem:[%s9078_s25 + $0x848] sm:$0xff]  ;;  %v2123_v32 = vpack.c.bf16 %v691_v24, %v687_v23 }
 0x19a   : > { %v2118_v33 = vpack.c.bf16 %v682_v26, %v678_v25  ;;  %v782_v23 = vld [vmem:[%s9078_s25 + $0xb68] sm:$0xff] }
 0x19f   : > { %3287 = vmatpush2.bf16.xpose.msra.mxu0 %v2137_v38  ;;  %v679_v38 = vld [vmem:[%s9078_s25 + $0x830] sm:$0xff] }
 0x1a0   : > { %3350 = vmatpush2.bf16.xpose.msra.mxu1 %v2139_v40  ;;  %3288 = vmatprep.subr.bf16.mxu0 %v2134_v41  ;;  %v683_v40 = vld [vmem:[%s9078_s25 + $0x850] sm:$0xff]  ;;  %v798_v41 = vld [vmem:[%s9078_s25 + $0xbe8] sm:$0xff] }
 0x1a1   : > { %8157 = vmatprep.subr.msk.bf16.mxu1 %vm2854_vm0, %v2136_v42  ;;  %v802_v42 = vld [vmem:[%s9078_s25 + $0xc08] sm:$0xff]  ;;  %v2119_v48 = vpack.c.bf16 %v683_v40, %v679_v38 }
 0x1a2   : > { %v2178_v49 = vpack.c.bf16 %v802_v42, %v798_v41  ;;  %v2170_v42 = vpack.c.bf16 %v786_v29, %v782_v23  ;;  %v765_v29 = vld [vmem:[%s9078_s25 + $0xae0] sm:$0xff] }
 0x1a7   : > { %3289 = vmatpush2.bf16.xpose.msra.mxu0 %v2133_v54 }
 0x1a8   : > { %3352 = vmatpush2.bf16.xpose.msra.mxu1 %v2135_v56  ;;  %3290 = vmatprep.subr.bf16.mxu0 %v2130_v57  ;;  %v797_v57 = vld [vmem:[%s9078_s25 + $0xbe0] sm:$0xff] }
 0x1a9   : > { %8158 = vmatprep.subr.msk.bf16.mxu1 %vm2854_vm0, %v2132_v58  ;;  %v801_v58 = vld [vmem:[%s9078_s25 + $0xc00] sm:$0xff] }
 0x1af   : > { %3291 = vmatpush2.bf16.xpose.msra.mxu0 %v2129_v3  ;;  %v796_v3 = vld [vmem:[%s9078_s25 + $0xbd8] sm:$0xff] }
 0x1b0   : > { %3354 = vmatpush2.bf16.xpose.msra.mxu1 %v2131_v4  ;;  %3292 = vmatprep.subr.bf16.mxu0 %v2126_v5  ;;  %v2177_v5 = vpack.c.bf16 %v801_v58, %v797_v57  ;;  %v2176_v10 = vpack.c.bf16 %v796_v3, %v792_v2  ;;  %v774_v57 = vld [vmem:[%s9078_s25 + $0xb28] sm:$0xff] }
 0x1b1   : > { %8159 = vmatprep.subr.msk.bf16.mxu1 %vm2854_vm0, %v2128_v6 }
 0x1b7   : > { %3293 = vmatpush2.bf16.xpose.msra.mxu0 %v2125_v13 }
 0x1b8   : > { %3356 = vmatpush2.bf16.xpose.msra.mxu1 %v2127_v14  ;;  %3294 = vmatprep.subr.bf16.mxu0 %v2122_v17  ;;  %v789_v17 = vld [vmem:[%s9078_s25 + $0xba0] sm:$0xff] }
 0x1b9   : > { %8160 = vmatprep.subr.msk.bf16.mxu1 %vm2854_vm0, %v2124_v18  ;;  %v793_v18 = vld [vmem:[%s9078_s25 + $0xbc0] sm:$0xff] }
 0x1bf   : > { %3295 = vmatpush2.bf16.xpose.msra.mxu0 %v2121_v31  ;;  %v788_v31 = vld [vmem:[%s9078_s25 + $0xb98] sm:$0xff] }
 0x1c0   : > { %3358 = vmatpush2.bf16.xpose.msra.mxu1 %v2123_v32  ;;  %3296 = vmatprep.subr.bf16.mxu0 %v2118_v33  ;;  %v2173_v33 = vpack.c.bf16 %v793_v18, %v789_v17  ;;  %v768_v17 = vld [vmem:[%s9078_s25 + $0xaf8] sm:$0xff]  ;;  %v9646_v18 = vld [vmem:[%s13936_s1 + $0x4] ss:$16 sps:$4 sm:$0xff]  }
 0x1c1   : > { %8161 = vmatprep.subr.msk.bf16.mxu1 %vm2854_vm0, %v2120_v34 }
 0x1c6   : > { %v2973_v52 = vpop.f32.mrf.mxu0 }
 0x1c7   : > { %v3036_v53 = vpop.f32.mrf.mxu1  ;;  %3297 = vmatpush2.bf16.xpose.msra.mxu0 %v2117_v47 }
 0x1c8   : > { %v9558_v54 = vadd.f32 %v3036_v53, %v2973_v52  ;;  %3360 = vmatpush2.bf16.xpose.msra.mxu1 %v2119_v48  ;;  %v2975_v56 = vpop.f32.mrf.mxu0  ;;  %3392 = vmatprep.subr.bf16.mxu0 %v2178_v49  ;;  %v785_v52 = vld [vmem:[%s9078_s25 + $0xb80] sm:$0xff] }
 0x1c9   : > { %v3038_v59 = vpop.f32.mrf.mxu1  ;;  %8165 = vmatprep.subr.msk.bf16.mxu1 %vm2854_vm0, %v2180_v50 }
 0x1ca   : > { %v9566_v63 = vadd.f32 %v3038_v59, %v2975_v56  ;;  %v2977_v0 = vpop.f32.mrf.mxu0  ;;  %v787_v56 = vld [vmem:[%s9078_s25 + $0xb90] sm:$0xff] }
 0x1cb   : > { %v3040_v4 = vpop.f32.mrf.mxu1 }
 0x1cc   : > { %v9571_v6 = vadd.f32 %v3040_v4, %v2977_v0  ;;  %v2979_v7 = vpop.f32.mrf.mxu0 }
 0x1cd   : > { %v3042_v15 = vpop.f32.mrf.mxu1 }
 0x1ce   : > { %v9573_v16 = vadd.f32 %v3042_v15, %v2979_v7  ;;  %3299 = vmatmul.mubr.bf16.vlgmr.msra.gmra.mxu0 %v9267_v19  ;;  %v5512_v11 = vrot.slane %v9571_v6, 4  ;;  %v2983_v12 = vpop.f32.mrf.mxu0 }
 0x1cf   : > { %3362 = vmatmul.mubr.bf16.vlgmr.msra.gmra.mxu1 %v9274_v22  ;;  %3393 = vmatpush1.bf16.xpose.msra.mxu0 %v2177_v5  ;;  %v3046_v13 = vpop.f32.mrf.mxu1  ;;  %v795_v22 = vld [vmem:[%s9078_s25 + $0xbd0] sm:$0xff] }
 0x1d0   : > { %3456 = vmatpush1.bf16.xpose.msra.mxu1 %v2179_v8  ;;  %5544 = vrot.lane.b32.xlu0 %v5512_v11, %s8863_s19  ;;  %v9579_v14 = vadd.f32 %v3046_v13, %v2983_v12  ;;  %v2985_v19 = vpop.f32.mrf.mxu0  ;;  %v5513_v24 = vrot.slane %v9573_v16, 4  ;;  %v2175_v38 = vpack.c.bf16 %v795_v22, %v791_v21  ;;  %v2166_v8 = vpack.c.bf16 %v778_v60, %v774_v57  ;;  %v775_v11 = vld [vmem:[%s9078_s25 + $0xb30] sm:$0xff]  ;;  %v766_v13 = vld [vmem:[%s9078_s25 + $0xae8] sm:$0xff]  ;;  %v749_v60 = vld [vmem:[%s9078_s25 + $0xa60] sm:$0xff] }
 0x1d1   : > { %v3048_v20 = vpop.f32.mrf.mxu1  ;;  %3394 = vmatprep.subr.bf16.mxu0 %v2174_v9  ;;  %8166 = vmatprep.subr.msk.bf16.mxu1 %vm2854_vm0, %v2176_v10  ;;  %v773_v9 = vld [vmem:[%s9078_s25 + $0xb20] sm:$0xff]  ;;  %v779_v12 = vld [vmem:[%s9078_s25 + $0xb50] sm:$0xff]  ;;  %v9652_v21 = vld [vmem:[%s13936_s1 + $0xc] ss:$16 sps:$4 sm:$0xff]  }
 0x1d2   : > { %v9588_v25 = vadd.f32 %v3048_v20, %v2985_v19  ;;  %v2987_v26 = vpop.f32.mrf.mxu0  ;;  %3308 = vmatprep.mubr.bf16.mxu0 %v9279_v27  ;;  %8163 = vmatprep.mubr.msk.bf16.mxu1 %vm2854_vm0, %v9285_v28  ;;  %v5729_v34 = vrot.slane %v9579_v14, 4  ;;  %v2172_v27 = vpack.c.bf16 %v788_v31, %v784_v30  ;;  %v777_v10 = vld [vmem:[%s9078_s25 + $0xb40] sm:$0xff]  ;;  %v2167_v23 = vpack.c.bf16 %v779_v12, %v775_v11  ;;  %v767_v31 = vld [vmem:[%s9078_s25 + $0xaf0] sm:$0xff]  ;;  %v806_v11 = vld [vmem:[%s9078_s25 + $0xc28] sm:$0xff] }
 0x1d3   : > { %v3050_v32 = vpop.f32.mrf.mxu1  ;;  %v2165_v20 = vpack.c.bf16 %v777_v10, %v773_v9  ;;  %v769_v30 = vld [vmem:[%s9078_s25 + $0xb00] sm:$0xff]  ;;  %v743_v9 = vld [vmem:[%s9078_s25 + $0xa30] sm:$0xff]  ;;  %v808_v12 = vld [vmem:[%s9078_s25 + $0xc38] sm:$0xff] }
 0x1d4   : > { %5546 = vrot.lane.b32.xlu0 %v5513_v24, %s8863_s19  ;;  %v9598_v36 = vadd.f32 %v3050_v32, %v2987_v26  ;;  %v2989_v37 = vpop.f32.mrf.mxu0  ;;  %v5730_v40 = vrot.slane %v9588_v25, 4  ;;  %v771_v32 = vld [vmem:[%s9078_s25 + $0xb10] sm:$0xff] }
 0x1d5   : > { %v3052_v41 = vpop.f32.mrf.mxu1  ;;  %v747_v10 = vld [vmem:[%s9078_s25 + $0xa50] sm:$0xff] }
 0x1d6   : > { %v9601_v45 = vadd.f32 %v3052_v41, %v2989_v37  ;;  %5763 = vrot.lane.b32.xlu1 %v5730_v40, %s8863_s19  ;;  %v2993_v28 = vpop.f32.mrf.mxu0  ;;  %3309 = vmatmul.mubr.bf16.gmra.mxu0 %v9301_v35  ;;  %v6130_v47 = vrot.slane %v9598_v36, 4  ;;  %v781_v35 = vld [vmem:[%s9078_s25 + $0xb60] sm:$0xff]  ;;  %v760_v37 = vld [vmem:[%s9078_s25 + $0xab8] sm:$0xff]  ;;  %v2161_v40 = vpack.c.bf16 %v769_v30, %v765_v29  ;;  %v2163_v41 = vpack.c.bf16 %v771_v32, %v767_v31 }
 0x1d7   : > { %3395 = vmatpush1.bf16.xpose.msra.mxu0 %v2173_v33  ;;  %v3056_v46 = vpop.f32.mrf.mxu1  ;;  %3372 = vmatmul.mubr.bf16.gmra.mxu1 %v9308_v39  ;;  %v783_v39 = vld [vmem:[%s9078_s25 + $0xb70] sm:$0xff]  ;;  %v2169_v1 = vpack.c.bf16 %v785_v52, %v781_v35  ;;  %v758_v33 = vld [vmem:[%s9078_s25 + $0xaa8] sm:$0xff]  ;;  %v752_v52 = vld [vmem:[%s9078_s25 + $0xa78] sm:$0xff] }
 0x1d8   : > { %v6131_v48 = vrot.slane %v9601_v45, 4  ;;  %3458 = vmatpush1.bf16.xpose.msra.mxu1 %v2175_v38  ;;  %5761 = vrot.lane.b32.xlu0 %v5729_v34, %s8863_s19  ;;  %v9609_v49 = vadd.f32 %v3056_v46, %v2993_v28  ;;  %v2995_v50 = vpop.f32.mrf.mxu0  ;;  %v2171_v4 = vpack.c.bf16 %v787_v56, %v783_v39  ;;  %v762_v34 = vld [vmem:[%s9078_s25 + $0xac8] sm:$0xff]  ;;  %v764_v38 = vld [vmem:[%s9078_s25 + $0xad8] sm:$0xff]  ;;  %v757_v28 = vld [vmem:[%s9078_s25 + $0xaa0] sm:$0xff] }
 0x1d9   : > { %v3058_v53 = vpop.f32.mrf.mxu1  ;;  %3396 = vmatprep.subr.bf16.mxu0 %v2170_v42  ;;  %8167 = vmatprep.subr.msk.bf16.mxu1 %vm2854_vm0, %v2172_v27  ;;  %v2158_v42 = vpack.c.bf16 %v762_v34, %v758_v33  ;;  %v2160_v27 = vpack.c.bf16 %v764_v38, %v760_v37  ;;  %v761_v46 = vld [vmem:[%s9078_s25 + $0xac0] sm:$0xff]  ;;  %v754_v35 = vld [vmem:[%s9078_s25 + $0xa88] sm:$0xff]  ;;  %v7268_v33 = vsel %vm7267_vm1, %v9558_v54, -inf  ;;  %v7269_v34 = vsel %vm7267_vm1, %v9566_v63, -inf }
 0x1da   : > { %v9617_v58 = vadd.f32 %v3058_v53, %v2995_v50  ;;  %6164 = vrot.lane.b32.xlu1 %v6131_v48, %s8863_s19  ;;  %v2997_v59 = vpop.f32.mrf.mxu0  ;;  %3318 = vmatprep.mubr.bf16.mxu0 %v9313_v43  ;;  %v6346_v2 = vrot.slane %v9609_v49, 4  ;;  %v2168_v43 = vpack.c.bf16 %v780_v62, %v776_v61  ;;  %v763_v48 = vld [vmem:[%s9078_s25 + $0xad0] sm:$0xff]  ;;  %v750_v50 = vld [vmem:[%s9078_s25 + $0xa68] sm:$0xff]  ;;  %v756_v53 = vld [vmem:[%s9078_s25 + $0xa98] sm:$0xff]  ;;  %v2157_v39 = vpack.c.bf16 %v761_v46, %v757_v28 }
 0x1db   : > { %v3060_v0 = vpop.f32.mrf.mxu1  ;;  %8164 = vmatprep.mubr.msk.bf16.mxu1 %vm2854_vm0, %v9319_v44  ;;  %v2154_v57 = vpack.c.bf16 %v754_v35, %v750_v50  ;;  %v753_v61 = vld [vmem:[%s9078_s25 + $0xa80] sm:$0xff]  ;;  %v751_v62 = vld [vmem:[%s9078_s25 + $0xa70] sm:$0xff] }
 0x1dc   : > { %v6347_v3 = vrot.slane %v9617_v58, 4  ;;  %6162 = vrot.lane.b32.xlu0 %v6130_v47, %s8863_s19  ;;  %v2999_v5 = vpop.f32.mrf.mxu0  ;;  %v3061_v44 = vadd.f32 %v3060_v0, %v2997_v59  ;;  %v759_v47 = vld [vmem:[%s9078_s25 + $0xab0] sm:$0xff]  ;;  %v2156_v59 = vpack.c.bf16 %v756_v53, %v752_v52  ;;  %v869_v46 = vld [vmem:[%s9078_s25 + $0xe20] sm:$0xff] }
 0x1dd   : > { %v3062_v7 = vpop.f32.mrf.mxu1  ;;  %v2159_v56 = vpack.c.bf16 %v763_v48, %v759_v47  ;;  %v755_v0 = vld [vmem:[%s9078_s25 + $0xa90] sm:$0xff] }
 0x1de   : > { %6380 = vrot.lane.b32.xlu1 %v6347_v3, %s8863_s19  ;;  %v3063_v15 = vadd.f32 %v3062_v7, %v2999_v5  ;;  %3319 = vmatmul.mubr.bf16.gmra.mxu0 %v9335_v51  ;;  %v770_v51 = vld [vmem:[%s9078_s25 + $0xb08] sm:$0xff]  ;;  %v6746_v22 = vrot.slane %v3061_v44, 4  ;;  %v744_v3 = vld [vmem:[%s9078_s25 + $0xa38] sm:$0xff]  ;;  %v2153_v5 = vpack.c.bf16 %v753_v61, %v749_v60  ;;  %v2155_v7 = vpack.c.bf16 %v755_v0, %v751_v62  ;;  %v867_v47 = vld [vmem:[%s9078_s25 + $0xe10] sm:$0xff] }
 0x1df   : > { %3397 = vmatpush1.bf16.xpose.msra.mxu0 %v2169_v1  ;;  %3382 = vmatmul.mubr.bf16.gmra.mxu1 %v9342_v55  ;;  %v772_v55 = vld [vmem:[%s9078_s25 + $0xb18] sm:$0xff]  ;;  %v2162_v24 = vpack.c.bf16 %v770_v51, %v766_v13  ;;  %v742_v1 = vld [vmem:[%s9078_s25 + $0xa28] sm:$0xff]  ;;  %v2182_v51 = vpack.c.bf16 %v806_v11, %v806_v11  ;;  %v871_v48 = vld [vmem:[%s9078_s25 + $0xe30] sm:$0xff] }
 0x1e0   : > { %3460 = vmatpush1.bf16.xpose.msra.mxu1 %v2171_v4  ;;  %6378 = vrot.lane.b32.xlu0 %v6346_v2, %s8863_s19  ;;  %v6747_v19 = vrot.slane %v3063_v15, 4  ;;  %v2164_v26 = vpack.c.bf16 %v772_v55, %v768_v17  ;;  %v746_v2 = vld [vmem:[%s9078_s25 + $0xa48] sm:$0xff]  ;;  %v748_v4 = vld [vmem:[%s9078_s25 + $0xa58] sm:$0xff]  ;;  %v2184_v17 = vpack.c.bf16 %v808_v12, %v808_v12  ;;  %v805_v55 = vld [vmem:[%s9078_s25 + $0xc20] sm:$0xff]  ;;  %v2215_v0 = vpack.c.bf16 %v871_v48, %v867_v47 }
 0x1e1   : > { %3398 = vmatprep.subr.bf16.mxu0 %v2166_v8  ;;  %8168 = vmatprep.subr.msk.bf16.mxu1 %vm2854_vm0, %v2168_v43  ;;  %v2150_v8 = vpack.c.bf16 %v746_v2, %v742_v1  ;;  %v2152_v43 = vpack.c.bf16 %v748_v4, %v744_v3  ;;  %v2181_v29 = vpack.c.bf16 %v805_v55, %v805_v55  ;;  %v860_v1 = vld [vmem:[%s9078_s25 + $0xdd8] sm:$0xff]  ;;  %v857_v12 = vld [vmem:[%s9078_s25 + $0xdc0] sm:$0xff]  ;;  %v863_v55 = vld [vmem:[%s9078_s25 + $0xdf0] sm:$0xff] }
 0x1e2   : > { %6932 = vrot.lane.b32.xlu1 %v3063_v15, %s8864_s29  ;;  %3424 = vmatprep.mubr.bf16.mxu0 %v9646_v18  ;;  %v741_v15 = vld [vmem:[%s9078_s25 + $0xa20] sm:$0xff]  ;;  %v864_v2 = vld [vmem:[%s9078_s25 + $0xdf8] sm:$0xff] }
 0x1e3   : > { %8174 = vmatprep.mubr.msk.bf16.mxu1 %vm2854_vm0, %v9652_v21  ;;  %v9783_v48 = vld [vmem:[%s13936_s1 + $0x28] ss:$16 sps:$4 sm:$0xff]  }
 0x1e4   : > { %6930 = vrot.lane.b32.xlu0 %v3061_v44, %s8864_s29  ;;  %v745_v44 = vld [vmem:[%s9078_s25 + $0xa40] sm:$0xff] }
 0x1e5   : > { %v2149_v13 = vpack.c.bf16 %v745_v44, %v741_v15  ;;  %v9737_v44 = vld [vmem:[%s13936_s1 + $0x8] ss:$16 sps:$4 sm:$0xff]  }
 0x1e6   : > { %6780 = vrot.lane.b32.xlu1 %v6747_v19, %s8863_s19  ;;  %v2151_v19 = vpack.c.bf16 %v747_v10, %v743_v9  ;;  %v2212_v10 = vpack.c.bf16 %v864_v2, %v860_v1  ;;  %v9806_v2 = vld [vmem:[%s13936_s1 + $0x4c] ss:$16 sps:$4 sm:$0xff]  }
 0x1e7   : > { %3399 = vmatpush1.bf16.xpose.msra.mxu0 %v2165_v20  ;;  %v807_v20 = vld [vmem:[%s9078_s25 + $0xc30] sm:$0xff] }
 0x1e8   : > { %3462 = vmatpush1.bf16.xpose.msra.mxu1 %v2167_v23  ;;  %6778 = vrot.lane.b32.xlu0 %v6746_v22, %s8863_s19  ;;  %v866_v22 = vld [vmem:[%s9078_s25 + $0xe08] sm:$0xff]  ;;  %v2183_v30 = vpack.c.bf16 %v807_v20, %v807_v20 }
 0x1e9   : > { %3400 = vmatprep.subr.bf16.mxu0 %v2162_v24  ;;  %8169 = vmatprep.subr.msk.bf16.mxu1 %vm2854_vm0, %v2164_v26  ;;  %v870_v23 = vld [vmem:[%s9078_s25 + $0xe28] sm:$0xff]  ;;  %v868_v24 = vld [vmem:[%s9078_s25 + $0xe18] sm:$0xff] }
 0x1ea   : > { %v872_v26 = vld [vmem:[%s9078_s25 + $0xe38] sm:$0xff]  ;;  %v2214_v31 = vpack.c.bf16 %v870_v23, %v866_v22 }
 0x1eb   : > { %v2216_v32 = vpack.c.bf16 %v872_v26, %v868_v24  ;;  %v9760_v23 = vld [vmem:[%s13936_s1 + $0x2c] ss:$16 sps:$4 sm:$0xff]  }
 0x1ec   : > { %v850_v24 = vld [vmem:[%s9078_s25 + $0xd88] sm:$0xff] }
 0x1ed   : > { %v854_v26 = vld [vmem:[%s9078_s25 + $0xda8] sm:$0xff] }
 0x1ef   : > { %3401 = vmatpush1.bf16.xpose.msra.mxu0 %v2161_v40 }
 0x1f0   : > { %3464 = vmatpush1.bf16.xpose.msra.mxu1 %v2163_v41  ;;  %3402 = vmatprep.subr.bf16.mxu0 %v2158_v42  ;;  %v865_v42 = vld [vmem:[%s9078_s25 + $0xe00] sm:$0xff] }
 0x1f1   : > { %8170 = vmatprep.subr.msk.bf16.mxu1 %vm2854_vm0, %v2160_v27  ;;  %v7270_v27 = vmax.f32 %v7268_v33, %v7269_v34  ;;  %v2213_v62 = vpack.c.bf16 %v869_v46, %v865_v42  ;;  %v2206_v42 = vpack.c.bf16 %v854_v26, %v850_v24  ;;  %v9823_v26 = vld [vmem:[%s13936_s1 + $0x40] ss:$16 sps:$4 sm:$0xff]  }
 0x1f7   : > { %3403 = vmatpush1.bf16.xpose.msra.mxu0 %v2157_v39 }
 0x1f8   : > { %3466 = vmatpush1.bf16.xpose.msra.mxu1 %v2159_v56  ;;  %3404 = vmatprep.subr.bf16.mxu0 %v2154_v57  ;;  %v858_v56 = vld [vmem:[%s9078_s25 + $0xdc8] sm:$0xff] }
 0x1f9   : > { %8171 = vmatprep.subr.msk.bf16.mxu1 %vm2854_vm0, %v2156_v59  ;;  %v862_v57 = vld [vmem:[%s9078_s25 + $0xde8] sm:$0xff] }
 0x1ff   : > { %3405 = vmatpush1.bf16.xpose.msra.mxu0 %v2153_v5 }
 0x200   : > { %3468 = vmatpush1.bf16.xpose.msra.mxu1 %v2155_v7  ;;  %3406 = vmatprep.subr.bf16.mxu0 %v2150_v8  ;;  %v9727_v7 = vld [vmem:[%s13936_s1] ss:$16 sps:$4 sm:$0xff]  }
 0x201   : > { %8172 = vmatprep.subr.msk.bf16.mxu1 %vm2854_vm0, %v2152_v43  ;;  %v2210_v43 = vpack.c.bf16 %v862_v57, %v858_v56 }
 0x207   : > { %3407 = vmatpush1.bf16.xpose.msra.mxu0 %v2149_v13 }
 0x208   : > { %3470 = vmatpush1.bf16.xpose.msra.mxu1 %v2151_v19  ;;  %3422 = vmatprep.subr.bf16.mxu0 %v2182_v51  ;;  %v9747_v19 = vld [vmem:[%s13936_s1 + $0x24] ss:$16 sps:$4 sm:$0xff]  }
 0x209   : > { %8173 = vmatprep.subr.msk.bf16.mxu1 %vm2854_vm0, %v2184_v17  ;;  %v861_v51 = vld [vmem:[%s9078_s25 + $0xde0] sm:$0xff]  ;;  %v859_v17 = vld [vmem:[%s9078_s25 + $0xdd0] sm:$0xff] }
 0x20a   : > { %v2209_v34 = vpack.c.bf16 %v861_v51, %v857_v12 }
 0x20e   : > { %v3099_v37 = vpop.f32.mrf.mxu0 }
 0x20f   : > { %v3162_v38 = vpop.f32.mrf.mxu1  ;;  %3423 = vmatpush2.bf16.xpose.msra.mxu0 %v2181_v29 }
 0x210   : > { %v9704_v40 = vadd.f32 %v3162_v38, %v3099_v37  ;;  %3486 = vmatpush2.bf16.xpose.msra.mxu1 %v2183_v30  ;;  %v3101_v41 = vpop.f32.mrf.mxu0  ;;  %3593 = vmatprep.subr.bf16.mxu0 %v2214_v31  ;;  %v852_v31 = vld [vmem:[%s9078_s25 + $0xd98] sm:$0xff]  ;;  %v2211_v37 = vpack.c.bf16 %v863_v55, %v859_v17 }
 0x211   : > { %v3164_v28 = vpop.f32.mrf.mxu1  ;;  %8177 = vmatprep.subr.msk.bf16.mxu1 %vm2854_vm0, %v2216_v32  ;;  %v856_v32 = vld [vmem:[%s9078_s25 + $0xdb8] sm:$0xff] }
 0x212   : > { %v7271_v50 = vsel %vm7267_vm1, %v9704_v40, -inf  ;;  %v9713_v35 = vadd.f32 %v3164_v28, %v3101_v41  ;;  %v3103_v52 = vpop.f32.mrf.mxu0  ;;  %v9777_v28 = vld [vmem:[%s13936_s1 + $0x20] ss:$16 sps:$4 sm:$0xff]   ;;  %v2208_v47 = vpack.c.bf16 %v856_v32, %v852_v31 }
 0x213   : > { %v3166_v53 = vpop.f32.mrf.mxu1  ;;  %v7272_v39 = vmax.f32 %v7270_v27, %v7271_v50 }
 0x214   : > { %v9717_v59 = vadd.f32 %v3166_v53, %v3103_v52  ;;  %v3105_v60 = vpop.f32.mrf.mxu0  ;;  %v7274_v61 = vsel %vm7273_vm2, %v9713_v35, -inf  ;;  %v9789_v52 = vld [vmem:[%s13936_s1 + $0x44] ss:$16 sps:$4 sm:$0xff]  }
 0x215   : > { %v3168_v3 = vpop.f32.mrf.mxu1  ;;  %v7275_v4 = vmax.f32 %v7272_v39, %v7274_v61  ;;  %v849_v39 = vld [vmem:[%s9078_s25 + $0xd80] sm:$0xff]  ;;  %v851_v61 = vld [vmem:[%s9078_s25 + $0xd90] sm:$0xff] }
 0x216   : > { %v5514_v5 = vrot.slane %v9717_v59, 4  ;;  %3425 = vmatmul.mubr.bf16.vlgmr.msra.gmra.mxu0 %v9727_v7  ;;  %v9730_v8 = vpop.f32.mrf.mxu0  ;;  %v9732_v15 = vadd.f32 %v3168_v3, %v3105_v60  ;;  %v853_v60 = vld [vmem:[%s9078_s25 + $0xda0] sm:$0xff]  ;;  %v842_v3 = vld [vmem:[%s9078_s25 + $0xd48] sm:$0xff] }
 0x217   : > { %3488 = vmatmul.mubr.bf16.vlgmr.msra.gmra.mxu1 %v9737_v44  ;;  %7276 = vmax.xlane.f32.xlu0 %v7275_v4  ;;  %v9740_v9 = vpop.f32.mrf.mxu1  ;;  %v846_v4 = vld [vmem:[%s9078_s25 + $0xd68] sm:$0xff] }
 0x218   : > { %3594 = vmatpush1.bf16.xpose.msra.mxu0 %v2213_v62  ;;  %3657 = vmatpush1.bf16.xpose.msra.mxu1 %v2215_v0  ;;  %v3111_v11 = vpop.f32.mrf.mxu0  ;;  %v5515_v29 = vrot.slane %v9732_v15, 4  ;;  %v855_v62 = vld [vmem:[%s9078_s25 + $0xdb0] sm:$0xff]  ;;  %v2202_v17 = vpack.c.bf16 %v846_v4, %v842_v3  ;;  %v826_v3 = vld [vmem:[%s9078_s25 + $0xcc8] sm:$0xff] }
 0x219   : > { %5548 = vrot.lane.b32.xlu1 %v5514_v5, %s8863_s19  ;;  %v3174_v13 = vpop.f32.mrf.mxu1  ;;  %3434 = vmatprep.mubr.bf16.mxu0 %v9747_v19  ;;  %v2207_v12 = vpack.c.bf16 %v855_v62, %v851_v61  ;;  %v837_v61 = vld [vmem:[%s9078_s25 + $0xd20] sm:$0xff]  ;;  %v830_v4 = vld [vmem:[%s9078_s25 + $0xce8] sm:$0xff] }
 0x21a   : > { %v9753_v20 = vadd.f32 %v3174_v13, %v3111_v11  ;;  %v9755_v22 = vpop.f32.mrf.mxu0  ;;  %8175 = vmatprep.mubr.msk.bf16.mxu1 %vm2854_vm0, %v9760_v23  ;;  %3595 = vmatprep.subr.bf16.mxu0 %v2210_v43  ;;  %v844_v43 = vld [vmem:[%s9078_s25 + $0xd58] sm:$0xff]  ;;  %v2205_v11 = vpack.c.bf16 %v853_v60, %v849_v39  ;;  %v9816_v13 = vadd.f32 %v9740_v9, %v9730_v8  ;;  %v841_v9 = vld [vmem:[%s9078_s25 + $0xd40] sm:$0xff] }
 0x21b   : > { %v3176_v30 = vpop.f32.mrf.mxu1  ;;  %8178 = vmatprep.subr.msk.bf16.mxu1 %vm2854_vm0, %v2212_v10  ;;  %v848_v10 = vld [vmem:[%s9078_s25 + $0xd78] sm:$0xff]  ;;  %v833_v60 = vld [vmem:[%s9078_s25 + $0xd00] sm:$0xff] }
 0x21c   : > { %v3115_v33 = vpop.f32.mrf.mxu0  ;;  %v5732_v38 = vrot.slane %v9753_v20, 4  ;;  %v9829_v8 = vld [vmem:[%s13936_s1 + $0x48] ss:$16 sps:$4 sm:$0xff]   ;;  %v5731_v31 = vrot.slane %v9816_v13, 4  ;;  %v9836_v32 = vadd.f32 %v3176_v30, %v9755_v22 }
 0x21d   : > { %5550 = vrot.lane.b32.xlu1 %v5515_v29, %s8863_s19  ;;  %v3178_v41 = vpop.f32.mrf.mxu1  ;;  %v2204_v29 = vpack.c.bf16 %v848_v10, %v844_v43  ;;  %v828_v43 = vld [vmem:[%s9078_s25 + $0xcd8] sm:$0xff] }
 0x21e   : > { %v9772_v27 = vadd.f32 %v3178_v41, %v3115_v33  ;;  %3435 = vmatmul.mubr.bf16.gmra.mxu0 %v9777_v28  ;;  %v3119_v46 = vpop.f32.mrf.mxu0  ;;  %v838_v41 = vld [vmem:[%s9078_s25 + $0xd28] sm:$0xff]  ;;  %v832_v10 = vld [vmem:[%s9078_s25 + $0xcf8] sm:$0xff] }
 0x21f   : > { %3498 = vmatmul.mubr.bf16.gmra.mxu1 %v9783_v48  ;;  %v3182_v50 = vpop.f32.mrf.mxu1  ;;  %3444 = vmatprep.mubr.bf16.mxu0 %v9789_v52 }
 0x220   : > { %3596 = vmatpush1.bf16.xpose.msra.mxu0 %v2209_v34  ;;  %3659 = vmatpush1.bf16.xpose.msra.mxu1 %v2211_v37  ;;  %v3121_v53 = vpop.f32.mrf.mxu0  ;;  %v6133_v56 = vrot.slane %v9772_v27, 4  ;;  %v845_v34 = vld [vmem:[%s9078_s25 + $0xd60] sm:$0xff]  ;;  %v843_v37 = vld [vmem:[%s9078_s25 + $0xd50] sm:$0xff]  ;;  %v9850_v39 = vadd.f32 %v3182_v50, %v3119_v46 }
 0x221   : > { %5767 = vrot.lane.b32.xlu1 %v5732_v38, %s8863_s19  ;;  %v3184_v57 = vpop.f32.mrf.mxu1  ;;  %3597 = vmatprep.subr.bf16.mxu0 %v2206_v42  ;;  %v847_v38 = vld [vmem:[%s9078_s25 + $0xd70] sm:$0xff]  ;;  %v836_v42 = vld [vmem:[%s9078_s25 + $0xd18] sm:$0xff]  ;;  %v2201_v22 = vpack.c.bf16 %v845_v34, %v841_v9  ;;  %v818_v34 = vld [vmem:[%s9078_s25 + $0xc88] sm:$0xff] }
 0x222   : > { %v9798_v0 = vadd.f32 %v3184_v57, %v3121_v53  ;;  %v9800_v1 = vpop.f32.mrf.mxu0  ;;  %8179 = vmatprep.subr.msk.bf16.mxu1 %vm2854_vm0, %v2208_v47  ;;  %8176 = vmatprep.mubr.msk.bf16.mxu1 %vm2854_vm0, %v9806_v2  ;;  %v840_v47 = vld [vmem:[%s9078_s25 + $0xd38] sm:$0xff]  ;;  %v2203_v30 = vpack.c.bf16 %v847_v38, %v843_v37  ;;  %v6132_v53 = vrot.slane %v9836_v32, 4  ;;  %v6348_v62 = vrot.slane %v9850_v39, 4  ;;  %v835_v46 = vld [vmem:[%s9078_s25 + $0xd10] sm:$0xff] }
 0x223   : > { %v3186_v5 = vpop.f32.mrf.mxu1  ;;  %v2200_v57 = vpack.c.bf16 %v840_v47, %v836_v42  ;;  %v839_v50 = vld [vmem:[%s9078_s25 + $0xd30] sm:$0xff]  ;;  %v824_v37 = vld [vmem:[%s9078_s25 + $0xcb8] sm:$0xff]  ;;  %v817_v47 = vld [vmem:[%s9078_s25 + $0xc80] sm:$0xff] }
 0x224   : > { %v6349_v51 = vrot.slane %v9798_v0, 4  ;;  %v3125_v55 = vpop.f32.mrf.mxu0 }
 0x225   : > { %6168 = vrot.lane.b32.xlu1 %v6133_v56, %s8863_s19  ;;  %v3188_v24 = vpop.f32.mrf.mxu1 }
 0x226   : > { %3445 = vmatmul.mubr.bf16.gmra.mxu0 %v9823_v26  ;;  %v3189_v33 = vadd.f32 %v3188_v24, %v3125_v55  ;;  %v2196_v55 = vpack.c.bf16 %v832_v10, %v828_v43  ;;  %v825_v24 = vld [vmem:[%s9078_s25 + $0xcc0] sm:$0xff] }
 0x227   : > { %3508 = vmatmul.mubr.bf16.gmra.mxu1 %v9829_v8  ;;  %3625 = vmatprep.mubr.bf16.mxu0 %v9646_v18  ;;  %v834_v18 = vld [vmem:[%s9078_s25 + $0xd08] sm:$0xff]  ;;  %v809_v10 = vld [vmem:[%s9078_s25 + $0xc40] sm:$0xff] }
 0x228   : > { %3598 = vmatpush1.bf16.xpose.msra.mxu0 %v2205_v11  ;;  %3661 = vmatpush1.bf16.xpose.msra.mxu1 %v2207_v12  ;;  %v6749_v56 = vrot.slane %v3189_v33, 4  ;;  %v2197_v11 = vpack.c.bf16 %v837_v61, %v833_v60  ;;  %v2199_v12 = vpack.c.bf16 %v839_v50, %v835_v46  ;;  %v812_v60 = vld [vmem:[%s9078_s25 + $0xc58] sm:$0xff] }
 0x229   : > { %6384 = vrot.lane.b32.xlu1 %v6349_v51, %s8863_s19  ;;  %3599 = vmatprep.subr.bf16.mxu0 %v2202_v17  ;;  %v3187_v51 = vadd.f32 %v3186_v5, %v9800_v1  ;;  %v2194_v17 = vpack.c.bf16 %v830_v4, %v826_v3  ;;  %v822_v1 = vld [vmem:[%s9078_s25 + $0xca8] sm:$0xff]  ;;  %v820_v5 = vld [vmem:[%s9078_s25 + $0xc98] sm:$0xff] }
 0x22a   : > { %8180 = vmatprep.subr.msk.bf16.mxu1 %vm2854_vm0, %v2204_v29  ;;  %8193 = vmatprep.mubr.msk.bf16.mxu1 %vm2854_vm0, %v9652_v21  ;;  %v2198_v21 = vpack.c.bf16 %v838_v41, %v834_v18  ;;  %v829_v29 = vld [vmem:[%s9078_s25 + $0xce0] sm:$0xff]  ;;  %v2190_v41 = vpack.c.bf16 %v822_v1, %v818_v34  ;;  %v2192_v42 = vpack.c.bf16 %v824_v37, %v820_v5  ;;  %v816_v61 = vld [vmem:[%s9078_s25 + $0xc78] sm:$0xff] }
 0x22b   : > { %v6748_v9 = vrot.slane %v3187_v51, 4  ;;  %v2193_v38 = vpack.c.bf16 %v829_v29, %v825_v24  ;;  %v2188_v3 = vpack.c.bf16 %v816_v61, %v812_v60  ;;  %v934_v24 = vld [vmem:[%s9078_s25 + $0x1028] sm:$0xff]  ;;  %v932_v29 = vld [vmem:[%s9078_s25 + $0x1018] sm:$0xff] }
 0x22c   : > { %v928_v60 = vld [vmem:[%s9078_s25 + $0xff8] sm:$0xff] }
 0x22d   : > { %6936 = vrot.lane.b32.xlu1 %v3189_v33, %s8864_s29  ;;  %5765 = vrot.lane.b32.xlu0 %v5731_v31, %s8863_s19  ;;  %v827_v31 = vld [vmem:[%s9078_s25 + $0xcd0] sm:$0xff] }
 0x22e   : > { %v831_v33 = vld [vmem:[%s9078_s25 + $0xcf0] sm:$0xff] }
 0x22f   : > { %v2195_v18 = vpack.c.bf16 %v831_v33, %v827_v31 }
 0x230   : > { %3600 = vmatpush1.bf16.xpose.msra.mxu0 %v2201_v22  ;;  %3663 = vmatpush1.bf16.xpose.msra.mxu1 %v2203_v30  ;;  %v821_v22 = vld [vmem:[%s9078_s25 + $0xca0] sm:$0xff]  ;;  %v819_v30 = vld [vmem:[%s9078_s25 + $0xc90] sm:$0xff] }
 0x231   : > { %6784 = vrot.lane.b32.xlu1 %v6749_v56, %s8863_s19  ;;  %6166 = vrot.lane.b32.xlu0 %v6132_v53, %s8863_s19  ;;  %v823_v53 = vld [vmem:[%s9078_s25 + $0xcb0] sm:$0xff]  ;;  %v810_v56 = vld [vmem:[%s9078_s25 + $0xc48] sm:$0xff] }
 0x232   : > { %3601 = vmatprep.subr.bf16.mxu0 %v2198_v21  ;;  %8181 = vmatprep.subr.msk.bf16.mxu1 %vm2854_vm0, %v2200_v57  ;;  %v814_v57 = vld [vmem:[%s9078_s25 + $0xc68] sm:$0xff]  ;;  %v2191_v46 = vpack.c.bf16 %v823_v53, %v819_v30 }
 0x233   : > { %v2186_v50 = vpack.c.bf16 %v814_v57, %v810_v56  ;;  %v922_v30 = vld [vmem:[%s9078_s25 + $0xfc8] sm:$0xff]  ;;  %v924_v57 = vld [vmem:[%s9078_s25 + $0xfd8] sm:$0xff] }
 0x234   : > { %v926_v56 = vld [vmem:[%s9078_s25 + $0xfe8] sm:$0xff] }
 0x235   : > { %6382 = vrot.lane.b32.xlu0 %v6348_v62, %s8863_s19  ;;  %v2189_v62 = vpack.c.bf16 %v821_v22, %v817_v47  ;;  %v933_v47 = vld [vmem:[%s9078_s25 + $0x1020] sm:$0xff]  ;;  %v935_v22 = vld [vmem:[%s9078_s25 + $0x1030] sm:$0xff] }
 0x238   : > { %3602 = vmatpush1.bf16.xpose.msra.mxu0 %v2197_v11  ;;  %3665 = vmatpush1.bf16.xpose.msra.mxu1 %v2199_v12  ;;  %v813_v11 = vld [vmem:[%s9078_s25 + $0xc60] sm:$0xff]  ;;  %v811_v12 = vld [vmem:[%s9078_s25 + $0xc50] sm:$0xff] }
 0x239   : > { %6934 = vrot.lane.b32.xlu0 %v3187_v51, %s8864_s29  ;;  %3603 = vmatprep.subr.bf16.mxu0 %v2194_v17  ;;  %v815_v51 = vld [vmem:[%s9078_s25 + $0xc70] sm:$0xff]  ;;  %v930_v17 = vld [vmem:[%s9078_s25 + $0x1008] sm:$0xff]  ;;  %v2185_v1 = vpack.c.bf16 %v813_v11, %v809_v10  ;;  %v2242_v10 = vpack.c.bf16 %v926_v56, %v922_v30  ;;  %v2244_v11 = vpack.c.bf16 %v928_v60, %v924_v57  ;;  %v917_v56 = vld [vmem:[%s9078_s25 + $0xfa0] sm:$0xff] }
 0x23a   : > { %8182 = vmatprep.subr.msk.bf16.mxu1 %vm2854_vm0, %v2196_v55  ;;  %v2187_v5 = vpack.c.bf16 %v815_v51, %v811_v12  ;;  %v2246_v37 = vpack.c.bf16 %v934_v24, %v930_v17  ;;  %v925_v17 = vld [vmem:[%s9078_s25 + $0xfe0] sm:$0xff]  ;;  %v927_v24 = vld [vmem:[%s9078_s25 + $0xff0] sm:$0xff]  ;;  %v906_v60 = vld [vmem:[%s9078_s25 + $0xf48] sm:$0xff] }
 0x23b   : > { %v915_v57 = vld [vmem:[%s9078_s25 + $0xf90] sm:$0xff] }
 0x23d   : > { %6782 = vrot.lane.b32.xlu0 %v6748_v9, %s8863_s19  ;;  %v936_v9 = vld [vmem:[%s9078_s25 + $0x1038] sm:$0xff] }
 0x240   : > { %3604 = vmatpush1.bf16.xpose.msra.mxu0 %v2193_v38  ;;  %3667 = vmatpush1.bf16.xpose.msra.mxu1 %v2195_v18  ;;  %v2248_v38 = vpack.c.bf16 %v936_v9, %v932_v29  ;;  %v914_v9 = vld [vmem:[%s9078_s25 + $0xf88] sm:$0xff] }
 0x241   : > { %3605 = vmatprep.subr.bf16.mxu0 %v2190_v41  ;;  %8183 = vmatprep.subr.msk.bf16.mxu1 %vm2854_vm0, %v2192_v42  ;;  %v929_v42 = vld [vmem:[%s9078_s25 + $0x1000] sm:$0xff] }
 0x242   : > { %v9885_v21 = vpop.permute.xlu0 %5544 }
 0x246   : > { %v9890_v4 = vpop.permute.xlu0 %5546 }
 0x248   : > { %3606 = vmatpush1.bf16.xpose.msra.mxu0 %v2189_v62  ;;  %3669 = vmatpush1.bf16.xpose.msra.mxu1 %v2191_v46  ;;  %v9892_v43 = vpop.permute.xlu1 %5763 }
 0x249   : > { %3607 = vmatprep.subr.bf16.mxu0 %v2186_v50  ;;  %8184 = vmatprep.subr.msk.bf16.mxu1 %vm2854_vm0, %v2188_v3  ;;  %v2245_v50 = vpack.c.bf16 %v933_v47, %v929_v42 }
 0x24a   : > { %v5762_v55 = vpop.permute.xlu0 %5761 }
 0x24b   : > { %v5825_v31 = vsel %vm5608_vm3, %v5762_v55, %v9892_v43  ;;  %v923_v55 = vld [vmem:[%s9078_s25 + $0xfd0] sm:$0xff] }
 0x24c   : > { %v9905_v33 = vpop.permute.xlu1 %6164  ;;  %v5881_v34 = vadd.f32 %v5825_v31, %v9571_v6  ;;  %v931_v6 = vld [vmem:[%s9078_s25 + $0x1010] sm:$0xff]  ;;  %v918_v31 = vld [vmem:[%s9078_s25 + $0xfa8] sm:$0xff]  ;;  %v2243_v47 = vpack.c.bf16 %v927_v24, %v923_v55 }
 0x24d   : > { %v2247_v3 = vpack.c.bf16 %v935_v22, %v931_v6  ;;  %v2238_v6 = vpack.c.bf16 %v918_v31, %v914_v9  ;;  %v907_v55 = vld [vmem:[%s9078_s25 + $0xf50] sm:$0xff]  ;;  %v902_v9 = vld [vmem:[%s9078_s25 + $0xf28] sm:$0xff]  ;;  %v900_v31 = vld [vmem:[%s9078_s25 + $0xf18] sm:$0xff] }
 0x24e   : > { %v9908_v18 = vpop.permute.xlu0 %6162  ;;  %5945 = vrot.lane.b32.xlu0 %v5881_v34, %s8864_s29  ;;  %v911_v24 = vld [vmem:[%s9078_s25 + $0xf70] sm:$0xff] }
 0x250   : > { %3608 = vmatpush1.bf16.xpose.msra.mxu0 %v2185_v1  ;;  %3671 = vmatpush1.bf16.xpose.msra.mxu1 %v2187_v5  ;;  %v9911_v41 = vpop.permute.xlu1 %6380  ;;  %v916_v5 = vld [vmem:[%s9078_s25 + $0xf98] sm:$0xff] }
 0x251   : > { %3609 = vmatprep.subr.bf16.mxu0 %v2246_v37  ;;  %8185 = vmatprep.subr.msk.bf16.mxu1 %vm2854_vm0, %v2248_v38  ;;  %v920_v37 = vld [vmem:[%s9078_s25 + $0xfb8] sm:$0xff] }
 0x252   : > { %v6379_v53 = vpop.permute.xlu0 %6378  ;;  %v2240_v30 = vpack.c.bf16 %v920_v37, %v916_v5  ;;  %v2235_v5 = vpack.c.bf16 %v911_v24, %v907_v55  ;;  %v888_v55 = vld [vmem:[%s9078_s25 + $0xeb8] sm:$0xff] }
 0x253   : > { %v6442_v61 = vsel %vm5608_vm3, %v6379_v53, %v9911_v41  ;;  %v913_v53 = vld [vmem:[%s9078_s25 + $0xf80] sm:$0xff] }
 0x254   : > { %v6498_v62 = vadd.f32 %v6442_v61, %v9598_v36  ;;  %v9925_v46 = vpop.permute.xlu1 %6932  ;;  %v921_v36 = vld [vmem:[%s9078_s25 + $0xfc0] sm:$0xff]  ;;  %v910_v61 = vld [vmem:[%s9078_s25 + $0xf68] sm:$0xff] }
 0x255   : > { %v2241_v42 = vpack.c.bf16 %v925_v17, %v921_v36  ;;  %v905_v36 = vld [vmem:[%s9078_s25 + $0xf40] sm:$0xff] }
 0x256   : > { %v6931_v12 = vpop.permute.xlu0 %6930  ;;  %6562 = vrot.lane.b32.xlu0 %v6498_v62, %s8864_s29  ;;  %v908_v62 = vld [vmem:[%s9078_s25 + $0xf58] sm:$0xff]  ;;  %v909_v17 = vld [vmem:[%s9078_s25 + $0xf60] sm:$0xff] }
 0x257   : > { %v6994_v34 = vsel %vm6009_vm4, %v6931_v12, %v9925_v46 }
 0x258   : > { %3610 = vmatpush2.bf16.xpose.msra.mxu0 %v2245_v50  ;;  %3673 = vmatpush2.bf16.xpose.msra.mxu1 %v2247_v3  ;;  %v9928_v51 = vpop.permute.xlu1 %6780  ;;  %v912_v50 = vld [vmem:[%s9078_s25 + $0xf78] sm:$0xff]  ;;  %v2237_v3 = vpack.c.bf16 %v917_v56, %v913_v53  ;;  %v894_v53 = vld [vmem:[%s9078_s25 + $0xee8] sm:$0xff] }
 0x259   : > { %3611 = vmatprep.subr.bf16.mxu0 %v2242_v10  ;;  %8186 = vmatprep.subr.msk.bf16.mxu1 %vm2854_vm0, %v2244_v11  ;;  %v2234_v11 = vpack.c.bf16 %v910_v61, %v906_v60  ;;  %v2236_v12 = vpack.c.bf16 %v912_v50, %v908_v62  ;;  %v892_v56 = vld [vmem:[%s9078_s25 + $0xed8] sm:$0xff]  ;;  %v889_v50 = vld [vmem:[%s9078_s25 + $0xec0] sm:$0xff] }
 0x25a   : > { %v6779_v29 = vpop.permute.xlu0 %6778 }
 0x25b   : > { %v6842_v1 = vsel %vm5608_vm3, %v6779_v29, %v9928_v51  ;;  %v898_v29 = vld [vmem:[%s9078_s25 + $0xf08] sm:$0xff] }
 0x25c   : > { %v6898_v38 = vadd.f32 %v6842_v1, %v9609_v49  ;;  %v919_v49 = vld [vmem:[%s9078_s25 + $0xfb0] sm:$0xff]  ;;  %v2233_v1 = vpack.c.bf16 %v909_v17, %v905_v36  ;;  %v2230_v37 = vpack.c.bf16 %v902_v9, %v898_v29  ;;  %v886_v36 = vld [vmem:[%s9078_s25 + $0xea8] sm:$0xff]  ;;  %v884_v17 = vld [vmem:[%s9078_s25 + $0xe98] sm:$0xff] }
 0x25d   : > { %v2239_v10 = vpack.c.bf16 %v919_v49, %v915_v57  ;;  %v896_v57 = vld [vmem:[%s9078_s25 + $0xef8] sm:$0xff] }
 0x25e   : > { %v7050_v22 = vadd.f32 %v6994_v34, %v6898_v38  ;;  %v904_v34 = vld [vmem:[%s9078_s25 + $0xf38] sm:$0xff]  ;;  %v2228_v62 = vpack.c.bf16 %v896_v57, %v892_v56  ;;  %v873_v57 = vld [vmem:[%s9078_s25 + $0xe40] sm:$0xff] }
 0x25f   : > { %v2232_v38 = vpack.c.bf16 %v904_v34, %v900_v31  ;;  %v2224_v31 = vpack.c.bf16 %v888_v55, %v884_v17  ;;  %v881_v34 = vld [vmem:[%s9078_s25 + $0xe80] sm:$0xff] }
 0x260   : > { %3612 = vmatpush2.bf16.xpose.msra.mxu0 %v2241_v42  ;;  %3675 = vmatpush2.bf16.xpose.msra.mxu1 %v2243_v47  ;;  %v897_v42 = vld [vmem:[%s9078_s25 + $0xf00] sm:$0xff] }
 0x261   : > { %7114 = vrot.lane.b32.xlu1 %v7050_v22, %s8865_s21  ;;  %3613 = vmatprep.subr.bf16.mxu0 %v2238_v6  ;;  %v901_v47 = vld [vmem:[%s9078_s25 + $0xf20] sm:$0xff]  ;;  %v899_v6 = vld [vmem:[%s9078_s25 + $0xf10] sm:$0xff] }
 0x262   : > { %8187 = vmatprep.subr.msk.bf16.mxu1 %vm2854_vm0, %v2240_v30  ;;  %v903_v22 = vld [vmem:[%s9078_s25 + $0xf30] sm:$0xff]  ;;  %v890_v30 = vld [vmem:[%s9078_s25 + $0xec8] sm:$0xff]  ;;  %v2229_v49 = vpack.c.bf16 %v901_v47, %v897_v42  ;;  %v876_v47 = vld [vmem:[%s9078_s25 + $0xe58] sm:$0xff] }
 0x263   : > { %v2231_v60 = vpack.c.bf16 %v903_v22, %v899_v6  ;;  %v2226_v61 = vpack.c.bf16 %v894_v53, %v890_v30  ;;  %v878_v42 = vld [vmem:[%s9078_s25 + $0xe68] sm:$0xff]  ;;  %v880_v6 = vld [vmem:[%s9078_s25 + $0xe78] sm:$0xff] }
 0x264   : > { %v2220_v56 = vpack.c.bf16 %v880_v6, %v876_v47  ;;  %v990_v47 = vld [vmem:[%s9078_s25 + $0x11e8] sm:$0xff]  ;;  %v988_v6 = vld [vmem:[%s9078_s25 + $0x11d8] sm:$0xff] }
 0x268   : > { %3614 = vmatpush2.bf16.xpose.msra.mxu0 %v2237_v3  ;;  %3677 = vmatpush2.bf16.xpose.msra.mxu1 %v2239_v10  ;;  %v893_v3 = vld [vmem:[%s9078_s25 + $0xee0] sm:$0xff]  ;;  %v891_v10 = vld [vmem:[%s9078_s25 + $0xed0] sm:$0xff] }
 0x269   : > { %3615 = vmatprep.subr.bf16.mxu0 %v2234_v11  ;;  %8188 = vmatprep.subr.msk.bf16.mxu1 %vm2854_vm0, %v2236_v12  ;;  %v895_v11 = vld [vmem:[%s9078_s25 + $0xef0] sm:$0xff]  ;;  %v882_v12 = vld [vmem:[%s9078_s25 + $0xe88] sm:$0xff]  ;;  %v2225_v24 = vpack.c.bf16 %v893_v3, %v889_v50  ;;  %v996_v3 = vld [vmem:[%s9078_s25 + $0x1218] sm:$0xff] }
 0x26a   : > { %v2227_v29 = vpack.c.bf16 %v895_v11, %v891_v10  ;;  %v2222_v9 = vpack.c.bf16 %v886_v36, %v882_v12  ;;  %v998_v50 = vld [vmem:[%s9078_s25 + $0x1228] sm:$0xff]  ;;  %v1000_v10 = vld [vmem:[%s9078_s25 + $0x1238] sm:$0xff] }
 0x26b   : > { %v2280_v17 = vpack.c.bf16 %v1000_v10, %v996_v3  ;;  %v978_v3 = vld [vmem:[%s9078_s25 + $0x1188] sm:$0xff] }
 0x270   : > { %3616 = vmatpush2.bf16.xpose.msra.mxu0 %v2233_v1  ;;  %3679 = vmatpush2.bf16.xpose.msra.mxu1 %v2235_v5  ;;  %v885_v1 = vld [vmem:[%s9078_s25 + $0xea0] sm:$0xff]  ;;  %v883_v5 = vld [vmem:[%s9078_s25 + $0xe90] sm:$0xff] }
 0x271   : > { %3617 = vmatprep.subr.bf16.mxu0 %v2230_v37  ;;  %8189 = vmatprep.subr.msk.bf16.mxu1 %vm2854_vm0, %v2232_v38  ;;  %v887_v37 = vld [vmem:[%s9078_s25 + $0xeb0] sm:$0xff]  ;;  %v874_v38 = vld [vmem:[%s9078_s25 + $0xe48] sm:$0xff]  ;;  %v2221_v22 = vpack.c.bf16 %v885_v1, %v881_v34  ;;  %v997_v34 = vld [vmem:[%s9078_s25 + $0x1220] sm:$0xff] }
 0x272   : > { %v2223_v30 = vpack.c.bf16 %v887_v37, %v883_v5  ;;  %v2218_v53 = vpack.c.bf16 %v878_v42, %v874_v38  ;;  %v995_v5 = vld [vmem:[%s9078_s25 + $0x1210] sm:$0xff]  ;;  %v986_v38 = vld [vmem:[%s9078_s25 + $0x11c8] sm:$0xff] }
 0x273   : > { %v999_v37 = vld [vmem:[%s9078_s25 + $0x1230] sm:$0xff] }
 0x278   : > { %3618 = vmatpush2.bf16.xpose.msra.mxu0 %v2229_v49  ;;  %3681 = vmatpush2.bf16.xpose.msra.mxu1 %v2231_v60  ;;  %v877_v49 = vld [vmem:[%s9078_s25 + $0xe60] sm:$0xff]  ;;  %v875_v60 = vld [vmem:[%s9078_s25 + $0xe50] sm:$0xff] }
 0x279   : > { %3619 = vmatprep.subr.bf16.mxu0 %v2226_v61  ;;  %8190 = vmatprep.subr.msk.bf16.mxu1 %vm2854_vm0, %v2228_v62  ;;  %v879_v61 = vld [vmem:[%s9078_s25 + $0xe70] sm:$0xff]  ;;  %v994_v62 = vld [vmem:[%s9078_s25 + $0x1208] sm:$0xff]  ;;  %v2217_v11 = vpack.c.bf16 %v877_v49, %v873_v57  ;;  %v2274_v57 = vpack.c.bf16 %v990_v47, %v986_v38 }
 0x27a   : > { %v2219_v12 = vpack.c.bf16 %v879_v61, %v875_v60  ;;  %v2278_v36 = vpack.c.bf16 %v998_v50, %v994_v62  ;;  %v985_v60 = vld [vmem:[%s9078_s25 + $0x11c0] sm:$0xff]  ;;  %v987_v62 = vld [vmem:[%s9078_s25 + $0x11d0] sm:$0xff] }
 0x27b   : > { %v989_v61 = vld [vmem:[%s9078_s25 + $0x11e0] sm:$0xff]  ;;  %v991_v50 = vld [vmem:[%s9078_s25 + $0x11f0] sm:$0xff] }
 0x280   : > { %3620 = vmatpush2.bf16.xpose.msra.mxu0 %v2225_v24  ;;  %3683 = vmatpush2.bf16.xpose.msra.mxu1 %v2227_v29 }
 0x281   : > { %3621 = vmatprep.subr.bf16.mxu0 %v2222_v9  ;;  %8191 = vmatprep.subr.msk.bf16.mxu1 %vm2854_vm0, %v2224_v31  ;;  %v993_v31 = vld [vmem:[%s9078_s25 + $0x1200] sm:$0xff] }
 0x288   : > { %3622 = vmatpush2.bf16.xpose.msra.mxu0 %v2221_v22  ;;  %3685 = vmatpush2.bf16.xpose.msra.mxu1 %v2223_v30  ;;  %v992_v22 = vld [vmem:[%s9078_s25 + $0x11f8] sm:$0xff] }
 0x289   : > { %3623 = vmatprep.subr.bf16.mxu0 %v2218_v53  ;;  %8192 = vmatprep.subr.msk.bf16.mxu1 %vm2854_vm0, %v2220_v56  ;;  %v2277_v53 = vpack.c.bf16 %v997_v34, %v993_v31  ;;  %v2279_v56 = vpack.c.bf16 %v999_v37, %v995_v5  ;;  %v2276_v49 = vpack.c.bf16 %v992_v22, %v988_v6  ;;  %v979_v31 = vld [vmem:[%s9078_s25 + $0x1190] sm:$0xff]  ;;  %v972_v5 = vld [vmem:[%s9078_s25 + $0x1158] sm:$0xff] }
 0x28a   : > { %v983_v34 = vld [vmem:[%s9078_s25 + $0x11b0] sm:$0xff]  ;;  %v976_v37 = vld [vmem:[%s9078_s25 + $0x1178] sm:$0xff] }
 0x28b   : > { %v10012_v30 = vpop.permute.xlu1 %5548  ;;  %v2271_v22 = vpack.c.bf16 %v983_v34, %v979_v31  ;;  %v10083_v31 = vld [vmem:[%s13936_s1 + $0xc] ss:$16 sps:$4 sm:$0xff]  }
 0x28e   : > { %v3300_v55 = vpop.f32.mrf.mxu0 }
 0x28f   : > { %v3363_v24 = vpop.f32.mrf.mxu1  ;;  %v10022_v10 = vpop.permute.xlu1 %5550 }
 0x290   : > { %v9999_v29 = vadd.f32 %v3363_v24, %v3300_v55  ;;  %3624 = vmatpush2.bf16.xpose.msra.mxu0 %v2217_v11  ;;  %3687 = vmatpush2.bf16.xpose.msra.mxu1 %v2219_v12  ;;  %v3302_v9 = vpop.f32.mrf.mxu0  ;;  %v982_v11 = vld [vmem:[%s9078_s25 + $0x11a8] sm:$0xff]  ;;  %v980_v12 = vld [vmem:[%s9078_s25 + $0x1198] sm:$0xff] }
 0x291   : > { %v3365_v1 = vpop.f32.mrf.mxu1  ;;  %3719 = vmatprep.subr.bf16.mxu0 %v2278_v36  ;;  %8196 = vmatprep.subr.msk.bf16.mxu1 %vm2854_vm0, %v2280_v17  ;;  %v984_v36 = vld [vmem:[%s9078_s25 + $0x11b8] sm:$0xff]  ;;  %v2270_v17 = vpack.c.bf16 %v982_v11, %v978_v3  ;;  %v971_v3 = vld [vmem:[%s9078_s25 + $0x1150] sm:$0xff] }
 0x292   : > { %14026 = vst [vmem:[#allocation17_spill] sm:$0xff] %v9999_v29  ;;  %v10007_v42 = vadd.f32 %v3365_v1, %v3302_v9  ;;  %v2272_v55 = vpack.c.bf16 %v984_v36, %v980_v12  ;;  %v977_v9 = vld [vmem:[%s9078_s25 + $0x1180] sm:$0xff]  ;;  %v970_v1 = vld [vmem:[%s9078_s25 + $0x1148] sm:$0xff]  ;;  %v975_v11 = vld [vmem:[%s9078_s25 + $0x1170] sm:$0xff] }
 0x293   : > { %v5768_v24 = vpop.permute.xlu1 %5767  ;;  %v3367_v38 = vpop.f32.mrf.mxu1 }
 0x294   : > { %14027 = vst [vmem:[#allocation18_spill] sm:$0xff] %v10007_v42  ;;  %v5884_v36 = vadd.f32 %v5768_v24, %v9732_v15 }
 0x297   : > { %3626 = vmatmul.mubr.bf16.vlgmr.msra.gmra.mxu0 %v9727_v7  ;;  %3689 = vmatmul.mubr.bf16.vlgmr.msra.gmra.mxu1 %v9737_v44  ;;  %v2273_v7 = vpack.c.bf16 %v989_v61, %v985_v60  ;;  %v2275_v44 = vpack.c.bf16 %v991_v50, %v987_v62  ;;  %v2268_v60 = vpack.c.bf16 %v976_v37, %v972_v5 }
 0x298   : > { %3720 = vmatpush1.bf16.xpose.msra.mxu0 %v2277_v53  ;;  %3783 = vmatpush1.bf16.xpose.msra.mxu1 %v2279_v56 }
 0x299   : > { %3721 = vmatprep.subr.bf16.mxu0 %v2274_v57  ;;  %8197 = vmatprep.subr.msk.bf16.mxu1 %vm2854_vm0, %v2276_v49  ;;  %v10049_v57 = vpop.permute.xlu1 %6168 }
 0x29a   : > { %3635 = vmatprep.mubr.bf16.mxu0 %v9747_v19  ;;  %8194 = vmatprep.mubr.msk.bf16.mxu1 %vm2854_vm0, %v9760_v23  ;;  %v981_v23 = vld [vmem:[%s9078_s25 + $0x11a0] sm:$0xff] }
 0x29b   : > { %v2269_v6 = vpack.c.bf16 %v981_v23, %v977_v9  ;;  %v968_v9 = vld [vmem:[%s9078_s25 + $0x1138] sm:$0xff]  ;;  %v10077_v23 = vld [vmem:[%s13936_s1 + $0x4] ss:$16 sps:$4 sm:$0xff]  }
 0x29d   : > { %v6385_v15 = vpop.permute.xlu1 %6384 }
 0x29f   : > { %3636 = vmatmul.mubr.bf16.gmra.mxu0 %v9777_v28  ;;  %3699 = vmatmul.mubr.bf16.gmra.mxu1 %v9783_v48  ;;  %v3304_v28 = vpop.f32.mrf.mxu0  ;;  %v974_v48 = vld [vmem:[%s9078_s25 + $0x1168] sm:$0xff] }
 0x2a0   : > { %3722 = vmatpush1.bf16.xpose.msra.mxu0 %v2273_v7  ;;  %3785 = vmatpush1.bf16.xpose.msra.mxu1 %v2275_v44  ;;  %v10032_v19 = vpop.xlane.xlu0 %7276  ;;  %v2266_v49 = vpack.c.bf16 %v974_v48, %v970_v1  ;;  %v10053_v61 = vadd.f32 %v3367_v38, %v3304_v28  ;;  %v2267_v1 = vpack.c.bf16 %v975_v11, %v971_v3  ;;  %v958_v3 = vld [vmem:[%s9078_s25 + $0x10e8] sm:$0xff]  ;;  %v956_v11 = vld [vmem:[%s9078_s25 + $0x10d8] sm:$0xff] }
 0x2a1   : > { %14028 = vst [vmem:[#allocation19_spill] sm:$0xff] %v10032_v19  ;;  %3723 = vmatprep.subr.bf16.mxu0 %v2270_v17  ;;  %8198 = vmatprep.subr.msk.bf16.mxu1 %vm2854_vm0, %v2272_v55  ;;  %v3306_v62 = vpop.f32.mrf.mxu0  ;;  %v966_v17 = vld [vmem:[%s9078_s25 + $0x1128] sm:$0xff]  ;;  %v964_v55 = vld [vmem:[%s9078_s25 + $0x1118] sm:$0xff] }
 0x2a2   : > { %3645 = vmatprep.mubr.bf16.mxu0 %v9789_v52  ;;  %8195 = vmatprep.mubr.msk.bf16.mxu1 %vm2854_vm0, %v9806_v2  ;;  %v5516_v7 = vrot.slane %v10053_v61, 4  ;;  %v2264_v38 = vpack.c.bf16 %v968_v9, %v964_v55 }
 0x2a4   : > { %v5766_v47 = vpop.permute.xlu0 %5765 }
 0x2a5   : > { %v5826_v53 = vsel %vm5608_vm3, %v9892_v43, %v5766_v47  ;;  %v5827_v56 = vsel %vm5608_vm3, %v5766_v47, %v5768_v24  ;;  %v3369_v43 = vpop.f32.mrf.mxu1 }
 0x2a6   : > { %v5882_v52 = vadd.f32 %v5826_v53, %v9573_v16  ;;  %v5883_v2 = vadd.f32 %v5827_v56, %v9717_v59  ;;  %v969_v16 = vld [vmem:[%s9078_s25 + $0x1140] sm:$0xff]  ;;  %v10069_v44 = vadd.f32 %v3369_v43, %v3306_v62  ;;  %v6937_v62 = vpop.permute.xlu1 %6936 }
 0x2a7   : > { %3646 = vmatmul.mubr.bf16.gmra.mxu0 %v9823_v26  ;;  %3709 = vmatmul.mubr.bf16.gmra.mxu1 %v9829_v8  ;;  %v973_v59 = vld [vmem:[%s9078_s25 + $0x1160] sm:$0xff]  ;;  %v3310_v26 = vpop.f32.mrf.mxu0  ;;  %v3373_v12 = vpop.f32.mrf.mxu1  ;;  %v962_v8 = vld [vmem:[%s9078_s25 + $0x1108] sm:$0xff] }
 0x2a8   : > { %3724 = vmatpush1.bf16.xpose.msra.mxu0 %v2269_v6  ;;  %3787 = vmatpush1.bf16.xpose.msra.mxu1 %v2271_v22  ;;  %v10057_v50 = vpop.permute.xlu0 %6166  ;;  %v2265_v34 = vpack.c.bf16 %v973_v59, %v969_v16  ;;  %v10089_v28 = vadd.f32 %v3373_v12, %v3310_v26  ;;  %v2262_v37 = vpack.c.bf16 %v966_v17, %v962_v8  ;;  %v5517_v47 = vrot.slane %v10069_v44, 4  ;;  %v961_v56 = vld [vmem:[%s9078_s25 + $0x1100] sm:$0xff]  ;;  %v954_v16 = vld [vmem:[%s9078_s25 + $0x10c8] sm:$0xff]  ;;  %v960_v26 = vld [vmem:[%s9078_s25 + $0x10f8] sm:$0xff] }
 0x2a9   : > { %5947 = vrot.lane.b32.xlu1 %v5882_v52, %s8864_s29  ;;  %5949 = vrot.lane.b32.xlu0 %v5883_v2, %s8864_s29  ;;  %v3312_v48 = vpop.f32.mrf.mxu0  ;;  %v3375_v5 = vpop.f32.mrf.mxu1  ;;  %v6501_v6 = vadd.f32 %v6385_v15, %v9772_v27  ;;  %v965_v52 = vld [vmem:[%s9078_s25 + $0x1120] sm:$0xff] }
 0x2aa   : > { %3725 = vmatprep.subr.bf16.mxu0 %v2266_v49  ;;  %8199 = vmatprep.subr.msk.bf16.mxu1 %vm2854_vm0, %v2268_v60  ;;  %14029 = vst [vmem:[#allocation20_spill] sm:$0xff] %v10089_v28  ;;  %v5733_v2 = vrot.slane %v10089_v28, 4  ;;  %v10102_v27 = vadd.f32 %v3375_v5, %v3312_v48  ;;  %v967_v60 = vld [vmem:[%s9078_s25 + $0x1130] sm:$0xff]  ;;  %v6785_v5 = vpop.permute.xlu1 %6784 }
 0x2ab   : > { %3751 = vmatprep.mubr.bf16.mxu0 %v10077_v23  ;;  %8205 = vmatprep.mubr.msk.bf16.mxu1 %vm2854_vm0, %v10083_v31  ;;  %v3314_v49 = vpop.f32.mrf.mxu0  ;;  %v3377_v43 = vpop.f32.mrf.mxu1 }
 0x2ac   : > { %v6383_v24 = vpop.permute.xlu0 %6382  ;;  %14030 = vst [vmem:[#allocation21_spill] sm:$0xff] %v10102_v27  ;;  %v5734_v17 = vrot.slane %v10102_v27, 4 }
 0x2ad   : > { %5951 = vrot.lane.b32.xlu1 %v5884_v36, %s8864_s29  ;;  %5552 = vrot.lane.b32.xlu0 %v5516_v7, %s8863_s19  ;;  %v6443_v22 = vsel %vm5608_vm3, %v9911_v41, %v6383_v24  ;;  %v963_v41 = vld [vmem:[%s9078_s25 + $0x1110] sm:$0xff]  ;;  %v6444_v12 = vsel %vm5608_vm3, %v6383_v24, %v6385_v15  ;;  %v2261_v36 = vpack.c.bf16 %v965_v52, %v961_v56  ;;  %v3316_v9 = vpop.f32.mrf.mxu0  ;;  %v3379_v15 = vpop.f32.mrf.mxu1  ;;  %v946_v52 = vld [vmem:[%s9078_s25 + $0x1088] sm:$0xff] }
 0x2ae   : > { %v6499_v59 = vadd.f32 %v6443_v22, %v9601_v45  ;;  %v2263_v7 = vpack.c.bf16 %v967_v60, %v963_v41  ;;  %v10118_v45 = vadd.f32 %v3377_v43, %v3314_v49  ;;  %v2258_v24 = vpack.c.bf16 %v958_v3, %v954_v16  ;;  %v950_v41 = vld [vmem:[%s9078_s25 + $0x10a8] sm:$0xff]  ;;  %v948_v60 = vld [vmem:[%s9078_s25 + $0x1098] sm:$0xff] }
 0x2af   : > { %v6500_v48 = vadd.f32 %v6444_v12, %v9836_v32  ;;  %v3320_v22 = vpop.f32.mrf.mxu0  ;;  %v3383_v56 = vpop.f32.mrf.mxu1  ;;  %v952_v43 = vld [vmem:[%s9078_s25 + $0x10b8] sm:$0xff]  ;;  %v2254_v12 = vpack.c.bf16 %v950_v41, %v946_v52  ;;  %v941_v41 = vld [vmem:[%s9078_s25 + $0x1060] sm:$0xff] }
 0x2b0   : > { %3726 = vmatpush1.bf16.xpose.msra.mxu0 %v2265_v34  ;;  %3789 = vmatpush1.bf16.xpose.msra.mxu1 %v2267_v1  ;;  %v10095_v53 = vpop.permute.xlu0 %6934  ;;  %v2260_v34 = vpack.c.bf16 %v960_v26, %v956_v11  ;;  %v10144_v11 = vadd.f32 %v3383_v56, %v3320_v22 }
 0x2b1   : > { %5554 = vrot.lane.b32.xlu1 %v5517_v47, %s8863_s19  ;;  %6568 = vrot.lane.b32.xlu0 %v6501_v6, %s8864_s29  ;;  %v10127_v47 = vadd.f32 %v3379_v15, %v3316_v9  ;;  %v959_v6 = vld [vmem:[%s9078_s25 + $0x10f0] sm:$0xff]  ;;  %v6995_v32 = vsel %vm6009_vm4, %v9925_v46, %v10095_v53  ;;  %v3385_v26 = vpop.f32.mrf.mxu1  ;;  %v949_v9 = vld [vmem:[%s9078_s25 + $0x10a0] sm:$0xff] }
 0x2b2   : > { %3727 = vmatprep.subr.bf16.mxu0 %v2262_v37  ;;  %8200 = vmatprep.subr.msk.bf16.mxu1 %vm2854_vm0, %v2264_v38  ;;  %v957_v37 = vld [vmem:[%s9078_s25 + $0x10e0] sm:$0xff]  ;;  %v6134_v38 = vrot.slane %v10118_v45, 4  ;;  %v6350_v15 = vrot.slane %v10144_v11, 4 }
 0x2b3   : > { %14031 = vst [vmem:[#allocation22_spill] sm:$0xff] %v10127_v47  ;;  %v6135_v46 = vrot.slane %v10127_v47, 4 }
 0x2b4   : > { %v6783_v8 = vpop.permute.xlu0 %6782 }
 0x2b5   : > { %v6843_v55 = vsel %vm5608_vm3, %v9928_v51, %v6783_v8  ;;  %6564 = vrot.lane.b32.xlu1 %v6499_v59, %s8864_s29  ;;  %5769 = vrot.lane.b32.xlu0 %v5733_v2, %s8863_s19  ;;  %v953_v51 = vld [vmem:[%s9078_s25 + $0x10c0] sm:$0xff]  ;;  %v6901_v2 = vadd.f32 %v6785_v5, %v9798_v0  ;;  %v6844_v16 = vsel %vm5608_vm3, %v6783_v8, %v6785_v5  ;;  %v3322_v0 = vpop.f32.mrf.mxu0  ;;  %v942_v5 = vld [vmem:[%s9078_s25 + $0x1068] sm:$0xff] }
 0x2b6   : > { %v6899_v1 = vadd.f32 %v6843_v55, %v9617_v58  ;;  %v955_v58 = vld [vmem:[%s9078_s25 + $0x10d0] sm:$0xff]  ;;  %v2257_v59 = vpack.c.bf16 %v957_v37, %v953_v51  ;;  %v6900_v8 = vadd.f32 %v6844_v16, %v9850_v39  ;;  %v945_v55 = vld [vmem:[%s9078_s25 + $0x1080] sm:$0xff]  ;;  %v940_v51 = vld [vmem:[%s9078_s25 + $0x1058] sm:$0xff] }
 0x2b7   : > { %v2259_v3 = vpack.c.bf16 %v959_v6, %v955_v58  ;;  %v947_v39 = vld [vmem:[%s9078_s25 + $0x1090] sm:$0xff]  ;;  %v944_v37 = vld [vmem:[%s9078_s25 + $0x1078] sm:$0xff] }
 0x2b8   : > { %3728 = vmatpush1.bf16.xpose.msra.mxu0 %v2261_v36  ;;  %3791 = vmatpush1.bf16.xpose.msra.mxu1 %v2263_v7  ;;  %v7051_v49 = vadd.f32 %v6995_v32, %v6899_v1  ;;  %v2256_v36 = vpack.c.bf16 %v952_v43, %v948_v60  ;;  %v7053_v7 = vadd.f32 %v6937_v62, %v6901_v2  ;;  %v3324_v1 = vpop.f32.mrf.mxu0  ;;  %v939_v16 = vld [vmem:[%s9078_s25 + $0x1050] sm:$0xff] }
 0x2b9   : > { %5771 = vrot.lane.b32.xlu1 %v5734_v17, %s8863_s19  ;;  %6566 = vrot.lane.b32.xlu0 %v6500_v48, %s8864_s29  ;;  %v6996_v17 = vsel %vm6009_vm4, %v10095_v53, %v6937_v62  ;;  %v3387_v48 = vpop.f32.mrf.mxu1  ;;  %v938_v53 = vld [vmem:[%s9078_s25 + $0x1048] sm:$0xff]  ;;  %v2252_v2 = vpack.c.bf16 %v944_v37, %v940_v51  ;;  %v1061_v37 = vld [vmem:[%s9078_s25 + $0x1420] sm:$0xff] }
 0x2ba   : > { %3729 = vmatprep.subr.bf16.mxu0 %v2258_v24  ;;  %8201 = vmatprep.subr.msk.bf16.mxu1 %vm2854_vm0, %v2260_v34  ;;  %v10154_v24 = vadd.f32 %v3385_v26, %v3322_v0  ;;  %v951_v34 = vld [vmem:[%s9078_s25 + $0x10b0] sm:$0xff]  ;;  %v7052_v62 = vadd.f32 %v6996_v17, %v6900_v8  ;;  %v3388_v32 = vadd.f32 %v3387_v48, %v3324_v1  ;;  %v3326_v22 = vpop.f32.mrf.mxu0 }
 0x2bb   : > { %v2255_v58 = vpack.c.bf16 %v951_v34, %v947_v39  ;;  %v3389_v56 = vpop.f32.mrf.mxu1  ;;  %v2250_v52 = vpack.c.bf16 %v942_v5, %v938_v53  ;;  %v1003_v17 = vld [vmem:[%s9078_s25 + $0x1250] sm:$0xff]  ;;  %v1068_v39 = vld [vmem:[%s9078_s25 + $0x1458] sm:$0xff] }
 0x2bc   : > { %14032 = vst [vmem:[#allocation23_spill] sm:$0xff] %v10154_v24  ;;  %v6351_v6 = vrot.slane %v10154_v24, 4  ;;  %v6750_v60 = vrot.slane %v3388_v32, 4  ;;  %v3390_v43 = vadd.f32 %v3389_v56, %v3326_v22  ;;  %v2283_v1 = vpack.c.bf16 %v1003_v17, %v1003_v17  ;;  %v1054_v56 = vld [vmem:[%s9078_s25 + $0x13e8] sm:$0xff] }
 0x2bd   : > { %6170 = vrot.lane.b32.xlu1 %v6134_v38, %s8863_s19  ;;  %7116 = vrot.lane.b32.xlu0 %v7051_v49, %s8865_s21  ;;  %v2253_v38 = vpack.c.bf16 %v949_v9, %v945_v55  ;;  %v937_v49 = vld [vmem:[%s9078_s25 + $0x1040] sm:$0xff]  ;;  %v1062_v55 = vld [vmem:[%s9078_s25 + $0x1428] sm:$0xff] }
 0x2be   : > { %v2249_v0 = vpack.c.bf16 %v941_v41, %v937_v49  ;;  %v1066_v9 = vld [vmem:[%s9078_s25 + $0x1448] sm:$0xff]  ;;  %v1056_v49 = vld [vmem:[%s9078_s25 + $0x13f8] sm:$0xff] }
 0x2bf   : > { %v2314_v48 = vpack.c.bf16 %v1066_v9, %v1062_v55  ;;  %v1060_v41 = vld [vmem:[%s9078_s25 + $0x1418] sm:$0xff]  ;;  %v1053_v9 = vld [vmem:[%s9078_s25 + $0x13e0] sm:$0xff] }
 0x2c0   : > { %3730 = vmatpush1.bf16.xpose.msra.mxu0 %v2257_v59  ;;  %3793 = vmatpush1.bf16.xpose.msra.mxu1 %v2259_v3  ;;  %v943_v59 = vld [vmem:[%s9078_s25 + $0x1070] sm:$0xff]  ;;  %v1002_v3 = vld [vmem:[%s9078_s25 + $0x1248] sm:$0xff] }
 0x2c1   : > { %6172 = vrot.lane.b32.xlu0 %v6135_v46, %s8863_s19  ;;  %7120 = vrot.lane.b32.xlu1 %v7053_v7, %s8865_s21  ;;  %v1004_v46 = vld [vmem:[%s9078_s25 + $0x1258] sm:$0xff]  ;;  %v2251_v26 = vpack.c.bf16 %v943_v59, %v939_v16  ;;  %v1001_v7 = vld [vmem:[%s9078_s25 + $0x1240] sm:$0xff] }
 0x2c2   : > { %3731 = vmatprep.subr.bf16.mxu0 %v2254_v12  ;;  %8202 = vmatprep.subr.msk.bf16.mxu1 %vm2854_vm0, %v2256_v36  ;;  %v6751_v12 = vrot.slane %v3390_v43, 4  ;;  %v2282_v36 = vpack.c.bf16 %v1002_v3, %v1002_v3  ;;  %v2284_v8 = vpack.c.bf16 %v1004_v46, %v1004_v46  ;;  %v2281_v34 = vpack.c.bf16 %v1001_v7, %v1001_v7  ;;  %v10218_v7 = vld [vmem:[%s13936_s1 + $0x8] ss:$16 sps:$4 sm:$0xff]  }
 0x2c5   : > { %7118 = vrot.lane.b32.xlu1 %v7052_v62, %s8865_s21  ;;  %6386 = vrot.lane.b32.xlu0 %v6350_v15, %s8863_s19  ;;  %v1064_v15 = vld [vmem:[%s9078_s25 + $0x1438] sm:$0xff] }
 0x2c6   : > { %v2316_v53 = vpack.c.bf16 %v1068_v39, %v1064_v15  ;;  %v1057_v15 = vld [vmem:[%s9078_s25 + $0x1400] sm:$0xff] }
 0x2c8   : > { %3732 = vmatpush1.bf16.xpose.msra.mxu0 %v2253_v38  ;;  %3795 = vmatpush1.bf16.xpose.msra.mxu1 %v2255_v58  ;;  %v1065_v58 = vld [vmem:[%s9078_s25 + $0x1440] sm:$0xff] }
 0x2c9   : > { %6388 = vrot.lane.b32.xlu1 %v6351_v6, %s8863_s19  ;;  %6938 = vrot.lane.b32.xlu0 %v3388_v32, %s8864_s29  ;;  %v1063_v6 = vld [vmem:[%s9078_s25 + $0x1430] sm:$0xff]  ;;  %v2313_v16 = vpack.c.bf16 %v1065_v58, %v1061_v37 }
 0x2ca   : > { %3733 = vmatprep.subr.bf16.mxu0 %v2250_v52  ;;  %8203 = vmatprep.subr.msk.bf16.mxu1 %vm2854_vm0, %v2252_v2  ;;  %v1067_v32 = vld [vmem:[%s9078_s25 + $0x1450] sm:$0xff]  ;;  %v1058_v52 = vld [vmem:[%s9078_s25 + $0x1408] sm:$0xff] }
 0x2cb   : > { %v2315_v59 = vpack.c.bf16 %v1067_v32, %v1063_v6  ;;  %v2310_v46 = vpack.c.bf16 %v1058_v52, %v1054_v56  ;;  %v10240_v58 = vld [vmem:[%s13936_s1 + $0x24] ss:$16 sps:$4 sm:$0xff]   ;;  %v1050_v6 = vld [vmem:[%s9078_s25 + $0x13c8] sm:$0xff]  ;;  %v1048_v32 = vld [vmem:[%s9078_s25 + $0x13b8] sm:$0xff] }
 0x2cc   : > { %v10251_v52 = vld [vmem:[%s13936_s1 + $0x2c] ss:$16 sps:$4 sm:$0xff]  }
 0x2cd   : > { %6940 = vrot.lane.b32.xlu1 %v3390_v43, %s8864_s29  ;;  %6786 = vrot.lane.b32.xlu0 %v6750_v60, %s8863_s19 }
 0x2d0   : > { %3734 = vmatpush1.bf16.xpose.msra.mxu0 %v2249_v0  ;;  %3797 = vmatpush1.bf16.xpose.msra.mxu1 %v2251_v26 }
 0x2d1   : > { %6788 = vrot.lane.b32.xlu1 %v6751_v12, %s8863_s19  ;;  %3749 = vmatprep.subr.bf16.mxu0 %v2282_v36  ;;  %v2312_v12 = vpack.c.bf16 %v1060_v41, %v1056_v49  ;;  %v2309_v49 = vpack.c.bf16 %v1057_v15, %v1053_v9  ;;  %v10267_v9 = vld [vmem:[%s13936_s1 + $0x28] ss:$16 sps:$4 sm:$0xff]  }
 0x2d2   : > { %8204 = vmatprep.subr.msk.bf16.mxu1 %vm2854_vm0, %v2284_v8  ;;  %v10212_v8 = vld [vmem:[%s13936_s1] ss:$16 sps:$4 sm:$0xff]  }
 0x2d6   : > { %v10185_v62 = vpop.f32.mrf.mxu0 }
 0x2d7   : > { %v10187_v5 = vpop.f32.mrf.mxu1 }
 0x2d8   : > { %3750 = vmatpush2.bf16.xpose.msra.mxu0 %v2281_v34  ;;  %3813 = vmatpush2.bf16.xpose.msra.mxu1 %v2283_v1  ;;  %v10189_v51 = vpop.f32.mrf.mxu0  ;;  %v1055_v34 = vld [vmem:[%s9078_s25 + $0x13f0] sm:$0xff]  ;;  %v10272_v15 = vadd.f32 %v10187_v5, %v10185_v62 }
 0x2d9   : > { %v10192_v38 = vpop.f32.mrf.mxu1  ;;  %3920 = vmatprep.subr.bf16.mxu0 %v2314_v48  ;;  %8208 = vmatprep.subr.msk.bf16.mxu1 %vm2854_vm0, %v2316_v53  ;;  %v1059_v1 = vld [vmem:[%s9078_s25 + $0x1410] sm:$0xff]  ;;  %v1046_v48 = vld [vmem:[%s9078_s25 + $0x13a8] sm:$0xff] }
 0x2da   : > { %v3430_v22 = vpop.f32.mrf.mxu0  ;;  %v2311_v41 = vpack.c.bf16 %v1059_v1, %v1055_v34  ;;  %14035 = vst [vmem:[#allocation26_spill] sm:$0xff] %v10272_v15  ;;  %v1047_v62 = vld [vmem:[%s9078_s25 + $0x13b0] sm:$0xff]  ;;  %v10313_v28 = vadd.f32 %v10192_v38, %v10189_v51  ;;  %v1041_v38 = vld [vmem:[%s9078_s25 + $0x1380] sm:$0xff] }
 0x2db   : > { %v3493_v2 = vpop.f32.mrf.mxu1  ;;  %v1051_v5 = vld [vmem:[%s9078_s25 + $0x13d0] sm:$0xff] }
 0x2dc   : > { %v10202_v60 = vadd.f32 %v3493_v2, %v3430_v22  ;;  %v10204_v43 = vpop.f32.mrf.mxu0  ;;  %v1052_v22 = vld [vmem:[%s9078_s25 + $0x13d8] sm:$0xff] }
 0x2dd   : > { %v10206_v3 = vpop.f32.mrf.mxu1  ;;  %v10325_v51 = vld [vmem:[%s13936_s1 + $0x48] ss:$16 sps:$4 sm:$0xff]  }
 0x2de   : > { %v5518_v0 = vrot.slane %v10202_v60, 4  ;;  %v3436_v26 = vpop.f32.mrf.mxu0 }
 0x2df   : > { %v3499_v36 = vpop.f32.mrf.mxu1  ;;  %3752 = vmatmul.mubr.bf16.vlgmr.msra.gmra.mxu0 %v10212_v8  ;;  %3815 = vmatmul.mubr.bf16.vlgmr.msra.gmra.mxu1 %v10218_v7 }
 0x2e0   : > { %v10221_v17 = vadd.f32 %v3499_v36, %v3436_v26  ;;  %3921 = vmatpush1.bf16.xpose.msra.mxu0 %v2313_v16  ;;  %3984 = vmatpush1.bf16.xpose.msra.mxu1 %v2315_v59  ;;  %v10223_v55 = vpop.f32.mrf.mxu0  ;;  %v2306_v59 = vpack.c.bf16 %v1050_v6, %v1046_v48  ;;  %v10261_v36 = vld [vmem:[%s13936_s1 + $0x20] ss:$16 sps:$4 sm:$0xff]  }
 0x2e1   : > { %5556 = vrot.lane.b32.xlu0 %v5518_v0, %s8863_s19  ;;  %v10228_v39 = vpop.f32.mrf.mxu1  ;;  %3922 = vmatprep.subr.bf16.mxu0 %v2310_v46  ;;  %v2308_v46 = vpack.c.bf16 %v1052_v22, %v1048_v32  ;;  %v1049_v6 = vld [vmem:[%s9078_s25 + $0x13c0] sm:$0xff]  ;;  %v1038_v22 = vld [vmem:[%s9078_s25 + $0x1368] sm:$0xff] }
 0x2e2   : > { %14033 = vst [vmem:[#allocation24_spill] sm:$0xff] %v10221_v17  ;;  %v5735_v53 = vrot.slane %v10221_v17, 4  ;;  %v10234_v37 = vpop.f32.mrf.mxu0  ;;  %8209 = vmatprep.subr.msk.bf16.mxu1 %vm2854_vm0, %v2312_v12  ;;  %3761 = vmatprep.mubr.bf16.mxu0 %v10240_v58  ;;  %v10305_v17 = vld [vmem:[%s13936_s1 + $0x4c] ss:$16 sps:$4 sm:$0xff]  }
 0x2e3   : > { %v10246_v56 = vpop.f32.mrf.mxu1  ;;  %8206 = vmatprep.mubr.msk.bf16.mxu1 %vm2854_vm0, %v10251_v52 }
 0x2e4   : > { %v3442_v2 = vpop.f32.mrf.mxu0 }
 0x2e5   : > { %5773 = vrot.lane.b32.xlu0 %v5735_v53, %s8863_s19  ;;  %v3505_v16 = vpop.f32.mrf.mxu1  ;;  %v1045_v53 = vld [vmem:[%s9078_s25 + $0x13a0] sm:$0xff] }
 0x2e6   : > { %v10256_v0 = vadd.f32 %v3505_v16, %v3442_v2  ;;  %v3446_v26 = vpop.f32.mrf.mxu0  ;;  %v7278_v2 = vsel %vm7267_vm1, %v9999_v29, -inf  ;;  %v1042_v16 = vld [vmem:[%s9078_s25 + $0x1388] sm:$0xff]  ;;  %v2305_v27 = vpack.c.bf16 %v1049_v6, %v1045_v53  ;;  %v1039_v53 = vld [vmem:[%s9078_s25 + $0x1370] sm:$0xff] }
 0x2e7   : > { %v3509_v12 = vpop.f32.mrf.mxu1  ;;  %3762 = vmatmul.mubr.bf16.gmra.mxu0 %v10261_v36  ;;  %3825 = vmatmul.mubr.bf16.gmra.mxu1 %v10267_v9  ;;  %v1043_v6 = vld [vmem:[%s9078_s25 + $0x1390] sm:$0xff] }
 0x2e8   : > { %14034 = vst [vmem:[#allocation25_spill] sm:$0xff] %v10256_v0  ;;  %v6137_v34 = vrot.slane %v10256_v0, 4  ;;  %3923 = vmatpush1.bf16.xpose.msra.mxu0 %v2309_v49  ;;  %3986 = vmatpush1.bf16.xpose.msra.mxu1 %v2311_v41  ;;  %v10275_v1 = vadd.f32 %v3509_v12, %v3446_v26  ;;  %v10277_v48 = vpop.f32.mrf.mxu0  ;;  %v7279_v49 = vsel %vm7267_vm1, %v10007_v42, -inf  ;;  %v1040_v26 = vld [vmem:[%s9078_s25 + $0x1378] sm:$0xff]  ;;  %v2307_v42 = vpack.c.bf16 %v1051_v5, %v1047_v62  ;;  %v1030_v62 = vld [vmem:[%s9078_s25 + $0x1328] sm:$0xff] }
 0x2e9   : > { %v10281_v32 = vpop.f32.mrf.mxu1  ;;  %3924 = vmatprep.subr.bf16.mxu0 %v2306_v59  ;;  %8210 = vmatprep.subr.msk.bf16.mxu1 %vm2854_vm0, %v2308_v46  ;;  %v1044_v12 = vld [vmem:[%s9078_s25 + $0x1398] sm:$0xff]  ;;  %v10299_v59 = vld [vmem:[%s13936_s1 + $0x44] ss:$16 sps:$4 sm:$0xff]   ;;  %v7280_v29 = vmax.f32 %v7278_v2, %v7279_v49 }
 0x2ea   : > { %14036 = vst [vmem:[#allocation27_spill] sm:$0xff] %v10275_v1  ;;  %v6352_v41 = vrot.slane %v10275_v1, 4  ;;  %6176 = vrot.lane.b32.xlu0 %v6137_v34, %s8863_s19  ;;  %3771 = vmatprep.mubr.bf16.mxu0 %v10299_v59  ;;  %v3450_v46 = vpop.f32.mrf.mxu0  ;;  %v7281_v34 = vsel %vm7267_vm1, %v10272_v15, -inf  ;;  %v2302_v1 = vpack.c.bf16 %v1042_v16, %v1038_v22  ;;  %v2304_v24 = vpack.c.bf16 %v1044_v12, %v1040_v26  ;;  %v10319_v15 = vld [vmem:[%s13936_s1 + $0x40] ss:$16 sps:$4 sm:$0xff]  }
 0x2eb   : > { %v3513_v19 = vpop.f32.mrf.mxu1  ;;  %8207 = vmatprep.mubr.msk.bf16.mxu1 %vm2854_vm0, %v10305_v17  ;;  %v7282_v0 = vmax.f32 %v7280_v29, %v7281_v34  ;;  %v7283_v29 = vsel %vm7273_vm2, %v10313_v28, -inf  ;;  %v1034_v22 = vld [vmem:[%s9078_s25 + $0x1348] sm:$0xff]  ;;  %v1032_v2 = vld [vmem:[%s9078_s25 + $0x1338] sm:$0xff] }
 0x2ec   : > { %v3514_v47 = vadd.f32 %v3513_v19, %v3450_v46  ;;  %v1037_v19 = vld [vmem:[%s9078_s25 + $0x1360] sm:$0xff]  ;;  %v1022_v16 = vld [vmem:[%s9078_s25 + $0x12e8] sm:$0xff]  ;;  %v1024_v12 = vld [vmem:[%s9078_s25 + $0x12f8] sm:$0xff] }
 0x2ed   : > { %v1026_v26 = vld [vmem:[%s9078_s25 + $0x1308] sm:$0xff]  ;;  %v1028_v46 = vld [vmem:[%s9078_s25 + $0x1318] sm:$0xff] }
 0x2ee   : > { %6390 = vrot.lane.b32.xlu0 %v6352_v41, %s8863_s19  ;;  %v6752_v5 = vrot.slane %v3514_v47, 4  ;;  %v1029_v41 = vld [vmem:[%s9078_s25 + $0x1320] sm:$0xff] }
 0x2ef   : > { %3772 = vmatmul.mubr.bf16.gmra.mxu0 %v10319_v15  ;;  %3835 = vmatmul.mubr.bf16.gmra.mxu1 %v10325_v51 }
 0x2f0   : > { %3925 = vmatpush1.bf16.xpose.msra.mxu0 %v2305_v27  ;;  %3988 = vmatpush1.bf16.xpose.msra.mxu1 %v2307_v42  ;;  %v1036_v27 = vld [vmem:[%s9078_s25 + $0x1358] sm:$0xff]  ;;  %v7284_v42 = vmax.f32 %v7282_v0, %v7283_v29  ;;  %v1035_v0 = vld [vmem:[%s9078_s25 + $0x1350] sm:$0xff] }
 0x2f1   : > { %3926 = vmatprep.subr.bf16.mxu0 %v2302_v1  ;;  %8211 = vmatprep.subr.msk.bf16.mxu1 %vm2854_vm0, %v2304_v24  ;;  %v2301_v24 = vpack.c.bf16 %v1041_v38, %v1037_v19  ;;  %v2303_v1 = vpack.c.bf16 %v1043_v6, %v1039_v53  ;;  %v2300_v49 = vpack.c.bf16 %v1036_v27, %v1032_v2  ;;  %v1021_v6 = vld [vmem:[%s9078_s25 + $0x12e0] sm:$0xff]  ;;  %v1014_v2 = vld [vmem:[%s9078_s25 + $0x12a8] sm:$0xff] }
 0x2f2   : > { %6942 = vrot.lane.b32.xlu0 %v3514_v47, %s8864_s29  ;;  %3952 = vmatprep.mubr.bf16.mxu0 %v10077_v23  ;;  %v2298_v47 = vpack.c.bf16 %v1034_v22, %v1030_v62  ;;  %v1033_v23 = vld [vmem:[%s9078_s25 + $0x1340] sm:$0xff]  ;;  %v2294_v19 = vpack.c.bf16 %v1026_v26, %v1022_v16  ;;  %v2296_v38 = vpack.c.bf16 %v1028_v46, %v1024_v12  ;;  %v1027_v22 = vld [vmem:[%s9078_s25 + $0x1310] sm:$0xff]  ;;  %v1006_v26 = vld [vmem:[%s9078_s25 + $0x1268] sm:$0xff] }
 0x2f3   : > { %8224 = vmatprep.mubr.msk.bf16.mxu1 %vm2854_vm0, %v10083_v31  ;;  %v1031_v31 = vld [vmem:[%s9078_s25 + $0x1330] sm:$0xff]  ;;  %v2297_v34 = vpack.c.bf16 %v1033_v23, %v1029_v41  ;;  %v10355_v53 = vadd.f32 %v10206_v3, %v10204_v43  ;;  %v1025_v62 = vld [vmem:[%s9078_s25 + $0x1300] sm:$0xff]  ;;  %v10365_v27 = vadd.f32 %v10228_v39, %v10223_v55  ;;  %v1020_v43 = vld [vmem:[%s9078_s25 + $0x12d8] sm:$0xff]  ;;  %v10374_v55 = vadd.f32 %v10246_v56, %v10234_v37 }
 0x2f4   : > { %v2299_v29 = vpack.c.bf16 %v1035_v0, %v1031_v31  ;;  %v1013_v39 = vld [vmem:[%s9078_s25 + $0x12a0] sm:$0xff]  ;;  %v1015_v0 = vld [vmem:[%s9078_s25 + $0x12b0] sm:$0xff]  ;;  %v10386_v37 = vadd.f32 %v10281_v32, %v10277_v48  ;;  %v1010_v56 = vld [vmem:[%s9078_s25 + $0x1288] sm:$0xff]  ;;  %v3452_v48 = vpop.f32.mrf.mxu0  ;;  %v3515_v32 = vpop.f32.mrf.mxu1 }
 0x2f5   : > { %7285 = vmax.xlane.f32.xlu1 %v7284_v42  ;;  %v1018_v42 = vld [vmem:[%s9078_s25 + $0x12c8] sm:$0xff]  ;;  %v5519_v3 = vrot.slane %v10355_v53, 4  ;;  %v5736_v23 = vrot.slane %v10365_v27, 4  ;;  %v1017_v31 = vld [vmem:[%s9078_s25 + $0x12c0] sm:$0xff]  ;;  %v1019_v16 = vld [vmem:[%s9078_s25 + $0x12d0] sm:$0xff]  ;;  %v6136_v12 = vrot.slane %v10374_v55, 4 }
 0x2f6   : > { %6790 = vrot.lane.b32.xlu0 %v6752_v5, %s8863_s19  ;;  %v1023_v5 = vld [vmem:[%s9078_s25 + $0x12f0] sm:$0xff]  ;;  %v1008_v46 = vld [vmem:[%s9078_s25 + $0x1278] sm:$0xff] }
 0x2f8   : > { %3927 = vmatpush1.bf16.xpose.msra.mxu0 %v2301_v24  ;;  %3990 = vmatpush1.bf16.xpose.msra.mxu1 %v2303_v1  ;;  %v1016_v24 = vld [vmem:[%s9078_s25 + $0x12b8] sm:$0xff]  ;;  %v2293_v1 = vpack.c.bf16 %v1025_v62, %v1021_v6  ;;  %v6353_v62 = vrot.slane %v10386_v37, 4 }
 0x2f9   : > { %3928 = vmatprep.subr.bf16.mxu0 %v2298_v47  ;;  %8212 = vmatprep.subr.msk.bf16.mxu1 %vm2854_vm0, %v2300_v49  ;;  %v2295_v47 = vpack.c.bf16 %v1027_v22, %v1023_v5  ;;  %v2290_v49 = vpack.c.bf16 %v1018_v42, %v1014_v2  ;;  %v2292_v41 = vpack.c.bf16 %v1020_v43, %v1016_v24  ;;  %v1005_v5 = vld [vmem:[%s9078_s25 + $0x1260] sm:$0xff]  ;;  %v1007_v2 = vld [vmem:[%s9078_s25 + $0x1270] sm:$0xff]  ;;  %v1126_v24 = vld [vmem:[%s9078_s25 + $0x1628] sm:$0xff] }
 0x2fa   : > { %v1009_v22 = vld [vmem:[%s9078_s25 + $0x1280] sm:$0xff]  ;;  %v1011_v42 = vld [vmem:[%s9078_s25 + $0x1290] sm:$0xff]  ;;  %v3516_v43 = vadd.f32 %v3515_v32, %v3452_v48  ;;  %v1124_v48 = vld [vmem:[%s9078_s25 + $0x1618] sm:$0xff] }
 0x300   : > { %3929 = vmatpush1.bf16.xpose.msra.mxu0 %v2297_v34  ;;  %3992 = vmatpush1.bf16.xpose.msra.mxu1 %v2299_v29  ;;  %v1012_v34 = vld [vmem:[%s9078_s25 + $0x1298] sm:$0xff]  ;;  %v2289_v29 = vpack.c.bf16 %v1017_v31, %v1013_v39 }
 0x301   : > { %3930 = vmatprep.subr.bf16.mxu0 %v2294_v19  ;;  %8213 = vmatprep.subr.msk.bf16.mxu1 %vm2854_vm0, %v2296_v38  ;;  %v2291_v19 = vpack.c.bf16 %v1019_v16, %v1015_v0  ;;  %v2286_v38 = vpack.c.bf16 %v1010_v56, %v1006_v26  ;;  %v2288_v6 = vpack.c.bf16 %v1012_v34, %v1008_v46  ;;  %v6753_v0 = vrot.slane %v3516_v43, 4  ;;  %v10407_v26 = vpop.permute.xlu1 %7114  ;;  %v1125_v46 = vld [vmem:[%s9078_s25 + $0x1620] sm:$0xff] }
 0x302   : > { %v5610_v56 = vsel %vm5608_vm3, %v9890_v4, %v10012_v30  ;;  %v1129_v34 = vld [vmem:[%s9078_s25 + $0x1640] sm:$0xff] }
 0x303   : > { %v5666_v32 = vadd.f32 %v5610_v56, %v9566_v63 }
 0x306   : > { %5558 = vrot.lane.b32.xlu1 %v5519_v3, %s8863_s19  ;;  %v1130_v3 = vld [vmem:[%s9078_s25 + $0x1648] sm:$0xff] }
 0x307   : > { %v2346_v39 = vpack.c.bf16 %v1130_v3, %v1126_v24  ;;  %v2345_v24 = vpack.c.bf16 %v1129_v34, %v1125_v46  ;;  %v1123_v46 = vld [vmem:[%s9078_s25 + $0x1610] sm:$0xff]  ;;  %v1110_v34 = vld [vmem:[%s9078_s25 + $0x15a8] sm:$0xff] }
 0x308   : > { %3931 = vmatpush1.bf16.xpose.msra.mxu0 %v2293_v1  ;;  %3994 = vmatpush1.bf16.xpose.msra.mxu1 %v2295_v47  ;;  %v1128_v1 = vld [vmem:[%s9078_s25 + $0x1638] sm:$0xff] }
 0x309   : > { %3932 = vmatprep.subr.bf16.mxu0 %v2290_v49  ;;  %8214 = vmatprep.subr.msk.bf16.mxu1 %vm2854_vm0, %v2292_v41  ;;  %v1132_v47 = vld [vmem:[%s9078_s25 + $0x1658] sm:$0xff]  ;;  %v5946_v49 = vpop.permute.xlu0 %5945  ;;  %v2285_v41 = vpack.c.bf16 %v1009_v22, %v1005_v5 }
 0x30a   : > { %5775 = vrot.lane.b32.xlu1 %v5736_v23, %s8863_s19  ;;  %v2287_v23 = vpack.c.bf16 %v1011_v42, %v1007_v2  ;;  %v2348_v31 = vpack.c.bf16 %v1132_v47, %v1128_v1 }
 0x30d   : > { %v10405_v16 = vpop.permute.xlu0 %6562 }
 0x30e   : > { %6174 = vrot.lane.b32.xlu1 %v6136_v12, %s8863_s19  ;;  %v5609_v12 = vsel %vm5608_vm3, %v9885_v21, %v9890_v4  ;;  %v5611_v4 = vsel %vm5608_vm3, %v10012_v30, %v10022_v10  ;;  %v5668_v30 = vadd.f32 %v10022_v10, %v9713_v35  ;;  %v1117_v35 = vld [vmem:[%s9078_s25 + $0x15e0] sm:$0xff] }
 0x30f   : > { %v5665_v21 = vadd.f32 %v5609_v12, %v9558_v54  ;;  %v5667_v63 = vadd.f32 %v5611_v4, %v9704_v40  ;;  %v1121_v10 = vld [vmem:[%s9078_s25 + $0x1600] sm:$0xff]  ;;  %v1119_v12 = vld [vmem:[%s9078_s25 + $0x15f0] sm:$0xff] }
 0x310   : > { %3933 = vmatpush1.bf16.xpose.msra.mxu0 %v2289_v29  ;;  %3996 = vmatpush1.bf16.xpose.msra.mxu1 %v2291_v19  ;;  %v1127_v29 = vld [vmem:[%s9078_s25 + $0x1630] sm:$0xff] }
 0x311   : > { %3934 = vmatprep.subr.bf16.mxu0 %v2286_v38  ;;  %8215 = vmatprep.subr.msk.bf16.mxu1 %vm2854_vm0, %v2288_v6  ;;  %v1131_v19 = vld [vmem:[%s9078_s25 + $0x1650] sm:$0xff]  ;;  %v1118_v38 = vld [vmem:[%s9078_s25 + $0x15e8] sm:$0xff] }
 0x312   : > { %6392 = vrot.lane.b32.xlu1 %v6353_v62, %s8863_s19  ;;  %v1122_v6 = vld [vmem:[%s9078_s25 + $0x1608] sm:$0xff]  ;;  %v1120_v62 = vld [vmem:[%s9078_s25 + $0x15f8] sm:$0xff] }
 0x313   : > { %v2342_v47 = vpack.c.bf16 %v1122_v6, %v1118_v38  ;;  %v2344_v54 = vpack.c.bf16 %v1124_v48, %v1120_v62  ;;  %v1112_v62 = vld [vmem:[%s9078_s25 + $0x15b8] sm:$0xff] }
 0x314   : > { %v1116_v48 = vld [vmem:[%s9078_s25 + $0x15d8] sm:$0xff] }
 0x316   : > { %6944 = vrot.lane.b32.xlu1 %v3516_v43, %s8864_s29  ;;  %v2347_v43 = vpack.c.bf16 %v1131_v19, %v1127_v29  ;;  %v1114_v29 = vld [vmem:[%s9078_s25 + $0x15c8] sm:$0xff] }
 0x318   : > { %3935 = vmatpush1.bf16.xpose.msra.mxu0 %v2285_v41  ;;  %3998 = vmatpush1.bf16.xpose.msra.mxu1 %v2287_v23 }
 0x319   : > { %3936 = vmatprep.subr.bf16.mxu0 %v2346_v39  ;;  %8216 = vmatprep.subr.msk.bf16.mxu1 %vm2854_vm0, %v2348_v31 }
 0x31a   : > { %6792 = vrot.lane.b32.xlu1 %v6753_v0, %s8863_s19 }
 0x31b   : > { %v5950_v5 = vpop.permute.xlu0 %5949  ;;  %v5948_v22 = vpop.permute.xlu1 %5947 }
 0x31c   : > { %v6010_v2 = vsel %vm6009_vm4, %v5946_v49, %v5948_v22  ;;  %v6011_v42 = vsel %vm6009_vm4, %v5948_v22, %v5950_v5  ;;  %v2338_v22 = vpack.c.bf16 %v1114_v29, %v1110_v34  ;;  %v1101_v29 = vld [vmem:[%s9078_s25 + $0x1560] sm:$0xff] }
 0x31d   : > { %v6066_v3 = vadd.f32 %v6010_v2, %v5665_v21  ;;  %v6067_v1 = vadd.f32 %v6011_v42, %v5666_v32  ;;  %v2341_v32 = vpack.c.bf16 %v1121_v10, %v1117_v35  ;;  %v2340_v42 = vpack.c.bf16 %v1116_v48, %v1112_v62  ;;  %v1103_v62 = vld [vmem:[%s9078_s25 + $0x1570] sm:$0xff]  ;;  %v1094_v48 = vld [vmem:[%s9078_s25 + $0x1528] sm:$0xff] }
 0x31f   : > { %v10435_v41 = vpop.permute.xlu0 %5552  ;;  %v5952_v49 = vpop.permute.xlu1 %5951  ;;  %v7368_v23 = vsel %vm7367_vm5, %v6066_v3, -inf  ;;  %v7369_v39 = vsel %vm7367_vm5, %v6067_v1, -inf  ;;  %v1109_v3 = vld [vmem:[%s9078_s25 + $0x15a0] sm:$0xff] }
 0x320   : > { %v6012_v31 = vsel %vm6009_vm4, %v5950_v5, %v5952_v49  ;;  %3937 = vmatpush2.bf16.xpose.msra.mxu0 %v2345_v24  ;;  %4000 = vmatpush2.bf16.xpose.msra.mxu1 %v2347_v43  ;;  %v6069_v40 = vadd.f32 %v5952_v49, %v5668_v30  ;;  %v7370_v56 = vmax.f32 %v7368_v23, %v7369_v39  ;;  %v1113_v1 = vld [vmem:[%s9078_s25 + $0x15c0] sm:$0xff]  ;;  %v1106_v30 = vld [vmem:[%s9078_s25 + $0x1588] sm:$0xff]  ;;  %v1104_v39 = vld [vmem:[%s9078_s25 + $0x1578] sm:$0xff] }
 0x321   : > { %v6068_v0 = vadd.f32 %v6012_v31, %v5667_v63  ;;  %3938 = vmatprep.subr.bf16.mxu0 %v2342_v47  ;;  %8217 = vmatprep.subr.msk.bf16.mxu1 %vm2854_vm0, %v2344_v54  ;;  %v2343_v5 = vpack.c.bf16 %v1123_v46, %v1119_v12  ;;  %v1111_v47 = vld [vmem:[%s9078_s25 + $0x15b0] sm:$0xff]  ;;  %v1102_v63 = vld [vmem:[%s9078_s25 + $0x1568] sm:$0xff]  ;;  %v1108_v31 = vld [vmem:[%s9078_s25 + $0x1598] sm:$0xff] }
 0x322   : > { %v7374_v4 = vsel %vm7373_vm6, %v6069_v40, -inf  ;;  %v1115_v54 = vld [vmem:[%s9078_s25 + $0x15d0] sm:$0xff]  ;;  %v2337_v40 = vpack.c.bf16 %v1113_v1, %v1109_v3  ;;  %v2334_v12 = vpack.c.bf16 %v1106_v30, %v1102_v63  ;;  %v1097_v63 = vld [vmem:[%s9078_s25 + $0x1540] sm:$0xff] }
 0x323   : > { %v10447_v19 = vpop.permute.xlu0 %6568  ;;  %v10449_v38 = vpop.permute.xlu1 %5554  ;;  %v7371_v6 = vsel %vm7367_vm5, %v6068_v0, -inf  ;;  %v2339_v10 = vpack.c.bf16 %v1115_v54, %v1111_v47  ;;  %v1093_v54 = vld [vmem:[%s9078_s25 + $0x1520] sm:$0xff]  ;;  %v1095_v30 = vld [vmem:[%s9078_s25 + $0x1530] sm:$0xff] }
 0x324   : > { %v7372_v21 = vmax.f32 %v7370_v56, %v7371_v6  ;;  %v2336_v56 = vpack.c.bf16 %v1108_v31, %v1104_v39  ;;  %v1105_v6 = vld [vmem:[%s9078_s25 + $0x1580] sm:$0xff]  ;;  %v1099_v39 = vld [vmem:[%s9078_s25 + $0x1550] sm:$0xff]  ;;  %v1086_v31 = vld [vmem:[%s9078_s25 + $0x14e8] sm:$0xff] }
 0x326   : > { %v7375_v2 = vmax.f32 %v7372_v21, %v7374_v4  ;;  %v1098_v21 = vld [vmem:[%s9078_s25 + $0x1548] sm:$0xff] }
 0x327   : > { %v5770_v24 = vpop.permute.xlu0 %5769  ;;  %v10455_v43 = vpop.permute.xlu1 %6564 }
 0x328   : > { %7376 = vmax.xlane.f32.xlu0 %v7375_v2  ;;  %3939 = vmatpush2.bf16.xpose.msra.mxu0 %v2341_v32  ;;  %v2333_v2 = vpack.c.bf16 %v1105_v6, %v1101_v29  ;;  %v2329_v29 = vpack.c.bf16 %v1097_v63, %v1093_v54  ;;  %v1080_v54 = vld [vmem:[%s9078_s25 + $0x14b8] sm:$0xff] }
 0x329   : > { %4002 = vmatpush2.bf16.xpose.msra.mxu1 %v2343_v5  ;;  %3940 = vmatprep.subr.bf16.mxu0 %v2338_v22  ;;  %v1096_v5 = vld [vmem:[%s9078_s25 + $0x1538] sm:$0xff] }
 0x32a   : > { %8218 = vmatprep.subr.msk.bf16.mxu1 %vm2854_vm0, %v2340_v42  ;;  %v1100_v22 = vld [vmem:[%s9078_s25 + $0x1558] sm:$0xff] }
 0x32b   : > { %v10464_v49 = vpop.permute.xlu0 %6566  ;;  %v10466_v23 = vpop.permute.xlu1 %5771  ;;  %v2332_v3 = vpack.c.bf16 %v1100_v22, %v1096_v5  ;;  %v1085_v22 = vld [vmem:[%s9078_s25 + $0x14e0] sm:$0xff]  ;;  %v1084_v63 = vld [vmem:[%s9078_s25 + $0x14d8] sm:$0xff] }
 0x32c   : > { %v5828_v0 = vsel %vm5608_vm3, %v5770_v24, %v10466_v23  ;;  %v2330_v24 = vpack.c.bf16 %v1098_v21, %v1094_v48 }
 0x32d   : > { %v5885_v35 = vadd.f32 %v5828_v0, %v10053_v61  ;;  %v1107_v61 = vld [vmem:[%s9078_s25 + $0x1590] sm:$0xff]  ;;  %v1090_v0 = vld [vmem:[%s9078_s25 + $0x1508] sm:$0xff] }
 0x32e   : > { %v2335_v42 = vpack.c.bf16 %v1107_v61, %v1103_v62  ;;  %v2331_v62 = vpack.c.bf16 %v1099_v39, %v1095_v30  ;;  %v2326_v61 = vpack.c.bf16 %v1090_v0, %v1086_v31 }
 0x32f   : > { %v10473_v46 = vpop.permute.xlu0 %7116  ;;  %5953 = vrot.lane.b32.xlu1 %v5885_v35, %s8864_s29  ;;  %v10476_v34 = vpop.permute.xlu1 %6170 }
 0x330   : > { %3941 = vmatpush2.bf16.xpose.msra.mxu0 %v2337_v40 }
 0x331   : > { %4004 = vmatpush2.bf16.xpose.msra.mxu1 %v2339_v10  ;;  %3942 = vmatprep.subr.bf16.mxu0 %v2334_v12  ;;  %v1088_v10 = vld [vmem:[%s9078_s25 + $0x14f8] sm:$0xff] }
 0x332   : > { %8219 = vmatprep.subr.msk.bf16.mxu1 %vm2854_vm0, %v2336_v56  ;;  %v1092_v12 = vld [vmem:[%s9078_s25 + $0x1518] sm:$0xff] }
 0x333   : > { %v10485_v32 = vpop.permute.xlu0 %6172  ;;  %v10487_v4 = vpop.permute.xlu1 %7120  ;;  %v2328_v48 = vpack.c.bf16 %v1092_v12, %v1088_v10 }
 0x337   : > { %v10491_v1 = vpop.permute.xlu1 %7118  ;;  %v6387_v47 = vpop.permute.xlu0 %6386 }
 0x338   : > { %3943 = vmatpush2.bf16.xpose.msra.mxu0 %v2333_v2  ;;  %v1089_v2 = vld [vmem:[%s9078_s25 + $0x1500] sm:$0xff] }
 0x339   : > { %4006 = vmatpush2.bf16.xpose.msra.mxu1 %v2335_v42  ;;  %3944 = vmatprep.subr.bf16.mxu0 %v2330_v24  ;;  %v1087_v42 = vld [vmem:[%s9078_s25 + $0x14f0] sm:$0xff]  ;;  %v1078_v24 = vld [vmem:[%s9078_s25 + $0x14a8] sm:$0xff]  ;;  %v2325_v31 = vpack.c.bf16 %v1089_v2, %v1085_v22  ;;  %v1072_v22 = vld [vmem:[%s9078_s25 + $0x1478] sm:$0xff] }
 0x33a   : > { %8220 = vmatprep.subr.msk.bf16.mxu1 %vm2854_vm0, %v2332_v3  ;;  %v1076_v2 = vld [vmem:[%s9078_s25 + $0x1498] sm:$0xff] }
 0x33b   : > { %v10500_v40 = vpop.permute.xlu1 %6388  ;;  %v6939_v35 = vpop.permute.xlu0 %6938 }
 0x33c   : > { %v6445_v56 = vsel %vm5608_vm3, %v6387_v47, %v10500_v40  ;;  %v1082_v47 = vld [vmem:[%s9078_s25 + $0x14c8] sm:$0xff] }
 0x33d   : > { %v6502_v6 = vadd.f32 %v6445_v56, %v10118_v45  ;;  %v1091_v45 = vld [vmem:[%s9078_s25 + $0x1510] sm:$0xff]  ;;  %v2322_v12 = vpack.c.bf16 %v1082_v47, %v1078_v24  ;;  %v2324_v56 = vpack.c.bf16 %v1084_v63, %v1080_v54  ;;  %v6627_v24 = vsel %vm6009_vm4, %v10455_v43, %v10464_v49 }
 0x33e   : > { %v2327_v10 = vpack.c.bf16 %v1091_v45, %v1087_v42  ;;  %v6226_v45 = vsel %vm5608_vm3, %v9908_v18, %v9905_v33 }
 0x33f   : > { %6570 = vrot.lane.b32.xlu1 %v6502_v6, %s8864_s29  ;;  %v10508_v21 = vpop.permute.xlu1 %6940  ;;  %v6787_v5 = vpop.permute.xlu0 %6786  ;;  %v1081_v6 = vld [vmem:[%s9078_s25 + $0x14c0] sm:$0xff]  ;;  %v6282_v18 = vadd.f32 %v6226_v45, %v9579_v14  ;;  %v1075_v14 = vld [vmem:[%s9078_s25 + $0x1490] sm:$0xff] }
 0x340   : > { %3945 = vmatpush2.bf16.xpose.msra.mxu0 %v2329_v29  ;;  %v6997_v30 = vsel %vm6009_vm4, %v6939_v35, %v10508_v21  ;;  %v1077_v35 = vld [vmem:[%s9078_s25 + $0x14a0] sm:$0xff] }
 0x341   : > { %4008 = vmatpush2.bf16.xpose.msra.mxu1 %v2331_v62  ;;  %3946 = vmatprep.subr.bf16.mxu0 %v2326_v61  ;;  %v1079_v62 = vld [vmem:[%s9078_s25 + $0x14b0] sm:$0xff]  ;;  %v2321_v42 = vpack.c.bf16 %v1081_v6, %v1077_v35  ;;  %v1194_v35 = vld [vmem:[%s9078_s25 + $0x1848] sm:$0xff] }
 0x342   : > { %8221 = vmatprep.subr.msk.bf16.mxu1 %vm2854_vm0, %v2328_v48  ;;  %v1083_v61 = vld [vmem:[%s9078_s25 + $0x14d0] sm:$0xff]  ;;  %v1070_v48 = vld [vmem:[%s9078_s25 + $0x1468] sm:$0xff] }
 0x343   : > { %v10516_v3 = vpop.permute.xlu1 %6788  ;;  %v2323_v47 = vpack.c.bf16 %v1083_v61, %v1079_v62  ;;  %v1192_v62 = vld [vmem:[%s9078_s25 + $0x1838] sm:$0xff] }
 0x344   : > { %v6845_v39 = vsel %vm5608_vm3, %v6787_v5, %v10516_v3  ;;  %v1074_v5 = vld [vmem:[%s9078_s25 + $0x1488] sm:$0xff] }
 0x345   : > { %v6902_v0 = vadd.f32 %v6845_v39, %v10144_v11  ;;  %v6227_v11 = vsel %vm5608_vm3, %v9905_v33, %v10057_v50  ;;  %v2318_v54 = vpack.c.bf16 %v1074_v5, %v1070_v48  ;;  %v6626_v39 = vsel %vm6009_vm4, %v10405_v16, %v10455_v43  ;;  %v1069_v43 = vld [vmem:[%s9078_s25 + $0x1460] sm:$0xff] }
 0x346   : > { %v6283_v63 = vadd.f32 %v6227_v11, %v9588_v25  ;;  %v7180_v33 = vsel %vm7178_vm7, %v10473_v46, %v10491_v1  ;;  %v6228_v25 = vsel %vm5608_vm3, %v10057_v50, %v10049_v57  ;;  %v7179_v16 = vsel %vm7178_vm7, %v10407_v26, %v10473_v46  ;;  %v1196_v26 = vld [vmem:[%s9078_s25 + $0x1858] sm:$0xff] }
 0x347   : > { %v7054_v29 = vadd.f32 %v6997_v30, %v6902_v0  ;;  %v2320_v30 = vpack.c.bf16 %v1076_v2, %v1072_v22  ;;  %v1073_v0 = vld [vmem:[%s9078_s25 + $0x1480] sm:$0xff]  ;;  %v6628_v50 = vsel %vm6009_vm4, %v10464_v49, %v10447_v19  ;;  %v6284_v46 = vadd.f32 %v6228_v25, %v9816_v13 }
 0x348   : > { %3947 = vmatpush2.bf16.xpose.msra.mxu0 %v2325_v31  ;;  %v6683_v31 = vadd.f32 %v6627_v24, %v6283_v63  ;;  %v2317_v48 = vpack.c.bf16 %v1073_v0, %v1069_v43  ;;  %v7181_v5 = vsel %vm7178_vm7, %v10491_v1, %v10487_v4  ;;  %v6285_v13 = vadd.f32 %v10049_v57, %v9753_v20  ;;  %v1189_v57 = vld [vmem:[%s9078_s25 + $0x1820] sm:$0xff]  ;;  %v1182_v43 = vld [vmem:[%s9078_s25 + $0x17e8] sm:$0xff] }
 0x349   : > { %4010 = vmatpush2.bf16.xpose.msra.mxu1 %v2327_v10  ;;  %7122 = vrot.lane.b32.xlu0 %v7054_v29, %s8865_s21  ;;  %v1071_v10 = vld [vmem:[%s9078_s25 + $0x1470] sm:$0xff]  ;;  %v1190_v29 = vld [vmem:[%s9078_s25 + $0x1828] sm:$0xff]  ;;  %v6684_v2 = vadd.f32 %v6628_v50, %v6284_v46  ;;  %v1181_v46 = vld [vmem:[%s9078_s25 + $0x17e0] sm:$0xff] }
 0x34a   : > { %3948 = vmatprep.subr.bf16.mxu0 %v2322_v12  ;;  %8222 = vmatprep.subr.msk.bf16.mxu1 %vm2854_vm0, %v2324_v56  ;;  %v6682_v12 = vadd.f32 %v6626_v39, %v6282_v18  ;;  %v7236_v56 = vadd.f32 %v7180_v33, %v6683_v31  ;;  %v2319_v11 = vpack.c.bf16 %v1075_v14, %v1071_v10  ;;  %v1193_v33 = vld [vmem:[%s9078_s25 + $0x1840] sm:$0xff]  ;;  %v1191_v18 = vld [vmem:[%s9078_s25 + $0x1830] sm:$0xff]  ;;  %v1186_v0 = vld [vmem:[%s9078_s25 + $0x1808] sm:$0xff] }
 0x34b   : > { %v2378_v22 = vpack.c.bf16 %v1194_v35, %v1190_v29  ;;  %v6685_v31 = vadd.f32 %v10447_v19, %v6285_v13  ;;  %v2377_v14 = vpack.c.bf16 %v1193_v33, %v1189_v57  ;;  %v2374_v50 = vpack.c.bf16 %v1186_v0, %v1182_v43  ;;  %v1177_v13 = vld [vmem:[%s9078_s25 + $0x17c0] sm:$0xff] }
 0x34c   : > { %v7235_v61 = vadd.f32 %v7179_v16, %v6682_v12  ;;  %v7469_v49 = vsel %vm7367_vm5, %v7236_v56, -inf  ;;  %v1195_v16 = vld [vmem:[%s9078_s25 + $0x1850] sm:$0xff]  ;;  %v1184_v12 = vld [vmem:[%s9078_s25 + $0x17f8] sm:$0xff]  ;;  %v1169_v33 = vld [vmem:[%s9078_s25 + $0x1780] sm:$0xff] }
 0x34d   : > { %v1188_v56 = vld [vmem:[%s9078_s25 + $0x1818] sm:$0xff]  ;;  %v2379_v29 = vpack.c.bf16 %v1195_v16, %v1191_v18  ;;  %v1167_v18 = vld [vmem:[%s9078_s25 + $0x1770] sm:$0xff] }
 0x34e   : > { %v7468_v63 = vsel %vm7367_vm5, %v7235_v61, -inf  ;;  %v1185_v61 = vld [vmem:[%s9078_s25 + $0x1800] sm:$0xff]  ;;  %v10653_v16 = vld [vmem:[%s13936_s1 + $0xc] ss:$16 sps:$4 sm:$0xff]  }
 0x350   : > { %3949 = vmatpush2.bf16.xpose.msra.mxu0 %v2321_v42  ;;  %v2380_v42 = vpack.c.bf16 %v1196_v26, %v1192_v62  ;;  %v2376_v62 = vpack.c.bf16 %v1188_v56, %v1184_v12 }
 0x351   : > { %4012 = vmatpush2.bf16.xpose.msra.mxu1 %v2323_v47  ;;  %3950 = vmatprep.subr.bf16.mxu0 %v2318_v54  ;;  %v7237_v47 = vadd.f32 %v7181_v5, %v6684_v2  ;;  %v1187_v5 = vld [vmem:[%s9078_s25 + $0x1810] sm:$0xff]  ;;  %v2373_v2 = vpack.c.bf16 %v1185_v61, %v1181_v46  ;;  %v1156_v46 = vld [vmem:[%s9078_s25 + $0x1718] sm:$0xff] }
 0x352   : > { %8223 = vmatprep.subr.msk.bf16.mxu1 %vm2854_vm0, %v2320_v30 }
 0x353   : > { %v10569_v6 = vpop.permute.xlu0 %5556  ;;  %v7471_v19 = vsel %vm7367_vm5, %v7237_v47, -inf  ;;  %v1175_v47 = vld [vmem:[%s9078_s25 + $0x17b0] sm:$0xff] }
 0x357   : > { %v10578_v45 = vpop.permute.xlu0 %5773  ;;  %v3627_v24 = vpop.f32.mrf.mxu0 }
 0x358   : > { %v5829_v1 = vsel %vm5608_vm3, %v10466_v23, %v10578_v45  ;;  %v3690_v54 = vpop.f32.mrf.mxu1  ;;  %3951 = vmatpush2.bf16.xpose.msra.mxu0 %v2317_v48  ;;  %v7470_v23 = vmax.f32 %v7468_v63, %v7469_v49  ;;  %v1183_v48 = vld [vmem:[%s9078_s25 + $0x17f0] sm:$0xff]  ;;  %v1168_v63 = vld [vmem:[%s9078_s25 + $0x1778] sm:$0xff] }
 0x359   : > { %v10586_v30 = vadd.f32 %v3690_v54, %v3627_v24  ;;  %4014 = vmatpush2.bf16.xpose.msra.mxu1 %v2319_v11  ;;  %v3629_v39 = vpop.f32.mrf.mxu0  ;;  %v5886_v20 = vadd.f32 %v5829_v1, %v10069_v44  ;;  %4046 = vmatprep.subr.bf16.mxu0 %v2378_v22  ;;  %v7238_v44 = vadd.f32 %v10487_v4, %v6685_v31  ;;  %v1174_v11 = vld [vmem:[%s9078_s25 + $0x17a8] sm:$0xff] }
 0x35a   : > { %v3692_v25 = vpop.f32.mrf.mxu1  ;;  %8227 = vmatprep.subr.msk.bf16.mxu1 %vm2854_vm0, %v2380_v42  ;;  %v7472_v35 = vmax.f32 %v7470_v23, %v7471_v19  ;;  %v1178_v22 = vld [vmem:[%s9078_s25 + $0x17c8] sm:$0xff]  ;;  %v2375_v42 = vpack.c.bf16 %v1187_v5, %v1183_v48  ;;  %v1159_v19 = vld [vmem:[%s9078_s25 + $0x1730] sm:$0xff] }
 0x35b   : > { %v10597_v10 = vadd.f32 %v3692_v25, %v3629_v39  ;;  %5955 = vrot.lane.b32.xlu0 %v5886_v20, %s8864_s29  ;;  %v7474_v4 = vsel %vm7473_vm8, %v7238_v44, -inf  ;;  %v2370_v49 = vpack.c.bf16 %v1178_v22, %v1174_v11  ;;  %v1166_v1 = vld [vmem:[%s9078_s25 + $0x1768] sm:$0xff]  ;;  %v1164_v25 = vld [vmem:[%s9078_s25 + $0x1758] sm:$0xff]  ;;  %v1157_v44 = vld [vmem:[%s9078_s25 + $0x1720] sm:$0xff] }
 0x35c   : > { %v7475_v26 = vmax.f32 %v7472_v35, %v7474_v4  ;;  %v1170_v54 = vld [vmem:[%s9078_s25 + $0x1788] sm:$0xff]  ;;  %v3694_v4 = vpop.f32.mrf.mxu1 }
 0x35d   : > { %v2366_v20 = vpack.c.bf16 %v1170_v54, %v1166_v1  ;;  %v1158_v23 = vld [vmem:[%s9078_s25 + $0x1728] sm:$0xff] }
 0x35e   : > { %v1162_v31 = vld [vmem:[%s9078_s25 + $0x1748] sm:$0xff] }
 0x35f   : > { %3953 = vmatmul.mubr.bf16.vlgmr.msra.gmra.mxu0 %v10212_v8  ;;  %v1176_v8 = vld [vmem:[%s9078_s25 + $0x17b8] sm:$0xff]  ;;  %v2362_v12 = vpack.c.bf16 %v1162_v31, %v1158_v23  ;;  %v1150_v35 = vld [vmem:[%s9078_s25 + $0x16e8] sm:$0xff] }
 0x360   : > { %4016 = vmatmul.mubr.bf16.vlgmr.msra.gmra.mxu1 %v10218_v7  ;;  %4047 = vmatpush1.bf16.xpose.msra.mxu0 %v2377_v14  ;;  %v1180_v7 = vld [vmem:[%s9078_s25 + $0x17d8] sm:$0xff]  ;;  %v1161_v14 = vld [vmem:[%s9078_s25 + $0x1740] sm:$0xff]  ;;  %v1142_v1 = vld [vmem:[%s9078_s25 + $0x16a8] sm:$0xff] }
 0x361   : > { %4110 = vmatpush1.bf16.xpose.msra.mxu1 %v2379_v29  ;;  %4048 = vmatprep.subr.bf16.mxu0 %v2374_v50  ;;  %v2372_v24 = vpack.c.bf16 %v1180_v7, %v1176_v8  ;;  %v1163_v29 = vld [vmem:[%s9078_s25 + $0x1750] sm:$0xff]  ;;  %v1154_v50 = vld [vmem:[%s9078_s25 + $0x1708] sm:$0xff]  ;;  %v2361_v61 = vpack.c.bf16 %v1161_v14, %v1157_v44  ;;  %v3696_v7 = vpop.f32.mrf.mxu1 }
 0x362   : > { %8228 = vmatprep.subr.msk.bf16.mxu1 %vm2854_vm0, %v2376_v62  ;;  %3962 = vmatprep.mubr.bf16.mxu0 %v10240_v58  ;;  %v1173_v58 = vld [vmem:[%s9078_s25 + $0x17a0] sm:$0xff]  ;;  %v3631_v62 = vpop.f32.mrf.mxu0  ;;  %v2363_v48 = vpack.c.bf16 %v1163_v29, %v1159_v19  ;;  %v2358_v5 = vpack.c.bf16 %v1154_v50, %v1150_v35  ;;  %v1146_v54 = vld [vmem:[%s9078_s25 + $0x16c8] sm:$0xff]  ;;  %v1143_v44 = vld [vmem:[%s9078_s25 + $0x16b0] sm:$0xff] }
 0x363   : > { %7476 = vmax.xlane.f32.xlu1 %v7475_v26  ;;  %8225 = vmatprep.mubr.msk.bf16.mxu1 %vm2854_vm0, %v10251_v52  ;;  %v1179_v52 = vld [vmem:[%s9078_s25 + $0x17d0] sm:$0xff]  ;;  %v1152_v26 = vld [vmem:[%s9078_s25 + $0x16f8] sm:$0xff]  ;;  %v1138_v29 = vld [vmem:[%s9078_s25 + $0x1688] sm:$0xff] }
 0x364   : > { %v2371_v39 = vpack.c.bf16 %v1179_v52, %v1175_v47  ;;  %v2360_v22 = vpack.c.bf16 %v1156_v46, %v1152_v26  ;;  %v3633_v8 = vpop.f32.mrf.mxu0  ;;  %v1151_v47 = vld [vmem:[%s9078_s25 + $0x16f0] sm:$0xff]  ;;  %v1136_v26 = vld [vmem:[%s9078_s25 + $0x1678] sm:$0xff] }
 0x365   : > { %v1155_v52 = vld [vmem:[%s9078_s25 + $0x1710] sm:$0xff]  ;;  %v1140_v46 = vld [vmem:[%s9078_s25 + $0x1698] sm:$0xff] }
 0x366   : > { %v1147_v14 = vld [vmem:[%s9078_s25 + $0x16d0] sm:$0xff] }
 0x367   : > { %3963 = vmatmul.mubr.bf16.gmra.mxu0 %v10261_v36  ;;  %v1172_v36 = vld [vmem:[%s9078_s25 + $0x1798] sm:$0xff] }
 0x368   : > { %4049 = vmatpush1.bf16.xpose.msra.mxu0 %v2373_v2  ;;  %4026 = vmatmul.mubr.bf16.gmra.mxu1 %v10267_v9  ;;  %v2369_v9 = vpack.c.bf16 %v1177_v13, %v1173_v58  ;;  %v2368_v57 = vpack.c.bf16 %v1172_v36, %v1168_v63  ;;  %v10668_v2 = vpop.permute.xlu0 %6176  ;;  %v3700_v58 = vpop.f32.mrf.mxu1  ;;  %v1144_v36 = vld [vmem:[%s9078_s25 + $0x16b8] sm:$0xff] }
 0x369   : > { %4112 = vmatpush1.bf16.xpose.msra.mxu1 %v2375_v42  ;;  %4050 = vmatprep.subr.bf16.mxu0 %v2370_v49  ;;  %v1149_v42 = vld [vmem:[%s9078_s25 + $0x16e0] sm:$0xff] }
 0x36a   : > { %8229 = vmatprep.subr.msk.bf16.mxu1 %vm2854_vm0, %v2372_v24  ;;  %3972 = vmatprep.mubr.bf16.mxu0 %v10299_v59  ;;  %v1165_v59 = vld [vmem:[%s9078_s25 + $0x1760] sm:$0xff]  ;;  %v3637_v24 = vpop.f32.mrf.mxu0 }
 0x36b   : > { %8226 = vmatprep.mubr.msk.bf16.mxu1 %vm2854_vm0, %v10305_v17  ;;  %v1171_v17 = vld [vmem:[%s9078_s25 + $0x1790] sm:$0xff]  ;;  %v2365_v43 = vpack.c.bf16 %v1169_v33, %v1165_v59  ;;  %v1153_v49 = vld [vmem:[%s9078_s25 + $0x1700] sm:$0xff] }
 0x36c   : > { %v2367_v0 = vpack.c.bf16 %v1171_v17, %v1167_v18  ;;  %v2357_v63 = vpack.c.bf16 %v1153_v49, %v1149_v42  ;;  %v6391_v59 = vpop.permute.xlu0 %6390  ;;  %v2354_v18 = vpack.c.bf16 %v1146_v54, %v1142_v1  ;;  %v10681_v17 = vadd.f32 %v3694_v4, %v3631_v62  ;;  %v14038_v42 = vld [vmem:[#allocation25_spill] sm:$0xff]  ;;  %v14039_v49 = vld [vmem:[#allocation22_spill] sm:$0xff] }
 0x36d   : > { %v6446_v50 = vsel %vm5608_vm3, %v10500_v40, %v6391_v59 }
 0x36e   : > { %v5520_v19 = vrot.slane %v10681_v17, 4 }
 0x36f   : > { %3973 = vmatmul.mubr.bf16.gmra.mxu0 %v10319_v15  ;;  %v10645_v15 = vld [vmem:[%s13936_s1 + $0x4] ss:$16 sps:$4 sm:$0xff]  }
 0x370   : > { %4051 = vmatpush1.bf16.xpose.msra.mxu0 %v2369_v9  ;;  %4036 = vmatmul.mubr.bf16.gmra.mxu1 %v10325_v51  ;;  %v1160_v51 = vld [vmem:[%s9078_s25 + $0x1738] sm:$0xff]  ;;  %v10704_v62 = vpop.permute.xlu0 %6942 }
 0x371   : > { %4114 = vmatpush1.bf16.xpose.msra.mxu1 %v2371_v39  ;;  %4052 = vmatprep.subr.bf16.mxu0 %v2366_v20  ;;  %v2364_v56 = vpack.c.bf16 %v1164_v25, %v1160_v51  ;;  %v1148_v9 = vld [vmem:[%s9078_s25 + $0x16d8] sm:$0xff]  ;;  %v2359_v39 = vpack.c.bf16 %v1155_v52, %v1151_v47  ;;  %v3639_v20 = vpop.f32.mrf.mxu0  ;;  %v10686_v25 = vadd.f32 %v3696_v7, %v3633_v8 }
 0x372   : > { %8230 = vmatprep.subr.msk.bf16.mxu1 %vm2854_vm0, %v2368_v57  ;;  %4078 = vmatprep.mubr.bf16.mxu0 %v10645_v15  ;;  %v3702_v57 = vpop.f32.mrf.mxu1  ;;  %v2356_v51 = vpack.c.bf16 %v1148_v9, %v1144_v36  ;;  %v6503_v47 = vadd.f32 %v6446_v50, %v14039_v49  ;;  %v2352_v52 = vpack.c.bf16 %v1140_v46, %v1136_v26  ;;  %v1137_v36 = vld [vmem:[%s9078_s25 + $0x1680] sm:$0xff] }
 0x373   : > { %8236 = vmatprep.mubr.msk.bf16.mxu1 %vm2854_vm0, %v10653_v16  ;;  %v5521_v35 = vrot.slane %v10686_v25, 4  ;;  %v1197_v26 = vld [vmem:[%s9078_s25 + $0x1860] sm:$0xff]  ;;  %v6998_v46 = vsel %vm6009_vm4, %v10508_v21, %v10704_v62 }
 0x374   : > { %v6791_v9 = vpop.permute.xlu0 %6790 }
 0x378   : > { %4053 = vmatpush1.bf16.xpose.msra.mxu0 %v2365_v43 }
 0x379   : > { %4116 = vmatpush1.bf16.xpose.msra.mxu1 %v2367_v0  ;;  %4054 = vmatprep.subr.bf16.mxu0 %v2362_v12  ;;  %v3641_v0 = vpop.f32.mrf.mxu0  ;;  %v3704_v12 = vpop.f32.mrf.mxu1 }
 0x37a   : > { %8231 = vmatprep.subr.msk.bf16.mxu1 %vm2854_vm0, %v2364_v56  ;;  %v1141_v56 = vld [vmem:[%s9078_s25 + $0x16a0] sm:$0xff] }
 0x37e   : > { %v10666_v11 = vpop.xlane.xlu1 %7285 }
 0x37f   : > { %14037 = vst [vmem:[#allocation28_spill] sm:$0xff] %v10666_v11  ;;  %v1220_v11 = vld [vmem:[%s9078_s25 + $0x1918] sm:$0xff] }
 0x380   : > { %4055 = vmatpush1.bf16.xpose.msra.mxu0 %v2361_v61  ;;  %v10708_v61 = vadd.f32 %v3700_v58, %v3637_v24 }
 0x381   : > { %4118 = vmatpush1.bf16.xpose.msra.mxu1 %v2363_v48  ;;  %4056 = vmatprep.subr.bf16.mxu0 %v2358_v5  ;;  %v3643_v48 = vpop.f32.mrf.mxu0  ;;  %v3706_v5 = vpop.f32.mrf.mxu1 }
 0x382   : > { %v10672_v13 = vpop.permute.xlu1 %5558  ;;  %8232 = vmatprep.subr.msk.bf16.mxu1 %vm2854_vm0, %v2360_v22  ;;  %v2355_v22 = vpack.c.bf16 %v1147_v14, %v1143_v44  ;;  %v5737_v24 = vrot.slane %v10708_v61, 4  ;;  %v10750_v49 = vadd.f32 %v3706_v5, %v3643_v48 }
 0x383   : > { %v3647_v1 = vpop.f32.mrf.mxu0  ;;  %v3710_v54 = vpop.f32.mrf.mxu1 }
 0x385   : > { %v3649_v44 = vpop.f32.mrf.mxu0  ;;  %v3712_v14 = vpop.f32.mrf.mxu1 }
 0x386   : > { %v5776_v33 = vpop.permute.xlu1 %5775 }
 0x387   : > { %v5830_v23 = vsel %vm5608_vm3, %v10578_v45, %v5776_v33  ;;  %v5888_v31 = vadd.f32 %v5776_v33, %v10355_v53  ;;  %v1145_v45 = vld [vmem:[%s9078_s25 + $0x16c0] sm:$0xff]  ;;  %v1135_v33 = vld [vmem:[%s9078_s25 + $0x1670] sm:$0xff]  ;;  %v3651_v50 = vpop.f32.mrf.mxu0 }
 0x388   : > { %4057 = vmatpush1.bf16.xpose.msra.mxu0 %v2357_v63  ;;  %v5887_v43 = vadd.f32 %v5830_v23, %v10202_v60  ;;  %v1134_v60 = vld [vmem:[%s9078_s25 + $0x1668] sm:$0xff]  ;;  %v2353_v4 = vpack.c.bf16 %v1145_v45, %v1141_v56  ;;  %v1133_v63 = vld [vmem:[%s9078_s25 + $0x1660] sm:$0xff]  ;;  %v10722_v23 = vadd.f32 %v3704_v12, %v3641_v0  ;;  %v1200_v56 = vld [vmem:[%s9078_s25 + $0x1878] sm:$0xff]  ;;  %v6846_v45 = vsel %vm5608_vm3, %v10516_v3, %v6791_v9 }
 0x389   : > { %4120 = vmatpush1.bf16.xpose.msra.mxu1 %v2359_v39  ;;  %5959 = vrot.lane.b32.xlu0 %v5888_v31, %s8864_s29  ;;  %v2350_v7 = vpack.c.bf16 %v1138_v29, %v1134_v60  ;;  %v10726_v31 = vadd.f32 %v3702_v57, %v3639_v20  ;;  %v2384_v57 = vpack.c.bf16 %v1200_v56, %v1200_v56  ;;  %v14041_v60 = vld [vmem:[#allocation23_spill] sm:$0xff] }
 0x38a   : > { %5957 = vrot.lane.b32.xlu1 %v5887_v43, %s8864_s29  ;;  %v10693_v53 = vpop.permute.xlu1 %6174  ;;  %4058 = vmatprep.subr.bf16.mxu0 %v2354_v18  ;;  %v1139_v18 = vld [vmem:[%s9078_s25 + $0x1690] sm:$0xff]  ;;  %v2349_v43 = vpack.c.bf16 %v1137_v36, %v1133_v63  ;;  %v6138_v20 = vrot.slane %v10722_v23, 4  ;;  %v6903_v29 = vadd.f32 %v6846_v45, %v14041_v60  ;;  %v1264_v63 = vld [vmem:[%s9078_s25 + $0x1a78] sm:$0xff]  ;;  %v3653_v36 = vpop.f32.mrf.mxu0 }
 0x38b   : > { %8233 = vmatprep.subr.msk.bf16.mxu1 %vm2854_vm0, %v2356_v51  ;;  %14040 = vst [vmem:[#allocation25_spill] sm:$0xff] %v10726_v31  ;;  %v5738_v3 = vrot.slane %v10726_v31, 4  ;;  %v1259_v45 = vld [vmem:[%s9078_s25 + $0x1a50] sm:$0xff]  ;;  %v1252_v60 = vld [vmem:[%s9078_s25 + $0x1a18] sm:$0xff] }
 0x38d   : > { %5560 = vrot.lane.b32.xlu0 %v5520_v19, %s8863_s19  ;;  %v2351_v19 = vpack.c.bf16 %v1139_v18, %v1135_v33  ;;  %v10758_v18 = vadd.f32 %v3710_v54, %v3647_v1  ;;  %v1257_v54 = vld [vmem:[%s9078_s25 + $0x1a40] sm:$0xff] }
 0x38e   : > { %5562 = vrot.lane.b32.xlu1 %v5521_v35, %s8863_s19  ;;  %v6393_v8 = vpop.permute.xlu1 %6392 }
 0x38f   : > { %v6505_v40 = vadd.f32 %v6393_v8, %v14038_v42  ;;  %v6447_v58 = vsel %vm5608_vm3, %v6391_v59, %v6393_v8  ;;  %v1198_v59 = vld [vmem:[%s9078_s25 + $0x1868] sm:$0xff] }
 0x390   : > { %4059 = vmatpush1.bf16.xpose.msra.mxu0 %v2353_v4  ;;  %v6504_v51 = vadd.f32 %v6447_v58, %v10374_v55  ;;  %v2382_v12 = vpack.c.bf16 %v1198_v59, %v1198_v59  ;;  %v3714_v4 = vpop.f32.mrf.mxu1  ;;  %v1258_v42 = vld [vmem:[%s9078_s25 + $0x1a48] sm:$0xff]  ;;  %v1260_v58 = vld [vmem:[%s9078_s25 + $0x1a58] sm:$0xff]  ;;  %v6139_v59 = vrot.slane %v10750_v49, 4 }
 0x391   : > { %4122 = vmatpush1.bf16.xpose.msra.mxu1 %v2355_v22  ;;  %6572 = vrot.lane.b32.xlu0 %v6503_v47, %s8864_s29  ;;  %v14042_v22 = vld [vmem:[#allocation27_spill] sm:$0xff] }
 0x392   : > { %6576 = vrot.lane.b32.xlu1 %v6505_v40, %s8864_s29  ;;  %v6945_v39 = vpop.permute.xlu1 %6944  ;;  %4060 = vmatprep.subr.bf16.mxu0 %v2350_v7  ;;  %v1262_v40 = vld [vmem:[%s9078_s25 + $0x1a68] sm:$0xff] }
 0x393   : > { %8234 = vmatprep.subr.msk.bf16.mxu1 %vm2854_vm0, %v2352_v52  ;;  %v6999_v47 = vsel %vm6009_vm4, %v10704_v62, %v6945_v39  ;;  %v7055_v52 = vadd.f32 %v6998_v46, %v6903_v29  ;;  %v2414_v33 = vpack.c.bf16 %v1262_v40, %v1258_v42  ;;  %v1256_v29 = vld [vmem:[%s9078_s25 + $0x1a38] sm:$0xff]  ;;  %v3715_v46 = vadd.f32 %v3714_v4, %v3651_v50  ;;  %v1249_v4 = vld [vmem:[%s9078_s25 + $0x1a00] sm:$0xff] }
 0x394   : > { %v10799_v40 = vld [vmem:[%s13936_s1 + $0x8] ss:$16 sps:$4 sm:$0xff]  }
 0x395   : > { %5777 = vrot.lane.b32.xlu0 %v5737_v24, %s8863_s19  ;;  %v2381_v24 = vpack.c.bf16 %v1197_v26, %v1197_v26 }
 0x396   : > { %6574 = vrot.lane.b32.xlu1 %v6504_v51, %s8864_s29  ;;  %v6793_v0 = vpop.permute.xlu1 %6792  ;;  %v10765_v51 = vadd.f32 %v3712_v14, %v3649_v44  ;;  %v6354_v44 = vrot.slane %v10758_v18, 4 }
 0x397   : > { %v6905_v55 = vadd.f32 %v6793_v0, %v10386_v37  ;;  %v6847_v35 = vsel %vm5608_vm3, %v6791_v9, %v6793_v0  ;;  %v1199_v37 = vld [vmem:[%s9078_s25 + $0x1870] sm:$0xff]  ;;  %v3716_v9 = vpop.f32.mrf.mxu1  ;;  %v1250_v0 = vld [vmem:[%s9078_s25 + $0x1a08] sm:$0xff] }
 0x398   : > { %4061 = vmatpush1.bf16.xpose.msra.mxu0 %v2349_v43  ;;  %v6904_v8 = vadd.f32 %v6847_v35, %v14042_v22  ;;  %v2383_v21 = vpack.c.bf16 %v1199_v37, %v1199_v37  ;;  %v1261_v43 = vld [vmem:[%s9078_s25 + $0x1a60] sm:$0xff]  ;;  %v3717_v42 = vadd.f32 %v3716_v9, %v3653_v36  ;;  %v1242_v36 = vld [vmem:[%s9078_s25 + $0x19c8] sm:$0xff]  ;;  %v6754_v9 = vrot.slane %v3715_v46, 4 }
 0x399   : > { %4124 = vmatpush1.bf16.xpose.msra.mxu1 %v2351_v19  ;;  %6178 = vrot.lane.b32.xlu0 %v6138_v20, %s8863_s19  ;;  %v7057_v7 = vadd.f32 %v6945_v39, %v6905_v55  ;;  %v2416_v39 = vpack.c.bf16 %v1264_v63, %v1260_v58  ;;  %v1263_v19 = vld [vmem:[%s9078_s25 + $0x1a70] sm:$0xff]  ;;  %v6355_v20 = vrot.slane %v10765_v51, 4 }
 0x39a   : > { %5779 = vrot.lane.b32.xlu1 %v5738_v3, %s8863_s19  ;;  %4076 = vmatprep.subr.bf16.mxu0 %v2382_v12  ;;  %v7056_v5 = vadd.f32 %v6999_v47, %v6904_v8  ;;  %v1254_v12 = vld [vmem:[%s9078_s25 + $0x1a28] sm:$0xff]  ;;  %v2415_v35 = vpack.c.bf16 %v1263_v19, %v1259_v45  ;;  %v1253_v47 = vld [vmem:[%s9078_s25 + $0x1a20] sm:$0xff] }
 0x39b   : > { %8235 = vmatprep.subr.msk.bf16.mxu1 %vm2854_vm0, %v2384_v57  ;;  %v2413_v57 = vpack.c.bf16 %v1261_v43, %v1257_v54  ;;  %v2410_v37 = vpack.c.bf16 %v1254_v12, %v1250_v0  ;;  %v10793_v22 = vld [vmem:[%s13936_s1] ss:$16 sps:$4 sm:$0xff]   ;;  %v6755_v54 = vrot.slane %v3717_v42, 4  ;;  %v2409_v43 = vpack.c.bf16 %v1253_v47, %v1249_v4  ;;  %v10828_v45 = vld [vmem:[%s13936_s1 + $0x2c] ss:$16 sps:$4 sm:$0xff]  }
 0x39c   : > { %v1234_v4 = vld [vmem:[%s9078_s25 + $0x1988] sm:$0xff] }
 0x39d   : > { %7128 = vrot.lane.b32.xlu0 %v7057_v7, %s8865_s21  ;;  %v2412_v7 = vpack.c.bf16 %v1256_v29, %v1252_v60  ;;  %v10846_v60 = vld [vmem:[%s13936_s1 + $0x28] ss:$16 sps:$4 sm:$0xff]  }
 0x39e   : > { %7124 = vrot.lane.b32.xlu1 %v7055_v52, %s8865_s21  ;;  %v1251_v52 = vld [vmem:[%s9078_s25 + $0x1a10] sm:$0xff]  ;;  %v1238_v47 = vld [vmem:[%s9078_s25 + $0x19a8] sm:$0xff] }
 0x39f   : > { %v10760_v48 = vpop.f32.mrf.mxu0  ;;  %v10762_v62 = vpop.f32.mrf.mxu1 }
 0x3a0   : > { %4077 = vmatpush2.bf16.xpose.msra.mxu0 %v2381_v24  ;;  %v1255_v24 = vld [vmem:[%s9078_s25 + $0x1a30] sm:$0xff] }
 0x3a1   : > { %4140 = vmatpush2.bf16.xpose.msra.mxu1 %v2383_v21  ;;  %7126 = vrot.lane.b32.xlu0 %v7056_v5, %s8865_s21  ;;  %v10768_v1 = vpop.f32.mrf.mxu0  ;;  %v10772_v56 = vpop.f32.mrf.mxu1  ;;  %v1244_v5 = vld [vmem:[%s9078_s25 + $0x19d8] sm:$0xff] }
 0x3a2   : > { %6180 = vrot.lane.b32.xlu1 %v6139_v59, %s8863_s19  ;;  %4247 = vmatprep.subr.bf16.mxu0 %v2414_v33  ;;  %v1246_v33 = vld [vmem:[%s9078_s25 + $0x19e8] sm:$0xff]  ;;  %v10822_v59 = vld [vmem:[%s13936_s1 + $0x24] ss:$16 sps:$4 sm:$0xff]  }
 0x3a3   : > { %v3757_v14 = vpop.f32.mrf.mxu0  ;;  %8239 = vmatprep.subr.msk.bf16.mxu1 %vm2854_vm0, %v2416_v39  ;;  %v3820_v55 = vpop.f32.mrf.mxu1  ;;  %v1248_v39 = vld [vmem:[%s9078_s25 + $0x19f8] sm:$0xff]  ;;  %v2406_v12 = vpack.c.bf16 %v1246_v33, %v1242_v36  ;;  %v10865_v36 = vld [vmem:[%s13936_s1 + $0x44] ss:$16 sps:$4 sm:$0xff]  }
 0x3a4   : > { %v10813_v21 = vadd.f32 %v3820_v55, %v3757_v14 }
 0x3a5   : > { %6394 = vrot.lane.b32.xlu0 %v6354_v44, %s8863_s19  ;;  %v10785_v3 = vpop.f32.mrf.mxu0  ;;  %v10787_v26 = vpop.f32.mrf.mxu1  ;;  %v2411_v44 = vpack.c.bf16 %v1255_v24, %v1251_v52  ;;  %v1236_v52 = vld [vmem:[%s9078_s25 + $0x1998] sm:$0xff] }
 0x3a6   : > { %6396 = vrot.lane.b32.xlu1 %v6355_v20, %s8863_s19  ;;  %v2408_v20 = vpack.c.bf16 %v1248_v39, %v1244_v5  ;;  %v5522_v55 = vrot.slane %v10813_v21, 4  ;;  %v1240_v24 = vld [vmem:[%s9078_s25 + $0x19b8] sm:$0xff] }
 0x3a7   : > { %4079 = vmatmul.mubr.bf16.vlgmr.msra.gmra.mxu0 %v10793_v22  ;;  %v3763_v8 = vpop.f32.mrf.mxu0  ;;  %v3826_v50 = vpop.f32.mrf.mxu1 }
 0x3a8   : > { %4142 = vmatmul.mubr.bf16.vlgmr.msra.gmra.mxu1 %v10799_v40  ;;  %4248 = vmatpush1.bf16.xpose.msra.mxu0 %v2413_v57  ;;  %v10833_v19 = vadd.f32 %v3826_v50, %v3763_v8  ;;  %v10840_v57 = vld [vmem:[%s13936_s1 + $0x20] ss:$16 sps:$4 sm:$0xff]  }
 0x3a9   : > { %4311 = vmatpush1.bf16.xpose.msra.mxu1 %v2415_v35  ;;  %6946 = vrot.lane.b32.xlu0 %v3715_v46, %s8864_s29  ;;  %v10808_v58 = vpop.f32.mrf.mxu0  ;;  %v10810_v63 = vpop.f32.mrf.mxu1  ;;  %v1245_v46 = vld [vmem:[%s9078_s25 + $0x19e0] sm:$0xff]  ;;  %v1247_v50 = vld [vmem:[%s9078_s25 + $0x19f0] sm:$0xff] }
 0x3aa   : > { %6948 = vrot.lane.b32.xlu1 %v3717_v42, %s8864_s29  ;;  %4249 = vmatprep.subr.bf16.mxu0 %v2410_v37  ;;  %14043 = vst [vmem:[#allocation22_spill] sm:$0xff] %v10833_v19  ;;  %v5739_v29 = vrot.slane %v10833_v19, 4  ;;  %v1241_v37 = vld [vmem:[%s9078_s25 + $0x19c0] sm:$0xff]  ;;  %v1243_v42 = vld [vmem:[%s9078_s25 + $0x19d0] sm:$0xff]  ;;  %v1224_v19 = vld [vmem:[%s9078_s25 + $0x1938] sm:$0xff] }
 0x3ab   : > { %8240 = vmatprep.subr.msk.bf16.mxu1 %vm2854_vm0, %v2412_v7  ;;  %4088 = vmatprep.mubr.bf16.mxu0 %v10822_v59  ;;  %v3767_v14 = vpop.f32.mrf.mxu0  ;;  %v3830_v0 = vpop.f32.mrf.mxu1  ;;  %v2405_v33 = vpack.c.bf16 %v1245_v46, %v1241_v37  ;;  %v1233_v37 = vld [vmem:[%s9078_s25 + $0x1980] sm:$0xff] }
 0x3ac   : > { %8237 = vmatprep.mubr.msk.bf16.mxu1 %vm2854_vm0, %v10828_v45  ;;  %v10851_v35 = vadd.f32 %v3830_v0, %v3767_v14  ;;  %v2402_v14 = vpack.c.bf16 %v1238_v47, %v1234_v4  ;;  %v2404_v0 = vpack.c.bf16 %v1240_v24, %v1236_v52  ;;  %v1237_v46 = vld [vmem:[%s9078_s25 + $0x19a0] sm:$0xff]  ;;  %v1226_v4 = vld [vmem:[%s9078_s25 + $0x1948] sm:$0xff]  ;;  %v1228_v52 = vld [vmem:[%s9078_s25 + $0x1958] sm:$0xff] }
 0x3ad   : > { %6794 = vrot.lane.b32.xlu0 %v6754_v9, %s8863_s19  ;;  %v3769_v8 = vpop.f32.mrf.mxu0  ;;  %v3832_v7 = vpop.f32.mrf.mxu1  ;;  %v10871_v9 = vld [vmem:[%s13936_s1 + $0x4c] ss:$16 sps:$4 sm:$0xff]  }
 0x3ae   : > { %6796 = vrot.lane.b32.xlu1 %v6755_v54, %s8863_s19  ;;  %v6140_v5 = vrot.slane %v10851_v35, 4  ;;  %v10877_v39 = vadd.f32 %v3832_v7, %v3769_v8  ;;  %v2407_v54 = vpack.c.bf16 %v1247_v50, %v1243_v42  ;;  %v1235_v42 = vld [vmem:[%s9078_s25 + $0x1990] sm:$0xff]  ;;  %v1230_v47 = vld [vmem:[%s9078_s25 + $0x1968] sm:$0xff]  ;;  %v1232_v24 = vld [vmem:[%s9078_s25 + $0x1978] sm:$0xff] }
 0x3af   : > { %4089 = vmatmul.mubr.bf16.gmra.mxu0 %v10840_v57  ;;  %v1239_v50 = vld [vmem:[%s9078_s25 + $0x19b0] sm:$0xff] }
 0x3b0   : > { %4250 = vmatpush1.bf16.xpose.msra.mxu0 %v2409_v43  ;;  %4152 = vmatmul.mubr.bf16.gmra.mxu1 %v10846_v60  ;;  %v3773_v43 = vpop.f32.mrf.mxu0 }
 0x3b1   : > { %4313 = vmatpush1.bf16.xpose.msra.mxu1 %v2411_v44  ;;  %5564 = vrot.lane.b32.xlu0 %v5522_v55, %s8863_s19  ;;  %v3836_v44 = vpop.f32.mrf.mxu1  ;;  %v6141_v55 = vrot.slane %v10877_v39, 4 }
 0x3b2   : > { %4251 = vmatprep.subr.bf16.mxu0 %v2406_v12  ;;  %8241 = vmatprep.subr.msk.bf16.mxu1 %vm2854_vm0, %v2408_v20  ;;  %v10882_v12 = vld [vmem:[%s13936_s1 + $0x40] ss:$16 sps:$4 sm:$0xff]   ;;  %v10888_v20 = vld [vmem:[%s13936_s1 + $0x48] ss:$16 sps:$4 sm:$0xff]   ;;  %v10897_v8 = vpop.f32.mrf.mxu0 }
 0x3b3   : > { %4098 = vmatprep.mubr.bf16.mxu0 %v10865_v36  ;;  %8238 = vmatprep.mubr.msk.bf16.mxu1 %vm2854_vm0, %v10871_v9  ;;  %v10899_v7 = vpop.f32.mrf.mxu1 }
 0x3b5   : > { %5781 = vrot.lane.b32.xlu0 %v5739_v29, %s8863_s19  ;;  %v10893_v29 = vadd.f32 %v3836_v44, %v3773_v43  ;;  %v3777_v43 = vpop.f32.mrf.mxu0  ;;  %v3840_v44 = vpop.f32.mrf.mxu1 }
 0x3b7   : > { %4099 = vmatmul.mubr.bf16.gmra.mxu0 %v10882_v12 }
 0x3b8   : > { %4252 = vmatpush1.bf16.xpose.msra.mxu0 %v2405_v33  ;;  %4162 = vmatmul.mubr.bf16.gmra.mxu1 %v10888_v20  ;;  %v2401_v33 = vpack.c.bf16 %v1237_v46, %v1233_v37  ;;  %v1229_v37 = vld [vmem:[%s9078_s25 + $0x1960] sm:$0xff]  ;;  %v1231_v46 = vld [vmem:[%s9078_s25 + $0x1970] sm:$0xff] }
 0x3b9   : > { %4315 = vmatpush1.bf16.xpose.msra.mxu1 %v2407_v54  ;;  %6182 = vrot.lane.b32.xlu0 %v6140_v5, %s8863_s19  ;;  %v6356_v5 = vrot.slane %v10893_v29, 4  ;;  %v2403_v54 = vpack.c.bf16 %v1239_v50, %v1235_v42  ;;  %v1218_v42 = vld [vmem:[%s9078_s25 + $0x1908] sm:$0xff] }
 0x3ba   : > { %4253 = vmatprep.subr.bf16.mxu0 %v2402_v14  ;;  %8242 = vmatprep.subr.msk.bf16.mxu1 %vm2854_vm0, %v2404_v0  ;;  %v2398_v14 = vpack.c.bf16 %v1230_v47, %v1226_v4  ;;  %v2400_v0 = vpack.c.bf16 %v1232_v24, %v1228_v52  ;;  %v1222_v50 = vld [vmem:[%s9078_s25 + $0x1928] sm:$0xff]  ;;  %v10925_v47 = vadd.f32 %v10762_v62, %v10760_v48 }
 0x3bb   : > { %4279 = vmatprep.mubr.bf16.mxu0 %v10645_v15  ;;  %8255 = vmatprep.mubr.msk.bf16.mxu1 %vm2854_vm0, %v10653_v16  ;;  %v3841_v15 = vadd.f32 %v3840_v44, %v3777_v43  ;;  %v1225_v16 = vld [vmem:[%s9078_s25 + $0x1940] sm:$0xff]  ;;  %v7288_v43 = vsel %vm7267_vm1, %v10597_v10, -inf  ;;  %v10936_v62 = vadd.f32 %v10772_v56, %v10768_v1  ;;  %v1219_v44 = vld [vmem:[%s9078_s25 + $0x1910] sm:$0xff] }
 0x3bc   : > { %v2397_v4 = vpack.c.bf16 %v1229_v37, %v1225_v16  ;;  %v7290_v48 = vsel %vm7267_vm1, %v10925_v47, -inf  ;;  %v1214_v16 = vld [vmem:[%s9078_s25 + $0x18e8] sm:$0xff]  ;;  %v1212_v37 = vld [vmem:[%s9078_s25 + $0x18d8] sm:$0xff] }
 0x3bd   : > { %6184 = vrot.lane.b32.xlu0 %v6141_v55, %s8863_s19  ;;  %v1227_v55 = vld [vmem:[%s9078_s25 + $0x1950] sm:$0xff]  ;;  %v6756_v52 = vrot.slane %v3841_v15, 4 }
 0x3be   : > { %v2399_v24 = vpack.c.bf16 %v1231_v46, %v1227_v55  ;;  %v1216_v55 = vld [vmem:[%s9078_s25 + $0x18f8] sm:$0xff] }
 0x3c0   : > { %4254 = vmatpush1.bf16.xpose.msra.mxu0 %v2401_v33  ;;  %v2394_v33 = vpack.c.bf16 %v1222_v50, %v1218_v42  ;;  %v7292_v42 = vsel %vm7273_vm2, %v10936_v62, -inf }
 0x3c1   : > { %4317 = vmatpush1.bf16.xpose.msra.mxu1 %v2403_v54  ;;  %6398 = vrot.lane.b32.xlu0 %v6356_v5, %s8863_s19  ;;  %v2396_v5 = vpack.c.bf16 %v1224_v19, %v1220_v11  ;;  %v7287_v54 = vsel %vm7267_vm1, %v10586_v30, -inf  ;;  %v1217_v11 = vld [vmem:[%s9078_s25 + $0x1900] sm:$0xff] }
 0x3c2   : > { %4255 = vmatprep.subr.bf16.mxu0 %v2398_v14  ;;  %8243 = vmatprep.subr.msk.bf16.mxu1 %vm2854_vm0, %v2400_v0  ;;  %v1221_v19 = vld [vmem:[%s9078_s25 + $0x1920] sm:$0xff]  ;;  %v7289_v14 = vmax.f32 %v7287_v54, %v7288_v43  ;;  %v1223_v0 = vld [vmem:[%s9078_s25 + $0x1930] sm:$0xff]  ;;  %v1202_v43 = vld [vmem:[%s9078_s25 + $0x1888] sm:$0xff] }
 0x3c3   : > { %v2393_v1 = vpack.c.bf16 %v1221_v19, %v1217_v11  ;;  %v2395_v46 = vpack.c.bf16 %v1223_v0, %v1219_v44  ;;  %v1215_v54 = vld [vmem:[%s9078_s25 + $0x18f0] sm:$0xff]  ;;  %v1204_v11 = vld [vmem:[%s9078_s25 + $0x1898] sm:$0xff] }
 0x3c4   : > { %v7291_v56 = vmax.f32 %v7289_v14, %v7290_v48  ;;  %v1206_v48 = vld [vmem:[%s9078_s25 + $0x18a8] sm:$0xff]  ;;  %v1208_v19 = vld [vmem:[%s9078_s25 + $0x18b8] sm:$0xff] }
 0x3c5   : > { %6950 = vrot.lane.b32.xlu0 %v3841_v15, %s8864_s29  ;;  %v1210_v15 = vld [vmem:[%s9078_s25 + $0x18c8] sm:$0xff]  ;;  %v2386_v0 = vpack.c.bf16 %v1206_v48, %v1202_v43  ;;  %v1321_v48 = vld [vmem:[%s9078_s25 + $0x1c40] sm:$0xff] }
 0x3c6   : > { %v2390_v50 = vpack.c.bf16 %v1214_v16, %v1210_v15  ;;  %v2388_v15 = vpack.c.bf16 %v1208_v19, %v1204_v11  ;;  %v1201_v16 = vld [vmem:[%s9078_s25 + $0x1880] sm:$0xff]  ;;  %v1323_v19 = vld [vmem:[%s9078_s25 + $0x1c50] sm:$0xff] }
 0x3c7   : > { %v1325_v11 = vld [vmem:[%s9078_s25 + $0x1c60] sm:$0xff] }
 0x3c8   : > { %4256 = vmatpush1.bf16.xpose.msra.mxu0 %v2397_v4  ;;  %v2392_v4 = vpack.c.bf16 %v1216_v55, %v1212_v37  ;;  %v1205_v37 = vld [vmem:[%s9078_s25 + $0x18a0] sm:$0xff]  ;;  %v1203_v55 = vld [vmem:[%s9078_s25 + $0x1890] sm:$0xff] }
 0x3c9   : > { %4319 = vmatpush1.bf16.xpose.msra.mxu1 %v2399_v24  ;;  %6798 = vrot.lane.b32.xlu0 %v6756_v52, %s8863_s19  ;;  %v7293_v52 = vmax.f32 %v7291_v56, %v7292_v42  ;;  %v1209_v24 = vld [vmem:[%s9078_s25 + $0x18c0] sm:$0xff]  ;;  %v1322_v56 = vld [vmem:[%s9078_s25 + $0x1c48] sm:$0xff]  ;;  %v1324_v42 = vld [vmem:[%s9078_s25 + $0x1c58] sm:$0xff] }
 0x3ca   : > { %4257 = vmatprep.subr.bf16.mxu0 %v2394_v33  ;;  %8244 = vmatprep.subr.msk.bf16.mxu1 %vm2854_vm0, %v2396_v5  ;;  %v1213_v33 = vld [vmem:[%s9078_s25 + $0x18e0] sm:$0xff]  ;;  %v1211_v5 = vld [vmem:[%s9078_s25 + $0x18d0] sm:$0xff] }
 0x3cb   : > { %v2389_v44 = vpack.c.bf16 %v1213_v33, %v1209_v24  ;;  %v2391_v14 = vpack.c.bf16 %v1215_v54, %v1211_v5  ;;  %v10974_v54 = vadd.f32 %v10810_v63, %v10808_v58  ;;  %v10987_v58 = vadd.f32 %v10899_v7, %v10897_v8  ;;  %v1316_v63 = vld [vmem:[%s9078_s25 + $0x1c18] sm:$0xff]  ;;  %v3779_v8 = vpop.f32.mrf.mxu0  ;;  %v3842_v7 = vpop.f32.mrf.mxu1 }
 0x3cd   : > { %14044 = vst [vmem:[#allocation23_spill] sm:$0xff] %v10974_v54 }
 0x3d0   : > { %4258 = vmatpush1.bf16.xpose.msra.mxu0 %v2393_v1  ;;  %v1207_v1 = vld [vmem:[%s9078_s25 + $0x18b0] sm:$0xff] }
 0x3d1   : > { %4321 = vmatpush1.bf16.xpose.msra.mxu1 %v2395_v46  ;;  %4259 = vmatprep.subr.bf16.mxu0 %v2390_v50  ;;  %v1326_v46 = vld [vmem:[%s9078_s25 + $0x1c68] sm:$0xff]  ;;  %v1328_v50 = vld [vmem:[%s9078_s25 + $0x1c78] sm:$0xff]  ;;  %v2387_v24 = vpack.c.bf16 %v1207_v1, %v1203_v55  ;;  %v6357_v1 = vrot.slane %v10987_v58, 4 }
 0x3d2   : > { %7294 = vmax.xlane.f32.xlu1 %v7293_v52  ;;  %8245 = vmatprep.subr.msk.bf16.mxu1 %vm2854_vm0, %v2392_v4  ;;  %v2385_v4 = vpack.c.bf16 %v1205_v37, %v1201_v16  ;;  %v10970_v52 = vadd.f32 %v10787_v26, %v10785_v3  ;;  %v2446_v33 = vpack.c.bf16 %v1326_v46, %v1322_v56  ;;  %v1327_v3 = vld [vmem:[%s9078_s25 + $0x1c70] sm:$0xff]  ;;  %v1314_v26 = vld [vmem:[%s9078_s25 + $0x1c08] sm:$0xff]  ;;  %v1313_v56 = vld [vmem:[%s9078_s25 + $0x1c00] sm:$0xff] }
 0x3d3   : > { %v2448_v5 = vpack.c.bf16 %v1328_v50, %v1324_v42  ;;  %v2447_v16 = vpack.c.bf16 %v1327_v3, %v1323_v19  ;;  %v1317_v46 = vld [vmem:[%s9078_s25 + $0x1c20] sm:$0xff]  ;;  %v1315_v42 = vld [vmem:[%s9078_s25 + $0x1c10] sm:$0xff]  ;;  %v11004_v3 = vpop.xlane.xlu0 %7376 }
 0x3d4   : > { %v5523_v43 = vrot.slane %v10970_v52, 4  ;;  %v1319_v50 = vld [vmem:[%s9078_s25 + $0x1c30] sm:$0xff]  ;;  %14045 = vst [vmem:[#allocation27_spill] sm:$0xff] %v11004_v3 }
 0x3d8   : > { %4260 = vmatpush1.bf16.xpose.msra.mxu0 %v2389_v44  ;;  %v1318_v44 = vld [vmem:[%s9078_s25 + $0x1c28] sm:$0xff] }
 0x3d9   : > { %4323 = vmatpush1.bf16.xpose.msra.mxu1 %v2391_v14  ;;  %4261 = vmatprep.subr.bf16.mxu0 %v2386_v0  ;;  %v5740_v14 = vrot.slane %v10974_v54, 4  ;;  %v1320_v0 = vld [vmem:[%s9078_s25 + $0x1c38] sm:$0xff]  ;;  %v2442_v37 = vpack.c.bf16 %v1318_v44, %v1314_v26 }
 0x3da   : > { %8246 = vmatprep.subr.msk.bf16.mxu1 %vm2854_vm0, %v2388_v15  ;;  %v2445_v15 = vpack.c.bf16 %v1325_v11, %v1321_v48  ;;  %v2444_v55 = vpack.c.bf16 %v1320_v0, %v1316_v63  ;;  %v2441_v48 = vpack.c.bf16 %v1317_v46, %v1313_v56  ;;  %v2443_v11 = vpack.c.bf16 %v1319_v50, %v1315_v42  ;;  %v1305_v63 = vld [vmem:[%s9078_s25 + $0x1bc0] sm:$0xff] }
 0x3db   : > { %v1309_v0 = vld [vmem:[%s9078_s25 + $0x1be0] sm:$0xff] }
 0x3dc   : > { %v2437_v46 = vpack.c.bf16 %v1309_v0, %v1305_v63  ;;  %v1303_v0 = vld [vmem:[%s9078_s25 + $0x1bb0] sm:$0xff] }
 0x3e0   : > { %4262 = vmatpush1.bf16.xpose.msra.mxu0 %v2385_v4  ;;  %v1306_v4 = vld [vmem:[%s9078_s25 + $0x1bc8] sm:$0xff] }
 0x3e1   : > { %4325 = vmatpush1.bf16.xpose.msra.mxu1 %v2387_v24  ;;  %4263 = vmatprep.subr.bf16.mxu0 %v2446_v33  ;;  %v1310_v24 = vld [vmem:[%s9078_s25 + $0x1be8] sm:$0xff]  ;;  %v3843_v33 = vadd.f32 %v3842_v7, %v3779_v8  ;;  %v1300_v8 = vld [vmem:[%s9078_s25 + $0x1b98] sm:$0xff] }
 0x3e2   : > { %8247 = vmatprep.subr.msk.bf16.mxu1 %vm2854_vm0, %v2448_v5  ;;  %v1308_v5 = vld [vmem:[%s9078_s25 + $0x1bd8] sm:$0xff]  ;;  %v2438_v19 = vpack.c.bf16 %v1310_v24, %v1306_v4 }
 0x3e3   : > { %5566 = vrot.lane.b32.xlu1 %v5523_v43, %s8863_s19  ;;  %v1312_v43 = vld [vmem:[%s9078_s25 + $0x1bf8] sm:$0xff]  ;;  %v6757_v44 = vrot.slane %v3843_v33, 4 }
 0x3e4   : > { %v2440_v26 = vpack.c.bf16 %v1312_v43, %v1308_v5  ;;  %v1304_v7 = vld [vmem:[%s9078_s25 + $0x1bb8] sm:$0xff]  ;;  %v5613_v43 = vsel %vm5608_vm3, %v10449_v38, %v10569_v6 }
 0x3e5   : > { %v2436_v24 = vpack.c.bf16 %v1304_v7, %v1300_v8  ;;  %v14048_v8 = vld [vmem:[#allocation18_spill] sm:$0xff] }
 0x3e6   : > { %v5670_v7 = vadd.f32 %v5613_v43, %v14048_v8 }
 0x3e7   : > { %5783 = vrot.lane.b32.xlu1 %v5740_v14, %s8863_s19  ;;  %v5954_v14 = vpop.permute.xlu1 %5953 }
 0x3e8   : > { %4264 = vmatpush2.bf16.xpose.msra.mxu0 %v2445_v15  ;;  %v1307_v15 = vld [vmem:[%s9078_s25 + $0x1bd0] sm:$0xff] }
 0x3e9   : > { %4327 = vmatpush2.bf16.xpose.msra.mxu1 %v2447_v16  ;;  %4265 = vmatprep.subr.bf16.mxu0 %v2442_v37  ;;  %v11010_v16 = vpop.permute.xlu0 %7122  ;;  %v1311_v37 = vld [vmem:[%s9078_s25 + $0x1bf0] sm:$0xff] }
 0x3ea   : > { %8248 = vmatprep.subr.msk.bf16.mxu1 %vm2854_vm0, %v2444_v55  ;;  %v1298_v55 = vld [vmem:[%s9078_s25 + $0x1b88] sm:$0xff]  ;;  %v2439_v42 = vpack.c.bf16 %v1311_v37, %v1307_v15 }
 0x3eb   : > { %6400 = vrot.lane.b32.xlu1 %v6357_v1, %s8863_s19  ;;  %v1302_v1 = vld [vmem:[%s9078_s25 + $0x1ba8] sm:$0xff]  ;;  %v11019_v56 = vpop.permute.xlu1 %6570 }
 0x3ec   : > { %v2434_v50 = vpack.c.bf16 %v1302_v1, %v1298_v55  ;;  %v1290_v15 = vld [vmem:[%s9078_s25 + $0x1b48] sm:$0xff]  ;;  %v1296_v1 = vld [vmem:[%s9078_s25 + $0x1b78] sm:$0xff] }
 0x3ed   : > { %v5956_v4 = vpop.permute.xlu0 %5955  ;;  %v1294_v37 = vld [vmem:[%s9078_s25 + $0x1b68] sm:$0xff] }
 0x3ef   : > { %6952 = vrot.lane.b32.xlu1 %v3843_v33, %s8864_s29  ;;  %v5612_v33 = vsel %vm5608_vm3, %v10435_v41, %v10449_v38  ;;  %v11024_v5 = vpop.xlane.xlu1 %7476  ;;  %v1299_v41 = vld [vmem:[%s9078_s25 + $0x1b90] sm:$0xff]  ;;  %v1292_v38 = vld [vmem:[%s9078_s25 + $0x1b58] sm:$0xff] }
 0x3f0   : > { %4266 = vmatpush2.bf16.xpose.msra.mxu0 %v2441_v48  ;;  %14046 = vst [vmem:[#allocation29_spill] sm:$0xff] %v11024_v5  ;;  %v5614_v48 = vsel %vm5608_vm3, %v10569_v6, %v10672_v13  ;;  %v14049_v6 = vld [vmem:[#allocation26_spill] sm:$0xff]  ;;  %v2432_v43 = vpack.c.bf16 %v1296_v1, %v1292_v38 }
 0x3f1   : > { %4329 = vmatpush2.bf16.xpose.msra.mxu1 %v2443_v11  ;;  %4267 = vmatprep.subr.bf16.mxu0 %v2438_v19  ;;  %v6013_v11 = vsel %vm6009_vm4, %v5954_v14, %v5956_v4  ;;  %v1297_v19 = vld [vmem:[%s9078_s25 + $0x1b80] sm:$0xff]  ;;  %v1288_v38 = vld [vmem:[%s9078_s25 + $0x1b38] sm:$0xff] }
 0x3f2   : > { %8249 = vmatprep.subr.msk.bf16.mxu1 %vm2854_vm0, %v2440_v26  ;;  %v1301_v26 = vld [vmem:[%s9078_s25 + $0x1ba0] sm:$0xff] }
 0x3f3   : > { %6800 = vrot.lane.b32.xlu1 %v6757_v44, %s8863_s19  ;;  %v14047_v44 = vld [vmem:[#allocation17_spill] sm:$0xff] }
 0x3f4   : > { %v5669_v63 = vadd.f32 %v5612_v33, %v14047_v44  ;;  %v2435_v33 = vpack.c.bf16 %v1303_v0, %v1299_v41  ;;  %v5672_v44 = vadd.f32 %v10672_v13, %v10313_v28  ;;  %v1289_v28 = vld [vmem:[%s9078_s25 + $0x1b40] sm:$0xff]  ;;  %v1282_v0 = vld [vmem:[%s9078_s25 + $0x1b08] sm:$0xff] }
 0x3f5   : > { %v1293_v13 = vld [vmem:[%s9078_s25 + $0x1b60] sm:$0xff] }
 0x3f6   : > { %v6070_v14 = vadd.f32 %v6013_v11, %v5669_v63  ;;  %v1295_v63 = vld [vmem:[%s9078_s25 + $0x1b70] sm:$0xff] }
 0x3f8   : > { %4268 = vmatpush2.bf16.xpose.msra.mxu0 %v2437_v46  ;;  %v5671_v46 = vadd.f32 %v5614_v48, %v14049_v6 }
 0x3f9   : > { %4331 = vmatpush2.bf16.xpose.msra.mxu1 %v2439_v42  ;;  %4269 = vmatprep.subr.bf16.mxu0 %v2434_v50  ;;  %v2433_v50 = vpack.c.bf16 %v1301_v26, %v1297_v19 }
 0x3fa   : > { %8250 = vmatprep.subr.msk.bf16.mxu1 %vm2854_vm0, %v2436_v24  ;;  %v2430_v24 = vpack.c.bf16 %v1294_v37, %v1290_v15  ;;  %v1286_v15 = vld [vmem:[%s9078_s25 + $0x1b28] sm:$0xff] }
 0x3fb   : > { %v5960_v55 = vpop.permute.xlu0 %5959 }
 0x3fc   : > { %v5958_v42 = vpop.permute.xlu1 %5957  ;;  %v6073_v11 = vadd.f32 %v5960_v55, %v5672_v44  ;;  %v1283_v44 = vld [vmem:[%s9078_s25 + $0x1b10] sm:$0xff] }
 0x3fd   : > { %v6014_v3 = vsel %vm6009_vm4, %v5956_v4, %v5958_v42  ;;  %v6015_v5 = vsel %vm6009_vm4, %v5958_v42, %v5960_v55  ;;  %v7378_v4 = vsel %vm7367_vm5, %v6070_v14, -inf  ;;  %v1284_v55 = vld [vmem:[%s9078_s25 + $0x1b18] sm:$0xff] }
 0x3fe   : > { %v6071_v54 = vadd.f32 %v6014_v3, %v5670_v7  ;;  %v6072_v31 = vadd.f32 %v6015_v5, %v5671_v46  ;;  %v1291_v3 = vld [vmem:[%s9078_s25 + $0x1b50] sm:$0xff]  ;;  %v7383_v8 = vsel %vm7373_vm6, %v6073_v11, -inf  ;;  %v2429_v7 = vpack.c.bf16 %v1293_v13, %v1289_v28  ;;  %v1278_v11 = vld [vmem:[%s9078_s25 + $0x1ae8] sm:$0xff]  ;;  %v1280_v28 = vld [vmem:[%s9078_s25 + $0x1af8] sm:$0xff] }
 0x3ff   : > { %v11049_v48 = vpop.permute.xlu0 %5560  ;;  %v2431_v6 = vpack.c.bf16 %v1295_v63, %v1291_v3  ;;  %v2426_v46 = vpack.c.bf16 %v1286_v15, %v1282_v0  ;;  %v2428_v14 = vpack.c.bf16 %v1288_v38, %v1284_v55 }
 0x400   : > { %v7379_v19 = vsel %vm7367_vm5, %v6071_v54, -inf  ;;  %v11053_v26 = vpop.permute.xlu1 %5562  ;;  %4270 = vmatpush2.bf16.xpose.msra.mxu0 %v2433_v50  ;;  %v7381_v5 = vsel %vm7367_vm5, %v6072_v31, -inf }
 0x401   : > { %v7380_v41 = vmax.f32 %v7378_v4, %v7379_v19  ;;  %4333 = vmatpush2.bf16.xpose.msra.mxu1 %v2435_v33  ;;  %4271 = vmatprep.subr.bf16.mxu0 %v2430_v24  ;;  %v1281_v33 = vld [vmem:[%s9078_s25 + $0x1b00] sm:$0xff]  ;;  %v1274_v4 = vld [vmem:[%s9078_s25 + $0x1ac8] sm:$0xff] }
 0x402   : > { %8251 = vmatprep.subr.msk.bf16.mxu1 %vm2854_vm0, %v2432_v43  ;;  %v1285_v24 = vld [vmem:[%s9078_s25 + $0x1b20] sm:$0xff]  ;;  %v1287_v43 = vld [vmem:[%s9078_s25 + $0x1b30] sm:$0xff]  ;;  %v2422_v0 = vpack.c.bf16 %v1278_v11, %v1274_v4 }
 0x403   : > { %v11063_v37 = vpop.permute.xlu0 %6572  ;;  %v7382_v54 = vmax.f32 %v7380_v41, %v7381_v5  ;;  %v1276_v41 = vld [vmem:[%s9078_s25 + $0x1ad8] sm:$0xff]  ;;  %v2425_v3 = vpack.c.bf16 %v1285_v24, %v1281_v33  ;;  %v2427_v63 = vpack.c.bf16 %v1287_v43, %v1283_v44 }
 0x404   : > { %v11067_v1 = vpop.permute.xlu1 %6576  ;;  %v1272_v33 = vld [vmem:[%s9078_s25 + $0x1ab8] sm:$0xff] }
 0x405   : > { %v7384_v31 = vmax.f32 %v7382_v54, %v7383_v8  ;;  %v2424_v54 = vpack.c.bf16 %v1280_v28, %v1276_v41  ;;  %v1273_v8 = vld [vmem:[%s9078_s25 + $0x1ac0] sm:$0xff] }
 0x407   : > { %v5778_v42 = vpop.permute.xlu0 %5777  ;;  %7385 = vmax.xlane.f32.xlu0 %v7384_v31  ;;  %v1275_v31 = vld [vmem:[%s9078_s25 + $0x1ad0] sm:$0xff] }
 0x408   : > { %v11070_v50 = vpop.permute.xlu1 %6574  ;;  %4272 = vmatpush2.bf16.xpose.msra.mxu0 %v2429_v7  ;;  %v1277_v7 = vld [vmem:[%s9078_s25 + $0x1ae0] sm:$0xff] }
 0x409   : > { %4335 = vmatpush2.bf16.xpose.msra.mxu1 %v2431_v6  ;;  %4273 = vmatprep.subr.bf16.mxu0 %v2426_v46  ;;  %v1279_v6 = vld [vmem:[%s9078_s25 + $0x1af0] sm:$0xff]  ;;  %v1266_v46 = vld [vmem:[%s9078_s25 + $0x1a88] sm:$0xff]  ;;  %v2421_v44 = vpack.c.bf16 %v1277_v7, %v1273_v8 }
 0x40a   : > { %8252 = vmatprep.subr.msk.bf16.mxu1 %vm2854_vm0, %v2428_v14  ;;  %v2423_v43 = vpack.c.bf16 %v1279_v6, %v1275_v31  ;;  %v1386_v8 = vld [vmem:[%s9078_s25 + $0x1e48] sm:$0xff]  ;;  %v1388_v31 = vld [vmem:[%s9078_s25 + $0x1e58] sm:$0xff] }
 0x40b   : > { %v11079_v19 = vpop.permute.xlu0 %6178  ;;  %v1390_v7 = vld [vmem:[%s9078_s25 + $0x1e68] sm:$0xff]  ;;  %v1392_v6 = vld [vmem:[%s9078_s25 + $0x1e78] sm:$0xff] }
 0x40c   : > { %v11083_v13 = vpop.permute.xlu1 %5779 }
 0x40d   : > { %v5831_v5 = vsel %vm5608_vm3, %v5778_v42, %v11083_v13  ;;  %v1268_v42 = vld [vmem:[%s9078_s25 + $0x1a98] sm:$0xff] }
 0x40e   : > { %v5889_v15 = vadd.f32 %v5831_v5, %v10681_v17  ;;  %v1270_v17 = vld [vmem:[%s9078_s25 + $0x1aa8] sm:$0xff]  ;;  %v2420_v11 = vpack.c.bf16 %v1272_v33, %v1268_v42  ;;  %v1265_v5 = vld [vmem:[%s9078_s25 + $0x1a80] sm:$0xff]  ;;  %v2478_v42 = vpack.c.bf16 %v1390_v7, %v1386_v8  ;;  %v2480_v33 = vpack.c.bf16 %v1392_v6, %v1388_v31  ;;  %v1380_v8 = vld [vmem:[%s9078_s25 + $0x1e18] sm:$0xff] }
 0x40f   : > { %v11088_v55 = vpop.permute.xlu0 %7128  ;;  %v2418_v4 = vpack.c.bf16 %v1270_v17, %v1266_v46  ;;  %v1384_v7 = vld [vmem:[%s9078_s25 + $0x1e38] sm:$0xff]  ;;  %v6230_v31 = vsel %vm5608_vm3, %v10485_v32, %v10693_v53 }
 0x410   : > { %5961 = vrot.lane.b32.xlu1 %v5889_v15, %s8864_s29  ;;  %v11091_v38 = vpop.permute.xlu1 %7124  ;;  %4274 = vmatpush2.bf16.xpose.msra.mxu0 %v2425_v3 }
 0x411   : > { %4337 = vmatpush2.bf16.xpose.msra.mxu1 %v2427_v63  ;;  %4275 = vmatprep.subr.bf16.mxu0 %v2422_v0  ;;  %v1269_v63 = vld [vmem:[%s9078_s25 + $0x1aa0] sm:$0xff]  ;;  %v1267_v0 = vld [vmem:[%s9078_s25 + $0x1a90] sm:$0xff] }
 0x412   : > { %8253 = vmatprep.subr.msk.bf16.mxu1 %vm2854_vm0, %v2424_v54  ;;  %v1271_v54 = vld [vmem:[%s9078_s25 + $0x1ab0] sm:$0xff]  ;;  %v2417_v46 = vpack.c.bf16 %v1269_v63, %v1265_v5 }
 0x413   : > { %v11100_v14 = vpop.permute.xlu0 %7126  ;;  %v2419_v17 = vpack.c.bf16 %v1271_v54, %v1267_v0  ;;  %v1391_v63 = vld [vmem:[%s9078_s25 + $0x1e70] sm:$0xff]  ;;  %v1378_v0 = vld [vmem:[%s9078_s25 + $0x1e08] sm:$0xff] }
 0x414   : > { %v11104_v24 = vpop.permute.xlu1 %6180 }
 0x417   : > { %v6395_v41 = vpop.permute.xlu0 %6394 }
 0x418   : > { %v11106_v28 = vpop.permute.xlu1 %6396  ;;  %4276 = vmatpush2.bf16.xpose.msra.mxu0 %v2421_v44 }
 0x419   : > { %v6448_v3 = vsel %vm5608_vm3, %v6395_v41, %v11106_v28  ;;  %4339 = vmatpush2.bf16.xpose.msra.mxu1 %v2423_v43  ;;  %4277 = vmatprep.subr.bf16.mxu0 %v2418_v4  ;;  %v1389_v41 = vld [vmem:[%s9078_s25 + $0x1e60] sm:$0xff] }
 0x41a   : > { %v6506_v15 = vadd.f32 %v6448_v3, %v10722_v23  ;;  %8254 = vmatprep.subr.msk.bf16.mxu1 %vm2854_vm0, %v2420_v11  ;;  %v1385_v11 = vld [vmem:[%s9078_s25 + $0x1e40] sm:$0xff]  ;;  %v1387_v3 = vld [vmem:[%s9078_s25 + $0x1e50] sm:$0xff] }
 0x41b   : > { %v2477_v6 = vpack.c.bf16 %v1389_v41, %v1385_v11  ;;  %v6629_v11 = vsel %vm6009_vm4, %v11019_v56, %v11063_v37  ;;  %v6231_v56 = vsel %vm5608_vm3, %v10693_v53, %v10668_v2  ;;  %v6631_v53 = vsel %vm6009_vm4, %v11070_v50, %v11067_v1 }
 0x41d   : > { %6578 = vrot.lane.b32.xlu0 %v6506_v15, %s8864_s29  ;;  %v1382_v15 = vld [vmem:[%s9078_s25 + $0x1e28] sm:$0xff] }
 0x41f   : > { %v3954_v23 = vpop.f32.mrf.mxu0 }
 0x420   : > { %v4017_v44 = vpop.f32.mrf.mxu1  ;;  %4278 = vmatpush2.bf16.xpose.msra.mxu0 %v2417_v46  ;;  %v2479_v46 = vpack.c.bf16 %v1391_v63, %v1387_v3  ;;  %v1379_v63 = vld [vmem:[%s9078_s25 + $0x1e10] sm:$0xff] }
 0x421   : > { %v11121_v43 = vadd.f32 %v4017_v44, %v3954_v23  ;;  %4341 = vmatpush2.bf16.xpose.msra.mxu1 %v2419_v17  ;;  %v3956_v4 = vpop.f32.mrf.mxu0  ;;  %4373 = vmatprep.subr.bf16.mxu0 %v2478_v42  ;;  %v2474_v17 = vpack.c.bf16 %v1382_v15, %v1378_v0  ;;  %v6229_v42 = vsel %vm5608_vm3, %v10476_v34, %v10485_v32  ;;  %v14050_v44 = vld [vmem:[#allocation21_spill] sm:$0xff]  ;;  %v14051_v32 = vld [vmem:[#allocation20_spill] sm:$0xff] }
 0x422   : > { %v4019_v5 = vpop.f32.mrf.mxu1  ;;  %8258 = vmatprep.subr.msk.bf16.mxu1 %vm2854_vm0, %v2480_v33  ;;  %v6630_v33 = vsel %vm6009_vm4, %v11063_v37, %v11070_v50  ;;  %v2476_v23 = vpack.c.bf16 %v1384_v7, %v1380_v8  ;;  %v7183_v34 = vsel %vm7178_vm7, %v11091_v38, %v11100_v14  ;;  %v6286_v41 = vadd.f32 %v6229_v42, %v14051_v32  ;;  %v1370_v0 = vld [vmem:[%s9078_s25 + $0x1dc8] sm:$0xff]  ;;  %v1371_v32 = vld [vmem:[%s9078_s25 + $0x1dd0] sm:$0xff] }
 0x423   : > { %v11130_v54 = vadd.f32 %v4019_v5, %v3956_v4  ;;  %v6287_v4 = vadd.f32 %v6230_v31, %v14050_v44  ;;  %v1381_v5 = vld [vmem:[%s9078_s25 + $0x1e20] sm:$0xff]  ;;  %v7182_v37 = vsel %vm7178_vm7, %v11010_v16, %v11091_v38  ;;  %v1374_v15 = vld [vmem:[%s9078_s25 + $0x1de8] sm:$0xff]  ;;  %v1372_v31 = vld [vmem:[%s9078_s25 + $0x1dd8] sm:$0xff]  ;;  %v6289_v50 = vadd.f32 %v10668_v2, %v10365_v27 }
 0x424   : > { %v6686_v8 = vadd.f32 %v6629_v11, %v6286_v41  ;;  %v14052_v16 = vld [vmem:[#allocation24_spill] sm:$0xff]  ;;  %v1364_v27 = vld [vmem:[%s9078_s25 + $0x1d98] sm:$0xff] }
 0x425   : > { %v6687_v3 = vadd.f32 %v6630_v33, %v6287_v4  ;;  %v6288_v38 = vadd.f32 %v6231_v56, %v14052_v16  ;;  %v7184_v33 = vsel %vm7178_vm7, %v11100_v14, %v11088_v55  ;;  %v1369_v11 = vld [vmem:[%s9078_s25 + $0x1dc0] sm:$0xff]  ;;  %v1368_v2 = vld [vmem:[%s9078_s25 + $0x1db8] sm:$0xff]  ;;  %v6947_v16 = vpop.permute.xlu0 %6946 }
 0x427   : > { %4280 = vmatmul.mubr.bf16.vlgmr.msra.gmra.mxu0 %v10793_v22  ;;  %v1377_v22 = vld [vmem:[%s9078_s25 + $0x1e00] sm:$0xff]  ;;  %v7240_v7 = vadd.f32 %v7183_v34, %v6687_v3  ;;  %v1362_v3 = vld [vmem:[%s9078_s25 + $0x1d88] sm:$0xff] }
 0x428   : > { %4343 = vmatmul.mubr.bf16.vlgmr.msra.gmra.mxu1 %v10799_v40  ;;  %4374 = vmatpush1.bf16.xpose.msra.mxu0 %v2477_v6  ;;  %v1383_v40 = vld [vmem:[%s9078_s25 + $0x1e30] sm:$0xff]  ;;  %v1376_v6 = vld [vmem:[%s9078_s25 + $0x1df8] sm:$0xff]  ;;  %v1373_v34 = vld [vmem:[%s9078_s25 + $0x1de0] sm:$0xff] }
 0x429   : > { %4437 = vmatpush1.bf16.xpose.msra.mxu1 %v2479_v46  ;;  %4375 = vmatprep.subr.bf16.mxu0 %v2474_v17  ;;  %v2473_v46 = vpack.c.bf16 %v1381_v5, %v1377_v22  ;;  %v7239_v17 = vadd.f32 %v7182_v37, %v6686_v8  ;;  %v2475_v42 = vpack.c.bf16 %v1383_v40, %v1379_v63  ;;  %v7479_v44 = vsel %vm7367_vm5, %v7240_v7, -inf  ;;  %v1366_v22 = vld [vmem:[%s9078_s25 + $0x1da8] sm:$0xff]  ;;  %v1367_v7 = vld [vmem:[%s9078_s25 + $0x1db0] sm:$0xff] }
 0x42a   : > { %8259 = vmatprep.subr.msk.bf16.mxu1 %vm2854_vm0, %v2476_v23  ;;  %4289 = vmatprep.mubr.bf16.mxu0 %v10822_v59  ;;  %v2470_v59 = vpack.c.bf16 %v1374_v15, %v1370_v0  ;;  %v2472_v23 = vpack.c.bf16 %v1376_v6, %v1372_v31  ;;  %v2469_v5 = vpack.c.bf16 %v1373_v34, %v1369_v11  ;;  %v1365_v0 = vld [vmem:[%s9078_s25 + $0x1da0] sm:$0xff]  ;;  %v1363_v15 = vld [vmem:[%s9078_s25 + $0x1d90] sm:$0xff]  ;;  %v1354_v31 = vld [vmem:[%s9078_s25 + $0x1d48] sm:$0xff] }
 0x42b   : > { %8256 = vmatprep.mubr.msk.bf16.mxu1 %vm2854_vm0, %v10828_v45  ;;  %v6688_v45 = vadd.f32 %v6631_v53, %v6288_v38  ;;  %v7478_v4 = vsel %vm7367_vm5, %v7239_v17, -inf  ;;  %v2466_v40 = vpack.c.bf16 %v1366_v22, %v1362_v3  ;;  %v1358_v6 = vld [vmem:[%s9078_s25 + $0x1d68] sm:$0xff]  ;;  %v1360_v53 = vld [vmem:[%s9078_s25 + $0x1d78] sm:$0xff]  ;;  %v2467_v17 = vpack.c.bf16 %v1367_v7, %v1363_v15 }
 0x42c   : > { %v7480_v41 = vmax.f32 %v7478_v4, %v7479_v44  ;;  %v1355_v44 = vld [vmem:[%s9078_s25 + $0x1d50] sm:$0xff]  ;;  %v1350_v11 = vld [vmem:[%s9078_s25 + $0x1d28] sm:$0xff]  ;;  %v1348_v34 = vld [vmem:[%s9078_s25 + $0x1d18] sm:$0xff] }
 0x42d   : > { %v7241_v14 = vadd.f32 %v7184_v33, %v6688_v45  ;;  %v11224_v33 = vpop.permute.xlu1 %6948  ;;  %v1357_v45 = vld [vmem:[%s9078_s25 + $0x1d60] sm:$0xff]  ;;  %v1359_v4 = vld [vmem:[%s9078_s25 + $0x1d70] sm:$0xff] }
 0x42f   : > { %4290 = vmatmul.mubr.bf16.gmra.mxu0 %v10840_v57  ;;  %v1375_v57 = vld [vmem:[%s9078_s25 + $0x1df0] sm:$0xff]  ;;  %v7481_v56 = vsel %vm7367_vm5, %v7241_v14, -inf  ;;  %v1346_v14 = vld [vmem:[%s9078_s25 + $0x1d08] sm:$0xff] }
 0x430   : > { %4376 = vmatpush1.bf16.xpose.msra.mxu0 %v2473_v46  ;;  %4353 = vmatmul.mubr.bf16.gmra.mxu1 %v10846_v60  ;;  %v6689_v60 = vadd.f32 %v11067_v1, %v6289_v50  ;;  %v2471_v37 = vpack.c.bf16 %v1375_v57, %v1371_v32  ;;  %v2468_v1 = vpack.c.bf16 %v1368_v2, %v1364_v27  ;;  %v11220_v46 = vld [vmem:[%s13936_s1 + $0xc] ss:$16 sps:$4 sm:$0xff]   ;;  %v6795_v50 = vpop.permute.xlu0 %6794  ;;  %v3958_v2 = vpop.f32.mrf.mxu0 }
 0x431   : > { %4439 = vmatpush1.bf16.xpose.msra.mxu1 %v2475_v42  ;;  %4377 = vmatprep.subr.bf16.mxu0 %v2470_v59  ;;  %v2462_v42 = vpack.c.bf16 %v1358_v6, %v1354_v31  ;;  %v1352_v32 = vld [vmem:[%s9078_s25 + $0x1d38] sm:$0xff]  ;;  %v2463_v57 = vpack.c.bf16 %v1359_v4, %v1355_v44  ;;  %v2458_v3 = vpack.c.bf16 %v1350_v11, %v1346_v14  ;;  %v11235_v22 = vpop.permute.xlu1 %6796  ;;  %v1341_v44 = vld [vmem:[%s9078_s25 + $0x1ce0] sm:$0xff]  ;;  %v1330_v14 = vld [vmem:[%s9078_s25 + $0x1c88] sm:$0xff] }
 0x432   : > { %8260 = vmatprep.subr.msk.bf16.mxu1 %vm2854_vm0, %v2472_v23  ;;  %4299 = vmatprep.mubr.bf16.mxu0 %v10865_v36  ;;  %v7242_v63 = vadd.f32 %v11088_v55, %v6689_v60  ;;  %v7482_v36 = vmax.f32 %v7480_v41, %v7481_v56  ;;  %v1361_v55 = vld [vmem:[%s9078_s25 + $0x1d80] sm:$0xff]  ;;  %v2460_v60 = vpack.c.bf16 %v1352_v32, %v1348_v34  ;;  %v1334_v11 = vld [vmem:[%s9078_s25 + $0x1ca8] sm:$0xff]  ;;  %v1332_v32 = vld [vmem:[%s9078_s25 + $0x1c98] sm:$0xff] }
 0x433   : > { %8257 = vmatprep.mubr.msk.bf16.mxu1 %vm2854_vm0, %v10871_v9  ;;  %v2465_v38 = vpack.c.bf16 %v1365_v0, %v1361_v55  ;;  %v1353_v23 = vld [vmem:[%s9078_s25 + $0x1d40] sm:$0xff]  ;;  %v1340_v55 = vld [vmem:[%s9078_s25 + $0x1cd8] sm:$0xff] }
 0x434   : > { %v7483_v9 = vsel %vm7473_vm8, %v7242_v63, -inf  ;;  %v2461_v41 = vpack.c.bf16 %v1357_v45, %v1353_v23  ;;  %v11237_v27 = vpop.permute.xlu0 %5564  ;;  %v4021_v63 = vpop.f32.mrf.mxu1  ;;  %v1345_v56 = vld [vmem:[%s9078_s25 + $0x1d00] sm:$0xff]  ;;  %v1344_v0 = vld [vmem:[%s9078_s25 + $0x1cf8] sm:$0xff] }
 0x435   : > { %v7484_v8 = vmax.f32 %v7482_v36, %v7483_v9  ;;  %v1351_v36 = vld [vmem:[%s9078_s25 + $0x1d30] sm:$0xff]  ;;  %v1342_v9 = vld [vmem:[%s9078_s25 + $0x1ce8] sm:$0xff]  ;;  %v1337_v45 = vld [vmem:[%s9078_s25 + $0x1cc0] sm:$0xff] }
 0x436   : > { %v11253_v31 = vpop.f32.mrf.mxu1 }
 0x437   : > { %4300 = vmatmul.mubr.bf16.gmra.mxu0 %v10882_v12  ;;  %v11212_v12 = vld [vmem:[%s13936_s1 + $0x4] ss:$16 sps:$4 sm:$0xff]  }
 0x438   : > { %4378 = vmatpush1.bf16.xpose.msra.mxu0 %v2469_v5  ;;  %4363 = vmatmul.mubr.bf16.gmra.mxu1 %v10888_v20  ;;  %v1356_v20 = vld [vmem:[%s9078_s25 + $0x1d58] sm:$0xff]  ;;  %v6848_v5 = vsel %vm5608_vm3, %v6795_v50, %v11235_v22  ;;  %v1339_v50 = vld [vmem:[%s9078_s25 + $0x1cd0] sm:$0xff] }
 0x439   : > { %4441 = vmatpush1.bf16.xpose.msra.mxu1 %v2471_v37  ;;  %4379 = vmatprep.subr.bf16.mxu0 %v2466_v40  ;;  %v2464_v59 = vpack.c.bf16 %v1360_v53, %v1356_v20  ;;  %v1349_v37 = vld [vmem:[%s9078_s25 + $0x1d20] sm:$0xff]  ;;  %v1347_v40 = vld [vmem:[%s9078_s25 + $0x1d10] sm:$0xff]  ;;  %v6906_v15 = vadd.f32 %v6848_v5, %v10758_v18  ;;  %v11255_v53 = vpop.permute.xlu0 %5781  ;;  %v7000_v18 = vsel %vm6009_vm4, %v6947_v16, %v11224_v33 }
 0x43a   : > { %8261 = vmatprep.subr.msk.bf16.mxu1 %vm2854_vm0, %v2468_v1  ;;  %4405 = vmatprep.mubr.bf16.mxu0 %v11212_v12  ;;  %v1338_v1 = vld [vmem:[%s9078_s25 + $0x1cc8] sm:$0xff]  ;;  %v2457_v7 = vpack.c.bf16 %v1349_v37, %v1345_v56  ;;  %v2459_v6 = vpack.c.bf16 %v1351_v36, %v1347_v40  ;;  %v5832_v23 = vsel %vm5608_vm3, %v11083_v13, %v11255_v53  ;;  %v1343_v16 = vld [vmem:[%s9078_s25 + $0x1cf0] sm:$0xff] }
 0x43b   : > { %8267 = vmatprep.mubr.msk.bf16.mxu1 %vm2854_vm0, %v11220_v46  ;;  %v2454_v20 = vpack.c.bf16 %v1342_v9, %v1338_v1  ;;  %v11280_v13 = vadd.f32 %v4021_v63, %v3958_v2  ;;  %v2450_v5 = vpack.c.bf16 %v1334_v11, %v1330_v14  ;;  %v1333_v63 = vld [vmem:[%s9078_s25 + $0x1ca0] sm:$0xff]  ;;  %v1331_v9 = vld [vmem:[%s9078_s25 + $0x1c90] sm:$0xff] }
 0x43c   : > { %7485 = vmax.xlane.f32.xlu0 %v7484_v8  ;;  %v11251_v8 = vpop.f32.mrf.mxu0  ;;  %v1395_v11 = vld [vmem:[%s9078_s25 + $0x1e90] sm:$0xff] }
 0x43d   : > { %v5524_v36 = vrot.slane %v11280_v13, 4  ;;  %v11289_v2 = vpop.permute.xlu0 %6182 }
 0x440   : > { %4380 = vmatpush1.bf16.xpose.msra.mxu0 %v2465_v38  ;;  %v11257_v38 = vpop.f32.mrf.mxu0 }
 0x441   : > { %4443 = vmatpush1.bf16.xpose.msra.mxu1 %v2467_v17  ;;  %4381 = vmatprep.subr.bf16.mxu0 %v2462_v42  ;;  %v2456_v17 = vpack.c.bf16 %v1344_v0, %v1340_v55  ;;  %v11261_v42 = vpop.f32.mrf.mxu1  ;;  %v1335_v55 = vld [vmem:[%s9078_s25 + $0x1cb0] sm:$0xff]  ;;  %v1394_v0 = vld [vmem:[%s9078_s25 + $0x1e88] sm:$0xff] }
 0x442   : > { %8262 = vmatprep.subr.msk.bf16.mxu1 %vm2854_vm0, %v2464_v59  ;;  %v7058_v59 = vadd.f32 %v7000_v18, %v6906_v15  ;;  %v11270_v4 = vpop.f32.mrf.mxu0  ;;  %v2482_v18 = vpack.c.bf16 %v1394_v0, %v1394_v0 }
 0x443   : > { %v11276_v34 = vpop.f32.mrf.mxu1 }
 0x444   : > { %v11284_v56 = vpop.f32.mrf.mxu0 }
 0x445   : > { %v11286_v40 = vpop.f32.mrf.mxu1 }
 0x446   : > { %v11293_v1 = vpop.f32.mrf.mxu0 }
 0x447   : > { %v11300_v15 = vpop.f32.mrf.mxu1 }
 0x448   : > { %4382 = vmatpush1.bf16.xpose.msra.mxu0 %v2461_v41  ;;  %v1336_v41 = vld [vmem:[%s9078_s25 + $0x1cb8] sm:$0xff] }
 0x449   : > { %4445 = vmatpush1.bf16.xpose.msra.mxu1 %v2463_v57  ;;  %4383 = vmatprep.subr.bf16.mxu0 %v2458_v3  ;;  %v5890_v57 = vadd.f32 %v5832_v23, %v10686_v25  ;;  %v2453_v3 = vpack.c.bf16 %v1341_v44, %v1337_v45  ;;  %v2452_v37 = vpack.c.bf16 %v1336_v41, %v1332_v32  ;;  %v1329_v25 = vld [vmem:[%s9078_s25 + $0x1c80] sm:$0xff]  ;;  %v11307_v23 = vpop.f32.mrf.mxu0  ;;  %v11309_v44 = vpop.f32.mrf.mxu1  ;;  %v1454_v32 = vld [vmem:[%s9078_s25 + $0x2068] sm:$0xff] }
 0x44a   : > { %8263 = vmatprep.subr.msk.bf16.mxu1 %vm2854_vm0, %v2460_v60  ;;  %v2455_v60 = vpack.c.bf16 %v1343_v16, %v1339_v50  ;;  %v1393_v16 = vld [vmem:[%s9078_s25 + $0x1e80] sm:$0xff]  ;;  %v1458_v41 = vld [vmem:[%s9078_s25 + $0x2088] sm:$0xff] }
 0x44b   : > { %v11314_v14 = vpop.f32.mrf.mxu0 }
 0x44d   : > { %v11327_v0 = vpop.f32.mrf.mxu0 }
 0x450   : > { %4384 = vmatpush1.bf16.xpose.msra.mxu0 %v2457_v7 }
 0x451   : > { %4447 = vmatpush1.bf16.xpose.msra.mxu1 %v2459_v6  ;;  %4385 = vmatprep.subr.bf16.mxu0 %v2454_v20  ;;  %v1396_v6 = vld [vmem:[%s9078_s25 + $0x1e98] sm:$0xff]  ;;  %v2449_v20 = vpack.c.bf16 %v1333_v63, %v1329_v25 }
 0x452   : > { %7130 = vrot.lane.b32.xlu0 %v7058_v59, %s8865_s21  ;;  %8264 = vmatprep.subr.msk.bf16.mxu1 %vm2854_vm0, %v2456_v17  ;;  %v2451_v17 = vpack.c.bf16 %v1335_v55, %v1331_v9  ;;  %v11305_v59 = vpop.permute.xlu0 %6184  ;;  %v2484_v45 = vpack.c.bf16 %v1396_v6, %v1396_v6  ;;  %v1460_v25 = vld [vmem:[%s9078_s25 + $0x2098] sm:$0xff]  ;;  %v2483_v9 = vpack.c.bf16 %v1395_v11, %v1395_v11  ;;  %v1457_v11 = vld [vmem:[%s9078_s25 + $0x2080] sm:$0xff] }
 0x453   : > { %v2514_v55 = vpack.c.bf16 %v1458_v41, %v1454_v32  ;;  %v1455_v32 = vld [vmem:[%s9078_s25 + $0x2070] sm:$0xff] }
 0x454   : > { %v1459_v41 = vld [vmem:[%s9078_s25 + $0x2090] sm:$0xff] }
 0x456   : > { %5963 = vrot.lane.b32.xlu0 %v5890_v57, %s8864_s29  ;;  %v11320_v57 = vpop.f32.mrf.mxu1 }
 0x458   : > { %4386 = vmatpush1.bf16.xpose.msra.mxu0 %v2453_v3  ;;  %v11330_v6 = vpop.f32.mrf.mxu1 }
 0x459   : > { %4449 = vmatpush1.bf16.xpose.msra.mxu1 %v2455_v60  ;;  %4387 = vmatprep.subr.bf16.mxu0 %v2450_v5  ;;  %v6399_v60 = vpop.permute.xlu0 %6398 }
 0x45a   : > { %5568 = vrot.lane.b32.xlu0 %v5524_v36, %s8863_s19  ;;  %8265 = vmatprep.subr.msk.bf16.mxu1 %vm2854_vm0, %v2452_v37  ;;  %v2481_v37 = vpack.c.bf16 %v1393_v16, %v1393_v16  ;;  %v1456_v36 = vld [vmem:[%s9078_s25 + $0x2078] sm:$0xff]  ;;  %v1453_v16 = vld [vmem:[%s9078_s25 + $0x2060] sm:$0xff] }
 0x45b   : > { %v11302_v7 = vpop.xlane.xlu1 %7294 }
 0x45c   : > { %14053 = vst [vmem:[#allocation17_spill] sm:$0xff] %v11302_v7 }
 0x45f   : > { %v11311_v50 = vpop.permute.xlu1 %5566 }
 0x460   : > { %4388 = vmatpush1.bf16.xpose.msra.mxu0 %v2449_v20 }
 0x461   : > { %4451 = vmatpush1.bf16.xpose.msra.mxu1 %v2451_v17  ;;  %4403 = vmatprep.subr.bf16.mxu0 %v2482_v18  ;;  %v11334_v17 = vadd.f32 %v11253_v31, %v11251_v8  ;;  %v11346_v8 = vpop.permute.xlu0 %6950  ;;  %v11348_v31 = vpop.f32.mrf.mxu0 }
 0x462   : > { %8266 = vmatprep.subr.msk.bf16.mxu1 %vm2854_vm0, %v2484_v45 }
 0x463   : > { %v5784_v3 = vpop.permute.xlu1 %5783 }
 0x464   : > { %v5892_v5 = vadd.f32 %v5784_v3, %v10970_v52  ;;  %v5833_v63 = vsel %vm5608_vm3, %v11255_v53, %v5784_v3  ;;  %v2516_v52 = vpack.c.bf16 %v1460_v25, %v1456_v36  ;;  %v11338_v53 = vadd.f32 %v11261_v42, %v11257_v38  ;;  %v1450_v38 = vld [vmem:[%s9078_s25 + $0x2048] sm:$0xff]  ;;  %v1448_v36 = vld [vmem:[%s9078_s25 + $0x2038] sm:$0xff] }
 0x465   : > { %v5891_v18 = vadd.f32 %v5833_v63, %v10813_v21  ;;  %v1446_v21 = vld [vmem:[%s9078_s25 + $0x2028] sm:$0xff]  ;;  %v5525_v3 = vrot.slane %v11334_v17, 4  ;;  %v1452_v25 = vld [vmem:[%s9078_s25 + $0x2058] sm:$0xff]  ;;  %v6449_v63 = vsel %vm5608_vm3, %v11106_v28, %v6399_v60 }
 0x466   : > { %5967 = vrot.lane.b32.xlu1 %v5892_v5, %s8864_s29  ;;  %14054 = vst [vmem:[#allocation18_spill] sm:$0xff] %v11338_v53  ;;  %v5741_v5 = vrot.slane %v11338_v53, 4  ;;  %v2510_v7 = vpack.c.bf16 %v1450_v38, %v1446_v21  ;;  %v11381_v28 = vld [vmem:[%s13936_s1] ss:$16 sps:$4 sm:$0xff]  }
 0x467   : > { %v6401_v20 = vpop.permute.xlu1 %6400  ;;  %v1449_v21 = vld [vmem:[%s9078_s25 + $0x2040] sm:$0xff] }
 0x468   : > { %v6509_v45 = vadd.f32 %v6401_v20, %v10877_v39  ;;  %4404 = vmatpush2.bf16.xpose.msra.mxu0 %v2481_v37  ;;  %v11354_v39 = vpop.f32.mrf.mxu1  ;;  %v2513_v37 = vpack.c.bf16 %v1457_v11, %v1453_v16  ;;  %v6799_v11 = vpop.permute.xlu0 %6798 }
 0x469   : > { %4467 = vmatpush2.bf16.xpose.msra.mxu1 %v2483_v9  ;;  %4574 = vmatprep.subr.bf16.mxu0 %v2514_v55  ;;  %v6450_v9 = vsel %vm5608_vm3, %v6399_v60, %v6401_v20  ;;  %v11366_v55 = vpop.f32.mrf.mxu0  ;;  %v2512_v60 = vpack.c.bf16 %v1452_v25, %v1448_v36  ;;  %v6507_v20 = vadd.f32 %v6449_v63, %v10750_v49  ;;  %v11414_v36 = vld [vmem:[%s13936_s1 + $0x24] ss:$16 sps:$4 sm:$0xff]  }
 0x46a   : > { %5965 = vrot.lane.b32.xlu1 %v5891_v18, %s8864_s29  ;;  %6584 = vrot.lane.b32.xlu0 %v6509_v45, %s8864_s29  ;;  %v11368_v18 = vpop.f32.mrf.mxu1  ;;  %v2515_v45 = vpack.c.bf16 %v1459_v41, %v1455_v32  ;;  %v11387_v32 = vadd.f32 %v11300_v15, %v11293_v1  ;;  %v1445_v41 = vld [vmem:[%s9078_s25 + $0x2020] sm:$0xff]  ;;  %v1451_v15 = vld [vmem:[%s9078_s25 + $0x2050] sm:$0xff]  ;;  %v11420_v25 = vadd.f32 %v11286_v40, %v11284_v56 }
 0x46b   : > { %v11356_v42 = vpop.permute.xlu1 %6952  ;;  %8270 = vmatprep.subr.msk.bf16.mxu1 %vm2854_vm0, %v2516_v52  ;;  %v11374_v52 = vadd.f32 %v11276_v34, %v11270_v4  ;;  %v6508_v4 = vadd.f32 %v6450_v9, %v10851_v35  ;;  %v11393_v34 = vld [vmem:[%s13936_s1 + $0x8] ss:$16 sps:$4 sm:$0xff]   ;;  %v11398_v49 = vpop.f32.mrf.mxu0 }
 0x46c   : > { %14056 = vst [vmem:[#allocation21_spill] sm:$0xff] %v11387_v32  ;;  %v11400_v38 = vpop.f32.mrf.mxu1  ;;  %v1447_v35 = vld [vmem:[%s9078_s25 + $0x2030] sm:$0xff]  ;;  %v6143_v63 = vrot.slane %v11387_v32, 4  ;;  %v7002_v56 = vsel %vm6009_vm4, %v11346_v8, %v11356_v42 }
 0x46d   : > { %14055 = vst [vmem:[#allocation26_spill] sm:$0xff] %v11374_v52  ;;  %v11438_v40 = vpop.f32.mrf.mxu0 }
 0x46e   : > { %5570 = vrot.lane.b32.xlu1 %v5525_v3, %s8863_s19  ;;  %5785 = vrot.lane.b32.xlu0 %v5741_v5, %s8863_s19  ;;  %v1438_v3 = vld [vmem:[%s9078_s25 + $0x1fe8] sm:$0xff] }
 0x46f   : > { %v11376_v16 = vpop.permute.xlu1 %6800  ;;  %4406 = vmatmul.mubr.bf16.vlgmr.msra.gmra.mxu0 %v11381_v28  ;;  %v1442_v5 = vld [vmem:[%s9078_s25 + $0x2008] sm:$0xff] }
 0x470   : > { %4469 = vmatmul.mubr.bf16.vlgmr.msra.gmra.mxu1 %v11393_v34  ;;  %4575 = vmatpush1.bf16.xpose.msra.mxu0 %v2513_v37  ;;  %v6850_v1 = vsel %vm5608_vm3, %v6799_v11, %v11376_v16  ;;  %v2509_v37 = vpack.c.bf16 %v1449_v21, %v1445_v41  ;;  %v2511_v41 = vpack.c.bf16 %v1451_v15, %v1447_v35  ;;  %v6142_v35 = vrot.slane %v11420_v25, 4 }
 0x471   : > { %4638 = vmatpush1.bf16.xpose.msra.mxu1 %v2515_v45  ;;  %4576 = vmatprep.subr.bf16.mxu0 %v2510_v7  ;;  %v5742_v7 = vrot.slane %v11374_v52, 4  ;;  %v6908_v9 = vadd.f32 %v6850_v1, %v10893_v29  ;;  %v1440_v45 = vld [vmem:[%s9078_s25 + $0x1ff8] sm:$0xff]  ;;  %v11440_v29 = vpop.f32.mrf.mxu1  ;;  %v2506_v21 = vpack.c.bf16 %v1442_v5, %v1438_v3  ;;  %v11454_v15 = vadd.f32 %v11309_v44, %v11307_v23  ;;  %v1437_v5 = vld [vmem:[%s9078_s25 + $0x1fe0] sm:$0xff]  ;;  %v1439_v23 = vld [vmem:[%s9078_s25 + $0x1ff0] sm:$0xff] }
 0x472   : > { %6580 = vrot.lane.b32.xlu1 %v6507_v20, %s8864_s29  ;;  %6582 = vrot.lane.b32.xlu0 %v6508_v4, %s8864_s29  ;;  %v11429_v20 = vld [vmem:[%s13936_s1 + $0x2c] ss:$16 sps:$4 sm:$0xff]   ;;  %v6849_v4 = vsel %vm5608_vm3, %v11235_v22, %v6799_v11  ;;  %v11447_v22 = vld [vmem:[%s13936_s1 + $0x20] ss:$16 sps:$4 sm:$0xff]  }
 0x473   : > { %8271 = vmatprep.subr.msk.bf16.mxu1 %vm2854_vm0, %v2512_v60  ;;  %4415 = vmatprep.mubr.bf16.mxu0 %v11414_v36  ;;  %v1444_v60 = vld [vmem:[%s9078_s25 + $0x2018] sm:$0xff]  ;;  %v6907_v11 = vadd.f32 %v6849_v4, %v10765_v51  ;;  %v7060_v3 = vadd.f32 %v7002_v56, %v6908_v9  ;;  %v11465_v51 = vpop.f32.mrf.mxu1  ;;  %v1443_v44 = vld [vmem:[%s9078_s25 + $0x2010] sm:$0xff]  ;;  %v1434_v9 = vld [vmem:[%s9078_s25 + $0x1fc8] sm:$0xff] }
 0x474   : > { %8268 = vmatprep.mubr.msk.bf16.mxu1 %vm2854_vm0, %v11429_v20  ;;  %v2508_v1 = vpack.c.bf16 %v1444_v60, %v1440_v45  ;;  %v1441_v45 = vld [vmem:[%s9078_s25 + $0x2000] sm:$0xff]  ;;  %v7001_v60 = vsel %vm6009_vm4, %v11224_v33, %v11346_v8  ;;  %v1432_v52 = vld [vmem:[%s9078_s25 + $0x1fb8] sm:$0xff] }
 0x475   : > { %v4153_v56 = vpop.f32.mrf.mxu1  ;;  %v2505_v53 = vpack.c.bf16 %v1441_v45, %v1437_v5  ;;  %v1436_v33 = vld [vmem:[%s9078_s25 + $0x1fd8] sm:$0xff]  ;;  %v11510_v45 = vadd.f32 %v11320_v57, %v11314_v14  ;;  %v1431_v14 = vld [vmem:[%s9078_s25 + $0x1fb0] sm:$0xff] }
 0x476   : > { %5787 = vrot.lane.b32.xlu1 %v5742_v7, %s8863_s19  ;;  %6188 = vrot.lane.b32.xlu0 %v6143_v63, %s8863_s19  ;;  %v11460_v7 = vld [vmem:[%s13936_s1 + $0x28] ss:$16 sps:$4 sm:$0xff]   ;;  %v11463_v63 = vpop.f32.mrf.mxu0  ;;  %v11492_v8 = vld [vmem:[%s13936_s1 + $0x4c] ss:$16 sps:$4 sm:$0xff]  }
 0x477   : > { %4416 = vmatmul.mubr.bf16.gmra.mxu0 %v11447_v22  ;;  %v11505_v5 = vld [vmem:[%s13936_s1 + $0x40] ss:$16 sps:$4 sm:$0xff]  }
 0x478   : > { %4577 = vmatpush1.bf16.xpose.msra.mxu0 %v2509_v37  ;;  %4479 = vmatmul.mubr.bf16.gmra.mxu1 %v11460_v7  ;;  %v1430_v37 = vld [vmem:[%s9078_s25 + $0x1fa8] sm:$0xff]  ;;  %v4090_v4 = vpop.f32.mrf.mxu0  ;;  %v1435_v57 = vld [vmem:[%s9078_s25 + $0x1fd0] sm:$0xff] }
 0x479   : > { %4640 = vmatpush1.bf16.xpose.msra.mxu1 %v2511_v41  ;;  %4578 = vmatprep.subr.bf16.mxu0 %v2506_v21  ;;  %v11481_v41 = vld [vmem:[%s13936_s1 + $0x44] ss:$16 sps:$4 sm:$0xff]   ;;  %v7059_v21 = vadd.f32 %v7001_v60, %v6907_v11  ;;  %v2502_v32 = vpack.c.bf16 %v1434_v9, %v1430_v37  ;;  %v11500_v11 = vpop.f32.mrf.mxu1  ;;  %v11519_v37 = vld [vmem:[%s13936_s1 + $0x48] ss:$16 sps:$4 sm:$0xff]  }
 0x47a   : > { %6186 = vrot.lane.b32.xlu1 %v6142_v35, %s8863_s19  ;;  %7134 = vrot.lane.b32.xlu0 %v7060_v3, %s8865_s21  ;;  %v6358_v35 = vrot.slane %v11454_v15, 4  ;;  %v6909_v3 = vadd.f32 %v11376_v16, %v10987_v58  ;;  %v2504_v58 = vpack.c.bf16 %v1436_v33, %v1432_v52  ;;  %v11498_v16 = vpop.f32.mrf.mxu0  ;;  %v4042_v52 = vadd.f32 %v11330_v6, %v11327_v0  ;;  %v1433_v9 = vld [vmem:[%s9078_s25 + $0x1fc0] sm:$0xff]  ;;  %v1422_v0 = vld [vmem:[%s9078_s25 + $0x1f68] sm:$0xff] }
 0x47b   : > { %8272 = vmatprep.subr.msk.bf16.mxu1 %vm2854_vm0, %v2508_v1  ;;  %4425 = vmatprep.mubr.bf16.mxu0 %v11481_v41  ;;  %v2507_v1 = vpack.c.bf16 %v1443_v44, %v1439_v23  ;;  %v1429_v44 = vld [vmem:[%s9078_s25 + $0x1fa0] sm:$0xff]  ;;  %v1426_v6 = vld [vmem:[%s9078_s25 + $0x1f88] sm:$0xff]  ;;  %v1428_v33 = vld [vmem:[%s9078_s25 + $0x1f98] sm:$0xff] }
 0x47c   : > { %8269 = vmatprep.mubr.msk.bf16.mxu1 %vm2854_vm0, %v11492_v8  ;;  %v7061_v23 = vadd.f32 %v11356_v42, %v6909_v3  ;;  %v11532_v42 = vpop.f32.mrf.mxu1  ;;  %v6758_v60 = vrot.slane %v4042_v52, 4  ;;  %v1424_v3 = vld [vmem:[%s9078_s25 + $0x1f78] sm:$0xff] }
 0x47e   : > { %7132 = vrot.lane.b32.xlu1 %v7059_v21, %s8865_s21  ;;  %6402 = vrot.lane.b32.xlu0 %v6358_v35, %s8863_s19  ;;  %v11538_v21 = vadd.f32 %v11440_v29, %v11438_v40  ;;  %v2501_v35 = vpack.c.bf16 %v1433_v9, %v1429_v44  ;;  %v4159_v29 = vpop.f32.mrf.mxu1  ;;  %v1421_v44 = vld [vmem:[%s9078_s25 + $0x1f60] sm:$0xff] }
 0x47f   : > { %4426 = vmatmul.mubr.bf16.gmra.mxu0 %v11505_v5  ;;  %v1425_v9 = vld [vmem:[%s9078_s25 + $0x1f80] sm:$0xff] }
 0x480   : > { %4579 = vmatpush1.bf16.xpose.msra.mxu0 %v2505_v53  ;;  %4489 = vmatmul.mubr.bf16.gmra.mxu1 %v11519_v37  ;;  %v11530_v53 = vpop.f32.mrf.mxu0 }
 0x481   : > { %4642 = vmatpush1.bf16.xpose.msra.mxu1 %v2507_v1  ;;  %4580 = vmatprep.subr.bf16.mxu0 %v2502_v32  ;;  %v6359_v32 = vrot.slane %v11510_v45, 4  ;;  %v2503_v1 = vpack.c.bf16 %v1435_v57, %v1431_v14  ;;  %v1423_v14 = vld [vmem:[%s9078_s25 + $0x1f70] sm:$0xff] }
 0x482   : > { %7136 = vrot.lane.b32.xlu1 %v7061_v23, %s8865_s21  ;;  %6954 = vrot.lane.b32.xlu0 %v4042_v52, %s8864_s29  ;;  %v4096_v40 = vpop.f32.mrf.mxu0  ;;  %v2500_v52 = vpack.c.bf16 %v1428_v33, %v1424_v3  ;;  %v4044_v23 = vadd.f32 %v11354_v39, %v11348_v31  ;;  %v1414_v31 = vld [vmem:[%s9078_s25 + $0x1f28] sm:$0xff]  ;;  %v2497_v3 = vpack.c.bf16 %v1425_v9, %v1421_v44  ;;  %v1417_v44 = vld [vmem:[%s9078_s25 + $0x1f40] sm:$0xff] }
 0x483   : > { %8273 = vmatprep.subr.msk.bf16.mxu1 %vm2854_vm0, %v2504_v58  ;;  %4606 = vmatprep.mubr.bf16.mxu0 %v11212_v12  ;;  %v2498_v58 = vpack.c.bf16 %v1426_v6, %v1422_v0  ;;  %v11546_v12 = vadd.f32 %v4153_v56, %v4090_v4  ;;  %v1427_v4 = vld [vmem:[%s9078_s25 + $0x1f90] sm:$0xff]  ;;  %v11558_v57 = vadd.f32 %v4159_v29, %v4096_v40  ;;  %v1418_v39 = vld [vmem:[%s9078_s25 + $0x1f48] sm:$0xff]  ;;  %v4163_v6 = vpop.f32.mrf.mxu1 }
 0x484   : > { %8286 = vmatprep.mubr.msk.bf16.mxu1 %vm2854_vm0, %v11220_v46  ;;  %v5526_v46 = vrot.slane %v11538_v21, 4  ;;  %v4100_v0 = vpop.f32.mrf.mxu0  ;;  %v2499_v33 = vpack.c.bf16 %v1427_v4, %v1423_v14  ;;  %v1415_v9 = vld [vmem:[%s9078_s25 + $0x1f30] sm:$0xff] }
 0x485   : > { %14057 = vst [vmem:[#allocation20_spill] sm:$0xff] %v11546_v12  ;;  %v5743_v56 = vrot.slane %v11546_v12, 4  ;;  %v11568_v40 = vadd.f32 %v4163_v6, %v4100_v0  ;;  %v1419_v4 = vld [vmem:[%s9078_s25 + $0x1f50] sm:$0xff]  ;;  %v1408_v6 = vld [vmem:[%s9078_s25 + $0x1ef8] sm:$0xff] }
 0x486   : > { %6404 = vrot.lane.b32.xlu1 %v6359_v32, %s8863_s19  ;;  %6802 = vrot.lane.b32.xlu0 %v6758_v60, %s8863_s19  ;;  %v1416_v32 = vld [vmem:[%s9078_s25 + $0x1f38] sm:$0xff]  ;;  %v1407_v12 = vld [vmem:[%s9078_s25 + $0x1ef0] sm:$0xff] }
 0x487   : > { %v1420_v60 = vld [vmem:[%s9078_s25 + $0x1f58] sm:$0xff]  ;;  %14058 = vst [vmem:[#allocation24_spill] sm:$0xff] %v11568_v40  ;;  %v6360_v14 = vrot.slane %v11568_v40, 4 }
 0x488   : > { %4581 = vmatpush1.bf16.xpose.msra.mxu0 %v2501_v35  ;;  %v6759_v35 = vrot.slane %v4044_v23, 4  ;;  %v2496_v29 = vpack.c.bf16 %v1420_v60, %v1416_v32  ;;  %v1412_v32 = vld [vmem:[%s9078_s25 + $0x1f18] sm:$0xff] }
 0x489   : > { %4644 = vmatpush1.bf16.xpose.msra.mxu1 %v2503_v1  ;;  %4582 = vmatprep.subr.bf16.mxu0 %v2498_v58  ;;  %v2494_v1 = vpack.c.bf16 %v1418_v39, %v1414_v31  ;;  %v6145_v58 = vrot.slane %v11558_v57, 4  ;;  %v1410_v31 = vld [vmem:[%s9078_s25 + $0x1f08] sm:$0xff] }
 0x48a   : > { %6956 = vrot.lane.b32.xlu1 %v4044_v23, %s8864_s29  ;;  %5572 = vrot.lane.b32.xlu0 %v5526_v46, %s8863_s19  ;;  %v11572_v23 = vpop.f32.mrf.mxu1  ;;  %v1413_v46 = vld [vmem:[%s9078_s25 + $0x1f20] sm:$0xff] }
 0x48b   : > { %8274 = vmatprep.subr.msk.bf16.mxu1 %vm2854_vm0, %v2500_v52  ;;  %v11570_v52 = vpop.f32.mrf.mxu0  ;;  %v2493_v60 = vpack.c.bf16 %v1417_v44, %v1413_v46  ;;  %v1411_v46 = vld [vmem:[%s9078_s25 + $0x1f10] sm:$0xff]  ;;  %v1398_v44 = vld [vmem:[%s9078_s25 + $0x1ea8] sm:$0xff] }
 0x48c   : > { %v4167_v0 = vpop.f32.mrf.mxu1 }
 0x48d   : > { %v4104_v39 = vpop.f32.mrf.mxu0 }
 0x48e   : > { %6804 = vrot.lane.b32.xlu1 %v6759_v35, %s8863_s19  ;;  %5789 = vrot.lane.b32.xlu0 %v5743_v56, %s8863_s19  ;;  %v1406_v56 = vld [vmem:[%s9078_s25 + $0x1ee8] sm:$0xff]  ;;  %v2495_v35 = vpack.c.bf16 %v1419_v4, %v1415_v9  ;;  %v1404_v4 = vld [vmem:[%s9078_s25 + $0x1ed8] sm:$0xff] }
 0x48f   : > { %v1402_v9 = vld [vmem:[%s9078_s25 + $0x1ec8] sm:$0xff] }
 0x490   : > { %4583 = vmatpush1.bf16.xpose.msra.mxu0 %v2497_v3  ;;  %v2490_v3 = vpack.c.bf16 %v1410_v31, %v1406_v56  ;;  %v2491_v31 = vpack.c.bf16 %v1411_v46, %v1407_v12  ;;  %v1524_v12 = vld [vmem:[%s9078_s25 + $0x2298] sm:$0xff] }
 0x491   : > { %4646 = vmatpush1.bf16.xpose.msra.mxu1 %v2499_v33  ;;  %4584 = vmatprep.subr.bf16.mxu0 %v2494_v1  ;;  %v4168_v33 = vadd.f32 %v4167_v0, %v4104_v39  ;;  %v2492_v1 = vpack.c.bf16 %v1412_v32, %v1408_v6  ;;  %v2486_v39 = vpack.c.bf16 %v1402_v9, %v1398_v44  ;;  %v1397_v6 = vld [vmem:[%s9078_s25 + $0x1ea0] sm:$0xff]  ;;  %v7296_v9 = vsel %vm7267_vm1, %v11121_v43, -inf }
 0x492   : > { %6192 = vrot.lane.b32.xlu0 %v6145_v58, %s8863_s19  ;;  %8275 = vmatprep.subr.msk.bf16.mxu1 %vm2854_vm0, %v2496_v29  ;;  %v1405_v58 = vld [vmem:[%s9078_s25 + $0x1ee0] sm:$0xff] }
 0x493   : > { %v1409_v29 = vld [vmem:[%s9078_s25 + $0x1f00] sm:$0xff]  ;;  %v6760_v40 = vrot.slane %v4168_v33, 4 }
 0x494   : > { %v2489_v56 = vpack.c.bf16 %v1409_v29, %v1405_v58  ;;  %v1401_v32 = vld [vmem:[%s9078_s25 + $0x1ec0] sm:$0xff] }
 0x495   : > { %v2485_v58 = vpack.c.bf16 %v1401_v32, %v1397_v6  ;;  %v1510_v6 = vld [vmem:[%s9078_s25 + $0x2228] sm:$0xff] }
 0x496   : > { %6406 = vrot.lane.b32.xlu0 %v6360_v14, %s8863_s19  ;;  %v1400_v14 = vld [vmem:[%s9078_s25 + $0x1eb8] sm:$0xff]  ;;  %v1514_v32 = vld [vmem:[%s9078_s25 + $0x2248] sm:$0xff] }
 0x497   : > { %v2488_v0 = vpack.c.bf16 %v1404_v4, %v1400_v14  ;;  %v7297_v14 = vsel %vm7267_vm1, %v11130_v54, -inf }
 0x498   : > { %4585 = vmatpush1.bf16.xpose.msra.mxu0 %v2493_v60  ;;  %v1399_v60 = vld [vmem:[%s9078_s25 + $0x1eb0] sm:$0xff] }
 0x499   : > { %4648 = vmatpush1.bf16.xpose.msra.mxu1 %v2495_v35  ;;  %4586 = vmatprep.subr.bf16.mxu0 %v2490_v3  ;;  %v1403_v35 = vld [vmem:[%s9078_s25 + $0x1ed0] sm:$0xff]  ;;  %v1518_v3 = vld [vmem:[%s9078_s25 + $0x2268] sm:$0xff] }
 0x49a   : > { %6958 = vrot.lane.b32.xlu0 %v4168_v33, %s8864_s29  ;;  %8276 = vmatprep.subr.msk.bf16.mxu1 %vm2854_vm0, %v2492_v1  ;;  %v1522_v33 = vld [vmem:[%s9078_s25 + $0x2288] sm:$0xff]  ;;  %v1520_v1 = vld [vmem:[%s9078_s25 + $0x2278] sm:$0xff]  ;;  %v2487_v29 = vpack.c.bf16 %v1403_v35, %v1399_v60 }
 0x49b   : > { %v2546_v46 = vpack.c.bf16 %v1522_v33, %v1518_v3  ;;  %v2548_v44 = vpack.c.bf16 %v1524_v12, %v1520_v1  ;;  %v1512_v60 = vld [vmem:[%s9078_s25 + $0x2238] sm:$0xff]  ;;  %v2542_v1 = vpack.c.bf16 %v1514_v32, %v1510_v6  ;;  %v1501_v32 = vld [vmem:[%s9078_s25 + $0x21e0] sm:$0xff] }
 0x49c   : > { %v1516_v35 = vld [vmem:[%s9078_s25 + $0x2258] sm:$0xff] }
 0x49d   : > { %v2544_v12 = vpack.c.bf16 %v1516_v35, %v1512_v60  ;;  %v1505_v60 = vld [vmem:[%s9078_s25 + $0x2200] sm:$0xff]  ;;  %v1503_v35 = vld [vmem:[%s9078_s25 + $0x21f0] sm:$0xff] }
 0x49e   : > { %6806 = vrot.lane.b32.xlu0 %v6760_v40, %s8863_s19  ;;  %v11608_v40 = vadd.f32 %v11368_v18, %v11366_v55  ;;  %v11618_v55 = vadd.f32 %v11400_v38, %v11398_v49  ;;  %v1517_v18 = vld [vmem:[%s9078_s25 + $0x2260] sm:$0xff] }
 0x4a0   : > { %4587 = vmatpush1.bf16.xpose.msra.mxu0 %v2489_v56  ;;  %v7299_v4 = vsel %vm7267_vm1, %v11608_v40, -inf  ;;  %v1521_v56 = vld [vmem:[%s9078_s25 + $0x2280] sm:$0xff]  ;;  %v7301_v38 = vsel %vm7273_vm2, %v11618_v55, -inf }
 0x4a1   : > { %4650 = vmatpush1.bf16.xpose.msra.mxu1 %v2491_v31  ;;  %4588 = vmatprep.subr.bf16.mxu0 %v2486_v39  ;;  %v1519_v31 = vld [vmem:[%s9078_s25 + $0x2270] sm:$0xff]  ;;  %v7298_v39 = vmax.f32 %v7296_v9, %v7297_v14  ;;  %v2545_v49 = vpack.c.bf16 %v1521_v56, %v1517_v18  ;;  %v1502_v14 = vld [vmem:[%s9078_s25 + $0x21e8] sm:$0xff]  ;;  %v1504_v18 = vld [vmem:[%s9078_s25 + $0x21f8] sm:$0xff] }
 0x4a2   : > { %8277 = vmatprep.subr.msk.bf16.mxu1 %vm2854_vm0, %v2488_v0  ;;  %v1523_v0 = vld [vmem:[%s9078_s25 + $0x2290] sm:$0xff]  ;;  %v1508_v56 = vld [vmem:[%s9078_s25 + $0x2218] sm:$0xff] }
 0x4a3   : > { %v7300_v3 = vmax.f32 %v7298_v39, %v7299_v4  ;;  %v2547_v33 = vpack.c.bf16 %v1523_v0, %v1519_v31  ;;  %v1515_v9 = vld [vmem:[%s9078_s25 + $0x2250] sm:$0xff]  ;;  %v1506_v4 = vld [vmem:[%s9078_s25 + $0x2208] sm:$0xff]  ;;  %v2540_v6 = vpack.c.bf16 %v1508_v56, %v1504_v18  ;;  %v1493_v18 = vld [vmem:[%s9078_s25 + $0x21a0] sm:$0xff] }
 0x4a4   : > { %v2538_v0 = vpack.c.bf16 %v1506_v4, %v1502_v14  ;;  %v11657_v14 = vadd.f32 %v11500_v11, %v11498_v16  ;;  %v1497_v56 = vld [vmem:[%s9078_s25 + $0x21c0] sm:$0xff]  ;;  %v11672_v11 = vadd.f32 %v11532_v42, %v11530_v53  ;;  %v11682_v53 = vadd.f32 %v11572_v23, %v11570_v52  ;;  %v1480_v52 = vld [vmem:[%s9078_s25 + $0x2138] sm:$0xff] }
 0x4a5   : > { %v1485_v42 = vld [vmem:[%s9078_s25 + $0x2160] sm:$0xff]  ;;  %v1484_v23 = vld [vmem:[%s9078_s25 + $0x2158] sm:$0xff] }
 0x4a6   : > { %14060 = vst [vmem:[#allocation31_spill] sm:$0xff] %v11657_v14  ;;  %v5744_v16 = vrot.slane %v11657_v14, 4 }
 0x4a8   : > { %4589 = vmatpush1.bf16.xpose.msra.mxu0 %v2485_v58  ;;  %v7302_v58 = vmax.f32 %v7300_v3, %v7301_v38  ;;  %v1507_v3 = vld [vmem:[%s9078_s25 + $0x2210] sm:$0xff]  ;;  %v1498_v38 = vld [vmem:[%s9078_s25 + $0x21c8] sm:$0xff] }
 0x4a9   : > { %4652 = vmatpush1.bf16.xpose.msra.mxu1 %v2487_v29  ;;  %4590 = vmatprep.subr.bf16.mxu0 %v2546_v46  ;;  %v1509_v29 = vld [vmem:[%s9078_s25 + $0x2220] sm:$0xff] }
 0x4aa   : > { %8278 = vmatprep.subr.msk.bf16.mxu1 %vm2854_vm0, %v2548_v44  ;;  %v1513_v46 = vld [vmem:[%s9078_s25 + $0x2240] sm:$0xff]  ;;  %v1511_v44 = vld [vmem:[%s9078_s25 + $0x2230] sm:$0xff] }
 0x4ab   : > { %v2541_v31 = vpack.c.bf16 %v1513_v46, %v1509_v29  ;;  %v2543_v39 = vpack.c.bf16 %v1515_v9, %v1511_v44  ;;  %v11653_v29 = vadd.f32 %v11465_v51, %v11463_v63  ;;  %v2539_v46 = vpack.c.bf16 %v1507_v3, %v1503_v35  ;;  %v1499_v51 = vld [vmem:[%s9078_s25 + $0x21d0] sm:$0xff] }
 0x4ad   : > { %v5527_v4 = vrot.slane %v11653_v29, 4 }
 0x4b0   : > { %4591 = vmatpush2.bf16.xpose.msra.mxu0 %v2545_v49  ;;  %v1494_v49 = vld [vmem:[%s9078_s25 + $0x21a8] sm:$0xff] }
 0x4b1   : > { %4654 = vmatpush2.bf16.xpose.msra.mxu1 %v2547_v33  ;;  %4592 = vmatprep.subr.bf16.mxu0 %v2542_v1  ;;  %v1496_v33 = vld [vmem:[%s9078_s25 + $0x21b8] sm:$0xff]  ;;  %v2534_v44 = vpack.c.bf16 %v1498_v38, %v1494_v49 }
 0x4b2   : > { %7303 = vmax.xlane.f32.xlu1 %v7302_v58  ;;  %8279 = vmatprep.subr.msk.bf16.mxu1 %vm2854_vm0, %v2544_v12  ;;  %v1500_v1 = vld [vmem:[%s9078_s25 + $0x21d8] sm:$0xff]  ;;  %v11649_v12 = vpop.xlane.xlu0 %7385  ;;  %v2537_v58 = vpack.c.bf16 %v1505_v60, %v1501_v32  ;;  %v2533_v60 = vpack.c.bf16 %v1497_v56, %v1493_v18  ;;  %v4106_v18 = vpop.f32.mrf.mxu0 }
 0x4b3   : > { %14059 = vst [vmem:[#allocation30_spill] sm:$0xff] %v11649_v12  ;;  %v2536_v9 = vpack.c.bf16 %v1500_v1, %v1496_v33  ;;  %v1492_v32 = vld [vmem:[%s9078_s25 + $0x2198] sm:$0xff]  ;;  %v6144_v33 = vrot.slane %v11672_v11, 4  ;;  %v1489_v1 = vld [vmem:[%s9078_s25 + $0x2180] sm:$0xff] }
 0x4b6   : > { %v11663_v63 = vpop.permute.xlu0 %6578 }
 0x4b8   : > { %4593 = vmatpush2.bf16.xpose.msra.mxu0 %v2541_v31  ;;  %v1495_v31 = vld [vmem:[%s9078_s25 + $0x21b0] sm:$0xff] }
 0x4b9   : > { %4656 = vmatpush2.bf16.xpose.msra.mxu1 %v2543_v39  ;;  %4594 = vmatprep.subr.bf16.mxu0 %v2538_v0  ;;  %v1486_v39 = vld [vmem:[%s9078_s25 + $0x2168] sm:$0xff]  ;;  %v2535_v35 = vpack.c.bf16 %v1499_v51, %v1495_v31  ;;  %v2529_v31 = vpack.c.bf16 %v1489_v1, %v1485_v42  ;;  %v4169_v51 = vpop.f32.mrf.mxu1 }
 0x4ba   : > { %8280 = vmatprep.subr.msk.bf16.mxu1 %vm2854_vm0, %v2540_v6  ;;  %v1490_v0 = vld [vmem:[%s9078_s25 + $0x2188] sm:$0xff]  ;;  %v1488_v6 = vld [vmem:[%s9078_s25 + $0x2178] sm:$0xff] }
 0x4bb   : > { %v2530_v3 = vpack.c.bf16 %v1490_v0, %v1486_v39  ;;  %v2532_v38 = vpack.c.bf16 %v1492_v32, %v1488_v6  ;;  %v4170_v6 = vadd.f32 %v4169_v51, %v4106_v18  ;;  %v1477_v32 = vld [vmem:[%s9078_s25 + $0x2120] sm:$0xff]  ;;  %v1474_v42 = vld [vmem:[%s9078_s25 + $0x2108] sm:$0xff]  ;;  %v5615_v18 = vsel %vm5608_vm3, %v11049_v48, %v11053_v26 }
 0x4bd   : > { %v6761_v1 = vrot.slane %v4170_v6, 4 }
 0x4c0   : > { %4595 = vmatpush2.bf16.xpose.msra.mxu0 %v2537_v58  ;;  %v1487_v58 = vld [vmem:[%s9078_s25 + $0x2170] sm:$0xff] }
 0x4c1   : > { %4658 = vmatpush2.bf16.xpose.msra.mxu1 %v2539_v46  ;;  %4596 = vmatprep.subr.bf16.mxu0 %v2534_v44  ;;  %v1491_v46 = vld [vmem:[%s9078_s25 + $0x2190] sm:$0xff]  ;;  %v1478_v44 = vld [vmem:[%s9078_s25 + $0x2128] sm:$0xff] }
 0x4c2   : > { %8281 = vmatprep.subr.msk.bf16.mxu1 %vm2854_vm0, %v2536_v9  ;;  %v1482_v9 = vld [vmem:[%s9078_s25 + $0x2148] sm:$0xff]  ;;  %v2531_v39 = vpack.c.bf16 %v1491_v46, %v1487_v58  ;;  %v1472_v58 = vld [vmem:[%s9078_s25 + $0x20f8] sm:$0xff] }
 0x4c3   : > { %5574 = vrot.lane.b32.xlu1 %v5527_v4, %s8863_s19  ;;  %v6361_v4 = vrot.slane %v11682_v53, 4  ;;  %v2526_v0 = vpack.c.bf16 %v1482_v9, %v1478_v44  ;;  %v1476_v46 = vld [vmem:[%s9078_s25 + $0x2118] sm:$0xff]  ;;  %v5962_v44 = vpop.permute.xlu1 %5961 }
 0x4c5   : > { %v11677_v49 = vpop.xlane.xlu0 %7485 }
 0x4c6   : > { %14061 = vst [vmem:[#allocation32_spill] sm:$0xff] %v11677_v49  ;;  %v1646_v49 = vld [vmem:[%s9078_s25 + $0x2668] sm:$0xff] }
 0x4c7   : > { %5791 = vrot.lane.b32.xlu1 %v5744_v16, %s8863_s19  ;;  %v2528_v16 = vpack.c.bf16 %v1484_v23, %v1480_v52  ;;  %v2524_v23 = vpack.c.bf16 %v1476_v46, %v1472_v58 }
 0x4c8   : > { %4597 = vmatpush2.bf16.xpose.msra.mxu0 %v2533_v60  ;;  %v1481_v60 = vld [vmem:[%s9078_s25 + $0x2140] sm:$0xff] }
 0x4c9   : > { %4660 = vmatpush2.bf16.xpose.msra.mxu1 %v2535_v35  ;;  %4598 = vmatprep.subr.bf16.mxu0 %v2530_v3  ;;  %v11696_v56 = vpop.permute.xlu0 %7130  ;;  %v1479_v35 = vld [vmem:[%s9078_s25 + $0x2130] sm:$0xff]  ;;  %v2525_v9 = vpack.c.bf16 %v1481_v60, %v1477_v32  ;;  %v5673_v60 = vadd.f32 %v5615_v18, %v10586_v30  ;;  %v5676_v18 = vadd.f32 %v11311_v50, %v10936_v62  ;;  %v1461_v62 = vld [vmem:[%s9078_s25 + $0x20a0] sm:$0xff] }
 0x4ca   : > { %8282 = vmatprep.subr.msk.bf16.mxu1 %vm2854_vm0, %v2532_v38  ;;  %v1483_v38 = vld [vmem:[%s9078_s25 + $0x2150] sm:$0xff] }
 0x4cb   : > { %6190 = vrot.lane.b32.xlu1 %v6144_v33, %s8863_s19  ;;  %v1470_v33 = vld [vmem:[%s9078_s25 + $0x20e8] sm:$0xff]  ;;  %v1471_v32 = vld [vmem:[%s9078_s25 + $0x20f0] sm:$0xff] }
 0x4cc   : > { %v2522_v52 = vpack.c.bf16 %v1474_v42, %v1470_v33  ;;  %v1466_v33 = vld [vmem:[%s9078_s25 + $0x20c8] sm:$0xff]  ;;  %v1464_v42 = vld [vmem:[%s9078_s25 + $0x20b8] sm:$0xff] }
 0x4cd   : > { %v5964_v3 = vpop.permute.xlu0 %5963 }
 0x4ce   : > { %v6016_v48 = vsel %vm6009_vm4, %v5962_v44, %v5964_v3 }
 0x4cf   : > { %6408 = vrot.lane.b32.xlu1 %v6361_v4, %s8863_s19  ;;  %v2527_v4 = vpack.c.bf16 %v1483_v38, %v1479_v35  ;;  %v1475_v35 = vld [vmem:[%s9078_s25 + $0x2110] sm:$0xff]  ;;  %v1462_v38 = vld [vmem:[%s9078_s25 + $0x20a8] sm:$0xff]  ;;  %v6074_v58 = vadd.f32 %v6016_v48, %v5673_v60 }
 0x4d0   : > { %4599 = vmatpush2.bf16.xpose.msra.mxu0 %v2529_v31  ;;  %v1463_v60 = vld [vmem:[%s9078_s25 + $0x20b0] sm:$0xff] }
 0x4d1   : > { %4662 = vmatpush2.bf16.xpose.msra.mxu1 %v2531_v39  ;;  %4600 = vmatprep.subr.bf16.mxu0 %v2526_v0  ;;  %v11713_v31 = vpop.permute.xlu0 %5568  ;;  %v5616_v39 = vsel %vm5608_vm3, %v11053_v26, %v11237_v27  ;;  %v5617_v0 = vsel %vm5608_vm3, %v11237_v27, %v11311_v50  ;;  %v1468_v26 = vld [vmem:[%s9078_s25 + $0x20d8] sm:$0xff]  ;;  %v1465_v50 = vld [vmem:[%s9078_s25 + $0x20c0] sm:$0xff] }
 0x4d2   : > { %8283 = vmatprep.subr.msk.bf16.mxu1 %vm2854_vm0, %v2528_v16  ;;  %v1469_v16 = vld [vmem:[%s9078_s25 + $0x20e0] sm:$0xff]  ;;  %v5675_v27 = vadd.f32 %v5617_v0, %v10925_v47  ;;  %v2520_v47 = vpack.c.bf16 %v1468_v26, %v1464_v42  ;;  %v7387_v0 = vsel %vm7367_vm5, %v6074_v58, -inf  ;;  %v1584_v26 = vld [vmem:[%s9078_s25 + $0x2478] sm:$0xff] }
 0x4d3   : > { %6960 = vrot.lane.b32.xlu1 %v4170_v6, %s8864_s29  ;;  %v1473_v6 = vld [vmem:[%s9078_s25 + $0x2100] sm:$0xff] }
 0x4d7   : > { %6808 = vrot.lane.b32.xlu1 %v6761_v1, %s8863_s19  ;;  %v5674_v1 = vadd.f32 %v5616_v39, %v10597_v10 }
 0x4d8   : > { %v5968_v51 = vpop.permute.xlu1 %5967  ;;  %4601 = vmatpush2.bf16.xpose.msra.mxu0 %v2525_v9  ;;  %v2521_v9 = vpack.c.bf16 %v1473_v6, %v1469_v16 }
 0x4d9   : > { %4664 = vmatpush2.bf16.xpose.msra.mxu1 %v2527_v4  ;;  %4602 = vmatprep.subr.bf16.mxu0 %v2522_v52  ;;  %v2523_v52 = vpack.c.bf16 %v1475_v35, %v1471_v32  ;;  %v6077_v48 = vadd.f32 %v5968_v51, %v5676_v18 }
 0x4da   : > { %8284 = vmatprep.subr.msk.bf16.mxu1 %vm2854_vm0, %v2524_v23  ;;  %v2518_v23 = vpack.c.bf16 %v1466_v33, %v1462_v38  ;;  %v1467_v38 = vld [vmem:[%s9078_s25 + $0x20d0] sm:$0xff]  ;;  %v1586_v33 = vld [vmem:[%s9078_s25 + $0x2488] sm:$0xff] }
 0x4dc   : > { %v11734_v46 = vpop.permute.xlu0 %6584  ;;  %v5966_v44 = vpop.permute.xlu1 %5965 }
 0x4dd   : > { %v6017_v4 = vsel %vm6009_vm4, %v5964_v3, %v5966_v44  ;;  %v6018_v30 = vsel %vm6009_vm4, %v5966_v44, %v5968_v51  ;;  %v1582_v51 = vld [vmem:[%s9078_s25 + $0x2468] sm:$0xff]  ;;  %v7392_v44 = vsel %vm7373_vm6, %v6077_v48, -inf }
 0x4de   : > { %v6075_v10 = vadd.f32 %v6017_v4, %v5674_v1  ;;  %v6076_v39 = vadd.f32 %v6018_v30, %v5675_v27  ;;  %v1588_v1 = vld [vmem:[%s9078_s25 + $0x2498] sm:$0xff]  ;;  %v2519_v30 = vpack.c.bf16 %v1467_v38, %v1463_v60  ;;  %v1574_v38 = vld [vmem:[%s9078_s25 + $0x2428] sm:$0xff] }
 0x4e0   : > { %v7388_v3 = vsel %vm7367_vm5, %v6075_v10, -inf  ;;  %v5786_v16 = vpop.permute.xlu0 %5785  ;;  %v11742_v6 = vpop.permute.xlu1 %5570  ;;  %4603 = vmatpush2.bf16.xpose.msra.mxu0 %v2521_v9  ;;  %v7390_v35 = vsel %vm7367_vm5, %v6076_v39, -inf  ;;  %v2517_v9 = vpack.c.bf16 %v1465_v50, %v1461_v62  ;;  %v1583_v62 = vld [vmem:[%s9078_s25 + $0x2470] sm:$0xff] }
 0x4e1   : > { %v7389_v32 = vmax.f32 %v7387_v0, %v7388_v3  ;;  %4666 = vmatpush2.bf16.xpose.msra.mxu1 %v2523_v52  ;;  %4604 = vmatprep.subr.bf16.mxu0 %v2518_v23  ;;  %v2578_v52 = vpack.c.bf16 %v1586_v33, %v1582_v51  ;;  %v2580_v23 = vpack.c.bf16 %v1588_v1, %v1584_v26  ;;  %v1581_v3 = vld [vmem:[%s9078_s25 + $0x2460] sm:$0xff]  ;;  %v1578_v51 = vld [vmem:[%s9078_s25 + $0x2448] sm:$0xff]  ;;  %v1576_v1 = vld [vmem:[%s9078_s25 + $0x2438] sm:$0xff] }
 0x4e2   : > { %8285 = vmatprep.subr.msk.bf16.mxu1 %vm2854_vm0, %v2520_v47 }
 0x4e3   : > { %v7391_v42 = vmax.f32 %v7389_v32, %v7390_v35  ;;  %v1585_v32 = vld [vmem:[%s9078_s25 + $0x2480] sm:$0xff]  ;;  %v1587_v35 = vld [vmem:[%s9078_s25 + $0x2490] sm:$0xff] }
 0x4e4   : > { %v11754_v27 = vpop.permute.xlu0 %6582  ;;  %v11756_v58 = vpop.permute.xlu1 %6580 }
 0x4e5   : > { %v7393_v4 = vmax.f32 %v7391_v42, %v7392_v44  ;;  %v1580_v44 = vld [vmem:[%s9078_s25 + $0x2458] sm:$0xff] }
 0x4e7   : > { %7394 = vmax.xlane.f32.xlu0 %v7393_v4  ;;  %v4281_v18 = vpop.f32.mrf.mxu0 }
 0x4e8   : > { %v4344_v10 = vpop.f32.mrf.mxu1  ;;  %v11759_v39 = vpop.permute.xlu0 %6188  ;;  %4605 = vmatpush2.bf16.xpose.msra.mxu0 %v2517_v9 }
 0x4e9   : > { %14062 = vst [vmem:[#allocation33_spill] sm:$0xff] %v11759_v39  ;;  %v11761_v47 = vadd.f32 %v4344_v10, %v4281_v18  ;;  %v11763_v0 = vpop.permute.xlu1 %5787  ;;  %4668 = vmatpush2.bf16.xpose.msra.mxu1 %v2519_v30  ;;  %v4283_v48 = vpop.f32.mrf.mxu0  ;;  %4700 = vmatprep.subr.bf16.mxu0 %v2578_v52  ;;  %v2574_v52 = vpack.c.bf16 %v1578_v51, %v1574_v38  ;;  %v1568_v38 = vld [vmem:[%s9078_s25 + $0x23f8] sm:$0xff] }
 0x4ea   : > { %v5834_v50 = vsel %vm5608_vm3, %v5786_v16, %v11763_v0  ;;  %v4346_v60 = vpop.f32.mrf.mxu1  ;;  %8289 = vmatprep.subr.msk.bf16.mxu1 %vm2854_vm0, %v2580_v23  ;;  %v2577_v16 = vpack.c.bf16 %v1585_v32, %v1581_v3  ;;  %v2576_v18 = vpack.c.bf16 %v1580_v44, %v1576_v1  ;;  %v1573_v3 = vld [vmem:[%s9078_s25 + $0x2420] sm:$0xff] }
 0x4eb   : > { %14063 = vst [vmem:[#allocation34_spill] sm:$0xff] %v11761_v47  ;;  %v11776_v33 = vsel %vm7267_vm1, %v11761_v47, -inf  ;;  %v5893_v42 = vadd.f32 %v5834_v50, %v11280_v13  ;;  %v11779_v26 = vadd.f32 %v4346_v60, %v4283_v48  ;;  %v2579_v13 = vpack.c.bf16 %v1587_v35, %v1583_v62  ;;  %v1577_v32 = vld [vmem:[%s9078_s25 + $0x2440] sm:$0xff]  ;;  %v1575_v62 = vld [vmem:[%s9078_s25 + $0x2430] sm:$0xff]  ;;  %v1566_v60 = vld [vmem:[%s9078_s25 + $0x23e8] sm:$0xff] }
 0x4ec   : > { %v11783_v9 = vpop.permute.xlu0 %7134  ;;  %v1579_v50 = vld [vmem:[%s9078_s25 + $0x2450] sm:$0xff]  ;;  %v1570_v35 = vld [vmem:[%s9078_s25 + $0x2408] sm:$0xff]  ;;  %v2573_v51 = vpack.c.bf16 %v1577_v32, %v1573_v3 }
 0x4ed   : > { %14064 = vst [vmem:[#allocation35_spill] sm:$0xff] %v11779_v26  ;;  %v11787_v4 = vsel %vm7267_vm1, %v11779_v26, -inf  ;;  %5969 = vrot.lane.b32.xlu1 %v5893_v42, %s8864_s29  ;;  %v11790_v30 = vpop.permute.xlu1 %6186  ;;  %v2575_v1 = vpack.c.bf16 %v1579_v50, %v1575_v62  ;;  %v2570_v44 = vpack.c.bf16 %v1570_v35, %v1566_v60  ;;  %v1558_v32 = vld [vmem:[%s9078_s25 + $0x23a8] sm:$0xff]  ;;  %v6233_v50 = vsel %vm5608_vm3, %v11104_v24, %v11289_v2  ;;  %v1560_v35 = vld [vmem:[%s9078_s25 + $0x23b8] sm:$0xff] }
 0x4ee   : > { %14065 = vst [vmem:[#allocation36_spill] sm:$0xff] %v11790_v30  ;;  %v1562_v62 = vld [vmem:[%s9078_s25 + $0x23c8] sm:$0xff] }
 0x4ef   : > { %4607 = vmatmul.mubr.bf16.vlgmr.msra.gmra.mxu0 %v11381_v28  ;;  %v1572_v28 = vld [vmem:[%s9078_s25 + $0x2418] sm:$0xff] }
 0x4f0   : > { %4670 = vmatmul.mubr.bf16.vlgmr.msra.gmra.mxu1 %v11393_v34  ;;  %v6403_v10 = vpop.permute.xlu0 %6402  ;;  %4701 = vmatpush1.bf16.xpose.msra.mxu0 %v2577_v16  ;;  %v2572_v16 = vpack.c.bf16 %v1572_v28, %v1568_v38  ;;  %v1564_v38 = vld [vmem:[%s9078_s25 + $0x23d8] sm:$0xff] }
 0x4f1   : > { %v7133_v48 = vpop.permute.xlu1 %7132  ;;  %4764 = vmatpush1.bf16.xpose.msra.mxu1 %v2579_v13  ;;  %4702 = vmatprep.subr.bf16.mxu0 %v2574_v52  ;;  %v1565_v13 = vld [vmem:[%s9078_s25 + $0x23e0] sm:$0xff] }
 0x4f2   : > { %8290 = vmatprep.subr.msk.bf16.mxu1 %vm2854_vm0, %v2576_v18  ;;  %4616 = vmatprep.mubr.bf16.mxu0 %v11414_v36  ;;  %v1569_v52 = vld [vmem:[%s9078_s25 + $0x2400] sm:$0xff]  ;;  %v1567_v18 = vld [vmem:[%s9078_s25 + $0x23f0] sm:$0xff] }
 0x4f3   : > { %8287 = vmatprep.mubr.msk.bf16.mxu1 %vm2854_vm0, %v11429_v20  ;;  %v2569_v28 = vpack.c.bf16 %v1569_v52, %v1565_v13  ;;  %v14067_v13 = vld [vmem:[#allocation22_spill] sm:$0xff]  ;;  %v7186_v52 = vsel %vm7178_vm7, %v7133_v48, %v11783_v9 }
 0x4f4   : > { %v11808_v34 = vpop.permute.xlu0 %6954  ;;  %v12067_v39 = vld [vmem:[%s13936_s1 + $0x20] ss:$16 sps:$4 sm:$0xff]  }
 0x4f5   : > { %v11810_v42 = vpop.permute.xlu1 %7136 }
 0x4f7   : > { %4617 = vmatmul.mubr.bf16.gmra.mxu0 %v11447_v22  ;;  %v1571_v22 = vld [vmem:[%s9078_s25 + $0x2410] sm:$0xff] }
 0x4f8   : > { %v11813_v36 = vpop.permute.xlu0 %6802  ;;  %4703 = vmatpush1.bf16.xpose.msra.mxu0 %v2573_v51  ;;  %4680 = vmatmul.mubr.bf16.gmra.mxu1 %v11460_v7  ;;  %v6232_v7 = vsel %vm5608_vm3, %v11079_v19, %v11104_v24  ;;  %v6632_v19 = vsel %vm6009_vm4, %v11663_v63, %v11756_v58  ;;  %v6633_v24 = vsel %vm6009_vm4, %v11756_v58, %v11754_v27 }
 0x4f9   : > { %v11816_v20 = vpop.permute.xlu1 %6404  ;;  %4766 = vmatpush1.bf16.xpose.msra.mxu1 %v2575_v1  ;;  %4704 = vmatprep.subr.bf16.mxu0 %v2570_v44  ;;  %v2566_v51 = vpack.c.bf16 %v1562_v62, %v1558_v32  ;;  %v14066_v1 = vld [vmem:[#allocation25_spill] sm:$0xff]  ;;  %v7185_v58 = vsel %vm7178_vm7, %v11696_v56, %v7133_v48  ;;  %v7187_v56 = vsel %vm7178_vm7, %v11783_v9, %v11810_v42  ;;  %v1557_v48 = vld [vmem:[%s9078_s25 + $0x23a0] sm:$0xff] }
 0x4fa   : > { %v6451_v3 = vsel %vm5608_vm3, %v6403_v10, %v11816_v20  ;;  %8291 = vmatprep.subr.msk.bf16.mxu1 %vm2854_vm0, %v2572_v16  ;;  %4626 = vmatprep.mubr.bf16.mxu0 %v11481_v41  ;;  %v6234_v10 = vsel %vm5608_vm3, %v11289_v2, %v11305_v59  ;;  %v6291_v44 = vadd.f32 %v6233_v50, %v14066_v1  ;;  %v1559_v32 = vld [vmem:[%s9078_s25 + $0x23b0] sm:$0xff]  ;;  %v1554_v9 = vld [vmem:[%s9078_s25 + $0x2388] sm:$0xff] }
 0x4fb   : > { %v6510_v60 = vadd.f32 %v6451_v3, %v11420_v25  ;;  %8288 = vmatprep.mubr.msk.bf16.mxu1 %vm2854_vm0, %v11492_v8  ;;  %v2571_v25 = vpack.c.bf16 %v1571_v22, %v1567_v18  ;;  %v6290_v8 = vadd.f32 %v6232_v7, %v10708_v61  ;;  %v6634_v2 = vsel %vm6009_vm4, %v11754_v27, %v11734_v46  ;;  %v1561_v22 = vld [vmem:[%s9078_s25 + $0x23c0] sm:$0xff]  ;;  %v1563_v50 = vld [vmem:[%s9078_s25 + $0x23d0] sm:$0xff] }
 0x4fc   : > { %v11842_v41 = vpop.permute.xlu0 %5572  ;;  %v2568_v16 = vpack.c.bf16 %v1564_v38, %v1560_v35  ;;  %v6292_v63 = vadd.f32 %v6234_v10, %v14067_v13  ;;  %v6691_v18 = vadd.f32 %v6633_v24, %v6291_v44  ;;  %v11882_v35 = vld [vmem:[%s13936_s1 + $0x4] ss:$16 sps:$4 sm:$0xff]   ;;  %v1556_v38 = vld [vmem:[%s9078_s25 + $0x2398] sm:$0xff] }
 0x4fd   : > { %6586 = vrot.lane.b32.xlu0 %v6510_v60, %s8864_s29  ;;  %v6690_v61 = vadd.f32 %v6632_v19, %v6290_v8  ;;  %v1550_v60 = vld [vmem:[%s9078_s25 + $0x2368] sm:$0xff]  ;;  %v2567_v19 = vpack.c.bf16 %v1563_v50, %v1559_v32 }
 0x4fe   : > { %v6692_v27 = vadd.f32 %v6634_v2, %v6292_v63  ;;  %v7244_v7 = vadd.f32 %v7186_v52, %v6691_v18  ;;  %v11890_v10 = vld [vmem:[%s13936_s1 + $0xc] ss:$16 sps:$4 sm:$0xff]   ;;  %v2562_v24 = vpack.c.bf16 %v1554_v9, %v1550_v60  ;;  %v1549_v63 = vld [vmem:[%s9078_s25 + $0x2360] sm:$0xff]  ;;  %v1551_v52 = vld [vmem:[%s9078_s25 + $0x2370] sm:$0xff] }
 0x4ff   : > { %4627 = vmatmul.mubr.bf16.gmra.mxu0 %v11505_v5  ;;  %v7243_v62 = vadd.f32 %v7185_v58, %v6690_v61  ;;  %v1553_v58 = vld [vmem:[%s9078_s25 + $0x2380] sm:$0xff]  ;;  %v1555_v61 = vld [vmem:[%s9078_s25 + $0x2390] sm:$0xff]  ;;  %v1542_v18 = vld [vmem:[%s9078_s25 + $0x2328] sm:$0xff] }
 0x500   : > { %v11862_v3 = vpop.permute.xlu0 %5789  ;;  %4705 = vmatpush1.bf16.xpose.msra.mxu0 %v2569_v28  ;;  %4690 = vmatmul.mubr.bf16.gmra.mxu1 %v11519_v37  ;;  %v2565_v28 = vpack.c.bf16 %v1561_v22, %v1557_v48  ;;  %v7488_v1 = vsel %vm7367_vm5, %v7244_v7, -inf  ;;  %v1548_v48 = vld [vmem:[%s9078_s25 + $0x2358] sm:$0xff]  ;;  %v11913_v22 = vpop.f32.mrf.mxu1  ;;  %v2561_v32 = vpack.c.bf16 %v1553_v58, %v1549_v63 }
 0x501   : > { %v5835_v5 = vsel %vm5608_vm3, %v11763_v0, %v11862_v3  ;;  %4768 = vmatpush1.bf16.xpose.msra.mxu1 %v2571_v25  ;;  %4706 = vmatprep.subr.bf16.mxu0 %v2566_v51  ;;  %v1552_v0 = vld [vmem:[%s9078_s25 + $0x2378] sm:$0xff]  ;;  %v7487_v8 = vsel %vm7367_vm5, %v7243_v62, -inf  ;;  %v2563_v62 = vpack.c.bf16 %v1555_v61, %v1551_v52 }
 0x502   : > { %v5894_v37 = vadd.f32 %v5835_v5, %v11334_v17  ;;  %8292 = vmatprep.subr.msk.bf16.mxu1 %vm2854_vm0, %v2568_v16  ;;  %4732 = vmatprep.mubr.bf16.mxu0 %v11882_v35  ;;  %v7245_v17 = vadd.f32 %v7187_v56, %v6692_v27  ;;  %v14068_v25 = vld [vmem:[#allocation23_spill] sm:$0xff]  ;;  %v2564_v44 = vpack.c.bf16 %v1556_v38, %v1552_v0  ;;  %v11908_v27 = vpop.f32.mrf.mxu0  ;;  %v1546_v56 = vld [vmem:[%s9078_s25 + $0x2348] sm:$0xff]  ;;  %v11918_v9 = vpop.f32.mrf.mxu1 }
 0x503   : > { %8298 = vmatprep.mubr.msk.bf16.mxu1 %vm2854_vm0, %v11890_v10  ;;  %v6293_v51 = vadd.f32 %v11305_v59, %v14068_v25  ;;  %v7489_v13 = vmax.f32 %v7487_v8, %v7488_v1  ;;  %v1544_v5 = vld [vmem:[%s9078_s25 + $0x2338] sm:$0xff]  ;;  %v2558_v7 = vpack.c.bf16 %v1546_v56, %v1542_v18  ;;  %v11920_v0 = vpop.permute.xlu1 %6956  ;;  %v1541_v38 = vld [vmem:[%s9078_s25 + $0x2320] sm:$0xff]  ;;  %v1538_v8 = vld [vmem:[%s9078_s25 + $0x2308] sm:$0xff] }
 0x504   : > { %5971 = vrot.lane.b32.xlu0 %v5894_v37, %s8864_s29  ;;  %v7490_v16 = vsel %vm7367_vm5, %v7245_v17, -inf  ;;  %v2560_v37 = vpack.c.bf16 %v1548_v48, %v1544_v5  ;;  %v11916_v50 = vpop.f32.mrf.mxu0  ;;  %v1545_v17 = vld [vmem:[%s9078_s25 + $0x2340] sm:$0xff]  ;;  %v11929_v25 = vpop.f32.mrf.mxu1  ;;  %v1536_v1 = vld [vmem:[%s9078_s25 + $0x22f8] sm:$0xff]  ;;  %v1535_v5 = vld [vmem:[%s9078_s25 + $0x22f0] sm:$0xff] }
 0x505   : > { %v6693_v2 = vadd.f32 %v11734_v46, %v6293_v51  ;;  %v7491_v46 = vmax.f32 %v7489_v13, %v7490_v16  ;;  %v1534_v51 = vld [vmem:[%s9078_s25 + $0x22e8] sm:$0xff]  ;;  %v1537_v56 = vld [vmem:[%s9078_s25 + $0x2300] sm:$0xff]  ;;  %v12109_v47 = vadd.f32 %v11918_v9, %v11916_v50 }
 0x506   : > { %v2554_v63 = vpack.c.bf16 %v1538_v8, %v1534_v51  ;;  %v7003_v8 = vsel %vm6009_vm4, %v11808_v34, %v11920_v0  ;;  %v1592_v34 = vld [vmem:[%s9078_s25 + $0x24b8] sm:$0xff]  ;;  %v1625_v9 = vld [vmem:[%s9078_s25 + $0x25c0] sm:$0xff] }
 0x507   : > { %v7246_v59 = vadd.f32 %v11810_v42, %v6693_v2  ;;  %v2557_v2 = vpack.c.bf16 %v1545_v17, %v1541_v38  ;;  %v11937_v58 = vpop.permute.xlu1 %6804  ;;  %v12130_v50 = vld [vmem:[%s13936_s1 + $0x48] ss:$16 sps:$4 sm:$0xff]  }
 0x508   : > { %4707 = vmatpush1.bf16.xpose.msra.mxu0 %v2565_v28  ;;  %v1543_v28 = vld [vmem:[%s9078_s25 + $0x2330] sm:$0xff]  ;;  %v6851_v61 = vsel %vm5608_vm3, %v11813_v36, %v11937_v58 }
 0x509   : > { %4770 = vmatpush1.bf16.xpose.msra.mxu1 %v2567_v19  ;;  %4708 = vmatprep.subr.bf16.mxu0 %v2562_v24  ;;  %v7492_v42 = vsel %vm7473_vm8, %v7246_v59, -inf  ;;  %v11925_v19 = vpop.f32.mrf.mxu0  ;;  %v1547_v24 = vld [vmem:[%s9078_s25 + $0x2350] sm:$0xff]  ;;  %v11939_v59 = vpop.f32.mrf.mxu1  ;;  %v6910_v36 = vadd.f32 %v6851_v61, %v11454_v15  ;;  %v1590_v61 = vld [vmem:[%s9078_s25 + $0x24a8] sm:$0xff] }
 0x50a   : > { %8293 = vmatprep.subr.msk.bf16.mxu1 %vm2854_vm0, %v2564_v44  ;;  %v7493_v60 = vmax.f32 %v7491_v46, %v7492_v42  ;;  %v1540_v44 = vld [vmem:[%s9078_s25 + $0x2318] sm:$0xff]  ;;  %v2559_v16 = vpack.c.bf16 %v1547_v24, %v1543_v28  ;;  %v1533_v46 = vld [vmem:[%s9078_s25 + $0x22e0] sm:$0xff]  ;;  %v1530_v42 = vld [vmem:[%s9078_s25 + $0x22c8] sm:$0xff] }
 0x50b   : > { %v11935_v13 = vpop.f32.mrf.mxu0  ;;  %v2556_v52 = vpack.c.bf16 %v1540_v44, %v1536_v1  ;;  %v11949_v48 = vpop.f32.mrf.mxu1  ;;  %v7062_v1 = vadd.f32 %v7003_v8, %v6910_v36  ;;  %v1525_v44 = vld [vmem:[%s9078_s25 + $0x22a0] sm:$0xff]  ;;  %v1656_v8 = vld [vmem:[%s9078_s25 + $0x26b8] sm:$0xff] }
 0x50d   : > { %v11944_v18 = vpop.f32.mrf.mxu0  ;;  %v11960_v24 = vpop.f32.mrf.mxu1 }
 0x50f   : > { %v11958_v38 = vpop.f32.mrf.mxu0 }
 0x510   : > { %4709 = vmatpush1.bf16.xpose.msra.mxu0 %v2561_v32  ;;  %v1539_v32 = vld [vmem:[%s9078_s25 + $0x2310] sm:$0xff] }
 0x511   : > { %7494 = vmax.xlane.f32.xlu1 %v7493_v60  ;;  %4772 = vmatpush1.bf16.xpose.msra.mxu1 %v2563_v62  ;;  %v1526_v62 = vld [vmem:[%s9078_s25 + $0x22a8] sm:$0xff]  ;;  %v2553_v60 = vpack.c.bf16 %v1537_v56, %v1533_v46  ;;  %v2555_v17 = vpack.c.bf16 %v1539_v32, %v1535_v5  ;;  %v11965_v15 = vpop.f32.mrf.mxu0  ;;  %v2582_v32 = vpack.c.bf16 %v1590_v61, %v1590_v61 }
 0x512   : > { %4710 = vmatprep.subr.bf16.mxu0 %v2558_v7  ;;  %8294 = vmatprep.subr.msk.bf16.mxu1 %vm2854_vm0, %v2560_v37  ;;  %v1528_v7 = vld [vmem:[%s9078_s25 + $0x22b8] sm:$0xff]  ;;  %v2550_v28 = vpack.c.bf16 %v1530_v42, %v1526_v62  ;;  %v2584_v42 = vpack.c.bf16 %v1592_v34, %v1592_v34 }
 0x513   : > { %v1532_v37 = vld [vmem:[%s9078_s25 + $0x22d8] sm:$0xff]  ;;  %v11977_v56 = vpop.f32.mrf.mxu0 }
 0x514   : > { %v2552_v51 = vpack.c.bf16 %v1532_v37, %v1528_v7  ;;  %v1589_v37 = vld [vmem:[%s9078_s25 + $0x24a0] sm:$0xff] }
 0x515   : > { %v11981_v7 = vpop.f32.mrf.mxu0 }
 0x518   : > { %4711 = vmatpush1.bf16.xpose.msra.mxu0 %v2557_v2  ;;  %v1529_v2 = vld [vmem:[%s9078_s25 + $0x22c0] sm:$0xff] }
 0x519   : > { %4774 = vmatpush1.bf16.xpose.msra.mxu1 %v2559_v16  ;;  %4712 = vmatprep.subr.bf16.mxu0 %v2554_v63  ;;  %v11970_v16 = vpop.f32.mrf.mxu1  ;;  %v1527_v63 = vld [vmem:[%s9078_s25 + $0x22b0] sm:$0xff]  ;;  %v2549_v46 = vpack.c.bf16 %v1529_v2, %v1525_v44  ;;  %v11992_v44 = vpop.f32.mrf.mxu0 }
 0x51a   : > { %8295 = vmatprep.subr.msk.bf16.mxu1 %vm2854_vm0, %v2556_v52  ;;  %v1531_v52 = vld [vmem:[%s9078_s25 + $0x22d0] sm:$0xff] }
 0x51b   : > { %v2551_v5 = vpack.c.bf16 %v1531_v52, %v1527_v63  ;;  %v11979_v62 = vpop.f32.mrf.mxu1 }
 0x51d   : > { %v11984_v36 = vpop.f32.mrf.mxu1 }
 0x51f   : > { %v11994_v52 = vpop.f32.mrf.mxu1 }
 0x520   : > { %4713 = vmatpush1.bf16.xpose.msra.mxu0 %v2553_v60  ;;  %v1591_v60 = vld [vmem:[%s9078_s25 + $0x24b0] sm:$0xff] }
 0x521   : > { %4776 = vmatpush1.bf16.xpose.msra.mxu1 %v2555_v17  ;;  %4714 = vmatprep.subr.bf16.mxu0 %v2550_v28  ;;  %v1650_v17 = vld [vmem:[%s9078_s25 + $0x2688] sm:$0xff]  ;;  %v2583_v2 = vpack.c.bf16 %v1591_v60, %v1591_v60  ;;  %v1651_v60 = vld [vmem:[%s9078_s25 + $0x2690] sm:$0xff] }
 0x522   : > { %7138 = vrot.lane.b32.xlu1 %v7062_v1, %s8865_s21  ;;  %8296 = vmatprep.subr.msk.bf16.mxu1 %vm2854_vm0, %v2552_v51  ;;  %v1654_v28 = vld [vmem:[%s9078_s25 + $0x26a8] sm:$0xff]  ;;  %v1652_v51 = vld [vmem:[%s9078_s25 + $0x2698] sm:$0xff]  ;;  %v2581_v1 = vpack.c.bf16 %v1589_v37, %v1589_v37  ;;  %v1653_v37 = vld [vmem:[%s9078_s25 + $0x26a0] sm:$0xff] }
 0x523   : > { %v2614_v63 = vpack.c.bf16 %v1654_v28, %v1650_v17  ;;  %v2616_v61 = vpack.c.bf16 %v1656_v8, %v1652_v51  ;;  %v1655_v17 = vld [vmem:[%s9078_s25 + $0x26b0] sm:$0xff]  ;;  %v1642_v28 = vld [vmem:[%s9078_s25 + $0x2648] sm:$0xff] }
 0x524   : > { %v2615_v12 = vpack.c.bf16 %v1655_v17, %v1651_v60  ;;  %v2610_v14 = vpack.c.bf16 %v1646_v49, %v1642_v28  ;;  %v1641_v49 = vld [vmem:[%s9078_s25 + $0x2640] sm:$0xff]  ;;  %v1643_v60 = vld [vmem:[%s9078_s25 + $0x2650] sm:$0xff] }
 0x525   : > { %v1647_v17 = vld [vmem:[%s9078_s25 + $0x2670] sm:$0xff] }
 0x526   : > { %v12044_v28 = vld [vmem:[%s13936_s1 + $0x24] ss:$16 sps:$4 sm:$0xff]  }
 0x528   : > { %4715 = vmatpush1.bf16.xpose.msra.mxu0 %v2549_v46 }
 0x529   : > { %4778 = vmatpush1.bf16.xpose.msra.mxu1 %v2551_v5  ;;  %4730 = vmatprep.subr.bf16.mxu0 %v2582_v32 }
 0x52a   : > { %8297 = vmatprep.subr.msk.bf16.mxu1 %vm2854_vm0, %v2584_v42  ;;  %v1649_v42 = vld [vmem:[%s9078_s25 + $0x2680] sm:$0xff] }
 0x52f   : > { %v4407_v34 = vpop.f32.mrf.mxu0 }
 0x530   : > { %v4470_v46 = vpop.f32.mrf.mxu1  ;;  %4731 = vmatpush2.bf16.xpose.msra.mxu0 %v2581_v1  ;;  %v1644_v1 = vld [vmem:[%s9078_s25 + $0x2658] sm:$0xff] }
 0x531   : > { %v11996_v5 = vadd.f32 %v4470_v46, %v4407_v34  ;;  %4794 = vmatpush2.bf16.xpose.msra.mxu1 %v2583_v2  ;;  %v4409_v32 = vpop.f32.mrf.mxu0  ;;  %4901 = vmatprep.subr.bf16.mxu0 %v2614_v63  ;;  %v1648_v34 = vld [vmem:[%s9078_s25 + $0x2678] sm:$0xff]  ;;  %v14071_v2 = vmax.f32 %v11776_v33, %v11787_v4  ;;  %v2613_v46 = vpack.c.bf16 %v1653_v37, %v1649_v42  ;;  %v12028_v4 = vpop.permute.xlu0 %6192  ;;  %v1645_v37 = vld [vmem:[%s9078_s25 + $0x2660] sm:$0xff] }
 0x532   : > { %v4472_v23 = vpop.f32.mrf.mxu1  ;;  %8301 = vmatprep.subr.msk.bf16.mxu1 %vm2854_vm0, %v2616_v61  ;;  %v12025_v33 = vld [vmem:[%s13936_s1] ss:$16 sps:$4 sm:$0xff]   ;;  %14074 = vst [vmem:[#allocation38_spill] sm:$0xff] %v12028_v4  ;;  %v12033_v42 = vld [vmem:[%s13936_s1 + $0x8] ss:$16 sps:$4 sm:$0xff]  }
 0x533   : > { %14069 = vst [vmem:[#allocation25_spill] sm:$0xff] %v11996_v5  ;;  %v7308_v51 = vsel %vm7267_vm1, %v11996_v5, -inf  ;;  %v12007_v8 = vadd.f32 %v4472_v23, %v4409_v32  ;;  %v2612_v32 = vpack.c.bf16 %v1648_v34, %v1644_v1  ;;  %v1638_v1 = vld [vmem:[%s9078_s25 + $0x2628] sm:$0xff] }
 0x534   : > { %v12014_v63 = vmax.f32 %v14071_v2, %v7308_v51  ;;  %v1634_v51 = vld [vmem:[%s9078_s25 + $0x2608] sm:$0xff]  ;;  %v1640_v2 = vld [vmem:[%s9078_s25 + $0x2638] sm:$0xff] }
 0x535   : > { %14070 = vst [vmem:[#allocation22_spill] sm:$0xff] %v12007_v8  ;;  %v12018_v61 = vsel %vm7273_vm2, %v12007_v8, -inf  ;;  %v2606_v23 = vpack.c.bf16 %v1638_v1, %v1634_v51  ;;  %v12060_v4 = vpop.permute.xlu0 %6406  ;;  %v1639_v51 = vld [vmem:[%s9078_s25 + $0x2630] sm:$0xff] }
 0x536   : > { %14072 = vst [vmem:[#allocation23_spill] sm:$0xff] %v12014_v63  ;;  %14073 = vst [vmem:[#allocation37_spill] sm:$0xff] %v12018_v61  ;;  %v12084_v1 = vld [vmem:[%s13936_s1 + $0x44] ss:$16 sps:$4 sm:$0xff]   ;;  %v12100_v61 = vadd.f32 %v11913_v22, %v11908_v27  ;;  %v12125_v22 = vadd.f32 %v11929_v25, %v11925_v19 }
 0x537   : > { %4733 = vmatmul.mubr.bf16.vlgmr.msra.gmra.mxu0 %v12025_v33  ;;  %14077 = vst [vmem:[#allocation41_spill] sm:$0xff] %v12084_v1  ;;  %v1631_v19 = vld [vmem:[%s9078_s25 + $0x25f0] sm:$0xff] }
 0x538   : > { %4796 = vmatmul.mubr.bf16.vlgmr.msra.gmra.mxu1 %v12033_v42  ;;  %4902 = vmatpush1.bf16.xpose.msra.mxu0 %v2613_v46  ;;  %v2609_v46 = vpack.c.bf16 %v1645_v37, %v1641_v49  ;;  %v12073_v49 = vld [vmem:[%s13936_s1 + $0x28] ss:$16 sps:$4 sm:$0xff]   ;;  %14079 = vst [vmem:[#allocation43_spill] sm:$0xff] %v12125_v22 }
 0x539   : > { %4965 = vmatpush1.bf16.xpose.msra.mxu1 %v2615_v12  ;;  %4903 = vmatprep.subr.bf16.mxu0 %v2610_v14  ;;  %v12054_v12 = vld [vmem:[%s13936_s1 + $0x2c] ss:$16 sps:$4 sm:$0xff]   ;;  %14076 = vst [vmem:[#allocation40_spill] sm:$0xff] %v12073_v49  ;;  %v1633_v37 = vld [vmem:[%s9078_s25 + $0x2600] sm:$0xff]  ;;  %v12102_v63 = vpop.permute.xlu0 %6958 }
 0x53a   : > { %8302 = vmatprep.subr.msk.bf16.mxu1 %vm2854_vm0, %v2612_v32  ;;  %4742 = vmatprep.mubr.bf16.mxu0 %v12044_v28  ;;  %v1636_v14 = vld [vmem:[%s9078_s25 + $0x2618] sm:$0xff]  ;;  %v2611_v32 = vpack.c.bf16 %v1647_v17, %v1643_v60  ;;  %v1637_v60 = vld [vmem:[%s9078_s25 + $0x2620] sm:$0xff]  ;;  %v1635_v17 = vld [vmem:[%s9078_s25 + $0x2610] sm:$0xff] }
 0x53b   : > { %v12049_v34 = vpop.xlane.xlu1 %7303  ;;  %8299 = vmatprep.mubr.msk.bf16.mxu1 %vm2854_vm0, %v12054_v12  ;;  %v2605_v26 = vpack.c.bf16 %v1637_v60, %v1633_v37  ;;  %v1627_v37 = vld [vmem:[%s9078_s25 + $0x25d0] sm:$0xff]  ;;  %v1618_v60 = vld [vmem:[%s9078_s25 + $0x2588] sm:$0xff] }
 0x53c   : > { %14075 = vst [vmem:[#allocation39_spill] sm:$0xff] %v12049_v34  ;;  %v2608_v34 = vpack.c.bf16 %v1640_v2, %v1636_v14  ;;  %v1626_v14 = vld [vmem:[%s9078_s25 + $0x25c8] sm:$0xff] }
 0x53d   : > { %v1630_v2 = vld [vmem:[%s9078_s25 + $0x25e8] sm:$0xff]  ;;  %v6807_v25 = vpop.permute.xlu0 %6806 }
 0x53f   : > { %v12062_v30 = vpop.permute.xlu1 %5574  ;;  %4743 = vmatmul.mubr.bf16.gmra.mxu0 %v12067_v39 }
 0x540   : > { %4904 = vmatpush1.bf16.xpose.msra.mxu0 %v2609_v46  ;;  %4806 = vmatmul.mubr.bf16.gmra.mxu1 %v12073_v49  ;;  %v2602_v49 = vpack.c.bf16 %v1630_v2, %v1626_v14  ;;  %v1620_v14 = vld [vmem:[%s9078_s25 + $0x2598] sm:$0xff] }
 0x541   : > { %4967 = vmatpush1.bf16.xpose.msra.mxu1 %v2611_v32  ;;  %4905 = vmatprep.subr.bf16.mxu0 %v2606_v23  ;;  %v12092_v23 = vld [vmem:[%s13936_s1 + $0x4c] ss:$16 sps:$4 sm:$0xff]  }
 0x542   : > { %8303 = vmatprep.subr.msk.bf16.mxu1 %vm2854_vm0, %v2608_v34  ;;  %4752 = vmatprep.mubr.bf16.mxu0 %v12084_v1  ;;  %14078 = vst [vmem:[#allocation42_spill] sm:$0xff] %v12092_v23  ;;  %v1628_v34 = vld [vmem:[%s9078_s25 + $0x25d8] sm:$0xff]  ;;  %v2607_v1 = vpack.c.bf16 %v1639_v51, %v1635_v17  ;;  %v1622_v17 = vld [vmem:[%s9078_s25 + $0x25a8] sm:$0xff] }
 0x543   : > { %v5792_v46 = vpop.permute.xlu1 %5791  ;;  %8300 = vmatprep.mubr.msk.bf16.mxu1 %vm2854_vm0, %v12092_v23  ;;  %v1632_v32 = vld [vmem:[%s9078_s25 + $0x25f8] sm:$0xff] }
 0x544   : > { %v5836_v5 = vsel %vm5608_vm3, %v11862_v3, %v5792_v46  ;;  %v5896_v8 = vadd.f32 %v5792_v46, %v11653_v29  ;;  %v2604_v27 = vpack.c.bf16 %v1632_v32, %v1628_v34  ;;  %v12119_v29 = vld [vmem:[%s13936_s1 + $0x40] ss:$16 sps:$4 sm:$0xff]   ;;  %v2603_v46 = vpack.c.bf16 %v1631_v19, %v1627_v37 }
 0x545   : > { %v5895_v23 = vadd.f32 %v5836_v5, %v11538_v21  ;;  %v5528_v21 = vrot.slane %v12100_v61, 4  ;;  %v5529_v5 = vrot.slane %v12109_v47, 4  ;;  %v6852_v34 = vsel %vm5608_vm3, %v11937_v58, %v6807_v25  ;;  %v1619_v37 = vld [vmem:[%s9078_s25 + $0x2590] sm:$0xff]  ;;  %v1614_v19 = vld [vmem:[%s9078_s25 + $0x2568] sm:$0xff] }
 0x546   : > { %5975 = vrot.lane.b32.xlu0 %v5896_v8, %s8864_s29  ;;  %v1629_v8 = vld [vmem:[%s9078_s25 + $0x25e0] sm:$0xff]  ;;  %v12163_v58 = vadd.f32 %v11939_v59, %v11935_v13  ;;  %v7004_v13 = vsel %vm6009_vm4, %v11920_v0, %v12102_v63  ;;  %v12186_v0 = vpop.f32.mrf.mxu0 }
 0x547   : > { %5973 = vrot.lane.b32.xlu1 %v5895_v23, %s8864_s29  ;;  %v12114_v3 = vpop.permute.xlu1 %6190  ;;  %4753 = vmatmul.mubr.bf16.gmra.mxu0 %v12119_v29  ;;  %v2601_v2 = vpack.c.bf16 %v1629_v8, %v1625_v9  ;;  %v1621_v8 = vld [vmem:[%s9078_s25 + $0x25a0] sm:$0xff] }
 0x548   : > { %4906 = vmatpush1.bf16.xpose.msra.mxu0 %v2605_v26  ;;  %4816 = vmatmul.mubr.bf16.gmra.mxu1 %v12130_v50  ;;  %v6452_v26 = vsel %vm5608_vm3, %v11816_v20, %v12060_v4  ;;  %v14080_v20 = vld [vmem:[#allocation21_spill] sm:$0xff] }
 0x549   : > { %4969 = vmatpush1.bf16.xpose.msra.mxu1 %v2607_v1  ;;  %4907 = vmatprep.subr.bf16.mxu0 %v2602_v49  ;;  %v1624_v1 = vld [vmem:[%s9078_s25 + $0x25b8] sm:$0xff]  ;;  %v5745_v49 = vrot.slane %v12125_v22, 4  ;;  %v6511_v23 = vadd.f32 %v6452_v26, %v14080_v20  ;;  %14081 = vst [vmem:[#allocation21_spill] sm:$0xff] %v12163_v58 }
 0x54a   : > { %5576 = vrot.lane.b32.xlu0 %v5528_v21, %s8863_s19  ;;  %8304 = vmatprep.subr.msk.bf16.mxu1 %vm2854_vm0, %v2604_v27  ;;  %v2598_v27 = vpack.c.bf16 %v1622_v17, %v1618_v60  ;;  %v6911_v21 = vadd.f32 %v6852_v34, %v11510_v45  ;;  %v1623_v45 = vld [vmem:[%s9078_s25 + $0x25b0] sm:$0xff]  ;;  %v1616_v26 = vld [vmem:[%s9078_s25 + $0x2578] sm:$0xff]  ;;  %v14082_v34 = vld [vmem:[#allocation24_spill] sm:$0xff] }
 0x54b   : > { %5578 = vrot.lane.b32.xlu1 %v5529_v5, %s8863_s19  ;;  %v6409_v51 = vpop.permute.xlu1 %6408  ;;  %4933 = vmatprep.mubr.bf16.mxu0 %v11882_v35  ;;  %v2600_v35 = vpack.c.bf16 %v1624_v1, %v1620_v14  ;;  %v1617_v5 = vld [vmem:[%s9078_s25 + $0x2580] sm:$0xff]  ;;  %v5746_v14 = vrot.slane %v12163_v58, 4  ;;  %v12184_v1 = vadd.f32 %v11949_v48, %v11944_v18  ;;  %v12195_v18 = vadd.f32 %v11960_v24, %v11958_v38  ;;  %v1615_v24 = vld [vmem:[%s9078_s25 + $0x2570] sm:$0xff] }
 0x54c   : > { %8317 = vmatprep.mubr.msk.bf16.mxu1 %vm2854_vm0, %v11890_v10  ;;  %v6453_v32 = vsel %vm5608_vm3, %v12060_v4, %v6409_v51  ;;  %v6513_v4 = vadd.f32 %v6409_v51, %v11558_v57  ;;  %v1612_v57 = vld [vmem:[%s9078_s25 + $0x2558] sm:$0xff]  ;;  %v7063_v60 = vadd.f32 %v7004_v13, %v6911_v21  ;;  %v2597_v51 = vpack.c.bf16 %v1621_v8, %v1617_v5  ;;  %v4413_v21 = vpop.f32.mrf.mxu0  ;;  %v1606_v5 = vld [vmem:[%s9078_s25 + $0x2528] sm:$0xff] }
 0x54d   : > { %v6512_v9 = vadd.f32 %v6453_v32, %v11672_v11  ;;  %v1610_v11 = vld [vmem:[%s9078_s25 + $0x2548] sm:$0xff]  ;;  %v1604_v8 = vld [vmem:[%s9078_s25 + $0x2518] sm:$0xff] }
 0x54e   : > { %5793 = vrot.lane.b32.xlu0 %v5745_v49, %s8863_s19  ;;  %v2599_v49 = vpack.c.bf16 %v1623_v45, %v1619_v37  ;;  %v1608_v37 = vld [vmem:[%s9078_s25 + $0x2538] sm:$0xff]  ;;  %v6147_v45 = vrot.slane %v12195_v18, 4  ;;  %v4417_v13 = vpop.f32.mrf.mxu0 }
 0x54f   : > { %6588 = vrot.lane.b32.xlu1 %v6511_v23, %s8864_s29  ;;  %v6961_v10 = vpop.permute.xlu1 %6960  ;;  %v6146_v23 = vrot.slane %v12184_v1, 4 }
 0x550   : > { %4908 = vmatpush1.bf16.xpose.msra.mxu0 %v2601_v2  ;;  %v2594_v2 = vpack.c.bf16 %v1614_v19, %v1610_v11  ;;  %v7005_v38 = vsel %vm6009_vm4, %v12102_v63, %v6961_v10  ;;  %v12215_v11 = vadd.f32 %v11970_v16, %v11965_v15  ;;  %v4419_v16 = vpop.f32.mrf.mxu0 }
 0x551   : > { %4971 = vmatpush1.bf16.xpose.msra.mxu1 %v2603_v46  ;;  %4909 = vmatprep.subr.bf16.mxu0 %v2598_v27  ;;  %v12188_v46 = vpop.f32.mrf.mxu1  ;;  %v1613_v27 = vld [vmem:[%s9078_s25 + $0x2560] sm:$0xff] }
 0x552   : > { %6590 = vrot.lane.b32.xlu0 %v6512_v9, %s8864_s29  ;;  %8305 = vmatprep.subr.msk.bf16.mxu1 %vm2854_vm0, %v2600_v35  ;;  %v1611_v35 = vld [vmem:[%s9078_s25 + $0x2550] sm:$0xff]  ;;  %v6362_v15 = vrot.slane %v12215_v11, 4 }
 0x553   : > { %6592 = vrot.lane.b32.xlu1 %v6513_v4, %s8864_s29  ;;  %v6809_v59 = vpop.permute.xlu1 %6808  ;;  %v4476_v9 = vpop.f32.mrf.mxu1  ;;  %v1602_v4 = vld [vmem:[%s9078_s25 + $0x2508] sm:$0xff] }
 0x554   : > { %v6913_v17 = vadd.f32 %v6809_v59, %v11682_v53  ;;  %v6853_v20 = vsel %vm5608_vm3, %v6807_v25, %v6809_v59  ;;  %v2596_v53 = vpack.c.bf16 %v1616_v26, %v1612_v57  ;;  %v1609_v25 = vld [vmem:[%s9078_s25 + $0x2540] sm:$0xff]  ;;  %v2595_v57 = vpack.c.bf16 %v1615_v24, %v1611_v35 }
 0x555   : > { %v6912_v32 = vadd.f32 %v6853_v20, %v14082_v34  ;;  %v2593_v19 = vpack.c.bf16 %v1613_v27, %v1609_v25  ;;  %v4480_v63 = vpop.f32.mrf.mxu1  ;;  %v2590_v26 = vpack.c.bf16 %v1606_v5, %v1602_v4  ;;  %v1598_v20 = vld [vmem:[%s9078_s25 + $0x24e8] sm:$0xff]  ;;  %v4371_v27 = vadd.f32 %v11994_v52, %v11992_v44 }
 0x556   : > { %7140 = vrot.lane.b32.xlu0 %v7063_v60, %s8865_s21  ;;  %v7065_v48 = vadd.f32 %v6961_v10, %v6913_v17  ;;  %v12219_v10 = vadd.f32 %v11979_v62, %v11977_v56  ;;  %v2592_v60 = vpack.c.bf16 %v1608_v37, %v1604_v8  ;;  %v1601_v17 = vld [vmem:[%s9078_s25 + $0x2500] sm:$0xff]  ;;  %v12246_v5 = vadd.f32 %v4476_v9, %v4413_v21  ;;  %v1716_v21 = vld [vmem:[%s9078_s25 + $0x2898] sm:$0xff] }
 0x557   : > { %5795 = vrot.lane.b32.xlu1 %v5746_v14, %s8863_s19  ;;  %v7064_v59 = vadd.f32 %v7005_v38, %v6912_v32  ;;  %v4482_v56 = vpop.f32.mrf.mxu1  ;;  %v1603_v14 = vld [vmem:[%s9078_s25 + $0x2510] sm:$0xff]  ;;  %v4421_v32 = vpop.f32.mrf.mxu0  ;;  %v6763_v52 = vrot.slane %v4371_v27, 4  ;;  %v1593_v8 = vld [vmem:[%s9078_s25 + $0x24c0] sm:$0xff]  ;;  %v1720_v9 = vld [vmem:[%s9078_s25 + $0x28b8] sm:$0xff] }
 0x558   : > { %4910 = vmatpush1.bf16.xpose.msra.mxu0 %v2597_v51  ;;  %v6363_v62 = vrot.slane %v12219_v10, 4  ;;  %v1605_v51 = vld [vmem:[%s9078_s25 + $0x2520] sm:$0xff] }
 0x559   : > { %4973 = vmatpush1.bf16.xpose.msra.mxu1 %v2599_v49  ;;  %4911 = vmatprep.subr.bf16.mxu0 %v2594_v2  ;;  %v1607_v49 = vld [vmem:[%s9078_s25 + $0x2530] sm:$0xff]  ;;  %v1594_v2 = vld [vmem:[%s9078_s25 + $0x24c8] sm:$0xff]  ;;  %v2589_v34 = vpack.c.bf16 %v1605_v51, %v1601_v17  ;;  %v4484_v25 = vpop.f32.mrf.mxu1  ;;  %v1597_v37 = vld [vmem:[%s9078_s25 + $0x24e0] sm:$0xff] }
 0x55a   : > { %7144 = vrot.lane.b32.xlu0 %v7065_v48, %s8865_s21  ;;  %8306 = vmatprep.subr.msk.bf16.mxu1 %vm2854_vm0, %v2596_v53  ;;  %v1596_v53 = vld [vmem:[%s9078_s25 + $0x24d8] sm:$0xff]  ;;  %v2591_v35 = vpack.c.bf16 %v1607_v49, %v1603_v14  ;;  %v2586_v38 = vpack.c.bf16 %v1598_v20, %v1594_v2  ;;  %v12270_v49 = vadd.f32 %v4484_v25, %v4421_v32  ;;  %v1719_v32 = vld [vmem:[%s9078_s25 + $0x28b0] sm:$0xff]  ;;  %v1706_v25 = vld [vmem:[%s9078_s25 + $0x2848] sm:$0xff] }
 0x55b   : > { %6194 = vrot.lane.b32.xlu1 %v6146_v23, %s8863_s19  ;;  %v1600_v48 = vld [vmem:[%s9078_s25 + $0x24f8] sm:$0xff]  ;;  %v4369_v23 = vadd.f32 %v11984_v36, %v11981_v7  ;;  %v12244_v7 = vadd.f32 %v12188_v46, %v12186_v0  ;;  %v4423_v36 = vpop.f32.mrf.mxu0  ;;  %v4486_v44 = vpop.f32.mrf.mxu1  ;;  %v1599_v0 = vld [vmem:[%s9078_s25 + $0x24f0] sm:$0xff]  ;;  %v1714_v46 = vld [vmem:[%s9078_s25 + $0x2888] sm:$0xff] }
 0x55c   : > { %v2588_v24 = vpack.c.bf16 %v1600_v48, %v1596_v53  ;;  %v1713_v53 = vld [vmem:[%s9078_s25 + $0x2880] sm:$0xff] }
 0x55d   : > { %v6762_v4 = vrot.slane %v4369_v23, 4  ;;  %v1717_v48 = vld [vmem:[%s9078_s25 + $0x28a0] sm:$0xff] }
 0x55e   : > { %6196 = vrot.lane.b32.xlu0 %v6147_v45, %s8863_s19  ;;  %v1595_v45 = vld [vmem:[%s9078_s25 + $0x24d0] sm:$0xff] }
 0x55f   : > { %7142 = vrot.lane.b32.xlu1 %v7064_v59, %s8865_s21  ;;  %v1718_v59 = vld [vmem:[%s9078_s25 + $0x28a8] sm:$0xff] }
 0x560   : > { %4912 = vmatpush1.bf16.xpose.msra.mxu0 %v2593_v19  ;;  %v12252_v19 = vadd.f32 %v4480_v63, %v4417_v13  ;;  %v5531_v13 = vrot.slane %v12246_v5, 4  ;;  %v2587_v63 = vpack.c.bf16 %v1599_v0, %v1595_v45  ;;  %v2646_v17 = vpack.c.bf16 %v1718_v59, %v1714_v46 }
 0x561   : > { %4975 = vmatpush1.bf16.xpose.msra.mxu1 %v2595_v57  ;;  %4913 = vmatprep.subr.bf16.mxu0 %v2590_v26  ;;  %v12259_v57 = vadd.f32 %v4482_v56, %v4419_v16  ;;  %v5530_v26 = vrot.slane %v12244_v7, 4  ;;  %v12267_v16 = vadd.f32 %v4486_v44, %v4423_v36  ;;  %v2648_v56 = vpack.c.bf16 %v1720_v9, %v1716_v21  ;;  %v1712_v36 = vld [vmem:[%s9078_s25 + $0x2878] sm:$0xff] }
 0x562   : > { %6410 = vrot.lane.b32.xlu0 %v6362_v15, %s8863_s19  ;;  %8307 = vmatprep.subr.msk.bf16.mxu1 %vm2854_vm0, %v2592_v60  ;;  %14083 = vst [vmem:[#allocation24_spill] sm:$0xff] %v12252_v19  ;;  %v2585_v60 = vpack.c.bf16 %v1597_v37, %v1593_v8  ;;  %v4427_v15 = vpop.f32.mrf.mxu0  ;;  %v5747_v51 = vrot.slane %v12252_v19, 4  ;;  %v2645_v44 = vpack.c.bf16 %v1717_v48, %v1713_v53 }
 0x563   : > { %6412 = vrot.lane.b32.xlu1 %v6363_v62, %s8863_s19  ;;  %14084 = vst [vmem:[#allocation44_spill] sm:$0xff] %v12259_v57  ;;  %v4490_v62 = vpop.f32.mrf.mxu1  ;;  %v5748_v14 = vrot.slane %v12259_v57, 4 }
 0x564   : > { %v4429_v2 = vpop.f32.mrf.mxu0 }
 0x565   : > { %v4492_v20 = vpop.f32.mrf.mxu1 }
 0x566   : > { %6962 = vrot.lane.b32.xlu0 %v4369_v23, %s8864_s29  ;;  %v1715_v23 = vld [vmem:[%s9078_s25 + $0x2890] sm:$0xff] }
 0x567   : > { %6964 = vrot.lane.b32.xlu1 %v4371_v27, %s8864_s29  ;;  %v12278_v27 = vadd.f32 %v4490_v62, %v4427_v15  ;;  %v4494_v8 = vpop.f32.mrf.mxu1  ;;  %v2647_v37 = vpack.c.bf16 %v1719_v32, %v1715_v23  ;;  %v1707_v15 = vld [vmem:[%s9078_s25 + $0x2850] sm:$0xff]  ;;  %v1697_v32 = vld [vmem:[%s9078_s25 + $0x2800] sm:$0xff] }
 0x568   : > { %4914 = vmatpush1.bf16.xpose.msra.mxu0 %v2589_v34  ;;  %v6149_v34 = vrot.slane %v12267_v16, 4 }
 0x569   : > { %4977 = vmatpush1.bf16.xpose.msra.mxu1 %v2591_v35  ;;  %4915 = vmatprep.subr.bf16.mxu0 %v2586_v38  ;;  %v1710_v35 = vld [vmem:[%s9078_s25 + $0x2868] sm:$0xff]  ;;  %v6148_v38 = vrot.slane %v12270_v49, 4  ;;  %v6364_v0 = vrot.slane %v12278_v27, 4  ;;  %v4496_v9 = vpop.f32.mrf.mxu1 }
 0x56a   : > { %6810 = vrot.lane.b32.xlu0 %v6762_v4, %s8863_s19  ;;  %8308 = vmatprep.subr.msk.bf16.mxu1 %vm2854_vm0, %v2588_v24  ;;  %v12286_v24 = vadd.f32 %v4492_v20, %v4429_v2  ;;  %v1708_v4 = vld [vmem:[%s9078_s25 + $0x2858] sm:$0xff]  ;;  %v2642_v45 = vpack.c.bf16 %v1710_v35, %v1706_v25  ;;  %v1701_v25 = vld [vmem:[%s9078_s25 + $0x2820] sm:$0xff]  ;;  %v1699_v35 = vld [vmem:[%s9078_s25 + $0x2810] sm:$0xff] }
 0x56b   : > { %6812 = vrot.lane.b32.xlu1 %v6763_v52, %s8863_s19  ;;  %v4431_v52 = vpop.f32.mrf.mxu0  ;;  %v2644_v46 = vpack.c.bf16 %v1712_v36, %v1708_v4  ;;  %v1690_v4 = vld [vmem:[%s9078_s25 + $0x27c8] sm:$0xff] }
 0x56c   : > { %v6365_v59 = vrot.slane %v12286_v24, 4  ;;  %v4495_v62 = vadd.f32 %v4494_v8, %v4431_v52  ;;  %v1694_v36 = vld [vmem:[%s9078_s25 + $0x27e8] sm:$0xff]  ;;  %v1696_v52 = vld [vmem:[%s9078_s25 + $0x27f8] sm:$0xff]  ;;  %v2637_v8 = vpack.c.bf16 %v1701_v25, %v1697_v32 }
 0x56d   : > { %v4433_v21 = vpop.f32.mrf.mxu0 }
 0x56e   : > { %5580 = vrot.lane.b32.xlu0 %v5530_v26, %s8863_s19  ;;  %v1705_v26 = vld [vmem:[%s9078_s25 + $0x2840] sm:$0xff]  ;;  %v6764_v48 = vrot.slane %v4495_v62, 4 }
 0x56f   : > { %5582 = vrot.lane.b32.xlu1 %v5531_v13, %s8863_s19  ;;  %v1711_v13 = vld [vmem:[%s9078_s25 + $0x2870] sm:$0xff] }
 0x570   : > { %4916 = vmatpush1.bf16.xpose.msra.mxu0 %v2585_v60  ;;  %v1709_v60 = vld [vmem:[%s9078_s25 + $0x2860] sm:$0xff]  ;;  %v2643_v20 = vpack.c.bf16 %v1711_v13, %v1707_v15  ;;  %v1684_v15 = vld [vmem:[%s9078_s25 + $0x2798] sm:$0xff] }
 0x571   : > { %4979 = vmatpush1.bf16.xpose.msra.mxu1 %v2587_v63  ;;  %4917 = vmatprep.subr.bf16.mxu0 %v2646_v17  ;;  %v1698_v63 = vld [vmem:[%s9078_s25 + $0x2808] sm:$0xff]  ;;  %v2641_v2 = vpack.c.bf16 %v1709_v60, %v1705_v26 }
 0x572   : > { %5797 = vrot.lane.b32.xlu0 %v5747_v51, %s8863_s19  ;;  %8309 = vmatprep.subr.msk.bf16.mxu1 %vm2854_vm0, %v2648_v56  ;;  %v1702_v17 = vld [vmem:[%s9078_s25 + $0x2828] sm:$0xff]  ;;  %v4497_v51 = vadd.f32 %v4496_v9, %v4433_v21  ;;  %v1700_v56 = vld [vmem:[%s9078_s25 + $0x2818] sm:$0xff]  ;;  %v1691_v21 = vld [vmem:[%s9078_s25 + $0x27d0] sm:$0xff] }
 0x573   : > { %5799 = vrot.lane.b32.xlu1 %v5748_v14, %s8863_s19  ;;  %v1704_v14 = vld [vmem:[%s9078_s25 + $0x2838] sm:$0xff]  ;;  %v2638_v53 = vpack.c.bf16 %v1702_v17, %v1698_v63  ;;  %v1695_v9 = vld [vmem:[%s9078_s25 + $0x27f0] sm:$0xff]  ;;  %v1682_v26 = vld [vmem:[%s9078_s25 + $0x2788] sm:$0xff] }
 0x574   : > { %v2640_v23 = vpack.c.bf16 %v1704_v14, %v1700_v56  ;;  %v1686_v60 = vld [vmem:[%s9078_s25 + $0x27a8] sm:$0xff]  ;;  %v2635_v63 = vpack.c.bf16 %v1695_v9, %v1691_v21  ;;  %v1681_v56 = vld [vmem:[%s9078_s25 + $0x2780] sm:$0xff] }
 0x575   : > { %v2630_v17 = vpack.c.bf16 %v1686_v60, %v1682_v26  ;;  %v1685_v14 = vld [vmem:[%s9078_s25 + $0x27a0] sm:$0xff] }
 0x576   : > { %6200 = vrot.lane.b32.xlu0 %v6149_v34, %s8863_s19  ;;  %v6765_v34 = vrot.slane %v4497_v51, 4  ;;  %v2629_v32 = vpack.c.bf16 %v1685_v14, %v1681_v56  ;;  %v1665_v26 = vld [vmem:[%s9078_s25 + $0x2700] sm:$0xff] }
 0x577   : > { %6198 = vrot.lane.b32.xlu1 %v6148_v38, %s8863_s19  ;;  %v1703_v38 = vld [vmem:[%s9078_s25 + $0x2830] sm:$0xff]  ;;  %v1669_v60 = vld [vmem:[%s9078_s25 + $0x2720] sm:$0xff] }
 0x578   : > { %4918 = vmatpush2.bf16.xpose.msra.mxu0 %v2645_v44  ;;  %v1692_v44 = vld [vmem:[%s9078_s25 + $0x27d8] sm:$0xff]  ;;  %v2621_v56 = vpack.c.bf16 %v1669_v60, %v1665_v26  ;;  %v1777_v26 = vld [vmem:[%s9078_s25 + $0x2a80] sm:$0xff] }
 0x579   : > { %4981 = vmatpush2.bf16.xpose.msra.mxu1 %v2647_v37  ;;  %4919 = vmatprep.subr.bf16.mxu0 %v2642_v45  ;;  %v2639_v37 = vpack.c.bf16 %v1703_v38, %v1699_v35  ;;  %v2634_v45 = vpack.c.bf16 %v1694_v36, %v1690_v4  ;;  %v1673_v4 = vld [vmem:[%s9078_s25 + $0x2740] sm:$0xff] }
 0x57a   : > { %6414 = vrot.lane.b32.xlu0 %v6364_v0, %s8863_s19  ;;  %8310 = vmatprep.subr.msk.bf16.mxu1 %vm2854_vm0, %v2644_v46  ;;  %v2636_v0 = vpack.c.bf16 %v1696_v52, %v1692_v44  ;;  %v1689_v46 = vld [vmem:[%s9078_s25 + $0x27c0] sm:$0xff]  ;;  %v1675_v44 = vld [vmem:[%s9078_s25 + $0x2750] sm:$0xff] }
 0x57b   : > { %6416 = vrot.lane.b32.xlu1 %v6365_v59, %s8863_s19  ;;  %v1693_v59 = vld [vmem:[%s9078_s25 + $0x27e0] sm:$0xff]  ;;  %v1679_v52 = vld [vmem:[%s9078_s25 + $0x2770] sm:$0xff] }
 0x57c   : > { %v2633_v13 = vpack.c.bf16 %v1693_v59, %v1689_v46  ;;  %v1677_v36 = vld [vmem:[%s9078_s25 + $0x2760] sm:$0xff]  ;;  %v2627_v59 = vpack.c.bf16 %v1679_v52, %v1675_v44 }
 0x57d   : > { %v2625_v46 = vpack.c.bf16 %v1677_v36, %v1673_v4  ;;  %v1780_v4 = vld [vmem:[%s9078_s25 + $0x2a98] sm:$0xff]  ;;  %v1781_v60 = vld [vmem:[%s9078_s25 + $0x2aa0] sm:$0xff] }
 0x57e   : > { %6966 = vrot.lane.b32.xlu0 %v4495_v62, %s8864_s29  ;;  %v1688_v62 = vld [vmem:[%s9078_s25 + $0x27b8] sm:$0xff] }
 0x57f   : > { %6968 = vrot.lane.b32.xlu1 %v4497_v51, %s8864_s29  ;;  %v2632_v51 = vpack.c.bf16 %v1688_v62, %v1684_v15  ;;  %v1667_v15 = vld [vmem:[%s9078_s25 + $0x2710] sm:$0xff]  ;;  %v1784_v36 = vld [vmem:[%s9078_s25 + $0x2ab8] sm:$0xff] }
 0x580   : > { %4920 = vmatpush2.bf16.xpose.msra.mxu0 %v2641_v2  ;;  %v1683_v2 = vld [vmem:[%s9078_s25 + $0x2790] sm:$0xff] }
 0x581   : > { %4983 = vmatpush2.bf16.xpose.msra.mxu1 %v2643_v20  ;;  %4921 = vmatprep.subr.bf16.mxu0 %v2638_v53  ;;  %v1687_v20 = vld [vmem:[%s9078_s25 + $0x27b0] sm:$0xff]  ;;  %v1674_v53 = vld [vmem:[%s9078_s25 + $0x2748] sm:$0xff] }
 0x582   : > { %6814 = vrot.lane.b32.xlu0 %v6764_v48, %s8863_s19  ;;  %8311 = vmatprep.subr.msk.bf16.mxu1 %vm2854_vm0, %v2640_v23  ;;  %v1678_v48 = vld [vmem:[%s9078_s25 + $0x2768] sm:$0xff]  ;;  %v1676_v23 = vld [vmem:[%s9078_s25 + $0x2758] sm:$0xff]  ;;  %v2631_v25 = vpack.c.bf16 %v1687_v20, %v1683_v2  ;;  %v1671_v62 = vld [vmem:[%s9078_s25 + $0x2730] sm:$0xff] }
 0x583   : > { %6816 = vrot.lane.b32.xlu1 %v6765_v34, %s8863_s19  ;;  %v1680_v34 = vld [vmem:[%s9078_s25 + $0x2778] sm:$0xff]  ;;  %v2626_v35 = vpack.c.bf16 %v1678_v48, %v1674_v53  ;;  %v2623_v14 = vpack.c.bf16 %v1671_v62, %v1667_v15  ;;  %v12354_v53 = vpop.xlane.xlu0 %7394  ;;  %v1657_v48 = vld [vmem:[%s9078_s25 + $0x26c0] sm:$0xff]  ;;  %v1779_v15 = vld [vmem:[%s9078_s25 + $0x2a90] sm:$0xff] }
 0x584   : > { %v2628_v38 = vpack.c.bf16 %v1680_v34, %v1676_v23  ;;  %14085 = vst [vmem:[#allocation45_spill] sm:$0xff] %v12354_v53  ;;  %v1661_v23 = vld [vmem:[%s9078_s25 + $0x26e0] sm:$0xff]  ;;  %v1659_v34 = vld [vmem:[%s9078_s25 + $0x26d0] sm:$0xff] }
 0x585   : > { %v2617_v44 = vpack.c.bf16 %v1661_v23, %v1657_v48  ;;  %v5618_v48 = vsel %vm5608_vm3, %v11713_v31, %v11742_v6  ;;  %v2677_v23 = vpack.c.bf16 %v1781_v60, %v1777_v26  ;;  %v1762_v60 = vld [vmem:[%s9078_s25 + $0x2a08] sm:$0xff] }
 0x587   : > { %v12365_v52 = vpop.permute.xlu0 %6586 }
 0x588   : > { %4922 = vmatpush2.bf16.xpose.msra.mxu0 %v2637_v8  ;;  %v1666_v8 = vld [vmem:[%s9078_s25 + $0x2708] sm:$0xff] }
 0x589   : > { %4985 = vmatpush2.bf16.xpose.msra.mxu1 %v2639_v37  ;;  %4923 = vmatprep.subr.bf16.mxu0 %v2634_v45  ;;  %v1670_v37 = vld [vmem:[%s9078_s25 + $0x2728] sm:$0xff]  ;;  %v1668_v45 = vld [vmem:[%s9078_s25 + $0x2718] sm:$0xff] }
 0x58a   : > { %8312 = vmatprep.subr.msk.bf16.mxu1 %vm2854_vm0, %v2636_v0  ;;  %v1672_v0 = vld [vmem:[%s9078_s25 + $0x2738] sm:$0xff]  ;;  %v2622_v21 = vpack.c.bf16 %v1670_v37, %v1666_v8 }
 0x58b   : > { %v2624_v9 = vpack.c.bf16 %v1672_v0, %v1668_v45  ;;  %v2680_v45 = vpack.c.bf16 %v1784_v36, %v1780_v4  ;;  %v5620_v36 = vsel %vm5608_vm3, %v11842_v41, %v12062_v30 }
 0x590   : > { %4924 = vmatpush2.bf16.xpose.msra.mxu0 %v2633_v13  ;;  %v1658_v13 = vld [vmem:[%s9078_s25 + $0x26c8] sm:$0xff] }
 0x591   : > { %4987 = vmatpush2.bf16.xpose.msra.mxu1 %v2635_v63  ;;  %4925 = vmatprep.subr.bf16.mxu0 %v2630_v17  ;;  %v1662_v63 = vld [vmem:[%s9078_s25 + $0x26e8] sm:$0xff]  ;;  %v1660_v17 = vld [vmem:[%s9078_s25 + $0x26d8] sm:$0xff] }
 0x592   : > { %8313 = vmatprep.subr.msk.bf16.mxu1 %vm2854_vm0, %v2632_v51  ;;  %v1664_v51 = vld [vmem:[%s9078_s25 + $0x26f8] sm:$0xff]  ;;  %v2618_v2 = vpack.c.bf16 %v1662_v63, %v1658_v13  ;;  %v1783_v13 = vld [vmem:[%s9078_s25 + $0x2ab0] sm:$0xff]  ;;  %v1770_v63 = vld [vmem:[%s9078_s25 + $0x2a48] sm:$0xff] }
 0x593   : > { %v2620_v20 = vpack.c.bf16 %v1664_v51, %v1660_v17  ;;  %v1774_v17 = vld [vmem:[%s9078_s25 + $0x2a68] sm:$0xff]  ;;  %v5972_v51 = vpop.permute.xlu0 %5971 }
 0x594   : > { %v2674_v4 = vpack.c.bf16 %v1774_v17, %v1770_v63  ;;  %v1768_v63 = vld [vmem:[%s9078_s25 + $0x2a38] sm:$0xff] }
 0x598   : > { %4926 = vmatpush2.bf16.xpose.msra.mxu0 %v2629_v32  ;;  %v1663_v32 = vld [vmem:[%s9078_s25 + $0x26f0] sm:$0xff] }
 0x599   : > { %4989 = vmatpush2.bf16.xpose.msra.mxu1 %v2631_v25  ;;  %4927 = vmatprep.subr.bf16.mxu0 %v2626_v35  ;;  %v1778_v25 = vld [vmem:[%s9078_s25 + $0x2a88] sm:$0xff]  ;;  %v2619_v8 = vpack.c.bf16 %v1663_v32, %v1659_v34  ;;  %v5619_v34 = vsel %vm5608_vm3, %v11742_v6, %v11842_v41  ;;  %v1769_v41 = vld [vmem:[%s9078_s25 + $0x2a40] sm:$0xff] }
 0x59a   : > { %8314 = vmatprep.subr.msk.bf16.mxu1 %vm2854_vm0, %v2628_v38  ;;  %v1782_v35 = vld [vmem:[%s9078_s25 + $0x2aa8] sm:$0xff]  ;;  %v5970_v38 = vpop.permute.xlu1 %5969 }
 0x59b   : > { %v2678_v37 = vpack.c.bf16 %v1782_v35, %v1778_v25  ;;  %v2679_v35 = vpack.c.bf16 %v1783_v13, %v1779_v15  ;;  %v6019_v31 = vsel %vm6009_vm4, %v5970_v38, %v5972_v51  ;;  %v5679_v38 = vadd.f32 %v5620_v36, %v11608_v40  ;;  %v1766_v15 = vld [vmem:[%s9078_s25 + $0x2a28] sm:$0xff]  ;;  %v1764_v13 = vld [vmem:[%s9078_s25 + $0x2a18] sm:$0xff] }
 0x59c   : > { %v14087_v36 = vld [vmem:[#allocation40_spill] sm:$0xff] }
 0x59e   : > { %v12367_v0 = vpop.xlane.xlu1 %7494 }
 0x59f   : > { %14086 = vst [vmem:[#allocation46_spill] sm:$0xff] %v12367_v0 }
 0x5a0   : > { %4928 = vmatpush2.bf16.xpose.msra.mxu0 %v2625_v46 }
 0x5a1   : > { %4991 = vmatpush2.bf16.xpose.msra.mxu1 %v2627_v59  ;;  %4929 = vmatprep.subr.bf16.mxu0 %v2622_v21 }
 0x5a2   : > { %8315 = vmatprep.subr.msk.bf16.mxu1 %vm2854_vm0, %v2624_v9  ;;  %v12392_v32 = vpop.permute.xlu1 %7138 }
 0x5a8   : > { %4930 = vmatpush2.bf16.xpose.msra.mxu0 %v2621_v56 }
 0x5a9   : > { %4993 = vmatpush2.bf16.xpose.msra.mxu1 %v2623_v14  ;;  %4931 = vmatprep.subr.bf16.mxu0 %v2618_v2  ;;  %v1772_v2 = vld [vmem:[%s9078_s25 + $0x2a58] sm:$0xff] }
 0x5aa   : > { %8316 = vmatprep.subr.msk.bf16.mxu1 %vm2854_vm0, %v2620_v20  ;;  %v1776_v20 = vld [vmem:[%s9078_s25 + $0x2a78] sm:$0xff] }
 0x5ab   : > { %v2676_v6 = vpack.c.bf16 %v1776_v20, %v1772_v2 }
 0x5af   : > { %v4608_v46 = vpop.f32.mrf.mxu0 }
 0x5b0   : > { %v4671_v59 = vpop.f32.mrf.mxu1  ;;  %4932 = vmatpush2.bf16.xpose.msra.mxu0 %v2617_v44 }
 0x5b1   : > { %v12369_v21 = vadd.f32 %v4671_v59, %v4608_v46  ;;  %4995 = vmatpush2.bf16.xpose.msra.mxu1 %v2619_v8  ;;  %v4610_v9 = vpop.f32.mrf.mxu0  ;;  %5027 = vmatprep.subr.bf16.mxu0 %v2678_v37  ;;  %v5677_v8 = vadd.f32 %v5618_v48, %v11121_v43  ;;  %v1773_v43 = vld [vmem:[%s9078_s25 + $0x2a60] sm:$0xff] }
 0x5b2   : > { %v4673_v62 = vpop.f32.mrf.mxu1  ;;  %8320 = vmatprep.subr.msk.bf16.mxu1 %vm2854_vm0, %v2680_v45  ;;  %v5678_v45 = vadd.f32 %v5619_v34, %v11130_v54  ;;  %v5680_v54 = vadd.f32 %v12062_v30, %v11618_v55  ;;  %v2670_v55 = vpack.c.bf16 %v1766_v15, %v1762_v60  ;;  %v2672_v34 = vpack.c.bf16 %v1768_v63, %v1764_v13  ;;  %v1753_v63 = vld [vmem:[%s9078_s25 + $0x29c0] sm:$0xff] }
 0x5b3   : > { %v12380_v56 = vsel %vm7267_vm1, %v12369_v21, -inf  ;;  %v12382_v14 = vadd.f32 %v4673_v62, %v4610_v9  ;;  %v6078_v46 = vadd.f32 %v6019_v31, %v5677_v8  ;;  %v1771_v9 = vld [vmem:[%s9078_s25 + $0x2a50] sm:$0xff]  ;;  %v1761_v8 = vld [vmem:[%s9078_s25 + $0x2a00] sm:$0xff] }
 0x5b5   : > { %v12396_v25 = vsel %vm7267_vm1, %v12382_v14, -inf  ;;  %v7396_v20 = vsel %vm7367_vm5, %v6078_v46, -inf  ;;  %v1758_v46 = vld [vmem:[%s9078_s25 + $0x29e8] sm:$0xff] }
 0x5b7   : > { %4934 = vmatmul.mubr.bf16.vlgmr.msra.gmra.mxu0 %v12025_v33  ;;  %v1775_v33 = vld [vmem:[%s9078_s25 + $0x2a70] sm:$0xff] }
 0x5b8   : > { %4997 = vmatmul.mubr.bf16.vlgmr.msra.gmra.mxu1 %v12033_v42  ;;  %v5976_v37 = vpop.permute.xlu0 %5975  ;;  %5028 = vmatpush1.bf16.xpose.msra.mxu0 %v2677_v23  ;;  %v2675_v2 = vpack.c.bf16 %v1775_v33, %v1771_v9  ;;  %v1760_v9 = vld [vmem:[%s9078_s25 + $0x29f8] sm:$0xff] }
 0x5b9   : > { %5091 = vmatpush1.bf16.xpose.msra.mxu1 %v2679_v35  ;;  %v5974_v59 = vpop.permute.xlu1 %5973  ;;  %5029 = vmatprep.subr.bf16.mxu0 %v2674_v4  ;;  %v6081_v48 = vadd.f32 %v5976_v37, %v5680_v54  ;;  %v14089_v33 = vld [vmem:[#allocation42_spill] sm:$0xff] }
 0x5ba   : > { %v6020_v42 = vsel %vm6009_vm4, %v5972_v51, %v5974_v59  ;;  %v6021_v26 = vsel %vm6009_vm4, %v5974_v59, %v5976_v37  ;;  %8321 = vmatprep.subr.msk.bf16.mxu1 %vm2854_vm0, %v2676_v6  ;;  %4943 = vmatprep.mubr.bf16.mxu0 %v12044_v28  ;;  %v2673_v51 = vpack.c.bf16 %v1773_v43, %v1769_v41  ;;  %v1765_v37 = vld [vmem:[%s9078_s25 + $0x2a20] sm:$0xff]  ;;  %v1763_v41 = vld [vmem:[%s9078_s25 + $0x2a10] sm:$0xff]  ;;  %v1756_v43 = vld [vmem:[%s9078_s25 + $0x29d8] sm:$0xff] }
 0x5bb   : > { %v6079_v40 = vadd.f32 %v6020_v42, %v5678_v45  ;;  %v6080_v62 = vadd.f32 %v6021_v26, %v5679_v38  ;;  %8318 = vmatprep.mubr.msk.bf16.mxu1 %vm2854_vm0, %v12054_v12  ;;  %v7401_v6 = vsel %vm7373_vm6, %v6081_v48, -inf  ;;  %v1754_v38 = vld [vmem:[%s9078_s25 + $0x29c8] sm:$0xff]  ;;  %v2669_v26 = vpack.c.bf16 %v1765_v37, %v1761_v8 }
 0x5bc   : > { %v12425_v17 = vpop.permute.xlu0 %5576  ;;  %v14088_v59 = vld [vmem:[#allocation41_spill] sm:$0xff]  ;;  %v2666_v54 = vpack.c.bf16 %v1758_v46, %v1754_v38 }
 0x5bd   : > { %v7397_v28 = vsel %vm7367_vm5, %v6079_v40, -inf  ;;  %v12429_v23 = vpop.permute.xlu1 %5578  ;;  %v7399_v12 = vsel %vm7367_vm5, %v6080_v62, -inf  ;;  %v2668_v40 = vpack.c.bf16 %v1760_v9, %v1756_v43  ;;  %v1746_v48 = vld [vmem:[%s9078_s25 + $0x2988] sm:$0xff]  ;;  %v1747_v38 = vld [vmem:[%s9078_s25 + $0x2990] sm:$0xff] }
 0x5be   : > { %v7398_v30 = vmax.f32 %v7396_v20, %v7397_v28  ;;  %v1759_v20 = vld [vmem:[%s9078_s25 + $0x29f0] sm:$0xff]  ;;  %v1750_v28 = vld [vmem:[%s9078_s25 + $0x29a8] sm:$0xff] }
 0x5bf   : > { %4944 = vmatmul.mubr.bf16.gmra.mxu0 %v12067_v39  ;;  %v1767_v39 = vld [vmem:[%s9078_s25 + $0x2a30] sm:$0xff]  ;;  %v1738_v43 = vld [vmem:[%s9078_s25 + $0x2948] sm:$0xff] }
 0x5c0   : > { %v12433_v35 = vpop.permute.xlu0 %5793  ;;  %5030 = vmatpush1.bf16.xpose.msra.mxu0 %v2673_v51  ;;  %v7400_v4 = vmax.f32 %v7398_v30, %v7399_v12  ;;  %5007 = vmatmul.mubr.bf16.gmra.mxu1 %v14087_v36  ;;  %v2671_v15 = vpack.c.bf16 %v1767_v39, %v1763_v41  ;;  %v1757_v51 = vld [vmem:[%s9078_s25 + $0x29e0] sm:$0xff]  ;;  %v12479_v30 = vld [vmem:[%s13936_s1 + $0xc] ss:$16 sps:$4 sm:$0xff]   ;;  %v1751_v46 = vld [vmem:[%s9078_s25 + $0x29b0] sm:$0xff] }
 0x5c1   : > { %5093 = vmatpush1.bf16.xpose.msra.mxu1 %v2675_v2  ;;  %v12436_v31 = vpop.permute.xlu1 %6588  ;;  %5031 = vmatprep.subr.bf16.mxu0 %v2670_v55  ;;  %v1755_v2 = vld [vmem:[%s9078_s25 + $0x29d0] sm:$0xff]  ;;  %v1752_v55 = vld [vmem:[%s9078_s25 + $0x29b8] sm:$0xff]  ;;  %v2665_v12 = vpack.c.bf16 %v1757_v51, %v1753_v63  ;;  %v1749_v39 = vld [vmem:[%s9078_s25 + $0x29a0] sm:$0xff] }
 0x5c2   : > { %v7402_v45 = vmax.f32 %v7400_v4, %v7401_v6  ;;  %8322 = vmatprep.subr.msk.bf16.mxu1 %vm2854_vm0, %v2672_v34  ;;  %4953 = vmatprep.mubr.bf16.mxu0 %v14088_v59  ;;  %v2667_v36 = vpack.c.bf16 %v1759_v20, %v1755_v2  ;;  %v2662_v6 = vpack.c.bf16 %v1750_v28, %v1746_v48  ;;  %v12496_v59 = vpop.f32.mrf.mxu0  ;;  %v1742_v9 = vld [vmem:[%s9078_s25 + $0x2968] sm:$0xff] }
 0x5c3   : > { %8319 = vmatprep.mubr.msk.bf16.mxu1 %vm2854_vm0, %v14089_v33  ;;  %v12500_v33 = vpop.f32.mrf.mxu1  ;;  %v2663_v2 = vpack.c.bf16 %v1751_v46, %v1747_v38  ;;  %v2658_v48 = vpack.c.bf16 %v1742_v9, %v1738_v43  ;;  %v1743_v38 = vld [vmem:[%s9078_s25 + $0x2970] sm:$0xff]  ;;  %v1734_v43 = vld [vmem:[%s9078_s25 + $0x2928] sm:$0xff]  ;;  %v1732_v9 = vld [vmem:[%s9078_s25 + $0x2918] sm:$0xff] }
 0x5c4   : > { %v12451_v42 = vpop.permute.xlu0 %6590  ;;  %7403 = vmax.xlane.f32.xlu0 %v7402_v45  ;;  %v1745_v45 = vld [vmem:[%s9078_s25 + $0x2980] sm:$0xff]  ;;  %v12511_v28 = vpop.f32.mrf.mxu0  ;;  %v12569_v22 = vadd.f32 %v12500_v33, %v12496_v59 }
 0x5c5   : > { %v12453_v60 = vpop.permute.xlu1 %6592  ;;  %v1721_v59 = vld [vmem:[%s9078_s25 + $0x28c0] sm:$0xff] }
 0x5c6   : > { %v1725_v33 = vld [vmem:[%s9078_s25 + $0x28e0] sm:$0xff] }
 0x5c7   : > { %4954 = vmatmul.mubr.bf16.gmra.mxu0 %v12119_v29  ;;  %v12471_v29 = vld [vmem:[%s13936_s1 + $0x4] ss:$16 sps:$4 sm:$0xff]  }
 0x5c8   : > { %v12456_v62 = vpop.permute.xlu0 %7140  ;;  %5032 = vmatpush1.bf16.xpose.msra.mxu0 %v2669_v26  ;;  %5017 = vmatmul.mubr.bf16.gmra.mxu1 %v12130_v50  ;;  %v1748_v50 = vld [vmem:[%s9078_s25 + $0x2998] sm:$0xff] }
 0x5c9   : > { %5095 = vmatpush1.bf16.xpose.msra.mxu1 %v2671_v15  ;;  %v12459_v13 = vpop.permute.xlu1 %5795  ;;  %5033 = vmatprep.subr.bf16.mxu0 %v2666_v54  ;;  %v2664_v8 = vpack.c.bf16 %v1752_v55, %v1748_v50  ;;  %v2661_v15 = vpack.c.bf16 %v1749_v39, %v1745_v45  ;;  %v1740_v54 = vld [vmem:[%s9078_s25 + $0x2958] sm:$0xff]  ;;  %v1741_v45 = vld [vmem:[%s9078_s25 + $0x2960] sm:$0xff]  ;;  %v1739_v39 = vld [vmem:[%s9078_s25 + $0x2950] sm:$0xff] }
 0x5ca   : > { %8323 = vmatprep.subr.msk.bf16.mxu1 %vm2854_vm0, %v2668_v40  ;;  %5059 = vmatprep.mubr.bf16.mxu0 %v12471_v29  ;;  %v1744_v40 = vld [vmem:[%s9078_s25 + $0x2978] sm:$0xff]  ;;  %v5837_v63 = vsel %vm5608_vm3, %v12433_v35, %v12459_v13 }
 0x5cb   : > { %8329 = vmatprep.mubr.msk.bf16.mxu1 %vm2854_vm0, %v12479_v30  ;;  %v2660_v55 = vpack.c.bf16 %v1744_v40, %v1740_v54  ;;  %v5897_v35 = vadd.f32 %v5837_v63, %v12100_v61  ;;  %v1730_v61 = vld [vmem:[%s9078_s25 + $0x2908] sm:$0xff]  ;;  %v2659_v63 = vpack.c.bf16 %v1743_v38, %v1739_v39 }
 0x5cc   : > { %v12483_v34 = vpop.permute.xlu0 %7144 }
 0x5cd   : > { %v12485_v4 = vpop.permute.xlu1 %6194 }
 0x5ce   : > { %14090 = vst [vmem:[#allocation40_spill] sm:$0xff] %v12485_v4 }
 0x5d0   : > { %v12487_v37 = vpop.permute.xlu0 %6196  ;;  %5034 = vmatpush1.bf16.xpose.msra.mxu0 %v2665_v12  ;;  %v12514_v12 = vpop.f32.mrf.mxu1 }
 0x5d1   : > { %14091 = vst [vmem:[#allocation41_spill] sm:$0xff] %v12487_v37  ;;  %5097 = vmatpush1.bf16.xpose.msra.mxu1 %v2667_v36  ;;  %v12489_v41 = vpop.permute.xlu1 %7142  ;;  %5035 = vmatprep.subr.bf16.mxu0 %v2662_v6 }
 0x5d2   : > { %8324 = vmatprep.subr.msk.bf16.mxu1 %vm2854_vm0, %v2664_v8  ;;  %v1737_v8 = vld [vmem:[%s9078_s25 + $0x2940] sm:$0xff]  ;;  %v12527_v46 = vpop.f32.mrf.mxu1 }
 0x5d3   : > { %v2657_v54 = vpack.c.bf16 %v1741_v45, %v1737_v8 }
 0x5d4   : > { %v6411_v26 = vpop.permute.xlu0 %6410 }
 0x5d5   : > { %v12507_v51 = vpop.permute.xlu1 %6412 }
 0x5d6   : > { %v6454_v20 = vsel %vm5608_vm3, %v6411_v26, %v12507_v51  ;;  %v1736_v26 = vld [vmem:[%s9078_s25 + $0x2938] sm:$0xff] }
 0x5d7   : > { %v6514_v50 = vadd.f32 %v6454_v20, %v12184_v1  ;;  %v12523_v1 = vpop.f32.mrf.mxu0  ;;  %v2654_v20 = vpack.c.bf16 %v1734_v43, %v1730_v61  ;;  %v1729_v43 = vld [vmem:[%s9078_s25 + $0x2900] sm:$0xff] }
 0x5d8   : > { %v6963_v36 = vpop.permute.xlu0 %6962  ;;  %5036 = vmatpush1.bf16.xpose.msra.mxu0 %v2661_v15 }
 0x5d9   : > { %5099 = vmatpush1.bf16.xpose.msra.mxu1 %v2663_v2  ;;  %6594 = vrot.lane.b32.xlu1 %v6514_v50, %s8864_s29  ;;  %v12518_v6 = vpop.permute.xlu1 %6964  ;;  %v12536_v2 = vpop.f32.mrf.mxu0 }
 0x5da   : > { %5977 = vrot.lane.b32.xlu0 %v5897_v35, %s8864_s29  ;;  %5037 = vmatprep.subr.bf16.mxu0 %v2658_v48  ;;  %v12540_v50 = vpop.f32.mrf.mxu1  ;;  %v7006_v8 = vsel %vm6009_vm4, %v6963_v36, %v12518_v6  ;;  %v1735_v36 = vld [vmem:[%s9078_s25 + $0x2930] sm:$0xff] }
 0x5db   : > { %8325 = vmatprep.subr.msk.bf16.mxu1 %vm2854_vm0, %v2660_v55  ;;  %v2656_v55 = vpack.c.bf16 %v1736_v26, %v1732_v9  ;;  %v12549_v61 = vpop.f32.mrf.mxu0  ;;  %v1733_v9 = vld [vmem:[%s9078_s25 + $0x2920] sm:$0xff] }
 0x5dc   : > { %v6811_v15 = vpop.permute.xlu0 %6810  ;;  %v12553_v26 = vpop.f32.mrf.mxu1 }
 0x5dd   : > { %v12534_v40 = vpop.permute.xlu1 %6812  ;;  %v4624_v53 = vpop.f32.mrf.mxu0 }
 0x5de   : > { %v6854_v48 = vsel %vm5608_vm3, %v6811_v15, %v12534_v40  ;;  %v1722_v15 = vld [vmem:[%s9078_s25 + $0x28c8] sm:$0xff]  ;;  %v4687_v19 = vpop.f32.mrf.mxu1 }
 0x5df   : > { %v6914_v35 = vadd.f32 %v6854_v48, %v12215_v11  ;;  %v1731_v11 = vld [vmem:[%s9078_s25 + $0x2910] sm:$0xff]  ;;  %v1724_v48 = vld [vmem:[%s9078_s25 + $0x28d8] sm:$0xff] }
 0x5e0   : > { %v12545_v45 = vpop.permute.xlu0 %5580  ;;  %5038 = vmatpush1.bf16.xpose.msra.mxu0 %v2657_v54  ;;  %v1726_v54 = vld [vmem:[%s9078_s25 + $0x28e8] sm:$0xff]  ;;  %v2655_v0 = vpack.c.bf16 %v1735_v36, %v1731_v11  ;;  %v1727_v11 = vld [vmem:[%s9078_s25 + $0x28f0] sm:$0xff]  ;;  %v5532_v36 = vrot.slane %v12569_v22, 4 }
 0x5e1   : > { %v7066_v39 = vadd.f32 %v7006_v8, %v6914_v35  ;;  %5101 = vmatpush1.bf16.xpose.msra.mxu1 %v2659_v63  ;;  %v12547_v38 = vpop.permute.xlu1 %5582  ;;  %5039 = vmatprep.subr.bf16.mxu0 %v2654_v20  ;;  %v1728_v35 = vld [vmem:[%s9078_s25 + $0x28f8] sm:$0xff]  ;;  %v2653_v8 = vpack.c.bf16 %v1733_v9, %v1729_v43  ;;  %v2650_v58 = vpack.c.bf16 %v1726_v54, %v1722_v15  ;;  %v12587_v9 = vpop.f32.mrf.mxu1  ;;  %v1786_v15 = vld [vmem:[%s9078_s25 + $0x2ac8] sm:$0xff] }
 0x5e2   : > { %8326 = vmatprep.subr.msk.bf16.mxu1 %vm2854_vm0, %v2656_v55  ;;  %v1788_v54 = vld [vmem:[%s9078_s25 + $0x2ad8] sm:$0xff] }
 0x5e3   : > { %7146 = vrot.lane.b32.xlu0 %v7066_v39, %s8865_s21  ;;  %v2652_v39 = vpack.c.bf16 %v1728_v35, %v1724_v48  ;;  %v2649_v35 = vpack.c.bf16 %v1725_v33, %v1721_v59  ;;  %v1785_v33 = vld [vmem:[%s9078_s25 + $0x2ac0] sm:$0xff] }
 0x5e4   : > { %v5798_v63 = vpop.permute.xlu0 %5797 }
 0x5e5   : > { %v5838_v44 = vsel %vm5608_vm3, %v12459_v13, %v5798_v63  ;;  %v5800_v20 = vpop.permute.xlu1 %5799 }
 0x5e6   : > { %v5898_v55 = vadd.f32 %v5838_v44, %v12109_v47  ;;  %v5839_v57 = vsel %vm5608_vm3, %v5798_v63, %v5800_v20  ;;  %v12578_v44 = vpop.f32.mrf.mxu0 }
 0x5e7   : > { %v5899_v43 = vadd.f32 %v5839_v57, %v12244_v7  ;;  %v12584_v7 = vadd.f32 %v12514_v12, %v12511_v28  ;;  %v5900_v57 = vadd.f32 %v5800_v20, %v12246_v5  ;;  %v12603_v20 = vpop.f32.mrf.mxu1 }
 0x5e8   : > { %v12572_v13 = vpop.permute.xlu0 %6200  ;;  %5979 = vrot.lane.b32.xlu1 %v5898_v55, %s8864_s29  ;;  %5040 = vmatpush1.bf16.xpose.msra.mxu0 %v2653_v8  ;;  %v12598_v12 = vpop.f32.mrf.mxu0  ;;  %v2682_v55 = vpack.c.bf16 %v1786_v15, %v1786_v15  ;;  %v12626_v15 = vadd.f32 %v4687_v19, %v4624_v53  ;;  %v12639_v19 = vadd.f32 %v12540_v50, %v12536_v2 }
 0x5e9   : > { %14092 = vst [vmem:[#allocation42_spill] sm:$0xff] %v12572_v13  ;;  %5103 = vmatpush1.bf16.xpose.msra.mxu1 %v2655_v0  ;;  %5981 = vrot.lane.b32.xlu0 %v5899_v43, %s8864_s29  ;;  %v12576_v47 = vpop.permute.xlu1 %6198  ;;  %v1723_v0 = vld [vmem:[%s9078_s25 + $0x28d0] sm:$0xff]  ;;  %v5533_v63 = vrot.slane %v12584_v7, 4 }
 0x5ea   : > { %14093 = vst [vmem:[#allocation47_spill] sm:$0xff] %v12576_v47  ;;  %5041 = vmatprep.subr.bf16.mxu0 %v2650_v58  ;;  %8327 = vmatprep.subr.msk.bf16.mxu1 %vm2854_vm0, %v2652_v39  ;;  %v2651_v5 = vpack.c.bf16 %v1727_v11, %v1723_v0  ;;  %v2684_v39 = vpack.c.bf16 %v1788_v54, %v1788_v54  ;;  %v12612_v59 = vpop.f32.mrf.mxu0  ;;  %v12619_v0 = vpop.f32.mrf.mxu1  ;;  %v1850_v11 = vld [vmem:[%s9078_s25 + $0x2cc8] sm:$0xff]  ;;  %14095 = vst [vmem:[#allocation49_spill] sm:$0xff] %v12639_v19 }
 0x5ec   : > { %v6415_v48 = vpop.permute.xlu0 %6414  ;;  %5983 = vrot.lane.b32.xlu1 %v5900_v57, %s8864_s29 }
 0x5ed   : > { %v6455_v28 = vsel %vm5608_vm3, %v12507_v51, %v6415_v48  ;;  %5584 = vrot.lane.b32.xlu0 %v5532_v36, %s8863_s19  ;;  %v6417_v58 = vpop.permute.xlu1 %6416  ;;  %v12607_v51 = vadd.f32 %v12527_v46, %v12523_v1  ;;  %v1787_v1 = vld [vmem:[%s9078_s25 + $0x2ad0] sm:$0xff]  ;;  %v1846_v46 = vld [vmem:[%s9078_s25 + $0x2ca8] sm:$0xff] }
 0x5ee   : > { %v6515_v8 = vadd.f32 %v6455_v28, %v12195_v18  ;;  %v6517_v57 = vadd.f32 %v6417_v58, %v12267_v16  ;;  %v6456_v54 = vsel %vm5608_vm3, %v6415_v48, %v6417_v58  ;;  %v1852_v28 = vld [vmem:[%s9078_s25 + $0x2cd8] sm:$0xff]  ;;  %v2681_v16 = vpack.c.bf16 %v1785_v33, %v1785_v33  ;;  %v12642_v48 = vpop.f32.mrf.mxu1 }
 0x5ef   : > { %14094 = vst [vmem:[#allocation48_spill] sm:$0xff] %v12607_v51  ;;  %v5749_v36 = vrot.slane %v12607_v51, 4  ;;  %v6516_v53 = vadd.f32 %v6456_v54, %v12270_v49  ;;  %v12659_v54 = vadd.f32 %v12553_v26, %v12549_v61  ;;  %v1832_v51 = vld [vmem:[%s9078_s25 + $0x2c38] sm:$0xff] }
 0x5f0   : > { %v12609_v43 = vpop.permute.xlu0 %6966  ;;  %5586 = vrot.lane.b32.xlu1 %v5533_v63, %s8863_s19  ;;  %5042 = vmatpush1.bf16.xpose.msra.mxu0 %v2649_v35  ;;  %v1848_v35 = vld [vmem:[%s9078_s25 + $0x2cb8] sm:$0xff]  ;;  %v12632_v63 = vpop.f32.mrf.mxu0 }
 0x5f1   : > { %5105 = vmatpush1.bf16.xpose.msra.mxu1 %v2651_v5  ;;  %6596 = vrot.lane.b32.xlu0 %v6515_v8, %s8864_s29  ;;  %v12615_v18 = vpop.permute.xlu1 %6968  ;;  %v2716_v33 = vpack.c.bf16 %v1852_v28, %v1848_v35  ;;  %v1849_v28 = vld [vmem:[%s9078_s25 + $0x2cc0] sm:$0xff]  ;;  %v4698_v47 = vadd.f32 %v12642_v48, %v12632_v63 }
 0x5f2   : > { %5057 = vmatprep.subr.bf16.mxu0 %v2682_v55  ;;  %8328 = vmatprep.subr.msk.bf16.mxu1 %vm2854_vm0, %v2684_v39  ;;  %v2683_v55 = vpack.c.bf16 %v1787_v1, %v1787_v1  ;;  %v2714_v39 = vpack.c.bf16 %v1850_v11, %v1846_v46  ;;  %v7008_v2 = vsel %vm6009_vm4, %v12609_v43, %v12615_v18  ;;  %v1845_v11 = vld [vmem:[%s9078_s25 + $0x2ca0] sm:$0xff] }
 0x5f3   : > { %v12822_v48 = vld [vmem:[%s13936_s1 + $0x48] ss:$16 sps:$4 sm:$0xff]  }
 0x5f4   : > { %v6815_v5 = vpop.permute.xlu0 %6814  ;;  %6600 = vrot.lane.b32.xlu1 %v6517_v57, %s8864_s29  ;;  %v6151_v57 = vrot.slane %v12626_v15, 4 }
 0x5f5   : > { %5801 = vrot.lane.b32.xlu0 %v5749_v36, %s8863_s19  ;;  %v12635_v8 = vpop.permute.xlu1 %6816 }
 0x5f6   : > { %v6856_v58 = vsel %vm5608_vm3, %v6815_v5, %v12635_v8 }
 0x5f7   : > { %v6916_v36 = vadd.f32 %v6856_v58, %v12278_v27  ;;  %v4734_v1 = vpop.f32.mrf.mxu0  ;;  %v5750_v27 = vrot.slane %v12639_v19, 4  ;;  %v1836_v19 = vld [vmem:[%s9078_s25 + $0x2c58] sm:$0xff] }
 0x5f8   : > { %v4797_v50 = vpop.f32.mrf.mxu1  ;;  %6598 = vrot.lane.b32.xlu1 %v6516_v53, %s8864_s29  ;;  %5058 = vmatpush2.bf16.xpose.msra.mxu0 %v2681_v16  ;;  %v1847_v16 = vld [vmem:[%s9078_s25 + $0x2cb0] sm:$0xff] }
 0x5f9   : > { %v12652_v49 = vadd.f32 %v4797_v50, %v4734_v1  ;;  %5121 = vmatpush2.bf16.xpose.msra.mxu1 %v2683_v55  ;;  %6204 = vrot.lane.b32.xlu0 %v6151_v57, %s8863_s19  ;;  %v4736_v46 = vpop.f32.mrf.mxu0  ;;  %v1851_v53 = vld [vmem:[%s9078_s25 + $0x2cd0] sm:$0xff]  ;;  %v6855_v55 = vsel %vm5608_vm3, %v12534_v40, %v6815_v5  ;;  %v7068_v58 = vadd.f32 %v7008_v2, %v6916_v36  ;;  %v1838_v5 = vld [vmem:[%s9078_s25 + $0x2c68] sm:$0xff] }
 0x5fa   : > { %v4799_v35 = vpop.f32.mrf.mxu1  ;;  %5228 = vmatprep.subr.bf16.mxu0 %v2714_v39  ;;  %8332 = vmatprep.subr.msk.bf16.mxu1 %vm2854_vm0, %v2716_v33  ;;  %v12675_v39 = vadd.f32 %v12587_v9, %v12578_v44  ;;  %v14096_v33 = vmax.f32 %v12380_v56, %v12396_v25  ;;  %v1842_v36 = vld [vmem:[%s9078_s25 + $0x2c88] sm:$0xff]  ;;  %v2713_v44 = vpack.c.bf16 %v1849_v28, %v1845_v11  ;;  %v6150_v56 = vrot.slane %v12659_v54, 4 }
 0x5fb   : > { %v7317_v57 = vsel %vm7267_vm1, %v12652_v49, -inf  ;;  %v12669_v61 = vadd.f32 %v4799_v35, %v4736_v46  ;;  %v12671_v26 = vpop.f32.mrf.mxu0  ;;  %v2715_v9 = vpack.c.bf16 %v1851_v53, %v1847_v16  ;;  %v1840_v46 = vld [vmem:[%s9078_s25 + $0x2c78] sm:$0xff]  ;;  %v6915_v25 = vadd.f32 %v6855_v55, %v12219_v10 }
 0x5fc   : > { %v12680_v1 = vmax.f32 %v14096_v33, %v7317_v57  ;;  %v4801_v40 = vpop.f32.mrf.mxu1  ;;  %5803 = vrot.lane.b32.xlu1 %v5750_v27, %s8863_s19  ;;  %v1844_v35 = vld [vmem:[%s9078_s25 + $0x2c98] sm:$0xff]  ;;  %v2710_v28 = vpack.c.bf16 %v1842_v36, %v1838_v5  ;;  %v6366_v16 = vrot.slane %v12675_v39, 4  ;;  %v7007_v33 = vsel %vm6009_vm4, %v12518_v6, %v12609_v43  ;;  %v1837_v5 = vld [vmem:[%s9078_s25 + $0x2c60] sm:$0xff]  ;;  %v1839_v43 = vld [vmem:[%s9078_s25 + $0x2c70] sm:$0xff] }
 0x5fd   : > { %v12687_v2 = vsel %vm7273_vm2, %v12669_v61, -inf  ;;  %7150 = vrot.lane.b32.xlu0 %v7068_v58, %s8865_s21  ;;  %v12690_v50 = vpop.f32.mrf.mxu0  ;;  %v12703_v58 = vld [vmem:[%s13936_s1] ss:$16 sps:$4 sm:$0xff]   ;;  %v12710_v10 = vld [vmem:[%s13936_s1 + $0x8] ss:$16 sps:$4 sm:$0xff]   ;;  %v2712_v55 = vpack.c.bf16 %v1844_v35, %v1840_v46  ;;  %v7067_v27 = vadd.f32 %v7007_v33, %v6915_v25  ;;  %v4696_v35 = vadd.f32 %v12619_v0, %v12612_v59 }
 0x5fe   : > { %14097 = vst [vmem:[#allocation50_spill] sm:$0xff] %v12680_v1  ;;  %14098 = vst [vmem:[#allocation51_spill] sm:$0xff] %v12687_v2  ;;  %v12698_v57 = vpop.f32.mrf.mxu1  ;;  %v6917_v2 = vadd.f32 %v12635_v8, %v12286_v24  ;;  %v12726_v46 = vld [vmem:[%s13936_s1 + $0x24] ss:$16 sps:$4 sm:$0xff]   ;;  %v12737_v24 = vld [vmem:[%s13936_s1 + $0x2c] ss:$16 sps:$4 sm:$0xff]  }
 0x5ff   : > { %5060 = vmatmul.mubr.bf16.vlgmr.msra.gmra.mxu0 %v12703_v58  ;;  %v4744_v11 = vpop.f32.mrf.mxu0  ;;  %v1841_v6 = vld [vmem:[%s9078_s25 + $0x2c80] sm:$0xff]  ;;  %v1830_v25 = vld [vmem:[%s9078_s25 + $0x2c28] sm:$0xff] }
 0x600   : > { %5123 = vmatmul.mubr.bf16.vlgmr.msra.gmra.mxu1 %v12710_v10  ;;  %6202 = vrot.lane.b32.xlu1 %v6150_v56, %s8863_s19  ;;  %v4807_v53 = vpop.f32.mrf.mxu1  ;;  %v2709_v33 = vpack.c.bf16 %v1841_v6, %v1837_v5  ;;  %v7069_v13 = vadd.f32 %v12615_v18, %v6917_v2  ;;  %v12762_v59 = vld [vmem:[%s13936_s1 + $0x20] ss:$16 sps:$4 sm:$0xff]   ;;  %v12775_v18 = vld [vmem:[%s13936_s1 + $0x28] ss:$16 sps:$4 sm:$0xff]   ;;  %v2708_v2 = vpack.c.bf16 %v1836_v19, %v1832_v51 }
 0x601   : > { %5229 = vmatpush1.bf16.xpose.msra.mxu0 %v2713_v44  ;;  %5292 = vmatpush1.bf16.xpose.msra.mxu1 %v2715_v9  ;;  %v12718_v36 = vpop.f32.mrf.mxu0  ;;  %v1843_v44 = vld [vmem:[%s9078_s25 + $0x2c90] sm:$0xff]  ;;  %v1829_v5 = vld [vmem:[%s9078_s25 + $0x2c20] sm:$0xff] }
 0x602   : > { %6418 = vrot.lane.b32.xlu0 %v6366_v16, %s8863_s19  ;;  %5069 = vmatprep.mubr.bf16.mxu0 %v12726_v46  ;;  %v12732_v9 = vpop.f32.mrf.mxu1  ;;  %v1834_v16 = vld [vmem:[%s9078_s25 + $0x2c48] sm:$0xff]  ;;  %v2711_v1 = vpack.c.bf16 %v1843_v44, %v1839_v43  ;;  %v12781_v43 = vadd.f32 %v4807_v53, %v4744_v11  ;;  %v1831_v51 = vld [vmem:[%s9078_s25 + $0x2c30] sm:$0xff] }
 0x603   : > { %8330 = vmatprep.mubr.msk.bf16.mxu1 %vm2854_vm0, %v12737_v24  ;;  %5230 = vmatprep.subr.bf16.mxu0 %v2710_v28  ;;  %v12741_v8 = vpop.f32.mrf.mxu0  ;;  %v12755_v28 = vadd.f32 %v12603_v20, %v12598_v12  ;;  %v6766_v12 = vrot.slane %v4696_v35, 4  ;;  %v12770_v20 = vadd.f32 %v4801_v40, %v12671_v26  ;;  %v12787_v26 = vld [vmem:[%s13936_s1 + $0x44] ss:$16 sps:$4 sm:$0xff]   ;;  %v1822_v53 = vld [vmem:[%s9078_s25 + $0x2be8] sm:$0xff] }
 0x604   : > { %7148 = vrot.lane.b32.xlu1 %v7067_v27, %s8865_s21  ;;  %8333 = vmatprep.subr.msk.bf16.mxu1 %vm2854_vm0, %v2712_v55  ;;  %v12747_v56 = vpop.f32.mrf.mxu1  ;;  %v2706_v55 = vpack.c.bf16 %v1834_v16, %v1830_v25  ;;  %14099 = vst [vmem:[#allocation52_spill] sm:$0xff] %v12781_v43  ;;  %v1835_v19 = vld [vmem:[%s9078_s25 + $0x2c50] sm:$0xff]  ;;  %v1826_v44 = vld [vmem:[%s9078_s25 + $0x2c08] sm:$0xff]  ;;  %v1824_v25 = vld [vmem:[%s9078_s25 + $0x2bf8] sm:$0xff]  ;;  %v5751_v4 = vrot.slane %v12781_v43, 4 }
 0x605   : > { %v12765_v0 = vpop.f32.mrf.mxu0  ;;  %v6367_v6 = vrot.slane %v12755_v28, 4  ;;  %v1828_v16 = vld [vmem:[%s9078_s25 + $0x2c18] sm:$0xff]  ;;  %v2702_v37 = vpack.c.bf16 %v1826_v44, %v1822_v53  ;;  %v1823_v53 = vld [vmem:[%s9078_s25 + $0x2bf0] sm:$0xff] }
 0x606   : > { %6970 = vrot.lane.b32.xlu0 %v4696_v35, %s8864_s29  ;;  %v12767_v27 = vpop.f32.mrf.mxu1  ;;  %v5534_v35 = vrot.slane %v12770_v20, 4  ;;  %v2704_v63 = vpack.c.bf16 %v1828_v16, %v1824_v25  ;;  %v1827_v44 = vld [vmem:[%s9078_s25 + $0x2c10] sm:$0xff]  ;;  %v1814_v16 = vld [vmem:[%s9078_s25 + $0x2ba8] sm:$0xff] }
 0x607   : > { %5070 = vmatmul.mubr.bf16.gmra.mxu0 %v12762_v59  ;;  %v4754_v40 = vpop.f32.mrf.mxu0 }
 0x608   : > { %5133 = vmatmul.mubr.bf16.gmra.mxu1 %v12775_v18  ;;  %7152 = vrot.lane.b32.xlu1 %v7069_v13, %s8865_s21  ;;  %v1833_v13 = vld [vmem:[%s9078_s25 + $0x2c40] sm:$0xff]  ;;  %v4817_v11 = vpop.f32.mrf.mxu1 }
 0x609   : > { %5231 = vmatpush1.bf16.xpose.msra.mxu0 %v2709_v33  ;;  %5294 = vmatpush1.bf16.xpose.msra.mxu1 %v2711_v1  ;;  %v12796_v1 = vld [vmem:[%s13936_s1 + $0x4c] ss:$16 sps:$4 sm:$0xff]   ;;  %v2705_v33 = vpack.c.bf16 %v1833_v13, %v1829_v5  ;;  %v1821_v13 = vld [vmem:[%s9078_s25 + $0x2be0] sm:$0xff] }
 0x60a   : > { %6818 = vrot.lane.b32.xlu0 %v6766_v12, %s8863_s19  ;;  %5079 = vmatprep.mubr.bf16.mxu0 %v12787_v26  ;;  %v2707_v12 = vpack.c.bf16 %v1835_v19, %v1831_v51  ;;  %v4819_v5 = vpop.f32.mrf.mxu1  ;;  %v6767_v51 = vrot.slane %v4698_v47, 4  ;;  %v12829_v19 = vadd.f32 %v12698_v57, %v12690_v50  ;;  %v12842_v50 = vadd.f32 %v12732_v9, %v12718_v36 }
 0x60b   : > { %8331 = vmatprep.mubr.msk.bf16.mxu1 %vm2854_vm0, %v12796_v1  ;;  %5232 = vmatprep.subr.bf16.mxu0 %v2706_v55  ;;  %v12811_v55 = vadd.f32 %v4817_v11, %v4754_v40  ;;  %v1825_v11 = vld [vmem:[%s9078_s25 + $0x2c00] sm:$0xff] }
 0x60c   : > { %6420 = vrot.lane.b32.xlu1 %v6367_v6, %s8863_s19  ;;  %8334 = vmatprep.subr.msk.bf16.mxu1 %vm2854_vm0, %v2708_v2  ;;  %v12816_v6 = vld [vmem:[%s13936_s1 + $0x40] ss:$16 sps:$4 sm:$0xff]   ;;  %v4756_v2 = vpop.f32.mrf.mxu0  ;;  %v4821_v25 = vpop.f32.mrf.mxu1  ;;  %14100 = vst [vmem:[#allocation53_spill] sm:$0xff] %v12842_v50  ;;  %v2701_v57 = vpack.c.bf16 %v1825_v11, %v1821_v13 }
 0x60d   : > { %v6368_v40 = vrot.slane %v12811_v55, 4  ;;  %v1813_v13 = vld [vmem:[%s9078_s25 + $0x2ba0] sm:$0xff]  ;;  %v1815_v11 = vld [vmem:[%s9078_s25 + $0x2bb0] sm:$0xff] }
 0x60e   : > { %5588 = vrot.lane.b32.xlu0 %v5534_v35, %s8863_s19  ;;  %v4758_v35 = vpop.f32.mrf.mxu0 }
 0x60f   : > { %5080 = vmatmul.mubr.bf16.gmra.mxu0 %v12816_v6 }
 0x610   : > { %5143 = vmatmul.mubr.bf16.gmra.mxu1 %v12822_v48  ;;  %6972 = vrot.lane.b32.xlu1 %v4698_v47, %s8864_s29  ;;  %v1818_v47 = vld [vmem:[%s9078_s25 + $0x2bc8] sm:$0xff] }
 0x611   : > { %5233 = vmatpush1.bf16.xpose.msra.mxu0 %v2705_v33  ;;  %5296 = vmatpush1.bf16.xpose.msra.mxu1 %v2707_v12  ;;  %v2703_v33 = vpack.c.bf16 %v1827_v44, %v1823_v53  ;;  %v5535_v12 = vrot.slane %v12829_v19, 4  ;;  %v2698_v36 = vpack.c.bf16 %v1818_v47, %v1814_v16  ;;  %v1819_v53 = vld [vmem:[%s9078_s25 + $0x2bd0] sm:$0xff]  ;;  %v1806_v44 = vld [vmem:[%s9078_s25 + $0x2b68] sm:$0xff]  ;;  %v12870_v16 = vadd.f32 %v12767_v27, %v12765_v0  ;;  %v1805_v0 = vld [vmem:[%s9078_s25 + $0x2b60] sm:$0xff] }
 0x612   : > { %5805 = vrot.lane.b32.xlu0 %v5751_v4, %s8863_s19  ;;  %5234 = vmatprep.subr.bf16.mxu0 %v2702_v37  ;;  %v1816_v4 = vld [vmem:[%s9078_s25 + $0x2bb8] sm:$0xff]  ;;  %v1809_v27 = vld [vmem:[%s9078_s25 + $0x2b80] sm:$0xff] }
 0x613   : > { %8335 = vmatprep.subr.msk.bf16.mxu1 %vm2854_vm0, %v2704_v63  ;;  %5260 = vmatprep.mubr.bf16.mxu0 %v12471_v29  ;;  %v1820_v37 = vld [vmem:[%s9078_s25 + $0x2bd8] sm:$0xff]  ;;  %v4822_v29 = vadd.f32 %v4821_v25, %v4758_v35  ;;  %v5752_v63 = vrot.slane %v12842_v50, 4  ;;  %v1810_v35 = vld [vmem:[%s9078_s25 + $0x2b88] sm:$0xff] }
 0x614   : > { %6820 = vrot.lane.b32.xlu1 %v6767_v51, %s8863_s19  ;;  %8348 = vmatprep.mubr.msk.bf16.mxu1 %vm2854_vm0, %v12479_v30  ;;  %v2700_v9 = vpack.c.bf16 %v1820_v37, %v1816_v4  ;;  %v12854_v30 = vadd.f32 %v12747_v56, %v12741_v8  ;;  %v1817_v51 = vld [vmem:[%s9078_s25 + $0x2bc0] sm:$0xff]  ;;  %v1808_v25 = vld [vmem:[%s9078_s25 + $0x2b78] sm:$0xff]  ;;  %v2699_v4 = vpack.c.bf16 %v1819_v53, %v1815_v11 }
 0x615   : > { %v1812_v8 = vld [vmem:[%s9078_s25 + $0x2b98] sm:$0xff]  ;;  %v2697_v47 = vpack.c.bf16 %v1817_v51, %v1813_v13  ;;  %v2694_v37 = vpack.c.bf16 %v1810_v35, %v1806_v44  ;;  %v2693_v11 = vpack.c.bf16 %v1809_v27, %v1805_v0 }
 0x616   : > { %6422 = vrot.lane.b32.xlu0 %v6368_v40, %s8863_s19  ;;  %v6768_v40 = vrot.slane %v4822_v29, 4  ;;  %v6152_v56 = vrot.slane %v12854_v30, 4  ;;  %v1800_v13 = vld [vmem:[%s9078_s25 + $0x2b38] sm:$0xff] }
 0x617   : > { %v1804_v51 = vld [vmem:[%s9078_s25 + $0x2b58] sm:$0xff] }
 0x618   : > { %5590 = vrot.lane.b32.xlu1 %v5535_v12, %s8863_s19  ;;  %v12875_v12 = vadd.f32 %v4819_v5, %v4756_v2  ;;  %v4760_v5 = vpop.f32.mrf.mxu0  ;;  %v2692_v35 = vpack.c.bf16 %v1804_v51, %v1800_v13  ;;  %v1796_v0 = vld [vmem:[%s9078_s25 + $0x2b18] sm:$0xff]  ;;  %v1789_v13 = vld [vmem:[%s9078_s25 + $0x2ae0] sm:$0xff] }
 0x619   : > { %5235 = vmatpush1.bf16.xpose.msra.mxu0 %v2701_v57  ;;  %5298 = vmatpush1.bf16.xpose.msra.mxu1 %v2703_v33  ;;  %v2696_v57 = vpack.c.bf16 %v1812_v8, %v1808_v25  ;;  %v6153_v33 = vrot.slane %v12870_v16, 4  ;;  %v1797_v8 = vld [vmem:[%s9078_s25 + $0x2b20] sm:$0xff] }
 0x61a   : > { %6974 = vrot.lane.b32.xlu0 %v4822_v29, %s8864_s29  ;;  %5236 = vmatprep.subr.bf16.mxu0 %v2698_v36  ;;  %v1807_v29 = vld [vmem:[%s9078_s25 + $0x2b70] sm:$0xff]  ;;  %v6369_v2 = vrot.slane %v12875_v12, 4  ;;  %v1793_v51 = vld [vmem:[%s9078_s25 + $0x2b00] sm:$0xff] }
 0x61b   : > { %8336 = vmatprep.subr.msk.bf16.mxu1 %vm2854_vm0, %v2700_v9  ;;  %v1811_v36 = vld [vmem:[%s9078_s25 + $0x2b90] sm:$0xff]  ;;  %v1798_v9 = vld [vmem:[%s9078_s25 + $0x2b28] sm:$0xff] }
 0x61c   : > { %5807 = vrot.lane.b32.xlu1 %v5752_v63, %s8863_s19  ;;  %v1802_v63 = vld [vmem:[%s9078_s25 + $0x2b48] sm:$0xff]  ;;  %v2695_v53 = vpack.c.bf16 %v1811_v36, %v1807_v29 }
 0x61d   : > { %v2690_v44 = vpack.c.bf16 %v1802_v63, %v1798_v9 }
 0x61e   : > { %6822 = vrot.lane.b32.xlu0 %v6768_v40, %s8863_s19  ;;  %v4823_v40 = vpop.f32.mrf.mxu1 }
 0x61f   : > { %v4824_v25 = vadd.f32 %v4823_v40, %v4760_v5  ;;  %v1795_v5 = vld [vmem:[%s9078_s25 + $0x2b10] sm:$0xff]  ;;  %v1910_v40 = vld [vmem:[%s9078_s25 + $0x2ea8] sm:$0xff] }
 0x620   : > { %6206 = vrot.lane.b32.xlu1 %v6152_v56, %s8863_s19  ;;  %v1801_v56 = vld [vmem:[%s9078_s25 + $0x2b40] sm:$0xff] }
 0x621   : > { %5237 = vmatpush1.bf16.xpose.msra.mxu0 %v2697_v47  ;;  %5300 = vmatpush1.bf16.xpose.msra.mxu1 %v2699_v4  ;;  %v1799_v47 = vld [vmem:[%s9078_s25 + $0x2b30] sm:$0xff]  ;;  %v6769_v27 = vrot.slane %v4824_v25, 4  ;;  %v2689_v29 = vpack.c.bf16 %v1801_v56, %v1797_v8 }
 0x622   : > { %5238 = vmatprep.subr.bf16.mxu0 %v2694_v37  ;;  %8337 = vmatprep.subr.msk.bf16.mxu1 %vm2854_vm0, %v2696_v57  ;;  %v1803_v4 = vld [vmem:[%s9078_s25 + $0x2b50] sm:$0xff]  ;;  %v1790_v37 = vld [vmem:[%s9078_s25 + $0x2ae8] sm:$0xff] }
 0x623   : > { %v1794_v57 = vld [vmem:[%s9078_s25 + $0x2b08] sm:$0xff]  ;;  %v2691_v36 = vpack.c.bf16 %v1803_v4, %v1799_v47  ;;  %v1909_v47 = vld [vmem:[%s9078_s25 + $0x2ea0] sm:$0xff] }
 0x624   : > { %6208 = vrot.lane.b32.xlu1 %v6153_v33, %s8863_s19  ;;  %v1792_v33 = vld [vmem:[%s9078_s25 + $0x2af8] sm:$0xff]  ;;  %v2686_v9 = vpack.c.bf16 %v1794_v57, %v1790_v37  ;;  %v1913_v4 = vld [vmem:[%s9078_s25 + $0x2ec0] sm:$0xff]  ;;  %v1911_v37 = vld [vmem:[%s9078_s25 + $0x2eb0] sm:$0xff] }
 0x625   : > { %v2688_v63 = vpack.c.bf16 %v1796_v0, %v1792_v33  ;;  %v1915_v57 = vld [vmem:[%s9078_s25 + $0x2ed0] sm:$0xff]  ;;  %v1902_v33 = vld [vmem:[%s9078_s25 + $0x2e68] sm:$0xff] }
 0x626   : > { %v1906_v0 = vld [vmem:[%s9078_s25 + $0x2e88] sm:$0xff] }
 0x628   : > { %6424 = vrot.lane.b32.xlu1 %v6369_v2, %s8863_s19  ;;  %v1791_v2 = vld [vmem:[%s9078_s25 + $0x2af0] sm:$0xff] }
 0x629   : > { %5239 = vmatpush1.bf16.xpose.msra.mxu0 %v2693_v11  ;;  %5302 = vmatpush1.bf16.xpose.msra.mxu1 %v2695_v53  ;;  %v1914_v11 = vld [vmem:[%s9078_s25 + $0x2ec8] sm:$0xff]  ;;  %v1912_v53 = vld [vmem:[%s9078_s25 + $0x2eb8] sm:$0xff] }
 0x62a   : > { %5240 = vmatprep.subr.bf16.mxu0 %v2690_v44  ;;  %8338 = vmatprep.subr.msk.bf16.mxu1 %vm2854_vm0, %v2692_v35  ;;  %v1916_v44 = vld [vmem:[%s9078_s25 + $0x2ed8] sm:$0xff]  ;;  %v2685_v35 = vpack.c.bf16 %v1793_v51, %v1789_v13  ;;  %v2746_v8 = vpack.c.bf16 %v1914_v11, %v1910_v40  ;;  %v1901_v51 = vld [vmem:[%s9078_s25 + $0x2e60] sm:$0xff]  ;;  %v1907_v40 = vld [vmem:[%s9078_s25 + $0x2e90] sm:$0xff] }
 0x62b   : > { %v2748_v56 = vpack.c.bf16 %v1916_v44, %v1912_v53  ;;  %v1894_v11 = vld [vmem:[%s9078_s25 + $0x2e28] sm:$0xff]  ;;  %v1896_v44 = vld [vmem:[%s9078_s25 + $0x2e38] sm:$0xff] }
 0x62c   : > { %6976 = vrot.lane.b32.xlu1 %v4824_v25, %s8864_s29  ;;  %v2687_v25 = vpack.c.bf16 %v1795_v5, %v1791_v2  ;;  %v1905_v2 = vld [vmem:[%s9078_s25 + $0x2e80] sm:$0xff]  ;;  %v1903_v5 = vld [vmem:[%s9078_s25 + $0x2e70] sm:$0xff]  ;;  %v1898_v53 = vld [vmem:[%s9078_s25 + $0x2e48] sm:$0xff] }
 0x630   : > { %6824 = vrot.lane.b32.xlu1 %v6769_v27, %s8863_s19  ;;  %v1904_v27 = vld [vmem:[%s9078_s25 + $0x2e78] sm:$0xff] }
 0x631   : > { %5241 = vmatpush1.bf16.xpose.msra.mxu0 %v2689_v29  ;;  %5304 = vmatpush1.bf16.xpose.msra.mxu1 %v2691_v36  ;;  %v1908_v29 = vld [vmem:[%s9078_s25 + $0x2e98] sm:$0xff]  ;;  %v2745_v36 = vpack.c.bf16 %v1913_v4, %v1909_v47  ;;  %v1893_v4 = vld [vmem:[%s9078_s25 + $0x2e20] sm:$0xff] }
 0x632   : > { %5242 = vmatprep.subr.bf16.mxu0 %v2686_v9  ;;  %8339 = vmatprep.subr.msk.bf16.mxu1 %vm2854_vm0, %v2688_v63  ;;  %v2747_v9 = vpack.c.bf16 %v1915_v57, %v1911_v37  ;;  %v2742_v63 = vpack.c.bf16 %v1906_v0, %v1902_v33  ;;  %v2744_v13 = vpack.c.bf16 %v1908_v29, %v1904_v27  ;;  %v1897_v37 = vld [vmem:[%s9078_s25 + $0x2e40] sm:$0xff]  ;;  %v1895_v57 = vld [vmem:[%s9078_s25 + $0x2e30] sm:$0xff]  ;;  %v1886_v0 = vld [vmem:[%s9078_s25 + $0x2de8] sm:$0xff] }
 0x633   : > { %v1899_v33 = vld [vmem:[%s9078_s25 + $0x2e50] sm:$0xff]  ;;  %v1890_v27 = vld [vmem:[%s9078_s25 + $0x2e08] sm:$0xff]  ;;  %v1888_v29 = vld [vmem:[%s9078_s25 + $0x2df8] sm:$0xff] }
 0x639   : > { %5243 = vmatpush1.bf16.xpose.msra.mxu0 %v2685_v35  ;;  %5306 = vmatpush1.bf16.xpose.msra.mxu1 %v2687_v25  ;;  %v1900_v35 = vld [vmem:[%s9078_s25 + $0x2e58] sm:$0xff]  ;;  %v2741_v25 = vpack.c.bf16 %v1905_v2, %v1901_v51  ;;  %v2734_v51 = vpack.c.bf16 %v1890_v27, %v1886_v0  ;;  %v5621_v0 = vsel %vm5608_vm3, %v12425_v17, %v12429_v23  ;;  %v1879_v17 = vld [vmem:[%s9078_s25 + $0x2db0] sm:$0xff] }
 0x63a   : > { %5244 = vmatprep.subr.bf16.mxu0 %v2746_v8  ;;  %8340 = vmatprep.subr.msk.bf16.mxu1 %vm2854_vm0, %v2748_v56  ;;  %v2743_v8 = vpack.c.bf16 %v1907_v40, %v1903_v5  ;;  %v2738_v56 = vpack.c.bf16 %v1898_v53, %v1894_v11  ;;  %v2740_v47 = vpack.c.bf16 %v1900_v35, %v1896_v44  ;;  %v1885_v40 = vld [vmem:[%s9078_s25 + $0x2de0] sm:$0xff]  ;;  %v1887_v53 = vld [vmem:[%s9078_s25 + $0x2df0] sm:$0xff]  ;;  %v1878_v35 = vld [vmem:[%s9078_s25 + $0x2da8] sm:$0xff] }
 0x63b   : > { %v1889_v11 = vld [vmem:[%s9078_s25 + $0x2e00] sm:$0xff]  ;;  %v1891_v44 = vld [vmem:[%s9078_s25 + $0x2e10] sm:$0xff] }
 0x641   : > { %5245 = vmatpush2.bf16.xpose.msra.mxu0 %v2745_v36  ;;  %5308 = vmatpush2.bf16.xpose.msra.mxu1 %v2747_v9  ;;  %v1892_v36 = vld [vmem:[%s9078_s25 + $0x2e18] sm:$0xff] }
 0x642   : > { %5246 = vmatprep.subr.bf16.mxu0 %v2742_v63  ;;  %8341 = vmatprep.subr.msk.bf16.mxu1 %vm2854_vm0, %v2744_v13  ;;  %v2737_v63 = vpack.c.bf16 %v1897_v37, %v1893_v4  ;;  %v2739_v13 = vpack.c.bf16 %v1899_v33, %v1895_v57  ;;  %v2736_v2 = vpack.c.bf16 %v1892_v36, %v1888_v29  ;;  %v1877_v36 = vld [vmem:[%s9078_s25 + $0x2da0] sm:$0xff] }
 0x643   : > { %v2735_v4 = vpack.c.bf16 %v1891_v44, %v1887_v53  ;;  %v5622_v29 = vsel %vm5608_vm3, %v12429_v23, %v12545_v45  ;;  %v14105_v53 = vld [vmem:[#allocation35_spill] sm:$0xff]  ;;  %v5623_v23 = vsel %vm5608_vm3, %v12545_v45, %v12547_v38 }
 0x644   : > { %v5682_v44 = vadd.f32 %v5622_v29, %v14105_v53  ;;  %v14107_v53 = vld [vmem:[#allocation25_spill] sm:$0xff] }
 0x645   : > { %v5683_v50 = vadd.f32 %v5623_v23, %v14107_v53 }
 0x649   : > { %5247 = vmatpush2.bf16.xpose.msra.mxu0 %v2741_v25  ;;  %5310 = vmatpush2.bf16.xpose.msra.mxu1 %v2743_v8  ;;  %v1882_v25 = vld [vmem:[%s9078_s25 + $0x2dc8] sm:$0xff]  ;;  %v1880_v8 = vld [vmem:[%s9078_s25 + $0x2db8] sm:$0xff] }
 0x64a   : > { %5248 = vmatprep.subr.bf16.mxu0 %v2738_v56  ;;  %8342 = vmatprep.subr.msk.bf16.mxu1 %vm2854_vm0, %v2740_v47  ;;  %v1884_v56 = vld [vmem:[%s9078_s25 + $0x2dd8] sm:$0xff]  ;;  %v2733_v47 = vpack.c.bf16 %v1889_v11, %v1885_v40  ;;  %v2730_v57 = vpack.c.bf16 %v1882_v25, %v1878_v35  ;;  %v1883_v40 = vld [vmem:[%s9078_s25 + $0x2dd0] sm:$0xff]  ;;  %v1870_v11 = vld [vmem:[%s9078_s25 + $0x2d68] sm:$0xff] }
 0x64b   : > { %v12948_v37 = vpop.permute.xlu1 %6594  ;;  %v2732_v33 = vpack.c.bf16 %v1884_v56, %v1880_v8  ;;  %v1874_v8 = vld [vmem:[%s9078_s25 + $0x2d88] sm:$0xff]  ;;  %v1872_v56 = vld [vmem:[%s9078_s25 + $0x2d78] sm:$0xff]  ;;  %v2731_v29 = vpack.c.bf16 %v1883_v40, %v1879_v17  ;;  %v1869_v40 = vld [vmem:[%s9078_s25 + $0x2d60] sm:$0xff] }
 0x64c   : > { %14102 = vst [vmem:[#allocation55_spill] sm:$0xff] %v12948_v37  ;;  %v2726_v43 = vpack.c.bf16 %v1874_v8, %v1870_v11  ;;  %v1873_v11 = vld [vmem:[%s9078_s25 + $0x2d80] sm:$0xff]  ;;  %v1862_v8 = vld [vmem:[%s9078_s25 + $0x2d28] sm:$0xff] }
 0x64d   : > { %v12937_v9 = vpop.xlane.xlu0 %7403 }
 0x64e   : > { %14101 = vst [vmem:[#allocation54_spill] sm:$0xff] %v12937_v9 }
 0x651   : > { %5249 = vmatpush2.bf16.xpose.msra.mxu0 %v2737_v63  ;;  %5312 = vmatpush2.bf16.xpose.msra.mxu1 %v2739_v13  ;;  %v5978_v5 = vpop.permute.xlu0 %5977  ;;  %v1881_v63 = vld [vmem:[%s9078_s25 + $0x2dc0] sm:$0xff]  ;;  %v14104_v13 = vld [vmem:[#allocation34_spill] sm:$0xff] }
 0x652   : > { %5250 = vmatprep.subr.bf16.mxu0 %v2734_v51  ;;  %8343 = vmatprep.subr.msk.bf16.mxu1 %vm2854_vm0, %v2736_v2  ;;  %v5681_v51 = vadd.f32 %v5621_v0, %v14104_v13  ;;  %v14106_v0 = vld [vmem:[#allocation22_spill] sm:$0xff]  ;;  %v2729_v9 = vpack.c.bf16 %v1881_v63, %v1877_v36 }
 0x655   : > { %v12953_v27 = vpop.permute.xlu0 %7146 }
 0x656   : > { %14103 = vst [vmem:[#allocation56_spill] sm:$0xff] %v12953_v27 }
 0x659   : > { %5251 = vmatpush2.bf16.xpose.msra.mxu0 %v2733_v47  ;;  %5314 = vmatpush2.bf16.xpose.msra.mxu1 %v2735_v4  ;;  %v1876_v47 = vld [vmem:[%s9078_s25 + $0x2d98] sm:$0xff] }
 0x65a   : > { %v5980_v2 = vpop.permute.xlu1 %5979  ;;  %5252 = vmatprep.subr.bf16.mxu0 %v2730_v57  ;;  %8344 = vmatprep.subr.msk.bf16.mxu1 %vm2854_vm0, %v2732_v33  ;;  %v5684_v33 = vadd.f32 %v12547_v38, %v14106_v0  ;;  %v2728_v27 = vpack.c.bf16 %v1876_v47, %v1872_v56  ;;  %v1864_v47 = vld [vmem:[%s9078_s25 + $0x2d38] sm:$0xff] }
 0x65b   : > { %v6022_v35 = vsel %vm6009_vm4, %v5978_v5, %v5980_v2  ;;  %v5982_v25 = vpop.permute.xlu0 %5981 }
 0x65c   : > { %v6082_v4 = vadd.f32 %v6022_v35, %v5681_v51  ;;  %v6023_v57 = vsel %vm6009_vm4, %v5980_v2, %v5982_v25  ;;  %v1871_v35 = vld [vmem:[%s9078_s25 + $0x2d70] sm:$0xff] }
 0x65d   : > { %v6083_v13 = vadd.f32 %v6023_v57, %v5682_v44 }
 0x65e   : > { %v7405_v45 = vsel %vm7367_vm5, %v6082_v4, -inf  ;;  %v5984_v5 = vpop.permute.xlu1 %5983  ;;  %v1868_v4 = vld [vmem:[%s9078_s25 + $0x2d58] sm:$0xff] }
 0x65f   : > { %v7406_v51 = vsel %vm7367_vm5, %v6083_v13, -inf  ;;  %v6024_v2 = vsel %vm6009_vm4, %v5982_v25, %v5984_v5  ;;  %v12980_v38 = vpop.permute.xlu0 %5584  ;;  %v6085_v17 = vadd.f32 %v5984_v5, %v5684_v33  ;;  %v1875_v25 = vld [vmem:[%s9078_s25 + $0x2d90] sm:$0xff] }
 0x660   : > { %v7407_v36 = vmax.f32 %v7405_v45, %v7406_v51  ;;  %v6084_v63 = vadd.f32 %v6024_v2, %v5683_v50  ;;  %v1866_v50 = vld [vmem:[%s9078_s25 + $0x2d48] sm:$0xff]  ;;  %v2727_v0 = vpack.c.bf16 %v1875_v25, %v1871_v35  ;;  %v1861_v45 = vld [vmem:[%s9078_s25 + $0x2d20] sm:$0xff]  ;;  %v1863_v2 = vld [vmem:[%s9078_s25 + $0x2d30] sm:$0xff] }
 0x661   : > { %5253 = vmatpush2.bf16.xpose.msra.mxu0 %v2729_v9  ;;  %5316 = vmatpush2.bf16.xpose.msra.mxu1 %v2731_v29  ;;  %v12999_v57 = vsel %vm7373_vm6, %v6085_v17, -inf  ;;  %v2722_v13 = vpack.c.bf16 %v1866_v50, %v1862_v8  ;;  %v2724_v29 = vpack.c.bf16 %v1868_v4, %v1864_v47  ;;  %v1865_v51 = vld [vmem:[%s9078_s25 + $0x2d40] sm:$0xff]  ;;  %v1854_v17 = vld [vmem:[%s9078_s25 + $0x2ce8] sm:$0xff] }
 0x662   : > { %v7408_v44 = vsel %vm7367_vm5, %v6084_v63, -inf  ;;  %v12985_v23 = vpop.permute.xlu1 %5586  ;;  %5254 = vmatprep.subr.bf16.mxu0 %v2726_v43  ;;  %8345 = vmatprep.subr.msk.bf16.mxu1 %vm2854_vm0, %v2728_v27  ;;  %v2725_v43 = vpack.c.bf16 %v1873_v11, %v1869_v40  ;;  %v1858_v40 = vld [vmem:[%s9078_s25 + $0x2d08] sm:$0xff]  ;;  %v1856_v11 = vld [vmem:[%s9078_s25 + $0x2cf8] sm:$0xff]  ;;  %v2721_v35 = vpack.c.bf16 %v1865_v51, %v1861_v45  ;;  %v1855_v51 = vld [vmem:[%s9078_s25 + $0x2cf0] sm:$0xff] }
 0x663   : > { %v12991_v56 = vpop.permute.xlu0 %6596  ;;  %v12996_v9 = vmax.f32 %v7407_v36, %v7408_v44  ;;  %v1867_v36 = vld [vmem:[%s9078_s25 + $0x2d50] sm:$0xff]  ;;  %v1860_v44 = vld [vmem:[%s9078_s25 + $0x2d18] sm:$0xff]  ;;  %v2718_v50 = vpack.c.bf16 %v1858_v40, %v1854_v17 }
 0x664   : > { %14108 = vst [vmem:[#allocation34_spill] sm:$0xff] %v12991_v56  ;;  %v2723_v25 = vpack.c.bf16 %v1867_v36, %v1863_v2  ;;  %v1859_v2 = vld [vmem:[%s9078_s25 + $0x2d10] sm:$0xff]  ;;  %v1974_v36 = vld [vmem:[%s9078_s25 + $0x30a8] sm:$0xff]  ;;  %v1976_v17 = vld [vmem:[%s9078_s25 + $0x30b8] sm:$0xff] }
 0x665   : > { %v1980_v40 = vld [vmem:[%s9078_s25 + $0x30d8] sm:$0xff] }
 0x666   : > { %v13003_v33 = vpop.permute.xlu1 %6600 }
 0x667   : > { %14109 = vst [vmem:[#allocation35_spill] sm:$0xff] %v13003_v33  ;;  %v5802_v53 = vpop.permute.xlu0 %5801 }
 0x669   : > { %5255 = vmatpush2.bf16.xpose.msra.mxu0 %v2725_v43  ;;  %5318 = vmatpush2.bf16.xpose.msra.mxu1 %v2727_v0  ;;  %v2720_v43 = vpack.c.bf16 %v1860_v44, %v1856_v11  ;;  %v2719_v44 = vpack.c.bf16 %v1859_v2, %v1855_v51 }
 0x66a   : > { %v13006_v5 = vpop.permute.xlu1 %6598  ;;  %5256 = vmatprep.subr.bf16.mxu0 %v2722_v13  ;;  %8346 = vmatprep.subr.msk.bf16.mxu1 %vm2854_vm0, %v2724_v29  ;;  %v1853_v13 = vld [vmem:[%s9078_s25 + $0x2ce0] sm:$0xff] }
 0x66b   : > { %14110 = vst [vmem:[#allocation22_spill] sm:$0xff] %v13006_v5  ;;  %v13012_v63 = vpop.permute.xlu0 %6204  ;;  %v1857_v29 = vld [vmem:[%s9078_s25 + $0x2d00] sm:$0xff] }
 0x66e   : > { %v13018_v8 = vpop.permute.xlu1 %5803 }
 0x66f   : > { %v5840_v47 = vsel %vm5608_vm3, %v5802_v53, %v13018_v8  ;;  %v13022_v4 = vpop.permute.xlu0 %7150  ;;  %v1978_v53 = vld [vmem:[%s9078_s25 + $0x30c8] sm:$0xff] }
 0x670   : > { %14111 = vst [vmem:[#allocation25_spill] sm:$0xff] %v13022_v4  ;;  %v5901_v0 = vadd.f32 %v5840_v47, %v12569_v22  ;;  %v2717_v22 = vpack.c.bf16 %v1857_v29, %v1853_v13  ;;  %v2780_v47 = vpack.c.bf16 %v1980_v40, %v1976_v17  ;;  %v1973_v29 = vld [vmem:[%s9078_s25 + $0x30a0] sm:$0xff]  ;;  %v1979_v17 = vld [vmem:[%s9078_s25 + $0x30d0] sm:$0xff]  ;;  %v1968_v4 = vld [vmem:[%s9078_s25 + $0x3078] sm:$0xff] }
 0x671   : > { %5257 = vmatpush2.bf16.xpose.msra.mxu0 %v2721_v35  ;;  %5320 = vmatpush2.bf16.xpose.msra.mxu1 %v2723_v25  ;;  %v2778_v25 = vpack.c.bf16 %v1978_v53, %v1974_v36  ;;  %v1977_v36 = vld [vmem:[%s9078_s25 + $0x30c0] sm:$0xff]  ;;  %v1975_v53 = vld [vmem:[%s9078_s25 + $0x30b0] sm:$0xff] }
 0x672   : > { %5985 = vrot.lane.b32.xlu1 %v5901_v0, %s8864_s29  ;;  %v13028_v45 = vpop.permute.xlu1 %6202  ;;  %5258 = vmatprep.subr.bf16.mxu0 %v2718_v50 }
 0x673   : > { %14112 = vst [vmem:[#allocation57_spill] sm:$0xff] %v13028_v45  ;;  %8347 = vmatprep.subr.msk.bf16.mxu1 %vm2854_vm0, %v2720_v43 }
 0x674   : > { %v6419_v11 = vpop.permute.xlu0 %6418 }
 0x676   : > { %v13037_v35 = vpop.permute.xlu1 %7148 }
 0x677   : > { %14113 = vst [vmem:[#allocation58_spill] sm:$0xff] %v13037_v35  ;;  %v4935_v50 = vpop.f32.mrf.mxu0  ;;  %v1972_v35 = vld [vmem:[%s9078_s25 + $0x3098] sm:$0xff] }
 0x678   : > { %v13039_v0 = vpop.permute.xlu0 %6970  ;;  %v4998_v27 = vpop.f32.mrf.mxu1  ;;  %v2776_v37 = vpack.c.bf16 %v1972_v35, %v1968_v4  ;;  %v1969_v4 = vld [vmem:[%s9078_s25 + $0x3080] sm:$0xff]  ;;  %v1962_v35 = vld [vmem:[%s9078_s25 + $0x3048] sm:$0xff] }
 0x679   : > { %v13041_v43 = vadd.f32 %v4998_v27, %v4935_v50  ;;  %5259 = vmatpush2.bf16.xpose.msra.mxu0 %v2717_v22  ;;  %5322 = vmatpush2.bf16.xpose.msra.mxu1 %v2719_v44  ;;  %v4937_v13 = vpop.f32.mrf.mxu0  ;;  %v1966_v22 = vld [vmem:[%s9078_s25 + $0x3068] sm:$0xff] }
 0x67a   : > { %v5000_v51 = vpop.f32.mrf.mxu1  ;;  %v13044_v2 = vpop.permute.xlu1 %7152  ;;  %5354 = vmatprep.subr.bf16.mxu0 %v2778_v25  ;;  %8351 = vmatprep.subr.msk.bf16.mxu1 %vm2854_vm0, %v2780_v47  ;;  %v1970_v44 = vld [vmem:[%s9078_s25 + $0x3088] sm:$0xff]  ;;  %v2777_v47 = vpack.c.bf16 %v1977_v36, %v1973_v29  ;;  %v1965_v29 = vld [vmem:[%s9078_s25 + $0x3060] sm:$0xff] }
 0x67b   : > { %14114 = vst [vmem:[#allocation59_spill] sm:$0xff] %v13044_v2  ;;  %v13052_v40 = vsel %vm7267_vm1, %v13041_v43, -inf  ;;  %v13054_v27 = vadd.f32 %v5000_v51, %v4937_v13  ;;  %v2779_v2 = vpack.c.bf16 %v1979_v17, %v1975_v53  ;;  %v2774_v13 = vpack.c.bf16 %v1970_v44, %v1966_v22  ;;  %v1964_v53 = vld [vmem:[%s9078_s25 + $0x3058] sm:$0xff] }
 0x67c   : > { %v6819_v50 = vpop.permute.xlu0 %6818  ;;  %v2773_v17 = vpack.c.bf16 %v1969_v4, %v1965_v29 }
 0x67d   : > { %v13062_v25 = vsel %vm7267_vm1, %v13054_v27, -inf }
 0x67e   : > { %v13066_v5 = vpop.permute.xlu1 %6420 }
 0x67f   : > { %v6457_v51 = vsel %vm5608_vm3, %v6419_v11, %v13066_v5  ;;  %v1967_v11 = vld [vmem:[%s9078_s25 + $0x3070] sm:$0xff] }
 0x680   : > { %v6518_v56 = vadd.f32 %v6457_v51, %v12659_v54  ;;  %v13071_v45 = vpop.permute.xlu0 %5588  ;;  %5261 = vmatmul.mubr.bf16.vlgmr.msra.gmra.mxu0 %v12703_v58  ;;  %5324 = vmatmul.mubr.bf16.vlgmr.msra.gmra.mxu1 %v12710_v10  ;;  %v1971_v54 = vld [vmem:[%s9078_s25 + $0x3090] sm:$0xff]  ;;  %v1958_v58 = vld [vmem:[%s9078_s25 + $0x3028] sm:$0xff]  ;;  %v5002_v51 = vpop.f32.mrf.mxu1 }
 0x681   : > { %5355 = vmatpush1.bf16.xpose.msra.mxu0 %v2777_v47  ;;  %5418 = vmatpush1.bf16.xpose.msra.mxu1 %v2779_v2  ;;  %v1960_v2 = vld [vmem:[%s9078_s25 + $0x3038] sm:$0xff]  ;;  %v2775_v22 = vpack.c.bf16 %v1971_v54, %v1967_v11  ;;  %v1963_v11 = vld [vmem:[%s9078_s25 + $0x3050] sm:$0xff]  ;;  %v1950_v54 = vld [vmem:[%s9078_s25 + $0x2fe8] sm:$0xff] }
 0x682   : > { %6602 = vrot.lane.b32.xlu0 %v6518_v56, %s8864_s29  ;;  %v13077_v36 = vpop.permute.xlu1 %6972  ;;  %5356 = vmatprep.subr.bf16.mxu0 %v2774_v13  ;;  %v2772_v13 = vpack.c.bf16 %v1964_v53, %v1960_v2  ;;  %v5004_v53 = vpop.f32.mrf.mxu1 }
 0x683   : > { %8352 = vmatprep.subr.msk.bf16.mxu1 %vm2854_vm0, %v2776_v37  ;;  %5270 = vmatprep.mubr.bf16.mxu0 %v12726_v46  ;;  %v2770_v37 = vpack.c.bf16 %v1962_v35, %v1958_v58  ;;  %v1952_v58 = vld [vmem:[%s9078_s25 + $0x2ff8] sm:$0xff] }
 0x684   : > { %v5806_v10 = vpop.permute.xlu0 %5805  ;;  %8349 = vmatprep.mubr.msk.bf16.mxu1 %vm2854_vm0, %v12737_v24  ;;  %v1956_v35 = vld [vmem:[%s9078_s25 + $0x3018] sm:$0xff] }
 0x685   : > { %v5841_v56 = vsel %vm5608_vm3, %v13018_v8, %v5806_v10  ;;  %v4939_v8 = vpop.f32.mrf.mxu0 }
 0x686   : > { %v5902_v44 = vadd.f32 %v5841_v56, %v12584_v7  ;;  %v13093_v47 = vpop.permute.xlu1 %6820  ;;  %v7009_v7 = vsel %vm6009_vm4, %v13039_v0, %v13077_v36  ;;  %v1954_v0 = vld [vmem:[%s9078_s25 + $0x3008] sm:$0xff] }
 0x687   : > { %v6857_v46 = vsel %vm5608_vm3, %v6819_v50, %v13093_v47  ;;  %v1957_v50 = vld [vmem:[%s9078_s25 + $0x3020] sm:$0xff]  ;;  %v4941_v2 = vpop.f32.mrf.mxu0 }
 0x688   : > { %v6918_v24 = vadd.f32 %v6857_v46, %v12675_v39  ;;  %5987 = vrot.lane.b32.xlu0 %v5902_v44, %s8864_s29  ;;  %5271 = vmatmul.mubr.bf16.gmra.mxu0 %v12762_v59  ;;  %v1961_v39 = vld [vmem:[%s9078_s25 + $0x3040] sm:$0xff]  ;;  %v1959_v59 = vld [vmem:[%s9078_s25 + $0x3030] sm:$0xff]  ;;  %v2766_v46 = vpack.c.bf16 %v1954_v0, %v1950_v54  ;;  %v1944_v0 = vld [vmem:[%s9078_s25 + $0x2fb8] sm:$0xff] }
 0x689   : > { %5357 = vmatpush1.bf16.xpose.msra.mxu0 %v2773_v17  ;;  %5420 = vmatpush1.bf16.xpose.msra.mxu1 %v2775_v22  ;;  %v2771_v56 = vpack.c.bf16 %v1963_v11, %v1959_v59  ;;  %v1946_v59 = vld [vmem:[%s9078_s25 + $0x2fc8] sm:$0xff] }
 0x68a   : > { %v7070_v29 = vadd.f32 %v7009_v7, %v6918_v24  ;;  %v13104_v4 = vpop.permute.xlu1 %5590  ;;  %5334 = vmatmul.mubr.bf16.gmra.mxu1 %v12775_v18  ;;  %5358 = vmatprep.subr.bf16.mxu0 %v2770_v37  ;;  %v2769_v18 = vpack.c.bf16 %v1961_v39, %v1957_v50  ;;  %v5008_v37 = vpop.f32.mrf.mxu1  ;;  %v13121_v24 = vadd.f32 %v5002_v51, %v4939_v8  ;;  %v1951_v51 = vld [vmem:[%s9078_s25 + $0x2ff0] sm:$0xff]  ;;  %v1942_v39 = vld [vmem:[%s9078_s25 + $0x2fa8] sm:$0xff] }
 0x68b   : > { %8353 = vmatprep.subr.msk.bf16.mxu1 %vm2854_vm0, %v2772_v13  ;;  %5280 = vmatprep.mubr.bf16.mxu0 %v12787_v26  ;;  %v4945_v26 = vpop.f32.mrf.mxu0  ;;  %v2768_v13 = vpack.c.bf16 %v1956_v35, %v1952_v58  ;;  %v13129_v50 = vpop.permute.xlu0 %6422  ;;  %v1948_v58 = vld [vmem:[%s9078_s25 + $0x2fd8] sm:$0xff]  ;;  %v8637_v35 = vld [vmem:[%s13936_s1 + $0x4] ss:$16 sps:$4 sm:$0xff]  }
 0x68c   : > { %7154 = vrot.lane.b32.xlu1 %v7070_v29, %s8865_s21  ;;  %8350 = vmatprep.mubr.msk.bf16.mxu1 %vm2854_vm0, %v12796_v1  ;;  %v13123_v1 = vadd.f32 %v5004_v53, %v4941_v2  ;;  %v5010_v29 = vpop.f32.mrf.mxu1  ;;  %v5536_v11 = vrot.slane %v13121_v24, 4  ;;  %v6458_v2 = vsel %vm5608_vm3, %v13066_v5, %v13129_v50 }
 0x68e   : > { %v5808_v17 = vpop.permute.xlu1 %5807  ;;  %v5537_v54 = vrot.slane %v13123_v1, 4 }
 0x68f   : > { %v5842_v22 = vsel %vm5608_vm3, %v5806_v10, %v5808_v17  ;;  %v5904_v44 = vadd.f32 %v5808_v17, %v12829_v19  ;;  %v1949_v10 = vld [vmem:[%s9078_s25 + $0x2fe0] sm:$0xff] }
 0x690   : > { %v5903_v7 = vadd.f32 %v5842_v22, %v12770_v20  ;;  %5281 = vmatmul.mubr.bf16.gmra.mxu0 %v12816_v6  ;;  %v1953_v19 = vld [vmem:[%s9078_s25 + $0x3000] sm:$0xff]  ;;  %v1955_v20 = vld [vmem:[%s9078_s25 + $0x3010] sm:$0xff]  ;;  %v4947_v6 = vpop.f32.mrf.mxu0  ;;  %v2762_v22 = vpack.c.bf16 %v1946_v59, %v1942_v39 }
 0x691   : > { %5359 = vmatpush1.bf16.xpose.msra.mxu0 %v2769_v18  ;;  %5422 = vmatpush1.bf16.xpose.msra.mxu1 %v2771_v56  ;;  %v2765_v53 = vpack.c.bf16 %v1953_v19, %v1949_v10  ;;  %v2767_v18 = vpack.c.bf16 %v1955_v20, %v1951_v51  ;;  %v8638_v56 = vld [vmem:[%s13936_s1 + $0xc] ss:$16 sps:$4 sm:$0xff]   ;;  %v13159_v17 = vadd.f32 %v5010_v29, %v4947_v6  ;;  %v1941_v10 = vld [vmem:[%s9078_s25 + $0x2fa0] sm:$0xff]  ;;  %v1943_v29 = vld [vmem:[%s9078_s25 + $0x2fb0] sm:$0xff] }
 0x692   : > { %5991 = vrot.lane.b32.xlu0 %v5904_v44, %s8864_s29  ;;  %5989 = vrot.lane.b32.xlu1 %v5903_v7, %s8864_s29  ;;  %v13133_v8 = vpop.permute.xlu1 %6206  ;;  %v4949_v5 = vpop.f32.mrf.mxu0  ;;  %v13165_v19 = vadd.f32 %v5008_v37, %v4945_v26  ;;  %v1947_v39 = vld [vmem:[%s9078_s25 + $0x2fd0] sm:$0xff]  ;;  %v1938_v37 = vld [vmem:[%s9078_s25 + $0x2f88] sm:$0xff] }
 0x693   : > { %5360 = vmatprep.subr.bf16.mxu0 %v2766_v46  ;;  %8354 = vmatprep.subr.msk.bf16.mxu1 %vm2854_vm0, %v2768_v13  ;;  %v5012_v44 = vpop.f32.mrf.mxu1  ;;  %v2764_v46 = vpack.c.bf16 %v1948_v58, %v1944_v0  ;;  %v6519_v13 = vadd.f32 %v6458_v2, %v12626_v15  ;;  %v13162_v7 = vpop.permute.xlu0 %6974  ;;  %v5754_v51 = vrot.slane %v13159_v17, 4  ;;  %v1945_v15 = vld [vmem:[%s9078_s25 + $0x2fc0] sm:$0xff]  ;;  %v1936_v0 = vld [vmem:[%s9078_s25 + $0x2f78] sm:$0xff]  ;;  %v2763_v2 = vpack.c.bf16 %v1947_v39, %v1943_v29  ;;  %v1935_v39 = vld [vmem:[%s9078_s25 + $0x2f70] sm:$0xff] }
 0x694   : > { %5344 = vmatmul.mubr.bf16.gmra.mxu1 %v12822_v48  ;;  %5386 = vmatprep.mubr.bf16.mxu0 %v8637_v35  ;;  %v13169_v6 = vadd.f32 %v5012_v44, %v4949_v5  ;;  %v1940_v58 = vld [vmem:[%s9078_s25 + $0x2f98] sm:$0xff]  ;;  %v2761_v35 = vpack.c.bf16 %v1945_v15, %v1941_v10  ;;  %v1933_v15 = vld [vmem:[%s9078_s25 + $0x2f60] sm:$0xff] }
 0x695   : > { %8360 = vmatprep.mubr.msk.bf16.mxu1 %vm2854_vm0, %v8638_v56  ;;  %v5014_v26 = vpop.f32.mrf.mxu1  ;;  %v2760_v5 = vpack.c.bf16 %v1940_v58, %v1936_v0  ;;  %v1937_v29 = vld [vmem:[%s9078_s25 + $0x2f80] sm:$0xff] }
 0x696   : > { %5592 = vrot.lane.b32.xlu0 %v5536_v11, %s8863_s19  ;;  %5594 = vrot.lane.b32.xlu1 %v5537_v54, %s8863_s19  ;;  %v13157_v48 = vpop.permute.xlu1 %6208  ;;  %v1934_v11 = vld [vmem:[%s9078_s25 + $0x2f68] sm:$0xff]  ;;  %v4951_v54 = vpop.f32.mrf.mxu0  ;;  %v6154_v56 = vrot.slane %v13169_v6, 4 }
 0x697   : > { %14115 = vst [vmem:[#allocation60_spill] sm:$0xff] %v13157_v48  ;;  %v2757_v48 = vpack.c.bf16 %v1937_v29, %v1933_v15  ;;  %v1927_v15 = vld [vmem:[%s9078_s25 + $0x2f30] sm:$0xff] }
 0x698   : > { %v4955_v44 = vpop.f32.mrf.mxu0  ;;  %v1931_v29 = vld [vmem:[%s9078_s25 + $0x2f50] sm:$0xff] }
 0x699   : > { %5361 = vmatpush1.bf16.xpose.msra.mxu0 %v2765_v53  ;;  %5424 = vmatpush1.bf16.xpose.msra.mxu1 %v2767_v18  ;;  %v6823_v53 = vpop.permute.xlu0 %6822  ;;  %v5753_v18 = vrot.slane %v13165_v19, 4 }
 0x69a   : > { %6604 = vrot.lane.b32.xlu1 %v6519_v13, %s8864_s29  ;;  %v6425_v20 = vpop.permute.xlu1 %6424  ;;  %5362 = vmatprep.subr.bf16.mxu0 %v2762_v22  ;;  %v2758_v22 = vpack.c.bf16 %v1938_v37, %v1934_v11  ;;  %v6858_v13 = vsel %vm5608_vm3, %v13093_v47, %v6823_v53  ;;  %v4957_v58 = vpop.f32.mrf.mxu0 }
 0x69b   : > { %v6521_v59 = vadd.f32 %v6425_v20, %v12870_v16  ;;  %8355 = vmatprep.subr.msk.bf16.mxu1 %vm2854_vm0, %v2764_v46  ;;  %v5018_v46 = vpop.f32.mrf.mxu1  ;;  %v6459_v10 = vsel %vm5608_vm3, %v13129_v50, %v6425_v20  ;;  %v1926_v50 = vld [vmem:[%s9078_s25 + $0x2f28] sm:$0xff]  ;;  %v6919_v37 = vadd.f32 %v6858_v13, %v12755_v28 }
 0x69c   : > { %v1930_v20 = vld [vmem:[%s9078_s25 + $0x2f48] sm:$0xff]  ;;  %v6520_v0 = vadd.f32 %v6459_v10, %v12854_v30  ;;  %v7010_v30 = vsel %vm6009_vm4, %v13077_v36, %v13162_v7  ;;  %v4959_v10 = vpop.f32.mrf.mxu0 }
 0x69d   : > { %6608 = vrot.lane.b32.xlu0 %v6521_v59, %s8864_s29  ;;  %v1939_v59 = vld [vmem:[%s9078_s25 + $0x2f90] sm:$0xff]  ;;  %v2754_v28 = vpack.c.bf16 %v1930_v20, %v1926_v50  ;;  %v7071_v13 = vadd.f32 %v7010_v30, %v6919_v37  ;;  %v1924_v50 = vld [vmem:[%s9078_s25 + $0x2f18] sm:$0xff] }
 0x69e   : > { %v6977_v16 = vpop.permute.xlu1 %6976  ;;  %5811 = vrot.lane.b32.xlu1 %v5754_v51, %s8863_s19  ;;  %v1984_v30 = vld [vmem:[%s9078_s25 + $0x30f8] sm:$0xff] }
 0x6a1   : > { %5363 = vmatpush1.bf16.xpose.msra.mxu0 %v2761_v35  ;;  %5426 = vmatpush1.bf16.xpose.msra.mxu1 %v2763_v2  ;;  %v5020_v35 = vpop.f32.mrf.mxu1  ;;  %v1928_v2 = vld [vmem:[%s9078_s25 + $0x2f38] sm:$0xff] }
 0x6a2   : > { %5809 = vrot.lane.b32.xlu0 %v5753_v18, %s8863_s19  ;;  %v6825_v51 = vpop.permute.xlu1 %6824  ;;  %6210 = vrot.lane.b32.xlu1 %v6154_v56, %s8863_s19  ;;  %v1932_v18 = vld [vmem:[%s9078_s25 + $0x2f58] sm:$0xff] }
 0x6a3   : > { %v6859_v11 = vsel %vm5608_vm3, %v6823_v53, %v6825_v51  ;;  %v6921_v47 = vadd.f32 %v6825_v51, %v12875_v12  ;;  %5364 = vmatprep.subr.bf16.mxu0 %v2758_v22  ;;  %8356 = vmatprep.subr.msk.bf16.mxu1 %vm2854_vm0, %v2760_v5  ;;  %v2759_v53 = vpack.c.bf16 %v1939_v59, %v1935_v39  ;;  %v1922_v39 = vld [vmem:[%s9078_s25 + $0x2f08] sm:$0xff]  ;;  %v4961_v59 = vpop.f32.mrf.mxu0 }
 0x6a4   : > { %v6920_v56 = vadd.f32 %v6859_v11, %v12811_v55  ;;  %v7011_v12 = vsel %vm6009_vm4, %v13162_v7, %v6977_v16  ;;  %v13207_v22 = vadd.f32 %v5014_v26, %v4951_v54  ;;  %v13213_v55 = vadd.f32 %v5020_v35, %v4957_v58  ;;  %v1925_v26 = vld [vmem:[%s9078_s25 + $0x2f20] sm:$0xff] }
 0x6a5   : > { %v7073_v33 = vadd.f32 %v6977_v16, %v6921_v47  ;;  %v2756_v5 = vpack.c.bf16 %v1932_v18, %v1928_v2  ;;  %v5022_v16 = vpop.f32.mrf.mxu1  ;;  %v1929_v7 = vld [vmem:[%s9078_s25 + $0x2f40] sm:$0xff]  ;;  %v1920_v47 = vld [vmem:[%s9078_s25 + $0x2ef8] sm:$0xff] }
 0x6a6   : > { %6606 = vrot.lane.b32.xlu0 %v6520_v0, %s8864_s29  ;;  %v7072_v54 = vadd.f32 %v7011_v12, %v6920_v56  ;;  %v6155_v36 = vrot.slane %v13207_v22, 4  ;;  %v6371_v51 = vrot.slane %v13213_v55, 4  ;;  %v2752_v58 = vpack.c.bf16 %v1924_v50, %v1920_v47  ;;  %v1917_v35 = vld [vmem:[%s9078_s25 + $0x2ee0] sm:$0xff]  ;;  %v1919_v56 = vld [vmem:[%s9078_s25 + $0x2ef0] sm:$0xff] }
 0x6a7   : > { %7160 = vrot.lane.b32.xlu1 %v7073_v33, %s8865_s21  ;;  %v13218_v33 = vadd.f32 %v5018_v46, %v4955_v44  ;;  %v5024_v11 = vpop.f32.mrf.mxu1  ;;  %v2753_v44 = vpack.c.bf16 %v1929_v7, %v1925_v26  ;;  %v2755_v46 = vpack.c.bf16 %v1931_v29, %v1927_v15  ;;  %v5023_v2 = vadd.f32 %v5022_v16, %v4959_v10  ;;  %v1921_v18 = vld [vmem:[%s9078_s25 + $0x2f00] sm:$0xff] }
 0x6a8   : > { %v5025_v0 = vadd.f32 %v5024_v11, %v4961_v59  ;;  %v2784_v16 = vpack.c.bf16 %v1984_v30, %v1984_v30  ;;  %v1981_v26 = vld [vmem:[%s9078_s25 + $0x30e0] sm:$0xff] }
 0x6a9   : > { %5365 = vmatpush1.bf16.xpose.msra.mxu0 %v2757_v48  ;;  %5428 = vmatpush1.bf16.xpose.msra.mxu1 %v2759_v53  ;;  %v1918_v48 = vld [vmem:[%s9078_s25 + $0x2ee8] sm:$0xff]  ;;  %v6370_v20 = vrot.slane %v13218_v33, 4  ;;  %v1923_v53 = vld [vmem:[%s9078_s25 + $0x2f10] sm:$0xff]  ;;  %v2781_v7 = vpack.c.bf16 %v1981_v26, %v1981_v26 }
 0x6aa   : > { %7156 = vrot.lane.b32.xlu0 %v7071_v13, %s8865_s21  ;;  %5366 = vmatprep.subr.bf16.mxu0 %v2754_v28  ;;  %v2750_v37 = vpack.c.bf16 %v1922_v39, %v1918_v48  ;;  %v6771_v12 = vrot.slane %v5025_v0, 4  ;;  %v1982_v28 = vld [vmem:[%s9078_s25 + $0x30e8] sm:$0xff]  ;;  %v2751_v13 = vpack.c.bf16 %v1923_v53, %v1919_v56 }
 0x6ab   : > { %7158 = vrot.lane.b32.xlu1 %v7072_v54, %s8865_s21  ;;  %8357 = vmatprep.subr.msk.bf16.mxu1 %vm2854_vm0, %v2756_v5  ;;  %v2749_v5 = vpack.c.bf16 %v1921_v18, %v1917_v35  ;;  %v6770_v54 = vrot.slane %v5023_v2, 4  ;;  %v2782_v10 = vpack.c.bf16 %v1982_v28, %v1982_v28 }
 0x6ae   : > { %6212 = vrot.lane.b32.xlu0 %v6155_v36, %s8863_s19  ;;  %v1983_v36 = vld [vmem:[%s9078_s25 + $0x30f0] sm:$0xff] }
 0x6af   : > { %6428 = vrot.lane.b32.xlu1 %v6371_v51, %s8863_s19  ;;  %v2783_v15 = vpack.c.bf16 %v1983_v36, %v1983_v36 }
 0x6b1   : > { %5367 = vmatpush1.bf16.xpose.msra.mxu0 %v2753_v44  ;;  %5430 = vmatpush1.bf16.xpose.msra.mxu1 %v2755_v46  ;;  %v14116_v44 = vmax.f32 %v13052_v40, %v13062_v25  ;;  %v8639_v25 = vld [vmem:[%s13936_s1] ss:$16 sps:$4 sm:$0xff]  }
 0x6b2   : > { %6426 = vrot.lane.b32.xlu0 %v6370_v20, %s8863_s19  ;;  %5368 = vmatprep.subr.bf16.mxu0 %v2750_v37 }
 0x6b3   : > { %6980 = vrot.lane.b32.xlu1 %v5025_v0, %s8864_s29  ;;  %8358 = vmatprep.subr.msk.bf16.mxu1 %vm2854_vm0, %v2752_v58 }
 0x6b6   : > { %6978 = vrot.lane.b32.xlu0 %v5023_v2, %s8864_s29 }
 0x6b7   : > { %6828 = vrot.lane.b32.xlu1 %v6771_v12, %s8863_s19  ;;  %v8640_v12 = vld [vmem:[%s13936_s1 + $0x8] ss:$16 sps:$4 sm:$0xff]  }
 0x6b9   : > { %5369 = vmatpush1.bf16.xpose.msra.mxu0 %v2749_v5  ;;  %5432 = vmatpush1.bf16.xpose.msra.mxu1 %v2751_v13  ;;  %v8641_v13 = vld [vmem:[%s13936_s1 + $0x24] ss:$16 sps:$4 sm:$0xff]  }
 0x6ba   : > { %6826 = vrot.lane.b32.xlu0 %v6770_v54, %s8863_s19  ;;  %5384 = vmatprep.subr.bf16.mxu0 %v2782_v10  ;;  %v8642_v10 = vld [vmem:[%s13936_s1 + $0x2c] ss:$16 sps:$4 sm:$0xff]  }
 0x6bb   : > { %8359 = vmatprep.subr.msk.bf16.mxu1 %vm2854_vm0, %v2784_v16 }
 0x6bf   : > { %v5061_v29 = vpop.f32.mrf.mxu0 }
 0x6c0   : > { %v5124_v51 = vpop.f32.mrf.mxu1 }
 0x6c1   : > { %v13248_v48 = vadd.f32 %v5124_v51, %v5061_v29  ;;  %5385 = vmatpush2.bf16.xpose.msra.mxu0 %v2781_v7  ;;  %5448 = vmatpush2.bf16.xpose.msra.mxu1 %v2783_v15  ;;  %v5063_v39 = vpop.f32.mrf.mxu0 }
 0x6c2   : > { %v5126_v59 = vpop.f32.mrf.mxu1 }
 0x6c3   : > { %v7326_v11 = vsel %vm7267_vm1, %v13248_v48, -inf  ;;  %v13252_v47 = vadd.f32 %v5126_v59, %v5063_v39  ;;  %v5065_v50 = vpop.f32.mrf.mxu0 }
 0x6c4   : > { %v13257_v46 = vmax.f32 %v14116_v44, %v7326_v11  ;;  %v5128_v20 = vpop.f32.mrf.mxu1 }
 0x6c5   : > { %v13261_v37 = vsel %vm7273_vm2, %v13252_v47, -inf  ;;  %v13263_v0 = vadd.f32 %v5128_v20, %v5065_v50  ;;  %v5067_v58 = vpop.f32.mrf.mxu0  ;;  %v8643_v20 = vld [vmem:[%s13936_s1 + $0x20] ss:$16 sps:$4 sm:$0xff]  }
 0x6c6   : > { %14117 = vst [vmem:[#allocation61_spill] sm:$0xff] %v13257_v46  ;;  %14118 = vst [vmem:[#allocation62_spill] sm:$0xff] %v13261_v37  ;;  %v5130_v2 = vpop.f32.mrf.mxu1 }
 0x6c7   : > { %v5538_v18 = vrot.slane %v13263_v0, 4  ;;  %v13268_v56 = vadd.f32 %v5130_v2, %v5067_v58  ;;  %v5071_v53 = vpop.f32.mrf.mxu0  ;;  %v8644_v58 = vld [vmem:[%s13936_s1 + $0x28] ss:$16 sps:$4 sm:$0xff]  }
 0x6c8   : > { %v5134_v40 = vpop.f32.mrf.mxu1  ;;  %5387 = vmatmul.mubr.bf16.vlgmr.msra.gmra.mxu0 %v8639_v25  ;;  %5450 = vmatmul.mubr.bf16.vlgmr.msra.gmra.mxu1 %v8640_v12  ;;  %v8646_v25 = vld [vmem:[%s13936_s1 + $0x4c] ss:$16 sps:$4 sm:$0xff]  }
 0x6c9   : > { %v5539_v28 = vrot.slane %v13268_v56, 4  ;;  %v13277_v30 = vadd.f32 %v5134_v40, %v5071_v53  ;;  %5596 = vrot.lane.b32.xlu0 %v5538_v18, %s8863_s19  ;;  %v5073_v5 = vpop.f32.mrf.mxu0  ;;  %5396 = vmatprep.mubr.bf16.mxu0 %v8641_v13  ;;  %v8645_v40 = vld [vmem:[%s13936_s1 + $0x44] ss:$16 sps:$4 sm:$0xff]  }
 0x6ca   : > { %v5136_v54 = vpop.f32.mrf.mxu1  ;;  %8361 = vmatprep.mubr.msk.bf16.mxu1 %vm2854_vm0, %v8642_v10 }
 0x6cb   : > { %v5755_v16 = vrot.slane %v13277_v30, 4  ;;  %v13288_v26 = vadd.f32 %v5136_v54, %v5073_v5  ;;  %5598 = vrot.lane.b32.xlu1 %v5539_v28, %s8863_s19  ;;  %v5075_v36 = vpop.f32.mrf.mxu0 }
 0x6cc   : > { %v5138_v7 = vpop.f32.mrf.mxu1 }
 0x6cd   : > { %v5756_v15 = vrot.slane %v13288_v26, 4  ;;  %v13292_v29 = vadd.f32 %v5138_v7, %v5075_v36  ;;  %5813 = vrot.lane.b32.xlu0 %v5755_v16, %s8863_s19  ;;  %v5077_v51 = vpop.f32.mrf.mxu0 }
 0x6ce   : > { %v5140_v39 = vpop.f32.mrf.mxu1 }
 0x6cf   : > { %v6156_v59 = vrot.slane %v13292_v29, 4  ;;  %v13296_v11 = vadd.f32 %v5140_v39, %v5077_v51  ;;  %5815 = vrot.lane.b32.xlu1 %v5756_v15, %s8863_s19  ;;  %v5081_v50 = vpop.f32.mrf.mxu0  ;;  %v8647_v51 = vld [vmem:[%s13936_s1 + $0x40] ss:$16 sps:$4 sm:$0xff]   ;;  %v8648_v39 = vld [vmem:[%s13936_s1 + $0x48] ss:$16 sps:$4 sm:$0xff]  }
 0x6d0   : > { %v5144_v44 = vpop.f32.mrf.mxu1  ;;  %5397 = vmatmul.mubr.bf16.gmra.mxu0 %v8643_v20  ;;  %5460 = vmatmul.mubr.bf16.gmra.mxu1 %v8644_v58 }
 0x6d1   : > { %v6157_v2 = vrot.slane %v13296_v11, 4  ;;  %v13306_v18 = vadd.f32 %v5144_v44, %v5081_v50  ;;  %v5083_v53 = vpop.f32.mrf.mxu0  ;;  %5406 = vmatprep.mubr.bf16.mxu0 %v8645_v40  ;;  %8362 = vmatprep.mubr.msk.bf16.mxu1 %vm2854_vm0, %v8646_v25  ;;  %v5625_v40 = vsel %vm5608_vm3, %v12985_v23, %v13071_v45  ;;  %v5626_v25 = vsel %vm5608_vm3, %v13071_v45, %v13104_v4 }
 0x6d2   : > { %v5146_v12 = vpop.f32.mrf.mxu1 }
 0x6d3   : > { %v6372_v28 = vrot.slane %v13306_v18, 4  ;;  %v13316_v5 = vadd.f32 %v5146_v12, %v5083_v53  ;;  %6216 = vrot.lane.b32.xlu0 %v6157_v2, %s8863_s19  ;;  %6214 = vrot.lane.b32.xlu1 %v6156_v59, %s8863_s19  ;;  %v5085_v13 = vpop.f32.mrf.mxu0  ;;  %v5624_v2 = vsel %vm5608_vm3, %v12980_v38, %v12985_v23  ;;  %v5688_v23 = vadd.f32 %v13104_v4, %v12669_v61 }
 0x6d4   : > { %v5148_v54 = vpop.f32.mrf.mxu1 }
 0x6d5   : > { %v6373_v10 = vrot.slane %v13316_v5, 4  ;;  %v5087_v16 = vpop.f32.mrf.mxu0  ;;  %v5149_v7 = vadd.f32 %v5148_v54, %v5085_v13  ;;  %v5686_v13 = vadd.f32 %v5625_v40, %v12382_v14  ;;  %v5687_v54 = vadd.f32 %v5626_v25, %v12652_v49 }
 0x6d6   : > { %v5150_v36 = vpop.f32.mrf.mxu1 }
 0x6d7   : > { %6430 = vrot.lane.b32.xlu0 %v6372_v28, %s8863_s19  ;;  %6432 = vrot.lane.b32.xlu1 %v6373_v10, %s8863_s19  ;;  %v5151_v15 = vadd.f32 %v5150_v36, %v5087_v16  ;;  %v6772_v59 = vrot.slane %v5149_v7, 4  ;;  %v5685_v28 = vadd.f32 %v5624_v2, %v12369_v21 }
 0x6d8   : > { %5407 = vmatmul.mubr.bf16.gmra.mxu0 %v8647_v51  ;;  %5470 = vmatmul.mubr.bf16.gmra.mxu1 %v8648_v39 }
 0x6d9   : > { %v6773_v50 = vrot.slane %v5151_v15, 4 }
 0x6db   : > { %6982 = vrot.lane.b32.xlu0 %v5149_v7, %s8864_s29  ;;  %6984 = vrot.lane.b32.xlu1 %v5151_v15, %s8864_s29 }
 0x6df   : > { %6830 = vrot.lane.b32.xlu0 %v6772_v59, %s8863_s19  ;;  %6832 = vrot.lane.b32.xlu1 %v6773_v50, %s8863_s19 }
 0x6e4   : > { %v5986_v20 = vpop.permute.xlu1 %5985 }
 0x6f4   : > { %v13333_v44 = vpop.permute.xlu0 %6602 }
 0x6f5   : > { %14119 = vst [vmem:[#allocation63_spill] sm:$0xff] %v13333_v44 }
 0x6fa   : > { %v5988_v58 = vpop.permute.xlu0 %5987 }
 0x6fb   : > { %v6025_v12 = vsel %vm6009_vm4, %v5986_v20, %v5988_v58 }
 0x6fc   : > { %v6086_v10 = vadd.f32 %v6025_v12, %v5685_v28 }
 0x6fe   : > { %v13338_v53 = vpop.permute.xlu1 %7154  ;;  %v7414_v51 = vsel %vm7367_vm5, %v6086_v10, -inf }
 0x6ff   : > { %14120 = vst [vmem:[#allocation64_spill] sm:$0xff] %v13338_v53 }
 0x704   : > { %v5992_v38 = vpop.permute.xlu0 %5991  ;;  %v5990_v16 = vpop.permute.xlu1 %5989 }
 0x705   : > { %v6026_v36 = vsel %vm6009_vm4, %v5988_v58, %v5990_v16  ;;  %v6027_v7 = vsel %vm6009_vm4, %v5990_v16, %v5992_v38  ;;  %v6089_v39 = vadd.f32 %v5992_v38, %v5688_v23 }
 0x706   : > { %v6087_v15 = vadd.f32 %v6026_v36, %v5686_v13  ;;  %v6088_v45 = vadd.f32 %v6027_v7, %v5687_v54 }
 0x707   : > { %v13366_v61 = vsel %vm7373_vm6, %v6089_v39, -inf }
 0x708   : > { %v7415_v21 = vsel %vm7367_vm5, %v6087_v15, -inf  ;;  %v13356_v14 = vpop.permute.xlu1 %5594  ;;  %v7417_v59 = vsel %vm7367_vm5, %v6088_v45, -inf  ;;  %v13359_v50 = vpop.permute.xlu0 %5592  ;;  %14123 = vst [vmem:[#allocation67_spill] sm:$0xff] %v13366_v61 }
 0x709   : > { %v7416_v49 = vmax.f32 %v7414_v51, %v7415_v21 }
 0x70b   : > { %v13361_v20 = vmax.f32 %v7416_v49, %v7417_v59 }
 0x70c   : > { %v13363_v58 = vpop.permute.xlu1 %6604 }
 0x70d   : > { %14121 = vst [vmem:[#allocation65_spill] sm:$0xff] %v13361_v20  ;;  %14122 = vst [vmem:[#allocation66_spill] sm:$0xff] %v13363_v58 }
 0x70f   : > { %v13370_v2 = vpop.permute.xlu0 %6608 }
 0x710   : > { %14124 = vst [vmem:[#allocation68_spill] sm:$0xff] %v13370_v2  ;;  %v5812_v40 = vpop.permute.xlu1 %5811 }
 0x714   : > { %v5810_v25 = vpop.permute.xlu0 %5809  ;;  %v13372_v12 = vpop.permute.xlu1 %6210 }
 0x715   : > { %v5843_v28 = vsel %vm5608_vm3, %v5810_v25, %v5812_v40 }
 0x716   : > { %v5905_v13 = vadd.f32 %v5843_v28, %v13121_v24 }
 0x718   : > { %v13376_v54 = vpop.permute.xlu0 %6606  ;;  %5993 = vrot.lane.b32.xlu0 %v5905_v13, %s8864_s29 }
 0x719   : > { %v13379_v10 = vpop.permute.xlu1 %7160 }
 0x71a   : > { %14125 = vst [vmem:[#allocation69_spill] sm:$0xff] %v13379_v10 }
 0x71c   : > { %v13381_v38 = vpop.permute.xlu0 %7156 }
 0x71d   : > { %14126 = vst [vmem:[#allocation70_spill] sm:$0xff] %v13381_v38  ;;  %v13383_v16 = vpop.permute.xlu1 %7158 }
 0x71e   : > { %14127 = vst [vmem:[#allocation71_spill] sm:$0xff] %v13383_v16 }
 0x720   : > { %v13385_v36 = vpop.permute.xlu0 %6212 }
 0x721   : > { %v6429_v7 = vpop.permute.xlu1 %6428 }
 0x724   : > { %v6427_v23 = vpop.permute.xlu0 %6426 }
 0x725   : > { %v6460_v15 = vsel %vm5608_vm3, %v6427_v23, %v6429_v7  ;;  %v13388_v45 = vpop.permute.xlu1 %6980 }
 0x726   : > { %v6522_v24 = vadd.f32 %v6460_v15, %v13169_v6 }
 0x728   : > { %v6979_v51 = vpop.permute.xlu0 %6978  ;;  %6610 = vrot.lane.b32.xlu0 %v6522_v24, %s8864_s29 }
 0x729   : > { %v13392_v39 = vpop.permute.xlu1 %6828  ;;  %v7012_v49 = vsel %vm6009_vm4, %v6979_v51, %v13388_v45 }
 0x72c   : > { %v6827_v21 = vpop.permute.xlu0 %6826 }
 0x72d   : > { %v6860_v59 = vsel %vm5608_vm3, %v6827_v21, %v13392_v39 }
 0x72e   : > { %v6922_v25 = vadd.f32 %v6860_v59, %v13218_v33 }
 0x730   : > { %v7074_v28 = vadd.f32 %v7012_v49, %v6922_v25 }
 0x732   : > { %7162 = vrot.lane.b32.xlu0 %v7074_v28, %s8865_s21 }
 0x73b   : > { %v13400_v13 = vpop.permute.xlu0 %5596 }
 0x73d   : > { %v13402_v6 = vpop.permute.xlu1 %5598 }
 0x73f   : > { %v5814_v23 = vpop.permute.xlu0 %5813 }
 0x740   : > { %v5844_v15 = vsel %vm5608_vm3, %v5812_v40, %v5814_v23  ;;  %v5262_v24 = vpop.f32.mrf.mxu0  ;;  %v5325_v35 = vpop.f32.mrf.mxu1 }
 0x741   : > { %v5906_v4 = vadd.f32 %v5844_v15, %v13123_v1  ;;  %v13406_v51 = vadd.f32 %v5325_v35, %v5262_v24  ;;  %v5816_v37 = vpop.permute.xlu1 %5815 }
 0x742   : > { %v5845_v21 = vsel %vm5608_vm3, %v5814_v23, %v5816_v37  ;;  %v5264_v33 = vpop.f32.mrf.mxu0  ;;  %v5327_v49 = vpop.f32.mrf.mxu1  ;;  %v5908_v1 = vadd.f32 %v5816_v37, %v13268_v56 }
 0x743   : > { %v13411_v59 = vsel %vm7267_vm1, %v13406_v51, -inf  ;;  %v5907_v25 = vadd.f32 %v5845_v21, %v13263_v0  ;;  %v13414_v28 = vadd.f32 %v5327_v49, %v5264_v33  ;;  %5995 = vrot.lane.b32.xlu1 %v5906_v4, %s8864_s29 }
 0x744   : > { %v5266_v40 = vpop.f32.mrf.mxu0  ;;  %v5329_v46 = vpop.f32.mrf.mxu1 }
 0x745   : > { %v13420_v35 = vsel %vm7267_vm1, %v13414_v28, -inf  ;;  %v13422_v23 = vadd.f32 %v5329_v46, %v5266_v40  ;;  %v13424_v15 = vpop.permute.xlu0 %6216  ;;  %5997 = vrot.lane.b32.xlu0 %v5907_v25, %s8864_s29  ;;  %v13427_v24 = vpop.permute.xlu1 %6214 }
 0x746   : > { %v13434_v4 = vsel %vm5608_vm3, %v13427_v24, %v13424_v15  ;;  %v5268_v37 = vpop.f32.mrf.mxu0  ;;  %v5331_v56 = vpop.f32.mrf.mxu1 }
 0x747   : > { %v5540_v21 = vrot.slane %v13422_v23, 4  ;;  %v13437_v46 = vadd.f32 %v5331_v56, %v5268_v37  ;;  %5999 = vrot.lane.b32.xlu1 %v5908_v1, %s8864_s29 }
 0x748   : > { %v5272_v33 = vpop.f32.mrf.mxu0 }
 0x749   : > { %v5541_v49 = vrot.slane %v13437_v46, 4  ;;  %v6431_v25 = vpop.permute.xlu0 %6430  ;;  %5600 = vrot.lane.b32.xlu0 %v5540_v21, %s8863_s19  ;;  %v6433_v40 = vpop.permute.xlu1 %6432 }
 0x74a   : > { %v6461_v0 = vsel %vm5608_vm3, %v6429_v7, %v6431_v25  ;;  %v6525_v61 = vadd.f32 %v6433_v40, %v13296_v11  ;;  %v5335_v20 = vpop.f32.mrf.mxu1  ;;  %v5274_v10 = vpop.f32.mrf.mxu0 }
 0x74b   : > { %5602 = vrot.lane.b32.xlu1 %v5541_v49, %s8863_s19  ;;  %v13445_v2 = vadd.f32 %v5335_v20, %v5272_v33  ;;  %v6523_v1 = vadd.f32 %v6461_v0, %v13207_v22  ;;  %v6462_v20 = vsel %vm5608_vm3, %v6431_v25, %v6433_v40 }
 0x74c   : > { %v5337_v37 = vpop.f32.mrf.mxu1  ;;  %v5276_v56 = vpop.f32.mrf.mxu0 }
 0x74d   : > { %14128 = vst [vmem:[#allocation72_spill] sm:$0xff] %v13445_v2  ;;  %v5757_v53 = vrot.slane %v13445_v2, 4  ;;  %v6983_v38 = vpop.permute.xlu0 %6982  ;;  %6616 = vrot.lane.b32.xlu0 %v6525_v61, %s8864_s29  ;;  %v6985_v21 = vpop.permute.xlu1 %6984  ;;  %v13450_v16 = vadd.f32 %v5337_v37, %v5274_v10  ;;  %v6524_v10 = vadd.f32 %v6462_v20, %v13292_v29 }
 0x74e   : > { %v5339_v7 = vpop.f32.mrf.mxu1  ;;  %v5278_v11 = vpop.f32.mrf.mxu0  ;;  %v7013_v25 = vsel %vm6009_vm4, %v13388_v45, %v6983_v38 }
 0x74f   : > { %14129 = vst [vmem:[#allocation73_spill] sm:$0xff] %v13450_v16  ;;  %v5758_v44 = vrot.slane %v13450_v16, 4  ;;  %6612 = vrot.lane.b32.xlu1 %v6523_v1, %s8864_s29  ;;  %v13456_v22 = vadd.f32 %v5339_v7, %v5276_v56 }
 0x750   : > { %v5341_v33 = vpop.f32.mrf.mxu1  ;;  %v5282_v49 = vpop.f32.mrf.mxu0 }
 0x751   : > { %v6831_v58 = vpop.permute.xlu0 %6830  ;;  %5817 = vrot.lane.b32.xlu0 %v5757_v53, %s8863_s19  ;;  %v6833_v37 = vpop.permute.xlu1 %6832  ;;  %v13463_v1 = vadd.f32 %v5341_v33, %v5278_v11  ;;  %v6158_v56 = vrot.slane %v13456_v22, 4 }
 0x752   : > { %v6861_v61 = vsel %vm5608_vm3, %v13392_v39, %v6831_v58  ;;  %v5284_v16 = vpop.f32.mrf.mxu0  ;;  %v6925_v29 = vadd.f32 %v6833_v37, %v13316_v5  ;;  %v6862_v7 = vsel %vm5608_vm3, %v6831_v58, %v6833_v37  ;;  %v7014_v5 = vsel %vm6009_vm4, %v6983_v38, %v6985_v21 }
 0x753   : > { %v6923_v0 = vadd.f32 %v6861_v61, %v13213_v55  ;;  %5819 = vrot.lane.b32.xlu1 %v5758_v44, %s8863_s19  ;;  %v6159_v55 = vrot.slane %v13463_v1, 4  ;;  %v6924_v20 = vadd.f32 %v6862_v7, %v13306_v18 }
 0x754   : > { %v5345_v40 = vpop.f32.mrf.mxu1  ;;  %v5286_v11 = vpop.f32.mrf.mxu0  ;;  %v7077_v33 = vadd.f32 %v6985_v21, %v6925_v29 }
 0x755   : > { %v7075_v53 = vadd.f32 %v7013_v25, %v6923_v0  ;;  %6614 = vrot.lane.b32.xlu0 %v6524_v10, %s8864_s29  ;;  %v7076_v58 = vadd.f32 %v7014_v5, %v6924_v20 }
 0x756   : > { %v5347_v39 = vpop.f32.mrf.mxu1  ;;  %v5288_v10 = vpop.f32.mrf.mxu0 }
 0x757   : > { %7164 = vrot.lane.b32.xlu1 %v7075_v53, %s8865_s21  ;;  %v13472_v44 = vadd.f32 %v5347_v39, %v5284_v16  ;;  %v13481_v16 = vadd.f32 %v5345_v40, %v5282_v49 }
 0x758   : > { %v5349_v45 = vpop.f32.mrf.mxu1 }
 0x759   : > { %6218 = vrot.lane.b32.xlu0 %v6158_v56, %s8863_s19  ;;  %v6375_v61 = vrot.slane %v13472_v44, 4  ;;  %v6374_v25 = vrot.slane %v13481_v16, 4  ;;  %v5350_v53 = vadd.f32 %v5349_v45, %v5286_v11 }
 0x75a   : > { %v5351_v0 = vpop.f32.mrf.mxu1 }
 0x75b   : > { %6220 = vrot.lane.b32.xlu1 %v6159_v55, %s8863_s19  ;;  %v5352_v37 = vadd.f32 %v5351_v0, %v5288_v10  ;;  %v6774_v38 = vrot.slane %v5350_v53, 4  ;;  %v14130_v55 = vmax.f32 %v13411_v59, %v13420_v35 }
 0x75d   : > { %7168 = vrot.lane.b32.xlu0 %v7077_v33, %s8865_s21  ;;  %v6775_v18 = vrot.slane %v5352_v37, 4 }
 0x75f   : > { %6436 = vrot.lane.b32.xlu1 %v6375_v61, %s8863_s19 }
 0x761   : > { %7166 = vrot.lane.b32.xlu0 %v7076_v58, %s8865_s21 }
 0x763   : > { %6988 = vrot.lane.b32.xlu1 %v5352_v37, %s8864_s29 }
 0x765   : > { %6434 = vrot.lane.b32.xlu0 %v6374_v25, %s8863_s19 }
 0x767   : > { %6836 = vrot.lane.b32.xlu1 %v6775_v18, %s8863_s19 }
 0x769   : > { %6986 = vrot.lane.b32.xlu0 %v5350_v53, %s8864_s29 }
 0x76d   : > { %6834 = vrot.lane.b32.xlu0 %v6774_v38, %s8863_s19 }
 0x788   : > { %v5388_v21 = vpop.f32.mrf.mxu0  ;;  %v5451_v49 = vpop.f32.mrf.mxu1 }
 0x789   : > { %v13491_v40 = vadd.f32 %v5451_v49, %v5388_v21 }
 0x78a   : > { %v5390_v56 = vpop.f32.mrf.mxu0  ;;  %v5453_v29 = vpop.f32.mrf.mxu1 }
 0x78b   : > { %v7335_v39 = vsel %vm7267_vm1, %v13491_v40, -inf  ;;  %v13500_v11 = vadd.f32 %v5453_v29, %v5390_v56 }
 0x78c   : > { %v13498_v7 = vmax.f32 %v14130_v55, %v7335_v39  ;;  %v5392_v45 = vpop.f32.mrf.mxu0  ;;  %v5455_v20 = vpop.f32.mrf.mxu1 }
 0x78d   : > { %v13504_v33 = vsel %vm7273_vm2, %v13500_v11, -inf  ;;  %v13506_v61 = vadd.f32 %v5455_v20, %v5392_v45  ;;  %vm7794_vm2 = vcmask 31744  }
 0x78e   : > { %14131 = vst [vmem:[#allocation74_spill] sm:$0xff] %v13504_v33  ;;  %v5394_v5 = vpop.f32.mrf.mxu0  ;;  %v5457_v0 = vpop.f32.mrf.mxu1 }
 0x78f   : > { %v5542_v58 = vrot.slane %v13506_v61, 4  ;;  %v13511_v59 = vadd.f32 %v5457_v0, %v5394_v5 }
 0x790   : > { %v5398_v35 = vpop.f32.mrf.mxu0  ;;  %v5461_v37 = vpop.f32.mrf.mxu1 }
 0x791   : > { %v5543_v25 = vrot.slane %v13511_v59, 4  ;;  %v13514_v18 = vadd.f32 %v5461_v37, %v5398_v35  ;;  %5604 = vrot.lane.b32.xlu0 %v5542_v58, %s8863_s19 }
 0x792   : > { %v5400_v53 = vpop.f32.mrf.mxu0  ;;  %v5463_v38 = vpop.f32.mrf.mxu1 }
 0x793   : > { %14132 = vst [vmem:[#allocation75_spill] sm:$0xff] %v13514_v18  ;;  %v5759_v21 = vrot.slane %v13514_v18, 4  ;;  %v13518_v49 = vadd.f32 %v5463_v38, %v5400_v53  ;;  %5606 = vrot.lane.b32.xlu1 %v5543_v25, %s8863_s19 }
 0x794   : > { %v5402_v56 = vpop.f32.mrf.mxu0  ;;  %v5465_v39 = vpop.f32.mrf.mxu1 }
 0x795   : > { %14133 = vst [vmem:[#allocation76_spill] sm:$0xff] %v13518_v49  ;;  %v5760_v29 = vrot.slane %v13518_v49, 4  ;;  %v13522_v55 = vadd.f32 %v5465_v39, %v5402_v56  ;;  %5821 = vrot.lane.b32.xlu0 %v5759_v21, %s8863_s19 }
 0x796   : > { %v5404_v45 = vpop.f32.mrf.mxu0  ;;  %v5467_v20 = vpop.f32.mrf.mxu1 }
 0x797   : > { %v6160_v5 = vrot.slane %v13522_v55, 4  ;;  %v13526_v0 = vadd.f32 %v5467_v20, %v5404_v45  ;;  %5823 = vrot.lane.b32.xlu1 %v5760_v29, %s8863_s19 }
 0x798   : > { %v5408_v58 = vpop.f32.mrf.mxu0  ;;  %v5471_v35 = vpop.f32.mrf.mxu1 }
 0x799   : > { %v6161_v37 = vrot.slane %v13526_v0, 4  ;;  %v13530_v25 = vadd.f32 %v5471_v35, %v5408_v58  ;;  %6222 = vrot.lane.b32.xlu0 %v6160_v5, %s8863_s19 }
 0x79a   : > { %v5410_v53 = vpop.f32.mrf.mxu0  ;;  %v5473_v38 = vpop.f32.mrf.mxu1 }
 0x79b   : > { %v6376_v21 = vrot.slane %v13530_v25, 4  ;;  %v13534_v56 = vadd.f32 %v5473_v38, %v5410_v53  ;;  %6224 = vrot.lane.b32.xlu1 %v6161_v37, %s8863_s19  ;;  %v5994_v37 = vpop.permute.xlu0 %5993 }
 0x79c   : > { %v5412_v39 = vpop.f32.mrf.mxu0  ;;  %v5475_v45 = vpop.f32.mrf.mxu1 }
 0x79d   : > { %v6377_v29 = vrot.slane %v13534_v56, 4  ;;  %6438 = vrot.lane.b32.xlu0 %v6376_v21, %s8863_s19  ;;  %v5476_v58 = vadd.f32 %v5475_v45, %v5412_v39  ;;  %v5627_v21 = vsel %vm5608_vm3, %v13359_v50, %v13356_v14  ;;  %v5692_v50 = vadd.f32 %v13402_v6, %v13252_v47 }
 0x79e   : > { %v5414_v20 = vpop.f32.mrf.mxu0  ;;  %v5477_v10 = vpop.f32.mrf.mxu1  ;;  %v5689_v45 = vadd.f32 %v5627_v21, %v13041_v43  ;;  %v6309_v47 = vadd.f32 %v13424_v15, %v13288_v26  ;;  %v6244_v15 = vsel %vm5608_vm3, %v13372_v12, %v13385_v36 }
 0x79f   : > { %6440 = vrot.lane.b32.xlu1 %v6377_v29, %s8863_s19  ;;  %v5478_v5 = vadd.f32 %v5477_v10, %v5414_v20  ;;  %v6776_v35 = vrot.slane %v5476_v58, 4  ;;  %v6611_v38 = vpop.permute.xlu0 %6610  ;;  %v5628_v10 = vsel %vm5608_vm3, %v13356_v14, %v13400_v13  ;;  %v5629_v20 = vsel %vm5608_vm3, %v13400_v13, %v13402_v6 }
 0x7a0   : > { %v5691_v14 = vadd.f32 %v5629_v20, %v13248_v48 }
 0x7a1   : > { %6990 = vrot.lane.b32.xlu0 %v5476_v58, %s8864_s29  ;;  %v6777_v53 = vrot.slane %v5478_v5, 4 }
 0x7a3   : > { %6992 = vrot.lane.b32.xlu1 %v5478_v5, %s8864_s29  ;;  %v5690_v5 = vadd.f32 %v5628_v10, %v13054_v27 }
 0x7a4   : > { %v7163_v39 = vpop.permute.xlu0 %7162 }
 0x7a5   : > { %6838 = vrot.lane.b32.xlu0 %v6776_v35, %s8863_s19 }
 0x7a7   : > { %6840 = vrot.lane.b32.xlu1 %v6777_v53, %s8863_s19 }
 0x7b5   : > { %v5996_v29 = vpop.permute.xlu1 %5995 }
 0x7b6   : > { %v6028_v58 = vsel %vm6009_vm4, %v5994_v37, %v5996_v29 }
 0x7b7   : > { %v6090_v35 = vadd.f32 %v6028_v58, %v5689_v45  ;;  %v5998_v53 = vpop.permute.xlu0 %5997 }
 0x7b8   : > { %v6029_v49 = vsel %vm6009_vm4, %v5996_v29, %v5998_v53 }
 0x7b9   : > { %v6091_v18 = vadd.f32 %v6029_v49, %v5690_v5  ;;  %v6000_v43 = vpop.permute.xlu1 %5999  ;;  %v7423_v13 = vsel %vm7367_vm5, %v6090_v35, -inf }
 0x7ba   : > { %v6030_v21 = vsel %vm6009_vm4, %v5998_v53, %v6000_v43  ;;  %v6093_v2 = vadd.f32 %v6000_v43, %v5692_v50  ;;  %v14134_v53 = vld [vmem:[#allocation23_spill] sm:$0xff]  ;;  %v6306_v43 = vadd.f32 %v6244_v15, %v13165_v19  ;;  %v14137_v19 = vmax.f32 %v12996_v9, %v12999_v57 }
 0x7bb   : > { %v7424_v37 = vsel %vm7367_vm5, %v6091_v18, -inf  ;;  %v6092_v33 = vadd.f32 %v6030_v21, %v5691_v14  ;;  %v5601_v27 = vpop.permute.xlu0 %5600 }
 0x7bc   : > { %v7425_v10 = vmax.f32 %v7423_v13, %v7424_v37  ;;  %v13573_v49 = vsel %vm7373_vm6, %v6093_v2, -inf  ;;  %v6245_v2 = vsel %vm5608_vm3, %v13385_v36, %v13427_v24 }
 0x7bd   : > { %v7426_v45 = vsel %vm7367_vm5, %v6092_v33, -inf  ;;  %v13564_v58 = vpop.permute.xlu1 %5602  ;;  %v6307_v21 = vadd.f32 %v6245_v2, %v13159_v17 }
 0x7be   : > { %v13568_v48 = vmax.f32 %v7425_v10, %v7426_v45  ;;  %v5630_v6 = vsel %vm5608_vm3, %v5601_v27, %v13564_v58 }
 0x7bf   : > { %v13576_v18 = vadd.f32 %v5630_v6, %v13406_v51  ;;  %v6617_v29 = vpop.permute.xlu0 %6616  ;;  %v14135_v51 = vld [vmem:[#allocation37_spill] sm:$0xff] }
 0x7c0   : > { %v6709_v20 = vadd.f32 %v6617_v29, %v6309_v47  ;;  %v7429_v33 = vmax.f32 %v13568_v48, %v13573_v49  ;;  %v14136_v50 = vmax.f32 %v14134_v53, %v14135_v51 }
 0x7c1   : > { %v6613_v5 = vpop.permute.xlu1 %6612 }
 0x7c2   : > { %v6644_v35 = vsel %vm6009_vm4, %v6611_v38, %v6613_v5  ;;  %v6308_v38 = vadd.f32 %v13434_v4, %v13277_v30 }
 0x7c3   : > { %v5818_v26 = vpop.permute.xlu0 %5817  ;;  %v6706_v27 = vadd.f32 %v6644_v35, %v6306_v43 }
 0x7c4   : > { %7312 = vmax.xlane.f32.xlu0 %v14136_v50 }
 0x7c5   : > { %v5820_v14 = vpop.permute.xlu1 %5819 }
 0x7c6   : > { %v5846_v43 = vsel %vm5608_vm3, %v5818_v26, %v5820_v14 }
 0x7c7   : > { %v6615_v13 = vpop.permute.xlu0 %6614 }
 0x7c8   : > { %v6645_v37 = vsel %vm6009_vm4, %v6613_v5, %v6615_v13  ;;  %v6646_v12 = vsel %vm6009_vm4, %v6615_v13, %v6617_v29  ;;  %v5909_v13 = vadd.f32 %v5846_v43, %v13422_v23 }
 0x7c9   : > { %v6707_v10 = vadd.f32 %v6645_v37, %v6307_v21  ;;  %v6708_v36 = vadd.f32 %v6646_v12, %v6308_v38  ;;  %v7165_v24 = vpop.permute.xlu1 %7164 }
 0x7ca   : > { %v7197_v45 = vsel %vm7178_vm7, %v7163_v39, %v7165_v24 }
 0x7cb   : > { %v7259_v47 = vadd.f32 %v7197_v45, %v6706_v27  ;;  %v6219_v6 = vpop.permute.xlu0 %6218  ;;  %7412 = vmax.xlane.f32.xlu1 %v14137_v19 }
 0x7cd   : > { %v6221_v17 = vpop.permute.xlu1 %6220  ;;  %v7523_v51 = vsel %vm7367_vm5, %v7259_v47, -inf }
 0x7ce   : > { %v13601_v30 = vsel %vm5608_vm3, %v6219_v6, %v6221_v17 }
 0x7cf   : > { %v7169_v4 = vpop.permute.xlu0 %7168 }
 0x7d0   : > { %v7262_v5 = vadd.f32 %v7169_v4, %v6709_v20 }
 0x7d1   : > { %v6437_v15 = vpop.permute.xlu1 %6436 }
 0x7d2   : > { %v13613_v37 = vsel %vm7473_vm8, %v7262_v5, -inf }
 0x7d3   : > { %v7167_v29 = vpop.permute.xlu0 %7166 }
 0x7d4   : > { %v7198_v35 = vsel %vm7178_vm7, %v7165_v24, %v7167_v29  ;;  %v7199_v2 = vsel %vm7178_vm7, %v7167_v29, %v7169_v4 }
 0x7d5   : > { %v7260_v53 = vadd.f32 %v7198_v35, %v6707_v10  ;;  %v7261_v39 = vadd.f32 %v7199_v2, %v6708_v36  ;;  %v6989_v57 = vpop.permute.xlu1 %6988 }
 0x7d7   : > { %v7524_v50 = vsel %vm7367_vm5, %v7260_v53, -inf  ;;  %v6435_v9 = vpop.permute.xlu0 %6434  ;;  %v7526_v38 = vsel %vm7367_vm5, %v7261_v39, -inf }
 0x7d8   : > { %v7525_v21 = vmax.f32 %v7523_v51, %v7524_v50  ;;  %v6463_v27 = vsel %vm5608_vm3, %v6435_v9, %v6437_v15 }
 0x7d9   : > { %v6837_v36 = vpop.permute.xlu1 %6836  ;;  %v6526_v26 = vadd.f32 %v6463_v27, %v13456_v22 }
 0x7da   : > { %v13609_v20 = vmax.f32 %v7525_v21, %v7526_v38 }
 0x7db   : > { %v6987_v12 = vpop.permute.xlu0 %6986 }
 0x7dc   : > { %v7529_v10 = vmax.f32 %v13609_v20, %v13613_v37  ;;  %6001 = vrot.lane.b32.xlu1 %v5909_v13, %s8864_s29  ;;  %v7015_v45 = vsel %vm6009_vm4, %v6987_v12, %v6989_v57 }
 0x7df   : > { %v6835_v24 = vpop.permute.xlu0 %6834 }
 0x7e0   : > { %v6863_v47 = vsel %vm5608_vm3, %v6835_v24, %v6837_v36  ;;  %6618 = vrot.lane.b32.xlu1 %v6526_v26, %s8864_s29 }
 0x7e1   : > { %v6926_v23 = vadd.f32 %v6863_v47, %v13481_v16 }
 0x7e3   : > { %v7078_v6 = vadd.f32 %v7015_v45, %v6926_v23 }
 0x7e5   : > { %7170 = vrot.lane.b32.xlu0 %v7078_v6, %s8865_s21 }
 0x803   : > { %v5605_v19 = vpop.permute.xlu0 %5604 }
 0x804   : > { %v5631_v4 = vsel %vm5608_vm3, %v13564_v58, %v5605_v19 }
 0x805   : > { %v13628_v5 = vadd.f32 %v5631_v4, %v13414_v28  ;;  %v5607_v22 = vpop.permute.xlu1 %5606  ;;  %v14140_v4 = vld [vmem:[#allocation26_spill] sm:$0xff] }
 0x806   : > { %v5632_v29 = vsel %vm5608_vm3, %v5605_v19, %v5607_v22  ;;  %v13632_v35 = vadd.f32 %v5607_v22, %v13500_v11 }
 0x807   : > { %v13635_v16 = vadd.f32 %v5632_v29, %v13491_v40  ;;  %v5822_v2 = vpop.permute.xlu0 %5821  ;;  %v6635_v29 = vsel %vm6009_vm4, %v12365_v52, %v12436_v31  ;;  %v6637_v52 = vsel %vm6009_vm4, %v12451_v42, %v12453_v60 }
 0x808   : > { %v5847_v53 = vsel %vm5608_vm3, %v5820_v14, %v5822_v2 }
 0x809   : > { %v5910_v39 = vadd.f32 %v5847_v53, %v13437_v46  ;;  %v5824_v51 = vpop.permute.xlu1 %5823  ;;  %v14141_v53 = vld [vmem:[#allocation18_spill] sm:$0xff] }
 0x80a   : > { %v5912_v58 = vadd.f32 %v5824_v51, %v13511_v59  ;;  %v5848_v28 = vsel %vm5608_vm3, %v5822_v2, %v5824_v51  ;;  %v7189_v2 = vsel %vm7178_vm7, %v12456_v62, %v12489_v41 }
 0x80b   : > { %v6223_v50 = vpop.permute.xlu0 %6222  ;;  %6003 = vrot.lane.b32.xlu0 %v5910_v39, %s8864_s29  ;;  %v5911_v11 = vadd.f32 %v5848_v28, %v13506_v61 }
 0x80c   : > { %v13643_v9 = vsel %vm5608_vm3, %v6221_v17, %v6223_v50  ;;  %6007 = vrot.lane.b32.xlu1 %v5912_v58, %s8864_s29  ;;  %v14142_v58 = vld [vmem:[#allocation38_spill] sm:$0xff] }
 0x80d   : > { %v13646_v40 = vpop.permute.xlu1 %6224  ;;  %v6237_v28 = vsel %vm5608_vm3, %v12114_v3, %v14142_v58 }
 0x80e   : > { %v13651_v46 = vsel %vm5608_vm3, %v6223_v50, %v13646_v40  ;;  %v7188_v50 = vsel %vm7178_vm7, %v12392_v32, %v12456_v62 }
 0x80f   : > { %v6439_v14 = vpop.permute.xlu0 %6438 }
 0x810   : > { %v6464_v59 = vsel %vm5608_vm3, %v6437_v15, %v6439_v14  ;;  %6005 = vrot.lane.b32.xlu1 %v5911_v11, %s8864_s29 }
 0x811   : > { %v6527_v43 = vadd.f32 %v6464_v59, %v13463_v1  ;;  %v6441_v21 = vpop.permute.xlu1 %6440 }
 0x812   : > { %v6465_v17 = vsel %vm5608_vm3, %v6439_v14, %v6441_v21  ;;  %v6529_v61 = vadd.f32 %v6441_v21, %v13526_v0  ;;  %v7190_v21 = vsel %vm7178_vm7, %v12489_v41, %v12483_v34 }
 0x813   : > { %v6528_v38 = vadd.f32 %v6465_v17, %v13522_v55  ;;  %v6991_v13 = vpop.permute.xlu0 %6990  ;;  %6620 = vrot.lane.b32.xlu0 %v6527_v43, %s8864_s29 }
 0x814   : > { %v7016_v24 = vsel %vm6009_vm4, %v6989_v57, %v6991_v13 }
 0x815   : > { %6622 = vrot.lane.b32.xlu1 %v6528_v38, %s8864_s29  ;;  %v6993_v12 = vpop.permute.xlu1 %6992  ;;  %v14144_v38 = vld [vmem:[#allocation31_spill] sm:$0xff] }
 0x816   : > { %v7017_v23 = vsel %vm6009_vm4, %v6991_v13, %v6993_v12  ;;  %v6297_v13 = vadd.f32 %v14142_v58, %v14144_v38 }
 0x817   : > { %v6839_v27 = vpop.permute.xlu0 %6838  ;;  %6624 = vrot.lane.b32.xlu0 %v6529_v61, %s8864_s29 }
 0x818   : > { %v6864_v15 = vsel %vm5608_vm3, %v6837_v36, %v6839_v27  ;;  %v14139_v36 = vld [vmem:[#allocation36_spill] sm:$0xff] }
 0x819   : > { %v6927_v1 = vadd.f32 %v6864_v15, %v13472_v44  ;;  %v6841_v26 = vpop.permute.xlu1 %6840  ;;  %v14138_v44 = vld [vmem:[#allocation33_spill] sm:$0xff] }
 0x81a   : > { %v6865_v55 = vsel %vm5608_vm3, %v6839_v27, %v6841_v26  ;;  %v6929_v0 = vadd.f32 %v6841_v26, %v13534_v56  ;;  %v6236_v57 = vsel %vm5608_vm3, %v14138_v44, %v12114_v3  ;;  %v6636_v56 = vsel %vm6009_vm4, %v12436_v31, %v12451_v42  ;;  %v14143_v31 = vld [vmem:[#allocation20_spill] sm:$0xff]  ;;  %v14145_v42 = vld [vmem:[#allocation41_spill] sm:$0xff] }
 0x81b   : > { %v7079_v45 = vadd.f32 %v7016_v24, %v6927_v1  ;;  %v6928_v47 = vadd.f32 %v6865_v55, %v13530_v25  ;;  %v6235_v25 = vsel %vm5608_vm3, %v14139_v36, %v14138_v44  ;;  %v6295_v22 = vadd.f32 %v6236_v57, %v14140_v4  ;;  %v14146_v27 = vld [vmem:[#allocation40_spill] sm:$0xff]  ;;  %v14147_v1 = vld [vmem:[#allocation47_spill] sm:$0xff]  ;;  %v14152_v36 = vld [vmem:[#allocation21_spill] sm:$0xff] }
 0x81c   : > { %v7081_v19 = vadd.f32 %v6993_v12, %v6929_v0  ;;  %v6294_v39 = vadd.f32 %v6235_v25, %v14141_v53  ;;  %v6296_v59 = vadd.f32 %v6237_v28, %v14143_v31  ;;  %v6697_v12 = vadd.f32 %v12453_v60, %v6297_v13  ;;  %v14159_v28 = vld [vmem:[#allocation63_spill] sm:$0xff]  ;;  %v14162_v31 = vld [vmem:[#allocation48_spill] sm:$0xff] }
 0x81d   : > { %v7080_v6 = vadd.f32 %v7017_v23, %v6928_v47  ;;  %7172 = vrot.lane.b32.xlu1 %v7079_v45, %s8865_s21  ;;  %v6695_v51 = vadd.f32 %v6636_v56, %v6295_v22  ;;  %v6238_v15 = vsel %vm5608_vm3, %v14146_v27, %v14145_v42  ;;  %v6239_v41 = vsel %vm5608_vm3, %v14145_v42, %v14147_v1  ;;  %v14148_v45 = vld [vmem:[#allocation42_spill] sm:$0xff]  ;;  %v14149_v47 = vld [vmem:[#allocation43_spill] sm:$0xff]  ;;  %v14150_v23 = vld [vmem:[#allocation57_spill] sm:$0xff] }
 0x81e   : > { %v6694_v11 = vadd.f32 %v6635_v29, %v6294_v39  ;;  %v6696_v17 = vadd.f32 %v6637_v52, %v6296_v59  ;;  %v6242_v26 = vsel %vm5608_vm3, %v13012_v63, %v13133_v8  ;;  %v7250_v24 = vadd.f32 %v12483_v34, %v6697_v12  ;;  %v14153_v34 = vld [vmem:[#allocation34_spill] sm:$0xff]  ;;  %v14154_v56 = vld [vmem:[#allocation55_spill] sm:$0xff]  ;;  %v14157_v39 = vld [vmem:[#allocation24_spill] sm:$0xff] }
 0x81f   : > { %7174 = vrot.lane.b32.xlu0 %v7080_v6, %s8865_s21  ;;  %v7248_v14 = vadd.f32 %v7189_v2, %v6695_v51  ;;  %v6240_v60 = vsel %vm5608_vm3, %v14147_v1, %v14148_v45  ;;  %v6298_v0 = vadd.f32 %v6238_v15, %v14149_v47  ;;  %v6241_v6 = vsel %vm5608_vm3, %v14150_v23, %v13012_v63  ;;  %v14155_v22 = vld [vmem:[#allocation22_spill] sm:$0xff]  ;;  %v14156_v2 = vld [vmem:[#allocation49_spill] sm:$0xff]  ;;  %v14158_v63 = vld [vmem:[#allocation35_spill] sm:$0xff] }
 0x820   : > { %v7247_v43 = vadd.f32 %v7188_v50, %v6694_v11  ;;  %v7249_v62 = vadd.f32 %v7190_v21, %v6696_v17  ;;  %v6299_v25 = vadd.f32 %v6239_v41, %v14152_v36  ;;  %v6638_v4 = vsel %vm6009_vm4, %v14154_v56, %v14153_v34  ;;  %v14160_v11 = vld [vmem:[#allocation71_spill] sm:$0xff]  ;;  %v14164_v21 = vld [vmem:[#allocation56_spill] sm:$0xff] }
 0x821   : > { %7176 = vrot.lane.b32.xlu1 %v7081_v19, %s8865_s21  ;;  %v7497_v3 = vsel %vm7367_vm5, %v7248_v14, -inf  ;;  %v14151_v19 = vld [vmem:[#allocation66_spill] sm:$0xff]  ;;  %v6639_v29 = vsel %vm6009_vm4, %v14153_v34, %v14155_v22  ;;  %v6303_v53 = vadd.f32 %v6242_v26, %v14156_v2  ;;  %v6300_v51 = vadd.f32 %v6240_v60, %v14157_v39  ;;  %v14167_v42 = vld [vmem:[#allocation64_spill] sm:$0xff]  ;;  %v14168_v15 = vld [vmem:[#allocation59_spill] sm:$0xff] }
 0x822   : > { %v7496_v32 = vsel %vm7367_vm5, %v7247_v43, -inf  ;;  %v7499_v55 = vsel %vm7367_vm5, %v7249_v62, -inf  ;;  %v6642_v44 = vsel %vm6009_vm4, %v14151_v19, %v13376_v54  ;;  %v6640_v58 = vsel %vm6009_vm4, %v14155_v22, %v14158_v63  ;;  %v14161_v14 = vld [vmem:[#allocation70_spill] sm:$0xff]  ;;  %v14169_v23 = vld [vmem:[#allocation68_spill] sm:$0xff]  ;;  %v14173_v39 = vld [vmem:[#allocation53_spill] sm:$0xff] }
 0x823   : > { %v7498_v61 = vmax.f32 %v7496_v32, %v7497_v3  ;;  %v6641_v50 = vsel %vm6009_vm4, %v14159_v28, %v14151_v19  ;;  %v7195_v52 = vsel %vm7178_vm7, %v14161_v14, %v14160_v11  ;;  %v6302_v59 = vadd.f32 %v6241_v6, %v14162_v31  ;;  %v14163_v43 = vld [vmem:[#allocation58_spill] sm:$0xff]  ;;  %v14165_v3 = vld [vmem:[#allocation25_spill] sm:$0xff]  ;;  %v14170_v6 = vld [vmem:[#allocation52_spill] sm:$0xff] }
 0x824   : > { %v7191_v17 = vsel %vm7178_vm7, %v14164_v21, %v14163_v43  ;;  %v7192_v38 = vsel %vm7178_vm7, %v14163_v43, %v14165_v3  ;;  %v6703_v13 = vadd.f32 %v6642_v44, %v6303_v53  ;;  %v6698_v32 = vadd.f32 %v6638_v4, %v6298_v0  ;;  %v14175_v31 = vld [vmem:[#allocation67_spill] sm:$0xff] }
 0x825   : > { %v7500_v57 = vmax.f32 %v7498_v61, %v7499_v55  ;;  %v6699_v62 = vadd.f32 %v6639_v29, %v6299_v25  ;;  %v14166_v61 = vld [vmem:[#allocation60_spill] sm:$0xff]  ;;  %v7194_v27 = vsel %vm7178_vm7, %v14167_v42, %v14161_v14  ;;  %v7193_v1 = vsel %vm7178_vm7, %v14165_v3, %v14168_v15  ;;  %v14171_v25 = vld [vmem:[#allocation69_spill] sm:$0xff] }
 0x826   : > { %v6243_v12 = vsel %vm5608_vm3, %v13133_v8, %v14166_v61  ;;  %v6702_v41 = vadd.f32 %v6641_v50, %v6302_v59  ;;  %v7256_v26 = vadd.f32 %v7195_v52, %v6703_v13  ;;  %v6700_v55 = vadd.f32 %v6640_v58, %v6300_v51  ;;  %v14172_v29 = vld [vmem:[#allocation44_spill] sm:$0xff]  ;;  %v14174_v52 = vld [vmem:[#allocation65_spill] sm:$0xff] }
 0x827   : > { %v7251_v60 = vadd.f32 %v7191_v17, %v6698_v32  ;;  %v7252_v47 = vadd.f32 %v7192_v38, %v6699_v62  ;;  %v6643_v0 = vsel %vm6009_vm4, %v13376_v54, %v14169_v23  ;;  %v6304_v19 = vadd.f32 %v6243_v12, %v14170_v6  ;;  %v14177_v38 = vld [vmem:[#allocation50_spill] sm:$0xff]  ;;  %v14180_v32 = vld [vmem:[#allocation61_spill] sm:$0xff] }
 0x828   : > { %v7255_v8 = vadd.f32 %v7194_v27, %v6702_v41  ;;  %v7501_v44 = vsel %vm7473_vm8, %v7250_v24, -inf  ;;  %v7253_v36 = vadd.f32 %v7193_v1, %v6700_v55  ;;  %v7196_v34 = vsel %vm7178_vm7, %v14160_v11, %v14171_v25  ;;  %v14181_v62 = vld [vmem:[#allocation62_spill] sm:$0xff]  ;;  %v8365_v55 = vld [vmem:[#allocation8] ss:$0 sm:$0xff] }
 0x829   : > { %v7502_v56 = vmax.f32 %v7500_v57, %v7501_v44  ;;  %v6704_v4 = vadd.f32 %v6643_v0, %v6304_v19  ;;  %v7515_v22 = vsel %vm7367_vm5, %v7256_v26, -inf  ;;  %v6301_v2 = vadd.f32 %v14148_v45, %v14172_v29  ;;  %v14183_v1 = vld [vmem:[#allocation74_spill] sm:$0xff]  ;;  %v8363_v26 = vld [vmem:[#allocation5] ss:$0 sm:$0xff] }
 0x82a   : > { %v7505_v53 = vsel %vm7367_vm5, %v7251_v60, -inf  ;;  %v7506_v54 = vsel %vm7367_vm5, %v7252_v47, -inf  ;;  %v6305_v24 = vadd.f32 %v14166_v61, %v14173_v39  ;;  %v7514_v51 = vsel %vm7367_vm5, %v7255_v8, -inf }
 0x82b   : > { %v7257_v58 = vadd.f32 %v7196_v34, %v6704_v4  ;;  %v6701_v28 = vadd.f32 %v14158_v63, %v6301_v2  ;;  %v7508_v57 = vsel %vm7367_vm5, %v7253_v36, -inf  ;;  %v7516_v50 = vmax.f32 %v7514_v51, %v7515_v22  ;;  %v14178_v63 = vld [vmem:[#allocation51_spill] sm:$0xff] }
 0x82c   : > { %v7507_v11 = vmax.f32 %v7505_v53, %v7506_v54  ;;  %v6705_v14 = vadd.f32 %v14169_v23, %v6305_v24  ;;  %v14176_v59 = vmax.f32 %v14174_v52, %v14175_v31  ;;  %v14179_v13 = vmax.f32 %v14177_v38, %v14178_v63  ;;  %v14186_v24 = vld [vmem:[#allocation73_spill] sm:$0xff] }
 0x82d   : > { %v7254_v45 = vadd.f32 %v14168_v15, %v6701_v28  ;;  %v7517_v21 = vsel %vm7367_vm5, %v7257_v58, -inf  ;;  %v14182_v61 = vmax.f32 %v14180_v32, %v14181_v62  ;;  %v14184_v41 = vmax.f32 %v13498_v7, %v14183_v1 }
 0x82e   : > { %v7258_v43 = vadd.f32 %v14171_v25, %v6705_v14  ;;  %v7509_v17 = vmax.f32 %v7507_v11, %v7508_v57  ;;  %v7518_v3 = vmax.f32 %v7516_v50, %v7517_v21  ;;  %v8866_v23 = vmov 0   ;;  %v14187_v11 = vld [vmem:[#allocation75_spill] sm:$0xff] }
 0x82f   : > { %v7510_v12 = vsel %vm7473_vm8, %v7254_v45, -inf  ;;  %8492 = vset.pattern.permute.xlu0 %v8866_v23  ;;  %8491 = vset.pattern.permute.xlu1 %v8866_v23  ;;  %v6311_v51 = vadd.f32 %v13643_v9, %v14186_v24  ;;  %v6312_v14 = vadd.f32 %v13651_v46, %v14187_v11  ;;  %v14188_v45 = vld [vmem:[#allocation76_spill] sm:$0xff]  ;;  %v14189_v23 = vld [vmem:[#allocation19_spill] sm:$0xff]  ;;  %v14197_v11 = vld [vmem:[#allocation45_spill] sm:$0xff]  ;;  %vm7806_vm3 = vcmask 97280  }
 0x830   : > { %v7511_v42 = vmax.f32 %v7509_v17, %v7510_v12  ;;  %v7519_v27 = vsel %vm7473_vm8, %v7258_v43, -inf  ;;  %v6313_v52 = vadd.f32 %v13646_v40, %v14188_v45  ;;  %v14198_v45 = vld [vmem:[#allocation32_spill] sm:$0xff] }
 0x831   : > { %v7520_v15 = vmax.f32 %v7518_v3, %v7519_v27  ;;  %v8364_v27 = vld [vmem:[#allocation7] ss:$0 sm:$0xff] }
 0x83e   : > { %7503 = vmax.xlane.f32.xlu0 %v7502_v56 }
 0x842   : > { %7421 = vmax.xlane.f32.xlu0 %v14176_v59 }
 0x845   : > { %7321 = vmax.xlane.f32.xlu1 %v14179_v13 }
 0x846   : > { %7330 = vmax.xlane.f32.xlu0 %v14182_v61 }
 0x849   : > { %7512 = vmax.xlane.f32.xlu1 %v7511_v42 }
 0x84a   : > { %7521 = vmax.xlane.f32.xlu0 %v7520_v15 }
 0x84d   : > { %7430 = vmax.xlane.f32.xlu1 %v7429_v33  ;;  %v13806_v48 = vpop.xlane.xlu0 %7312 }
 0x851   : > { %7339 = vmax.xlane.f32.xlu1 %v14184_v41 }
 0x854   : > { %v13804_v60 = vpop.xlane.xlu1 %7412 }
 0x855   : > { %7530 = vmax.xlane.f32.xlu1 %v7529_v10 }
 0x857   : > { %v7171_v49 = vpop.permute.xlu0 %7170 }
 0x858   : > { %v6002_v47 = vpop.permute.xlu1 %6001 }
 0x85c   : > { %v6619_v33 = vpop.permute.xlu1 %6618 }
 0x866   : > { %7348 = vbcast.lane.b32.xlu1 %v8363_v26, 256 }
 0x86a   : > { %7549 = vbcast.lane.b32.xlu1 %v8365_v55, 508 }
 0x87d   : > { %v6004_v7 = vpop.permute.xlu0 %6003 }
 0x87e   : > { %v6008_v0 = vpop.permute.xlu1 %6007  ;;  %v6031_v6 = vsel %vm6009_vm4, %v6002_v47, %v6004_v7 }
 0x87f   : > { %v6094_v20 = vadd.f32 %v6031_v6, %v13576_v18  ;;  %v6097_v25 = vadd.f32 %v6008_v0, %v13632_v35 }
 0x881   : > { %v7432_v36 = vsel %vm7367_vm5, %v6094_v20, -inf  ;;  %v7437_v29 = vsel %vm7373_vm6, %v6097_v25, -inf  ;;  %v14191_v20 = vld [vmem:[#allocation17_spill] sm:$0xff] }
 0x882   : > { %v6006_v37 = vpop.permute.xlu1 %6005 }
 0x883   : > { %v6032_v10 = vsel %vm6009_vm4, %v6004_v7, %v6006_v37  ;;  %v6033_v19 = vsel %vm6009_vm4, %v6006_v37, %v6008_v0 }
 0x884   : > { %v6095_v8 = vadd.f32 %v6032_v10, %v13628_v5  ;;  %v6096_v44 = vadd.f32 %v6033_v19, %v13635_v16  ;;  %v14185_v5 = vld [vmem:[#allocation72_spill] sm:$0xff]  ;;  %v14192_v19 = vld [vmem:[#allocation29_spill] sm:$0xff] }
 0x885   : > { %v6621_v4 = vpop.permute.xlu0 %6620  ;;  %v6310_v16 = vadd.f32 %v13601_v30, %v14185_v5 }
 0x886   : > { %v7433_v34 = vsel %vm7367_vm5, %v6095_v8, -inf  ;;  %v7435_v22 = vsel %vm7367_vm5, %v6096_v44, -inf  ;;  %v6647_v54 = vsel %vm6009_vm4, %v6619_v33, %v6621_v4  ;;  %v14190_v33 = vld [vmem:[#allocation28_spill] sm:$0xff]  ;;  %v14193_v44 = vld [vmem:[#allocation39_spill] sm:$0xff] }
 0x887   : > { %v7434_v56 = vmax.f32 %v7432_v36, %v7433_v34  ;;  %v6623_v2 = vpop.permute.xlu1 %6622  ;;  %v6710_v58 = vadd.f32 %v6647_v54, %v6310_v16  ;;  %v14194_v34 = vld [vmem:[#allocation46_spill] sm:$0xff] }
 0x888   : > { %v6648_v35 = vsel %vm6009_vm4, %v6621_v4, %v6623_v2 }
 0x889   : > { %v7436_v18 = vmax.f32 %v7434_v56, %v7435_v22  ;;  %v6625_v39 = vpop.permute.xlu0 %6624  ;;  %v6711_v30 = vadd.f32 %v6648_v35, %v6311_v51  ;;  %v14195_v51 = vld [vmem:[#allocation27_spill] sm:$0xff] }
 0x88a   : > { %v6649_v57 = vsel %vm6009_vm4, %v6623_v2, %v6625_v39  ;;  %v6713_v17 = vadd.f32 %v6625_v39, %v6313_v52 }
 0x88b   : > { %v7438_v53 = vmax.f32 %v7436_v18, %v7437_v29  ;;  %v6712_v21 = vadd.f32 %v6649_v57, %v6312_v14 }
 0x88d   : > { %7439 = vmax.xlane.f32.xlu0 %v7438_v53 }
 0x88f   : > { %v7173_v28 = vpop.permute.xlu1 %7172 }
 0x890   : > { %v7200_v50 = vsel %vm7178_vm7, %v7171_v49, %v7173_v28 }
 0x891   : > { %v7263_v31 = vadd.f32 %v7200_v50, %v6710_v58  ;;  %v7175_v59 = vpop.permute.xlu0 %7174 }
 0x892   : > { %v7201_v43 = vsel %vm7178_vm7, %v7173_v28, %v7175_v59  ;;  %v14196_v28 = vld [vmem:[#allocation30_spill] sm:$0xff] }
 0x893   : > { %v7264_v9 = vadd.f32 %v7201_v43, %v6711_v30  ;;  %v7177_v3 = vpop.permute.xlu1 %7176  ;;  %v7532_v63 = vsel %vm7367_vm5, %v7263_v31, -inf  ;;  %v14199_v31 = vld [vmem:[#allocation54_spill] sm:$0xff] }
 0x894   : > { %v7202_v38 = vsel %vm7178_vm7, %v7175_v59, %v7177_v3  ;;  %v7266_v46 = vadd.f32 %v7177_v3, %v6713_v17 }
 0x895   : > { %v7533_v13 = vsel %vm7367_vm5, %v7264_v9, -inf  ;;  %v7265_v32 = vadd.f32 %v7202_v38, %v6712_v21 }
 0x896   : > { %v7534_v62 = vmax.f32 %v7532_v63, %v7533_v13  ;;  %v7537_v12 = vsel %vm7473_vm8, %v7266_v46, -inf }
 0x897   : > { %v7535_v40 = vsel %vm7367_vm5, %v7265_v32, -inf }
 0x898   : > { %v7536_v61 = vmax.f32 %v7534_v62, %v7535_v40 }
 0x89a   : > { %v7538_v42 = vmax.f32 %v7536_v61, %v7537_v12 }
 0x89c   : > { %7539 = vmax.xlane.f32.xlu0 %v7538_v42 }
 0x8b2   : > { %7449 = vbcast.lane.b32.xlu0 %v8364_v27, 508 }
 0x8c7   : > { %v7504_v53 = vpop.xlane.xlu0 %7503 }
 0x8cb   : > { %v7422_v54 = vpop.xlane.xlu0 %7421 }
 0x8ce   : > { %v7322_v15 = vpop.xlane.xlu1 %7321 }
 0x8cf   : > { %v7331_v5 = vpop.xlane.xlu0 %7330 }
 0x8d2   : > { %v7513_v1 = vpop.xlane.xlu1 %7512 }
 0x8d3   : > { %v7522_v16 = vpop.xlane.xlu0 %7521 }
 0x8d6   : > { %v7431_v41 = vpop.xlane.xlu1 %7430 }
 0x8da   : > { %v7340_v26 = vpop.xlane.xlu1 %7339 }
 0x8de   : > { %v13837_v55 = vpop.xlane.xlu1 %7530 }
 0x8e2   : > { %v13839_v47 = vpop.permute.xlu1 %7348 }
 0x8e3   : > { %v7351_v49 = vadd.f32 %v13839_v47, %v14189_v23  ;;  %v7352_v7 = vadd.f32 %v13839_v47, %v14190_v33  ;;  %v7356_v0 = vadd.f32 %v13839_v47, %v7322_v15  ;;  %v7358_v6 = vadd.f32 %v13839_v47, %v7340_v26  ;;  %v7885_v26 = vld [vmem:[#allocation2] sm:$0x1] }
 0x8e4   : > { %v7353_v37 = vadd.f32 %v13839_v47, %v14191_v20  ;;  %v7354_v36 = vadd.f32 %v13839_v47, %v14193_v44  ;;  %v7357_v40 = vadd.f32 %v13839_v47, %v7331_v5  ;;  %v7797_v20 = vld [vmem:[%s13940_s5] sm:$0xff] }
 0x8e5   : > { %8511 = vtanh.f32 %v7351_v49 }
 0x8e6   : > { %8513 = vtanh.f32 %v7352_v7  ;;  %v13849_v10 = vpop.permute.xlu1 %7549 }
 0x8e7   : > { %8515 = vtanh.f32 %v7353_v37  ;;  %v7552_v8 = vadd.f32 %v13849_v10, %v14192_v19  ;;  %v7554_v56 = vadd.f32 %v13849_v10, %v14194_v34  ;;  %v7553_v52 = vadd.f32 %v13849_v10, %v14198_v45 }
 0x8e8   : > { %v7556_v30 = vadd.f32 %v13849_v10, %v7513_v1  ;;  %v7555_v3 = vadd.f32 %v13849_v10, %v7504_v53  ;;  %v7558_v63 = vadd.f32 %v13849_v10, %v13837_v55  ;;  %v7557_v42 = vadd.f32 %v13849_v10, %v7522_v16 }
 0x8e9   : > { %8517 = vtanh.f32 %v7552_v8 }
 0x8ea   : > { %8519 = vtanh.f32 %v7354_v36 }
 0x8eb   : > { %8521 = vtanh.f32 %v7554_v56 }
 0x8f2   : > { %v8512_v25 = vpop.eup %8511 }
 0x8f3   : > { %v8514_v4 = vpop.eup %8513  ;;  %7577 = vperm.xlu1 %8491, %v8512_v25  }
 0x8f4   : > { %7580 = vperm.xlu0 %8492, %v8514_v4   ;;  %v8516_v22 = vpop.eup %8515 }
 0x8f6   : > { %v8518_v18 = vpop.eup %8517 }
 0x8f7   : > { %v8520_v29 = vpop.eup %8519 }
 0x8f8   : > { %7583 = vperm.xlu0 %8492, %v8516_v22   ;;  %v8522_v2 = vpop.eup %8521 }
 0x8fc   : > { %7730 = vperm.xlu0 %8492, %v8518_v18  }
 0x900   : > { %7586 = vperm.xlu0 %8492, %v8520_v29  }
 0x904   : > { %7736 = vperm.xlu0 %8492, %v8522_v2   ;;  %v7600_v2 = vlaneseq }
 0x906   : > { %v13880_v5 = vshrl.u32 %v7600_v2, 7 }
 0x916   : > { %v7440_v39 = vpop.xlane.xlu0 %7439 }
 0x925   : > { %v7540_v35 = vpop.xlane.xlu0 %7539 }
 0x926   : > { %v7559_v55 = vadd.f32 %v13849_v10, %v7540_v35 }
 0x929   : > { %v7450_v24 = vpop.permute.xlu0 %7449 }
 0x92a   : > { %v7452_v58 = vadd.f32 %v7450_v24, %v14195_v51  ;;  %v7453_v57 = vadd.f32 %v7450_v24, %v14196_v28  ;;  %v7456_v50 = vadd.f32 %v7450_v24, %v13804_v60  ;;  %v7454_v14 = vadd.f32 %v7450_v24, %v14197_v11 }
 0x92b   : > { %v7455_v59 = vadd.f32 %v7450_v24, %v14199_v31  ;;  %v7458_v43 = vadd.f32 %v7450_v24, %v7431_v41  ;;  %v7355_v60 = vadd.f32 %v13839_v47, %v13806_v48  ;;  %v7457_v48 = vadd.f32 %v7450_v24, %v7422_v54 }
 0x92c   : > { %8523 = vtanh.f32 %v7452_v58  ;;  %v7459_v1 = vadd.f32 %v7450_v24, %v7440_v39  ;;  %v7601_v54 = vand.u32 127, %v7600_v2  ;;  %v8366_v2 = vld [vmem:[#allocation10] ss:$0 sm:$0xff] }
 0x92d   : > { %8525 = vtanh.f32 %v7453_v57 }
 0x92e   : > { %8527 = vtanh.f32 %v7456_v50  ;;  %v7753_v35 = vadd.s32 4294967292, %v7601_v54  ;;  %v7604_v24 = vsub.s32 %v7601_v54, %v13880_v5 }
 0x92f   : > { %8529 = vtanh.f32 %v7356_v0  ;;  %v7798_v0 = vld [vmem:[%s13940_s5 + $0x8] sm:$0xf] }
 0x930   : > { %8531 = vtanh.f32 %v7454_v14  ;;  %v13884_v58 = vsub.s32 %v7753_v35, %v13880_v5  ;;  %v7884_v35 = vld [vmem:[#allocation11] sm:$0x1] }
 0x931   : > { %8533 = vtanh.f32 %v7553_v52 }
 0x932   : > { %8535 = vtanh.f32 %v7556_v30 }
 0x933   : > { %8537 = vtanh.f32 %v7455_v59 }
 0x934   : > { %8539 = vtanh.f32 %v7458_v43 }
 0x935   : > { %8541 = vtanh.f32 %v7355_v60 }
 0x936   : > { %8543 = vtanh.f32 %v7358_v6  ;;  %v8867_v6 = vmov 0.0  }
 0x937   : > { %8545 = vtanh.f32 %v7555_v3  ;;  %8378 = vmatprep.subr.mxu0 %v8867_v6  ;;  %8382 = vmatprep.mubr.msk.f32.mxu0 %vm8868_vm9, %v8867_v6 }
 0x938   : > { %8547 = vtanh.f32 %v7558_v63  ;;  %8379 = vmatpush3.msk.msra.mxu0 %vm7267_vm1, %v7798_v0  ;;  %8385 = vmatprep.subr.mxu1 %v8867_v6  ;;  %vm7646_vm1 = vcmask 1047559  }
 0x939   : > { %v8524_v21 = vpop.eup %8523  ;;  %8549 = vtanh.f32 %v7457_v48  ;;  %8380 = vmatprep.subr.mxu0 %v8867_v6  ;;  %8387 = vmatprep.mubr.msk.f32.mxu1 %vm8868_vm9, %v8867_v6 }
 0x93a   : > { %7658 = vperm.xlu1 %8491, %v8524_v21   ;;  %v8526_v17 = vpop.eup %8525  ;;  %8551 = vtanh.f32 %v7357_v40  ;;  %8381 = vmatpush3.msra.mxu0 %v7797_v20 }
 0x93b   : > { %v8528_v9 = vpop.eup %8527  ;;  %8553 = vtanh.f32 %v7557_v42 }
 0x93c   : > { %7670 = vperm.xlu0 %8492, %v8528_v9   ;;  %v8530_v38 = vpop.eup %8529  ;;  %8555 = vtanh.f32 %v7459_v1 }
 0x93d   : > { %v8532_v13 = vpop.eup %8531  ;;  %8557 = vtanh.f32 %v7559_v55 }
 0x93e   : > { %7661 = vperm.xlu1 %8491, %v8526_v17   ;;  %v8534_v32 = vpop.eup %8533 }
 0x93f   : > { %v8536_v46 = vpop.eup %8535 }
 0x940   : > { %7592 = vperm.xlu0 %8492, %v8530_v38   ;;  %v8538_v62 = vpop.eup %8537 }
 0x941   : > { %v8540_v61 = vpop.eup %8539 }
 0x942   : > { %7664 = vperm.xlu1 %8491, %v8532_v13   ;;  %v8542_v12 = vpop.eup %8541 }
 0x943   : > { %v8544_v27 = vpop.eup %8543 }
 0x944   : > { %7742 = vperm.xlu0 %8492, %v8536_v46   ;;  %v8546_v15 = vpop.eup %8545 }
 0x945   : > { %v8548_v41 = vpop.eup %8547 }
 0x946   : > { %7733 = vperm.xlu1 %8491, %v8534_v32   ;;  %v8550_v47 = vpop.eup %8549 }
 0x947   : > { %v8552_v23 = vpop.eup %8551 }
 0x948   : > { %7676 = vperm.xlu0 %8492, %v8540_v61   ;;  %v8554_v49 = vpop.eup %8553 }
 0x949   : > { %v8556_v33 = vpop.eup %8555 }
 0x94a   : > { %7667 = vperm.xlu1 %8491, %v8538_v62   ;;  %v8558_v7 = vpop.eup %8557 }
 0x94c   : > { %7598 = vperm.xlu0 %8492, %v8544_v27  }
 0x94e   : > { %7589 = vperm.xlu1 %8491, %v8542_v12  }
 0x950   : > { %7748 = vperm.xlu0 %8492, %v8548_v41  }
 0x952   : > { %7739 = vperm.xlu1 %8491, %v8546_v15  }
 0x954   : > { %7888 = vperm.xlu0 %8492, %v7885_v26  }
 0x956   : > { %7673 = vperm.xlu1 %8491, %v8550_v47  }
 0x95a   : > { %7595 = vperm.xlu1 %8491, %v8552_v23  }
 0x95e   : > { %7745 = vperm.xlu1 %8491, %v8554_v49  }
 0x962   : > { %7679 = vperm.xlu1 %8491, %v8556_v33  }
 0x966   : > { %7751 = vperm.xlu1 %8491, %v8558_v7  }
 0x96e   : > { %v7578_v8 = vpop.permute.xlu1 %7577 }
 0x96f   : > { %v7581_v37 = vpop.permute.xlu0 %7580  ;;  %v7605_v30 = vrot.slane %v7578_v8, %v7604_v24 }
 0x970   : > { %v7609_v52 = vrot.slane %v7581_v37, %v7604_v24 }
 0x972   : > { %v7635_v32 = vsel %vm7634_vm10, %v7609_v52, %v7605_v30 }
 0x973   : > { %v7584_v10 = vpop.permute.xlu0 %7583 }
 0x974   : > { %v7613_v59 = vrot.slane %v7584_v10, %v7604_v24 }
 0x976   : > { %v7637_v61 = vsel %vm7636_vm11, %v7613_v59, %v7635_v32 }
 0x977   : > { %v7731_v19 = vpop.permute.xlu0 %7730 }
 0x978   : > { %v7757_v43 = vrot.slane %v7731_v19, %v13884_v58 }
 0x97b   : > { %v7587_v36 = vpop.permute.xlu0 %7586 }
 0x97c   : > { %v7617_v60 = vrot.slane %v7587_v36, %v7604_v24 }
 0x97e   : > { %v7639_v12 = vsel %vm7638_vm12, %v7617_v60, %v7637_v61 }
 0x97f   : > { %v7737_v34 = vpop.permute.xlu0 %7736 }
 0x980   : > { %v7765_v48 = vrot.slane %v7737_v34, %v13884_v58 }
 0x9b5   : > { %v7659_v44 = vpop.permute.xlu1 %7658 }
 0x9b6   : > { %v7684_v11 = vrot.slane %v7659_v44, %v7604_v24 }
 0x9b7   : > { %v7671_v4 = vpop.permute.xlu0 %7670 }
 0x9b8   : > { %v7700_v46 = vrot.slane %v7671_v4, %v7604_v24 }
 0x9b9   : > { %v7662_v25 = vpop.permute.xlu1 %7661 }
 0x9ba   : > { %v7688_v28 = vrot.slane %v7662_v25, %v7604_v24 }
 0x9bb   : > { %v7593_v29 = vpop.permute.xlu0 %7592 }
 0x9bc   : > { %v7713_v21 = vsel %vm7634_vm10, %v7688_v28, %v7684_v11  ;;  %v7625_v55 = vrot.slane %v7593_v29, %v7604_v24 }
 0x9bd   : > { %v7665_v56 = vpop.permute.xlu1 %7664 }
 0x9be   : > { %v7692_v50 = vrot.slane %v7665_v56, %v7604_v24 }
 0x9bf   : > { %v7743_v16 = vpop.permute.xlu0 %7742 }
 0x9c0   : > { %v7714_v17 = vsel %vm7636_vm11, %v7692_v50, %v7713_v21  ;;  %v7773_v47 = vrot.slane %v7743_v16, %v13884_v58 }
 0x9c1   : > { %v7734_v22 = vpop.permute.xlu1 %7733 }
 0x9c2   : > { %v7761_v14 = vrot.slane %v7734_v22, %v13884_v58 }
 0x9c3   : > { %v7677_v57 = vpop.permute.xlu0 %7676 }
 0x9c4   : > { %v7786_v9 = vsel %vm7634_vm10, %v7761_v14, %v7757_v43  ;;  %v7708_v33 = vrot.slane %v7677_v57, %v7604_v24 }
 0x9c5   : > { %v7668_v18 = vpop.permute.xlu1 %7667  ;;  %v7787_v42 = vsel %vm7636_vm11, %v7765_v48, %v7786_v9 }
 0x9c6   : > { %v7696_v45 = vrot.slane %v7668_v18, %v7604_v24 }
 0x9c7   : > { %v7599_v3 = vpop.permute.xlu0 %7598 }
 0x9c8   : > { %v7715_v38 = vsel %vm7638_vm12, %v7696_v45, %v7714_v17  ;;  %v7633_v8 = vrot.slane %v7599_v3, %v7604_v24 }
 0x9c9   : > { %v7590_v53 = vpop.permute.xlu1 %7589  ;;  %v7716_v27 = vsel %vm7640_vm13, %v7700_v46, %v7715_v38 }
 0x9ca   : > { %v7621_v63 = vrot.slane %v7590_v53, %v7604_v24 }
 0x9cb   : > { %v7749_v7 = vpop.permute.xlu0 %7748 }
 0x9cc   : > { %v7641_v15 = vsel %vm7640_vm13, %v7621_v63, %v7639_v12  ;;  %v7781_v44 = vrot.slane %v7749_v7, %v13884_v58 }
 0x9cd   : > { %v7740_v39 = vpop.permute.xlu1 %7739  ;;  %v7643_v6 = vsel %vm7642_vm14, %v7625_v55, %v7641_v15 }
 0x9ce   : > { %v7769_v13 = vrot.slane %v7740_v39, %v13884_v58 }
 0x9d0   : > { %v7788_v1 = vsel %vm7638_vm12, %v7769_v13, %v7787_v42 }
 0x9d1   : > { %v7674_v51 = vpop.permute.xlu1 %7673  ;;  %v7789_v20 = vsel %vm7640_vm13, %v7773_v47, %v7788_v1 }
 0x9d2   : > { %v7704_v62 = vrot.slane %v7674_v51, %v7604_v24  ;;  %v7889_v51 = vpop.permute.xlu0 %7888 }
 0x9d4   : > { %v7717_v23 = vsel %vm7642_vm14, %v7704_v62, %v7716_v27 }
 0x9d5   : > { %v7596_v31 = vpop.permute.xlu1 %7595  ;;  %v7718_v19 = vsel %vm7644_vm15, %v7708_v33, %v7717_v23 }
 0x9d6   : > { %v7629_v41 = vrot.slane %v7596_v31, %v7604_v24 }
 0x9d8   : > { %v7645_v37 = vsel %vm7644_vm15, %v7629_v41, %v7643_v6 }
 0x9d9   : > { %v7746_v40 = vpop.permute.xlu1 %7745  ;;  %v7647_v56 = vsel %vm7646_vm1, %v7633_v8, %v7645_v37 }
 0x9da   : > { %v7777_v26 = vrot.slane %v7746_v40, %v13884_v58 }
 0x9dc   : > { %v7790_v10 = vsel %vm7642_vm14, %v7777_v26, %v7789_v20 }
 0x9dd   : > { %v7680_v49 = vpop.permute.xlu1 %7679  ;;  %v7791_v4 = vsel %vm7644_vm15, %v7781_v44, %v7790_v10 }
 0x9de   : > { %v7712_v0 = vrot.slane %v7680_v49, %v7604_v24  ;;  %v7893_v24 = vsub.s32 0, %v13880_v5 }
 0x9e0   : > { %v7719_v36 = vsel %vm7646_vm1, %v7712_v0, %v7718_v19 }
 0x9e1   : > { %v7752_v25 = vpop.permute.xlu1 %7751  ;;  %v7795_v22 = vsel %vm7794_vm2, %v7647_v56, %v7719_v36 }
 0x9e2   : > { %v7785_v34 = vrot.slane %v7752_v25, %v13884_v58  ;;  %v7894_v58 = vrot.slane %v7889_v51, %v7893_v24 }
 0x9e4   : > { %v7792_v18 = vsel %vm7646_vm1, %v7785_v34, %v7791_v4 }
 0x9e5   : > { %v7796_v29 = vsel %vm2854_vm0, %v7795_v22, %v7792_v18  ;;  %vm7977_vm0 = vcmask 57344  }
 0x9e6   : > { %8383 = vmatmul.mubr.msk.f32.vlgmr.msra.gmra.mxu0 %vm7806_vm3, %v7796_v29 }
 0xaa6   : > { %v7879_v53 = vpop.f32.mrf.mxu0 }
 0xaa7   : > { %v7880_v54 = vadd.f32 %v8366_v2, %v7879_v53 }
 0xaa8   : > { %v8384_v16 = vpop.f32.mrf.mxu0 }
 0xaa9   : > { %8559 = vtanh.f32 %v7880_v54 }
 0xab6   : > { %v8560_v39 = vpop.eup %8559 }
 0xab7   : > { %8386 = vmatpush3.xpose.msk.msra.mxu1 %vm7794_vm2, %v8560_v39 }
 0xaba   : > { %8388 = vmatmul.mubr.msk.f32.vlgmr.msra.gmra.mxu1 %vm7794_vm2, %v7884_v35 }
 0xb7a   : > { %v7967_v28 = vpop.f32.mrf.mxu1 }
 0xb7b   : > { %v7968_v57 = vadd.f32 %v7967_v28, %v7894_v58 }
 0xb7c   : > { %v8389_v50 = vpop.f32.mrf.mxu1 }
 0xb7d   : > { %v7971_v11 = vsub.f32 0.0, %v7968_v57 }
 0xb7f   : > { %v7972_v14 = vmul.f32 1.442695, %v7971_v11 }
 0xb81   : > { %8561 = vpow2.f32 %v7972_v14 }
 0xb8e   : > { %v8562_v45 = vpop.eup %8561 }
 0xb8f   : > { %v7974_v52 = vadd.f32 1.0, %v8562_v45 }
 0xb91   : > { %8563 = vrcp.f32 %v7974_v52 }
 0xb9e   : > { %v8564_v30 = vpop.eup %8563 }
 0xb9f   : > { %7978 = vst.msk [vmem:[%s415_s26] sm:$0x1] %vm7977_vm0, %v8564_v30 }
 0xba0 PF: > { %p24_p13 = scmp.ge.s32.totalorder %s9021_s24, 4   ;;  %s14200_s11 = smov %s8845_s12 }
 0xba1   : > { %s14201_s12 = smov %s8849_s13  ;;  %s14202_s13 = smov %s9032_s20 }
 0xba2   : > { %s14203_s14 = smov %s9021_s24  ;;  %26 = sbr.rel (!%p24_p13) target bundleno = 9 (0x9), region = 116 }
 0xba7   :  { %7996 = vsyncpa [#allocation4], 1 }
 0xba8   :  { %7998 = vsyncpa [#allocation4 + $0x1], 1 }
 0xba9   :  { %7999 = vsyncpa [#allocation6], 1 }
 0xbaa   :  { %8000 = vsyncpa [#allocation9], 1 }
 0xbab   :  { %8001 = vsyncpa [#allocation12], 1 }

</bundles_post_ra>
